<compile_context>
chip_gen: v7x
topology: tpu7x:2x2x1
jax: 0.10.0
libtpu: 0.0.40
codegen_flags: <defaults>
</compile_context>

<pallas_src>
import functools

import jax
import jax.numpy as jnp
from jax.experimental import pallas as pl
from jax.experimental.pallas import tpu as pltpu


def _round_up(x, m):
    return ((x + m - 1) // m) * m


# ---------------- fused 3x3 conv + bias + ReLU + 2x2 max-pool kernel ----------------

def _conv_relu_pool_kernel(x_ref, w_ref, b_ref, o_ref, pool_scr, *, H, Wp, Ho, Wo):
    """One image per grid step.

    x_ref    : (1, (H+3)*Wp, Cin)  bf16  flattened zero-padded NHWC image
    w_ref    : (9, Cin, Cout)      bf16  tap-major conv weights (grid-resident)
    b_ref    : (1, Cout)           f32   bias (grid-resident)
    o_ref    : (1, Ho, Wo, Cout)         pooled activations
    pool_scr : (Ho, Wp, Cout)      f32   VMEM scratch for the W-direction pool
    """
    cout = o_ref.shape[-1]
    M = H * Wp                         # conv rows, incl. (Wp - W) junk columns per row
    x = x_ref[0]                       # ((H+3)*Wp, Cin)

    # 3x3 conv = 9 shifted contiguous slices of the flat padded image; each tap
    # is an (M, Cin) @ (Cin, Cout) MXU matmul accumulated in f32.  Columns
    # w >= W of each row are garbage and are never read by the epilogue.
    acc = jnp.zeros((M, cout), jnp.float32)
    for kh in range(3):
        for kw in range(3):
            off = kh * Wp + kw
            acc = acc + jnp.dot(x[off:off + M, :], w_ref[kh * 3 + kw],
                                preferred_element_type=jnp.float32)

    y = jnp.maximum(acc + b_ref[...], 0.0)        # bias + ReLU in f32
    # (H*Wp, Cout) -> (H, Wp, Cout) is layout-free because Wp % 8 == 0.
    y = y.reshape(H, Wp, cout)

    # 2x2 max-pool, floor semantics.  H direction: pair-max via leading dims.
    y = y[:2 * Ho].reshape(Ho, 2, Wp, cout)
    hp = jnp.maximum(y[:, 0], y[:, 1])            # (Ho, Wp, Cout)

    # W direction: stride-2 reads from VMEM scratch (even vs. odd columns).
    pool_scr[...] = hp
    left = pool_scr[:, pl.ds(0, Wo, stride=2), :]
    right = pool_scr[:, pl.ds(1, Wo, stride=2), :]
    o_ref[0] = jnp.maximum(left, right).astype(o_ref.dtype)


def conv3x3_relu_pool(x_nhwc, w_taps, bias, *, compute_dtype=jnp.bfloat16):
    """3x3 conv (padding=1, stride=1) + bias + ReLU + MaxPool2d(2, 2), NHWC layout."""
    B, H, W, Cin = x_nhwc.shape
    Cout = w_taps.shape[-1]
    Ho, Wo = H // 2, W // 2

    # Keep the contraction dim >= 8 lanes (conv1 has Cin == 1): zero-pad channels.
    if Cin < 8:
        x_nhwc = jnp.pad(x_nhwc, ((0, 0), (0, 0), (0, 0), (0, 8 - Cin)))
        w_taps = jnp.pad(w_taps, ((0, 0), (0, 8 - Cin), (0, 0)))
        Cin = 8

    # Zero-pad spatially: 1 halo row/col for the conv, width rounded up to a
    # multiple of 8 (makes the in-kernel reshape layout-free) and 2 extra
    # bottom rows so every shifted tap slice stays in bounds.  Flatten (H, W)
    # so the kernel only ever slices a 2-D (rows, channels) array.
    Wp = _round_up(W + 2, 8)
    Hp = H + 3
    xp = jnp.pad(x_nhwc, ((0, 0), (1, 2), (1, Wp - W - 1), (0, 0)))
    x_flat = xp.reshape(B, Hp * Wp, Cin).astype(compute_dtype)

    kernel = functools.partial(_conv_relu_pool_kernel, H=H, Wp=Wp, Ho=Ho, Wo=Wo)
    return pl.pallas_call(
        kernel,
        out_shape=jax.ShapeDtypeStruct((B, Ho, Wo, Cout), compute_dtype),
        grid=(B,),
        in_specs=[
            pl.BlockSpec((1, Hp * Wp, Cin), lambda i: (i, 0, 0)),
            pl.BlockSpec((9, Cin, Cout), lambda i: (0, 0, 0)),
            pl.BlockSpec((1, Cout), lambda i: (0, 0)),
        ],
        out_specs=pl.BlockSpec((1, Ho, Wo, Cout), lambda i: (i, 0, 0, 0)),
        scratch_shapes=[pltpu.VMEM((Ho, Wp, Cout), jnp.float32)],
        compiler_params=pltpu.CompilerParams(dimension_semantics=("parallel",)),
    )(x_flat, w_taps.astype(compute_dtype),
      bias.reshape(1, Cout).astype(jnp.float32))


# ------------------------- fused fc1 + ReLU + fc2 kernel ----------------------------

def _fc_fused_kernel(x_ref, w1_ref, b1_ref, w2_ref, b2_ref, o_ref):
    h = jnp.dot(x_ref[...], w1_ref[...], preferred_element_type=jnp.float32)
    h = jnp.maximum(h + b1_ref[...], 0.0)
    y = jnp.dot(h.astype(w2_ref.dtype), w2_ref[...],
                preferred_element_type=jnp.float32)
    o_ref[...] = (y + b2_ref[...]).astype(o_ref.dtype)


def fc1_relu_fc2(x, w1, b1, w2, b2, *, compute_dtype=jnp.bfloat16, block_m=512):
    B, K = x.shape
    N1 = w1.shape[1]
    N2 = w2.shape[1]
    tm = min(block_m, B)
    Bp = _round_up(B, tm)
    if Bp != B:                                   # pad the tail row-tile
        x = jnp.pad(x, ((0, Bp - B), (0, 0)))
    out = pl.pallas_call(
        _fc_fused_kernel,
        out_shape=jax.ShapeDtypeStruct((Bp, N2), jnp.float32),
        grid=(Bp // tm,),
        in_specs=[
            pl.BlockSpec((tm, K), lambda i: (i, 0)),
            pl.BlockSpec((K, N1), lambda i: (0, 0)),
            pl.BlockSpec((1, N1), lambda i: (0, 0)),
            pl.BlockSpec((N1, N2), lambda i: (0, 0)),
            pl.BlockSpec((1, N2), lambda i: (0, 0)),
        ],
        out_specs=pl.BlockSpec((tm, N2), lambda i: (i, 0)),
        compiler_params=pltpu.CompilerParams(dimension_semantics=("parallel",)),
    )(x.astype(compute_dtype), w1.astype(compute_dtype),
      b1.reshape(1, N1).astype(jnp.float32),
      w2.astype(compute_dtype), b2.reshape(1, N2).astype(jnp.float32))
    return out[:B]


# ----------------------------------- parameters -------------------------------------

def init_params(key):
    """Parameters in the original PyTorch layouts."""
    ks = jax.random.split(key, 10)

    def u(k, shape, fan_in):
        bound = 1.0 / jnp.sqrt(float(fan_in))
        return jax.random.uniform(k, shape, jnp.float32, -bound, bound)

    return {
        "conv1_w": u(ks[0], (32, 1, 3, 3), 1 * 9),
        "conv1_b": u(ks[1], (32,), 1 * 9),
        "conv2_w": u(ks[2], (64, 32, 3, 3), 32 * 9),
        "conv2_b": u(ks[3], (64,), 32 * 9),
        "conv3_w": u(ks[4], (128, 64, 3, 3), 64 * 9),
        "conv3_b": u(ks[5], (128,), 64 * 9),
        "fc1_w": u(ks[6], (256, 128 * 3 * 3), 128 * 3 * 3),  # torch (out, in)
        "fc1_b": u(ks[7], (256,), 128 * 3 * 3),
        "fc2_w": u(ks[8], (10, 256), 256),
        "fc2_b": u(ks[9], (10,), 256),
    }


def prepare_params(p):
    """One-time layout conversion so the forward pass has zero per-call transposes.

    * conv weights (Cout, Cin, 3, 3) -> (9, Cin, Cout), tap-major (kh, kw).
    * fc1 (256, 1152) -> (1152, 256), with the input axis permuted from torch's
      NCHW flatten order (c*9 + h*3 + w) to our NHWC flatten order
      ((h*3 + w)*128 + c), so conv3's NHWC output can be flattened directly.
    * fc2 (10, 256) -> (256, 10).
    """
    def conv_taps(w):
        cout, cin = w.shape[0], w.shape[1]
        return jnp.transpose(w, (2, 3, 1, 0)).reshape(9, cin, cout)

    fc1 = p["fc1_w"].reshape(256, 128, 3, 3)            # (o, c, h, w)
    fc1 = jnp.transpose(fc1, (2, 3, 1, 0)).reshape(3 * 3 * 128, 256)
    return {
        "conv1_w": conv_taps(p["conv1_w"]), "conv1_b": p["conv1_b"],
        "conv2_w": conv_taps(p["conv2_w"]), "conv2_b": p["conv2_b"],
        "conv3_w": conv_taps(p["conv3_w"]), "conv3_b": p["conv3_b"],
        "fc1_w": fc1, "fc1_b": p["fc1_b"],
        "fc2_w": p["fc2_w"].T, "fc2_b": p["fc2_b"],
    }


# ------------------------------------- forward --------------------------------------

def deep_cnn_forward(params, x_nchw, *, compute_dtype=jnp.bfloat16):
    """DeepCNN forward (eval mode: Dropout is identity)."""
    x = jnp.transpose(x_nchw, (0, 2, 3, 1))                            # NCHW -> NHWC
    x = conv3x3_relu_pool(x, params["conv1_w"], params["conv1_b"],
                          compute_dtype=compute_dtype)                 # (B,14,14,32)
    x = conv3x3_relu_pool(x, params["conv2_w"], params["conv2_b"],
                          compute_dtype=compute_dtype)                 # (B,7,7,64)
    x = conv3x3_relu_pool(x, params["conv3_w"], params["conv3_b"],
                          compute_dtype=compute_dtype)                 # (B,3,3,128)
    # Dropout(0.25) is identity in eval/inference mode.
    x = x.reshape(x.shape[0], -1)          # NHWC flatten; fc1_w is pre-permuted
    return fc1_relu_fc2(x, params["fc1_w"], params["fc1_b"],
                        params["fc2_w"], params["fc2_b"],
                        compute_dtype=compute_dtype)                   # (B,10) f32


def _reference_forward(p, x_nchw):
    """Pure-XLA f32 reference in the original torch layouts (self-check only)."""
    def conv(x, w, b):
        y = jax.lax.conv_general_dilated(
            x, w, window_strides=(1, 1), padding=((1, 1), (1, 1)),
            dimension_numbers=("NCHW", "OIHW", "NCHW"))
        return jax.nn.relu(y + b[None, :, None, None])

    def pool(x):
        return jax.lax.reduce_window(x, -jnp.inf, jax.lax.max,
                                     (1, 1, 2, 2), (1, 1, 2, 2), "VALID")

    x = pool(conv(x_nchw, p["conv1_w"], p["conv1_b"]))
    x = pool(conv(x, p["conv2_w"], p["conv2_b"]))
    x = pool(conv(x, p["conv3_w"], p["conv3_b"]))
    x = x.reshape(x.shape[0], -1)
    x = jax.nn.relu(x @ p["fc1_w"].T + p["fc1_b"])
    return x @ p["fc2_w"].T + p["fc2_b"]


if __name__ == "__main__":
    key = jax.random.PRNGKey(0)
    k_param, k_x = jax.random.split(key)
    raw_params = init_params(k_param)
    params = prepare_params(raw_params)
    # fc1 expects 128*3*3 features => input spatial must be 28x28, 1 channel.
    x = jax.random.normal(k_x, (2, 1, 28, 28), jnp.float32)

    fwd = jax.jit(deep_cnn_forward)
    out = fwd(params, x)
    jax.block_until_ready(out)
    assert out.shape == (2, 10) and out.dtype == jnp.float32
    assert bool(jnp.all(jnp.isfinite(out)))

    # Sanity check against a pure-XLA f32 reference (loose tol: bf16 matmuls).
    ref = _reference_forward(raw_params, x)
    max_err = float(jnp.max(jnp.abs(out - ref)))
    assert max_err < 5e-2, f"mismatch vs reference: {max_err}"

    print("KERNEL_OK")
</pallas_src>

<mosaic_0001>
module attributes {stable_mosaic.version = 11 : i64} {
  func.func @_conv_relu_pool_kernel(%arg0: i32, %arg1: memref<1x992x8xbf16, #tpu.memory_space<vmem>>, %arg2: memref<9x8x32xbf16, #tpu.memory_space<vmem>>, %arg3: memref<1x32xf32, #tpu.memory_space<vmem>>, %arg4: memref<1x14x14x32xbf16, #tpu.memory_space<vmem>>, %arg5: memref<14x32x32xf32, #tpu.memory_space<vmem>>) attributes {dimension_semantics = [#tpu.dimension_semantics<parallel>], iteration_bounds = array<i64: 2>, scalar_prefetch = 0 : i64, scratch_operands = 1 : i64, tpu.core_type = #tpu.core_type<tc>, window_params = [{transform_indices = @transform_0, window_bounds = array<i64: 1, 992, 8>}, {pipeline_mode = #tpu.pipeline_mode<synchronous>, transform_indices = @transform_1, window_bounds = array<i64: 9, 8, 32>}, {pipeline_mode = #tpu.pipeline_mode<synchronous>, transform_indices = @transform_2, window_bounds = array<i64: 1, 32>}, {transform_indices = @transform_3, window_bounds = array<i64: 1, 14, 14, 32>}]} {
    %c0 = arith.constant 0 : index
    %c0_0 = arith.constant 0 : index
    %c0_1 = arith.constant 0 : index
    %0 = vector.load %arg1[%c0, %c0_0, %c0_1] : memref<1x992x8xbf16, #tpu.memory_space<vmem>>, vector<1x992x8xbf16>
    %1 = vector.shape_cast %0 : vector<1x992x8xbf16> to vector<992x8xbf16>
    %cst = arith.constant 0.000000e+00 : f32
    %2 = vector.broadcast %cst : f32 to vector<896x32xf32>
    %3 = vector.extract_strided_slice %1 {offsets = [0, 0], sizes = [896, 8], strides = [1, 1]} : vector<992x8xbf16> to vector<896x8xbf16>
    %c0_2 = arith.constant 0 : index
    %c0_3 = arith.constant 0 : index
    %c0_4 = arith.constant 0 : index
    %4 = vector.load %arg2[%c0_2, %c0_3, %c0_4] : memref<9x8x32xbf16, #tpu.memory_space<vmem>>, vector<1x8x32xbf16>
    %5 = vector.shape_cast %4 : vector<1x8x32xbf16> to vector<8x32xbf16>
    %cst_5 = arith.constant dense<0.000000e+00> : vector<896x32xf32>
    %6 = tpu.matmul %3, %5, %cst_5 {dimension_numbers = #tpu.dot_dimension_numbers<[1], [0], [0], [1], [0, 0, 1, 1], [], []>} : vector<896x8xbf16>, vector<8x32xbf16>, vector<896x32xf32> -> vector<896x32xf32>
    %7 = arith.addf %2, %6 : vector<896x32xf32>
    %8 = vector.extract_strided_slice %1 {offsets = [1, 0], sizes = [896, 8], strides = [1, 1]} : vector<992x8xbf16> to vector<896x8xbf16>
    %c1 = arith.constant 1 : index
    %c0_6 = arith.constant 0 : index
    %c0_7 = arith.constant 0 : index
    %9 = vector.load %arg2[%c1, %c0_6, %c0_7] : memref<9x8x32xbf16, #tpu.memory_space<vmem>>, vector<1x8x32xbf16>
    %10 = vector.shape_cast %9 : vector<1x8x32xbf16> to vector<8x32xbf16>
    %cst_8 = arith.constant dense<0.000000e+00> : vector<896x32xf32>
    %11 = tpu.matmul %8, %10, %cst_8 {dimension_numbers = #tpu.dot_dimension_numbers<[1], [0], [0], [1], [0, 0, 1, 1], [], []>} : vector<896x8xbf16>, vector<8x32xbf16>, vector<896x32xf32> -> vector<896x32xf32>
    %12 = arith.addf %7, %11 : vector<896x32xf32>
    %13 = vector.extract_strided_slice %1 {offsets = [2, 0], sizes = [896, 8], strides = [1, 1]} : vector<992x8xbf16> to vector<896x8xbf16>
    %c2 = arith.constant 2 : index
    %c0_9 = arith.constant 0 : index
    %c0_10 = arith.constant 0 : index
    %14 = vector.load %arg2[%c2, %c0_9, %c0_10] : memref<9x8x32xbf16, #tpu.memory_space<vmem>>, vector<1x8x32xbf16>
    %15 = vector.shape_cast %14 : vector<1x8x32xbf16> to vector<8x32xbf16>
    %cst_11 = arith.constant dense<0.000000e+00> : vector<896x32xf32>
    %16 = tpu.matmul %13, %15, %cst_11 {dimension_numbers = #tpu.dot_dimension_numbers<[1], [0], [0], [1], [0, 0, 1, 1], [], []>} : vector<896x8xbf16>, vector<8x32xbf16>, vector<896x32xf32> -> vector<896x32xf32>
    %17 = arith.addf %12, %16 : vector<896x32xf32>
    %18 = vector.extract_strided_slice %1 {offsets = [32, 0], sizes = [896, 8], strides = [1, 1]} : vector<992x8xbf16> to vector<896x8xbf16>
    %c3 = arith.constant 3 : index
    %c0_12 = arith.constant 0 : index
    %c0_13 = arith.constant 0 : index
    %19 = vector.load %arg2[%c3, %c0_12, %c0_13] : memref<9x8x32xbf16, #tpu.memory_space<vmem>>, vector<1x8x32xbf16>
    %20 = vector.shape_cast %19 : vector<1x8x32xbf16> to vector<8x32xbf16>
    %cst_14 = arith.constant dense<0.000000e+00> : vector<896x32xf32>
    %21 = tpu.matmul %18, %20, %cst_14 {dimension_numbers = #tpu.dot_dimension_numbers<[1], [0], [0], [1], [0, 0, 1, 1], [], []>} : vector<896x8xbf16>, vector<8x32xbf16>, vector<896x32xf32> -> vector<896x32xf32>
    %22 = arith.addf %17, %21 : vector<896x32xf32>
    %23 = vector.extract_strided_slice %1 {offsets = [33, 0], sizes = [896, 8], strides = [1, 1]} : vector<992x8xbf16> to vector<896x8xbf16>
    %c4 = arith.constant 4 : index
    %c0_15 = arith.constant 0 : index
    %c0_16 = arith.constant 0 : index
    %24 = vector.load %arg2[%c4, %c0_15, %c0_16] : memref<9x8x32xbf16, #tpu.memory_space<vmem>>, vector<1x8x32xbf16>
    %25 = vector.shape_cast %24 : vector<1x8x32xbf16> to vector<8x32xbf16>
    %cst_17 = arith.constant dense<0.000000e+00> : vector<896x32xf32>
    %26 = tpu.matmul %23, %25, %cst_17 {dimension_numbers = #tpu.dot_dimension_numbers<[1], [0], [0], [1], [0, 0, 1, 1], [], []>} : vector<896x8xbf16>, vector<8x32xbf16>, vector<896x32xf32> -> vector<896x32xf32>
    %27 = arith.addf %22, %26 : vector<896x32xf32>
    %28 = vector.extract_strided_slice %1 {offsets = [34, 0], sizes = [896, 8], strides = [1, 1]} : vector<992x8xbf16> to vector<896x8xbf16>
    %c5 = arith.constant 5 : index
    %c0_18 = arith.constant 0 : index
    %c0_19 = arith.constant 0 : index
    %29 = vector.load %arg2[%c5, %c0_18, %c0_19] : memref<9x8x32xbf16, #tpu.memory_space<vmem>>, vector<1x8x32xbf16>
    %30 = vector.shape_cast %29 : vector<1x8x32xbf16> to vector<8x32xbf16>
    %cst_20 = arith.constant dense<0.000000e+00> : vector<896x32xf32>
    %31 = tpu.matmul %28, %30, %cst_20 {dimension_numbers = #tpu.dot_dimension_numbers<[1], [0], [0], [1], [0, 0, 1, 1], [], []>} : vector<896x8xbf16>, vector<8x32xbf16>, vector<896x32xf32> -> vector<896x32xf32>
    %32 = arith.addf %27, %31 : vector<896x32xf32>
    %33 = vector.extract_strided_slice %1 {offsets = [64, 0], sizes = [896, 8], strides = [1, 1]} : vector<992x8xbf16> to vector<896x8xbf16>
    %c6 = arith.constant 6 : index
    %c0_21 = arith.constant 0 : index
    %c0_22 = arith.constant 0 : index
    %34 = vector.load %arg2[%c6, %c0_21, %c0_22] : memref<9x8x32xbf16, #tpu.memory_space<vmem>>, vector<1x8x32xbf16>
    %35 = vector.shape_cast %34 : vector<1x8x32xbf16> to vector<8x32xbf16>
    %cst_23 = arith.constant dense<0.000000e+00> : vector<896x32xf32>
    %36 = tpu.matmul %33, %35, %cst_23 {dimension_numbers = #tpu.dot_dimension_numbers<[1], [0], [0], [1], [0, 0, 1, 1], [], []>} : vector<896x8xbf16>, vector<8x32xbf16>, vector<896x32xf32> -> vector<896x32xf32>
    %37 = arith.addf %32, %36 : vector<896x32xf32>
    %38 = vector.extract_strided_slice %1 {offsets = [65, 0], sizes = [896, 8], strides = [1, 1]} : vector<992x8xbf16> to vector<896x8xbf16>
    %c7 = arith.constant 7 : index
    %c0_24 = arith.constant 0 : index
    %c0_25 = arith.constant 0 : index
    %39 = vector.load %arg2[%c7, %c0_24, %c0_25] : memref<9x8x32xbf16, #tpu.memory_space<vmem>>, vector<1x8x32xbf16>
    %40 = vector.shape_cast %39 : vector<1x8x32xbf16> to vector<8x32xbf16>
    %cst_26 = arith.constant dense<0.000000e+00> : vector<896x32xf32>
    %41 = tpu.matmul %38, %40, %cst_26 {dimension_numbers = #tpu.dot_dimension_numbers<[1], [0], [0], [1], [0, 0, 1, 1], [], []>} : vector<896x8xbf16>, vector<8x32xbf16>, vector<896x32xf32> -> vector<896x32xf32>
    %42 = arith.addf %37, %41 : vector<896x32xf32>
    %43 = vector.extract_strided_slice %1 {offsets = [66, 0], sizes = [896, 8], strides = [1, 1]} : vector<992x8xbf16> to vector<896x8xbf16>
    %c8 = arith.constant 8 : index
    %c0_27 = arith.constant 0 : index
    %c0_28 = arith.constant 0 : index
    %44 = vector.load %arg2[%c8, %c0_27, %c0_28] : memref<9x8x32xbf16, #tpu.memory_space<vmem>>, vector<1x8x32xbf16>
    %45 = vector.shape_cast %44 : vector<1x8x32xbf16> to vector<8x32xbf16>
    %cst_29 = arith.constant dense<0.000000e+00> : vector<896x32xf32>
    %46 = tpu.matmul %43, %45, %cst_29 {dimension_numbers = #tpu.dot_dimension_numbers<[1], [0], [0], [1], [0, 0, 1, 1], [], []>} : vector<896x8xbf16>, vector<8x32xbf16>, vector<896x32xf32> -> vector<896x32xf32>
    %47 = arith.addf %42, %46 : vector<896x32xf32>
    %c0_30 = arith.constant 0 : index
    %c0_31 = arith.constant 0 : index
    %48 = vector.load %arg3[%c0_30, %c0_31] : memref<1x32xf32, #tpu.memory_space<vmem>>, vector<1x32xf32>
    %49 = vector.broadcast %48 : vector<1x32xf32> to vector<896x32xf32>
    %50 = arith.addf %47, %49 : vector<896x32xf32>
    %cst_32 = arith.constant 0.000000e+00 : f32
    %51 = vector.broadcast %cst_32 : f32 to vector<896x32xf32>
    %52 = arith.maximumf %50, %51 : vector<896x32xf32>
    %53 = vector.shape_cast %52 : vector<896x32xf32> to vector<28x32x32xf32>
    %54 = vector.shape_cast %53 : vector<28x32x32xf32> to vector<14x2x32x32xf32>
    %55 = vector.extract_strided_slice %54 {offsets = [0, 0, 0, 0], sizes = [14, 1, 32, 32], strides = [1, 1, 1, 1]} : vector<14x2x32x32xf32> to vector<14x1x32x32xf32>
    %56 = vector.shape_cast %55 : vector<14x1x32x32xf32> to vector<14x32x32xf32>
    %57 = vector.extract_strided_slice %54 {offsets = [0, 1, 0, 0], sizes = [14, 1, 32, 32], strides = [1, 1, 1, 1]} : vector<14x2x32x32xf32> to vector<14x1x32x32xf32>
    %58 = vector.shape_cast %57 : vector<14x1x32x32xf32> to vector<14x32x32xf32>
    %59 = arith.maximumf %56, %58 : vector<14x32x32xf32>
    %c0_33 = arith.constant 0 : index
    %c0_34 = arith.constant 0 : index
    %c0_35 = arith.constant 0 : index
    %60 = vector.load %arg5[%c0_33, %c0_34, %c0_35] : memref<14x32x32xf32, #tpu.memory_space<vmem>>, vector<14x32x32xf32>
    tpu.vector_store %arg5[%c0_33, %c0_34, %c0_35], %59 {strides = array<i32>} : memref<14x32x32xf32, #tpu.memory_space<vmem>>, vector<14x32x32xf32>,
    %c0_36 = arith.constant 0 : index
    %c0_37 = arith.constant 0 : index
    %c0_38 = arith.constant 0 : index
    %61 = tpu.strided_load %arg5[%c0_36, %c0_37, %c0_38] {strides = array<i32: 1, 2, 1>} : memref<14x32x32xf32, #tpu.memory_space<vmem>>, vector<14x14x32xf32>
    %c0_39 = arith.constant 0 : index
    %c1_40 = arith.constant 1 : index
    %c0_41 = arith.constant 0 : index
    %62 = tpu.strided_load %arg5[%c0_39, %c1_40, %c0_41] {strides = array<i32: 1, 2, 1>} : memref<14x32x32xf32, #tpu.memory_space<vmem>>, vector<14x14x32xf32>
    %63 = arith.maximumf %61, %62 : vector<14x14x32xf32>
    %64 = arith.truncf %63 : vector<14x14x32xf32> to vector<14x14x32xbf16>
    %c0_42 = arith.constant 0 : index
    %c0_43 = arith.constant 0 : index
    %c0_44 = arith.constant 0 : index
    %c0_45 = arith.constant 0 : index
    %65 = vector.load %arg4[%c0_42, %c0_43, %c0_44, %c0_45] : memref<1x14x14x32xbf16, #tpu.memory_space<vmem>>, vector<1x14x14x32xbf16>
    %66 = vector.shape_cast %65 : vector<1x14x14x32xbf16> to vector<14x14x32xbf16>
    %67 = vector.shape_cast %64 : vector<14x14x32xbf16> to vector<1x14x14x32xbf16>
    tpu.vector_store %arg4[%c0_42, %c0_43, %c0_44, %c0_45], %67 {strides = array<i32>} : memref<1x14x14x32xbf16, #tpu.memory_space<vmem>>, vector<1x14x14x32xbf16>,
    return
  }
  func.func @transform_0(%arg0: i32) -> (i32, i32, i32) {
    %c0_i32 = arith.constant 0 : i32
    %c0_i32_0 = arith.constant 0 : i32
    %c0_i32_1 = arith.constant 0 : i32
    return %arg0, %c0_i32, %c0_i32_0 : i32, i32, i32
  }
  func.func @transform_1(%arg0: i32) -> (i32, i32, i32) {
    %c0_i32 = arith.constant 0 : i32
    %c0_i32_0 = arith.constant 0 : i32
    %c0_i32_1 = arith.constant 0 : i32
    %c0_i32_2 = arith.constant 0 : i32
    return %c0_i32, %c0_i32_0, %c0_i32_1 : i32, i32, i32
  }
  func.func @transform_2(%arg0: i32) -> (i32, i32) {
    %c0_i32 = arith.constant 0 : i32
    %c0_i32_0 = arith.constant 0 : i32
    %c0_i32_1 = arith.constant 0 : i32
    return %c0_i32, %c0_i32_0 : i32, i32
  }
  func.func @transform_3(%arg0: i32) -> (i32, i32, i32, i32) {
    %c0_i32 = arith.constant 0 : i32
    %c0_i32_0 = arith.constant 0 : i32
    %c0_i32_1 = arith.constant 0 : i32
    %c0_i32_2 = arith.constant 0 : i32
    return %arg0, %c0_i32, %c0_i32_0, %c0_i32_1 : i32, i32, i32, i32
  }
}

module attributes {stable_mosaic.version = 11 : i64} {
  func.func @_conv_relu_pool_kernel(%arg0: i32, %arg1: memref<1x272x32xbf16, #tpu.memory_space<vmem>>, %arg2: memref<9x32x64xbf16, #tpu.memory_space<vmem>>, %arg3: memref<1x64xf32, #tpu.memory_space<vmem>>, %arg4: memref<1x7x7x64xbf16, #tpu.memory_space<vmem>>, %arg5: memref<7x16x64xf32, #tpu.memory_space<vmem>>) attributes {dimension_semantics = [#tpu.dimension_semantics<parallel>], iteration_bounds = array<i64: 2>, scalar_prefetch = 0 : i64, scratch_operands = 1 : i64, tpu.core_type = #tpu.core_type<tc>, window_params = [{transform_indices = @transform_0, window_bounds = array<i64: 1, 272, 32>}, {pipeline_mode = #tpu.pipeline_mode<synchronous>, transform_indices = @transform_1, window_bounds = array<i64: 9, 32, 64>}, {pipeline_mode = #tpu.pipeline_mode<synchronous>, transform_indices = @transform_2, window_bounds = array<i64: 1, 64>}, {transform_indices = @transform_3, window_bounds = array<i64: 1, 7, 7, 64>}]} {
    %c0 = arith.constant 0 : index
    %c0_0 = arith.constant 0 : index
    %c0_1 = arith.constant 0 : index
    %0 = vector.load %arg1[%c0, %c0_0, %c0_1] : memref<1x272x32xbf16, #tpu.memory_space<vmem>>, vector<1x272x32xbf16>
    %1 = vector.shape_cast %0 : vector<1x272x32xbf16> to vector<272x32xbf16>
    %cst = arith.constant 0.000000e+00 : f32
    %2 = vector.broadcast %cst : f32 to vector<224x64xf32>
    %3 = vector.extract_strided_slice %1 {offsets = [0, 0], sizes = [224, 32], strides = [1, 1]} : vector<272x32xbf16> to vector<224x32xbf16>
    %c0_2 = arith.constant 0 : index
    %c0_3 = arith.constant 0 : index
    %c0_4 = arith.constant 0 : index
    %4 = vector.load %arg2[%c0_2, %c0_3, %c0_4] : memref<9x32x64xbf16, #tpu.memory_space<vmem>>, vector<1x32x64xbf16>
    %5 = vector.shape_cast %4 : vector<1x32x64xbf16> to vector<32x64xbf16>
    %cst_5 = arith.constant dense<0.000000e+00> : vector<224x64xf32>
    %6 = tpu.matmul %3, %5, %cst_5 {dimension_numbers = #tpu.dot_dimension_numbers<[1], [0], [0], [1], [0, 0, 1, 1], [], []>} : vector<224x32xbf16>, vector<32x64xbf16>, vector<224x64xf32> -> vector<224x64xf32>
    %7 = arith.addf %2, %6 : vector<224x64xf32>
    %8 = vector.extract_strided_slice %1 {offsets = [1, 0], sizes = [224, 32], strides = [1, 1]} : vector<272x32xbf16> to vector<224x32xbf16>
    %c1 = arith.constant 1 : index
    %c0_6 = arith.constant 0 : index
    %c0_7 = arith.constant 0 : index
    %9 = vector.load %arg2[%c1, %c0_6, %c0_7] : memref<9x32x64xbf16, #tpu.memory_space<vmem>>, vector<1x32x64xbf16>
    %10 = vector.shape_cast %9 : vector<1x32x64xbf16> to vector<32x64xbf16>
    %cst_8 = arith.constant dense<0.000000e+00> : vector<224x64xf32>
    %11 = tpu.matmul %8, %10, %cst_8 {dimension_numbers = #tpu.dot_dimension_numbers<[1], [0], [0], [1], [0, 0, 1, 1], [], []>} : vector<224x32xbf16>, vector<32x64xbf16>, vector<224x64xf32> -> vector<224x64xf32>
    %12 = arith.addf %7, %11 : vector<224x64xf32>
    %13 = vector.extract_strided_slice %1 {offsets = [2, 0], sizes = [224, 32], strides = [1, 1]} : vector<272x32xbf16> to vector<224x32xbf16>
    %c2 = arith.constant 2 : index
    %c0_9 = arith.constant 0 : index
    %c0_10 = arith.constant 0 : index
    %14 = vector.load %arg2[%c2, %c0_9, %c0_10] : memref<9x32x64xbf16, #tpu.memory_space<vmem>>, vector<1x32x64xbf16>
    %15 = vector.shape_cast %14 : vector<1x32x64xbf16> to vector<32x64xbf16>
    %cst_11 = arith.constant dense<0.000000e+00> : vector<224x64xf32>
    %16 = tpu.matmul %13, %15, %cst_11 {dimension_numbers = #tpu.dot_dimension_numbers<[1], [0], [0], [1], [0, 0, 1, 1], [], []>} : vector<224x32xbf16>, vector<32x64xbf16>, vector<224x64xf32> -> vector<224x64xf32>
    %17 = arith.addf %12, %16 : vector<224x64xf32>
    %18 = vector.extract_strided_slice %1 {offsets = [16, 0], sizes = [224, 32], strides = [1, 1]} : vector<272x32xbf16> to vector<224x32xbf16>
    %c3 = arith.constant 3 : index
    %c0_12 = arith.constant 0 : index
    %c0_13 = arith.constant 0 : index
    %19 = vector.load %arg2[%c3, %c0_12, %c0_13] : memref<9x32x64xbf16, #tpu.memory_space<vmem>>, vector<1x32x64xbf16>
    %20 = vector.shape_cast %19 : vector<1x32x64xbf16> to vector<32x64xbf16>
    %cst_14 = arith.constant dense<0.000000e+00> : vector<224x64xf32>
    %21 = tpu.matmul %18, %20, %cst_14 {dimension_numbers = #tpu.dot_dimension_numbers<[1], [0], [0], [1], [0, 0, 1, 1], [], []>} : vector<224x32xbf16>, vector<32x64xbf16>, vector<224x64xf32> -> vector<224x64xf32>
    %22 = arith.addf %17, %21 : vector<224x64xf32>
    %23 = vector.extract_strided_slice %1 {offsets = [17, 0], sizes = [224, 32], strides = [1, 1]} : vector<272x32xbf16> to vector<224x32xbf16>
    %c4 = arith.constant 4 : index
    %c0_15 = arith.constant 0 : index
    %c0_16 = arith.constant 0 : index
    %24 = vector.load %arg2[%c4, %c0_15, %c0_16] : memref<9x32x64xbf16, #tpu.memory_space<vmem>>, vector<1x32x64xbf16>
    %25 = vector.shape_cast %24 : vector<1x32x64xbf16> to vector<32x64xbf16>
    %cst_17 = arith.constant dense<0.000000e+00> : vector<224x64xf32>
    %26 = tpu.matmul %23, %25, %cst_17 {dimension_numbers = #tpu.dot_dimension_numbers<[1], [0], [0], [1], [0, 0, 1, 1], [], []>} : vector<224x32xbf16>, vector<32x64xbf16>, vector<224x64xf32> -> vector<224x64xf32>
    %27 = arith.addf %22, %26 : vector<224x64xf32>
    %28 = vector.extract_strided_slice %1 {offsets = [18, 0], sizes = [224, 32], strides = [1, 1]} : vector<272x32xbf16> to vector<224x32xbf16>
    %c5 = arith.constant 5 : index
    %c0_18 = arith.constant 0 : index
    %c0_19 = arith.constant 0 : index
    %29 = vector.load %arg2[%c5, %c0_18, %c0_19] : memref<9x32x64xbf16, #tpu.memory_space<vmem>>, vector<1x32x64xbf16>
    %30 = vector.shape_cast %29 : vector<1x32x64xbf16> to vector<32x64xbf16>
    %cst_20 = arith.constant dense<0.000000e+00> : vector<224x64xf32>
    %31 = tpu.matmul %28, %30, %cst_20 {dimension_numbers = #tpu.dot_dimension_numbers<[1], [0], [0], [1], [0, 0, 1, 1], [], []>} : vector<224x32xbf16>, vector<32x64xbf16>, vector<224x64xf32> -> vector<224x64xf32>
    %32 = arith.addf %27, %31 : vector<224x64xf32>
    %33 = vector.extract_strided_slice %1 {offsets = [32, 0], sizes = [224, 32], strides = [1, 1]} : vector<272x32xbf16> to vector<224x32xbf16>
    %c6 = arith.constant 6 : index
    %c0_21 = arith.constant 0 : index
    %c0_22 = arith.constant 0 : index
    %34 = vector.load %arg2[%c6, %c0_21, %c0_22] : memref<9x32x64xbf16, #tpu.memory_space<vmem>>, vector<1x32x64xbf16>
    %35 = vector.shape_cast %34 : vector<1x32x64xbf16> to vector<32x64xbf16>
    %cst_23 = arith.constant dense<0.000000e+00> : vector<224x64xf32>
    %36 = tpu.matmul %33, %35, %cst_23 {dimension_numbers = #tpu.dot_dimension_numbers<[1], [0], [0], [1], [0, 0, 1, 1], [], []>} : vector<224x32xbf16>, vector<32x64xbf16>, vector<224x64xf32> -> vector<224x64xf32>
    %37 = arith.addf %32, %36 : vector<224x64xf32>
    %38 = vector.extract_strided_slice %1 {offsets = [33, 0], sizes = [224, 32], strides = [1, 1]} : vector<272x32xbf16> to vector<224x32xbf16>
    %c7 = arith.constant 7 : index
    %c0_24 = arith.constant 0 : index
    %c0_25 = arith.constant 0 : index
    %39 = vector.load %arg2[%c7, %c0_24, %c0_25] : memref<9x32x64xbf16, #tpu.memory_space<vmem>>, vector<1x32x64xbf16>
    %40 = vector.shape_cast %39 : vector<1x32x64xbf16> to vector<32x64xbf16>
    %cst_26 = arith.constant dense<0.000000e+00> : vector<224x64xf32>
    %41 = tpu.matmul %38, %40, %cst_26 {dimension_numbers = #tpu.dot_dimension_numbers<[1], [0], [0], [1], [0, 0, 1, 1], [], []>} : vector<224x32xbf16>, vector<32x64xbf16>, vector<224x64xf32> -> vector<224x64xf32>
    %42 = arith.addf %37, %41 : vector<224x64xf32>
    %43 = vector.extract_strided_slice %1 {offsets = [34, 0], sizes = [224, 32], strides = [1, 1]} : vector<272x32xbf16> to vector<224x32xbf16>
    %c8 = arith.constant 8 : index
    %c0_27 = arith.constant 0 : index
    %c0_28 = arith.constant 0 : index
    %44 = vector.load %arg2[%c8, %c0_27, %c0_28] : memref<9x32x64xbf16, #tpu.memory_space<vmem>>, vector<1x32x64xbf16>
    %45 = vector.shape_cast %44 : vector<1x32x64xbf16> to vector<32x64xbf16>
    %cst_29 = arith.constant dense<0.000000e+00> : vector<224x64xf32>
    %46 = tpu.matmul %43, %45, %cst_29 {dimension_numbers = #tpu.dot_dimension_numbers<[1], [0], [0], [1], [0, 0, 1, 1], [], []>} : vector<224x32xbf16>, vector<32x64xbf16>, vector<224x64xf32> -> vector<224x64xf32>
    %47 = arith.addf %42, %46 : vector<224x64xf32>
    %c0_30 = arith.constant 0 : index
    %c0_31 = arith.constant 0 : index
    %48 = vector.load %arg3[%c0_30, %c0_31] : memref<1x64xf32, #tpu.memory_space<vmem>>, vector<1x64xf32>
    %49 = vector.broadcast %48 : vector<1x64xf32> to vector<224x64xf32>
    %50 = arith.addf %47, %49 : vector<224x64xf32>
    %cst_32 = arith.constant 0.000000e+00 : f32
    %51 = vector.broadcast %cst_32 : f32 to vector<224x64xf32>
    %52 = arith.maximumf %50, %51 : vector<224x64xf32>
    %53 = vector.shape_cast %52 : vector<224x64xf32> to vector<14x16x64xf32>
    %54 = vector.shape_cast %53 : vector<14x16x64xf32> to vector<7x2x16x64xf32>
    %55 = vector.extract_strided_slice %54 {offsets = [0, 0, 0, 0], sizes = [7, 1, 16, 64], strides = [1, 1, 1, 1]} : vector<7x2x16x64xf32> to vector<7x1x16x64xf32>
    %56 = vector.shape_cast %55 : vector<7x1x16x64xf32> to vector<7x16x64xf32>
    %57 = vector.extract_strided_slice %54 {offsets = [0, 1, 0, 0], sizes = [7, 1, 16, 64], strides = [1, 1, 1, 1]} : vector<7x2x16x64xf32> to vector<7x1x16x64xf32>
    %58 = vector.shape_cast %57 : vector<7x1x16x64xf32> to vector<7x16x64xf32>
    %59 = arith.maximumf %56, %58 : vector<7x16x64xf32>
    %c0_33 = arith.constant 0 : index
    %c0_34 = arith.constant 0 : index
    %c0_35 = arith.constant 0 : index
    %60 = vector.load %arg5[%c0_33, %c0_34, %c0_35] : memref<7x16x64xf32, #tpu.memory_space<vmem>>, vector<7x16x64xf32>
    tpu.vector_store %arg5[%c0_33, %c0_34, %c0_35], %59 {strides = array<i32>} : memref<7x16x64xf32, #tpu.memory_space<vmem>>, vector<7x16x64xf32>,
    %c0_36 = arith.constant 0 : index
    %c0_37 = arith.constant 0 : index
    %c0_38 = arith.constant 0 : index
    %61 = tpu.strided_load %arg5[%c0_36, %c0_37, %c0_38] {strides = array<i32: 1, 2, 1>} : memref<7x16x64xf32, #tpu.memory_space<vmem>>, vector<7x7x64xf32>
    %c0_39 = arith.constant 0 : index
    %c1_40 = arith.constant 1 : index
    %c0_41 = arith.constant 0 : index
    %62 = tpu.strided_load %arg5[%c0_39, %c1_40, %c0_41] {strides = array<i32: 1, 2, 1>} : memref<7x16x64xf32, #tpu.memory_space<vmem>>, vector<7x7x64xf32>
    %63 = arith.maximumf %61, %62 : vector<7x7x64xf32>
    %64 = arith.truncf %63 : vector<7x7x64xf32> to vector<7x7x64xbf16>
    %c0_42 = arith.constant 0 : index
    %c0_43 = arith.constant 0 : index
    %c0_44 = arith.constant 0 : index
    %c0_45 = arith.constant 0 : index
    %65 = vector.load %arg4[%c0_42, %c0_43, %c0_44, %c0_45] : memref<1x7x7x64xbf16, #tpu.memory_space<vmem>>, vector<1x7x7x64xbf16>
    %66 = vector.shape_cast %65 : vector<1x7x7x64xbf16> to vector<7x7x64xbf16>
    %67 = vector.shape_cast %64 : vector<7x7x64xbf16> to vector<1x7x7x64xbf16>
    tpu.vector_store %arg4[%c0_42, %c0_43, %c0_44, %c0_45], %67 {strides = array<i32>} : memref<1x7x7x64xbf16, #tpu.memory_space<vmem>>, vector<1x7x7x64xbf16>,
    return
  }
  func.func @transform_0(%arg0: i32) -> (i32, i32, i32) {
    %c0_i32 = arith.constant 0 : i32
    %c0_i32_0 = arith.constant 0 : i32
    %c0_i32_1 = arith.constant 0 : i32
    return %arg0, %c0_i32, %c0_i32_0 : i32, i32, i32
  }
  func.func @transform_1(%arg0: i32) -> (i32, i32, i32) {
    %c0_i32 = arith.constant 0 : i32
    %c0_i32_0 = arith.constant 0 : i32
    %c0_i32_1 = arith.constant 0 : i32
    %c0_i32_2 = arith.constant 0 : i32
    return %c0_i32, %c0_i32_0, %c0_i32_1 : i32, i32, i32
  }
  func.func @transform_2(%arg0: i32) -> (i32, i32) {
    %c0_i32 = arith.constant 0 : i32
    %c0_i32_0 = arith.constant 0 : i32
    %c0_i32_1 = arith.constant 0 : i32
    return %c0_i32, %c0_i32_0 : i32, i32
  }
  func.func @transform_3(%arg0: i32) -> (i32, i32, i32, i32) {
    %c0_i32 = arith.constant 0 : i32
    %c0_i32_0 = arith.constant 0 : i32
    %c0_i32_1 = arith.constant 0 : i32
    %c0_i32_2 = arith.constant 0 : i32
    return %arg0, %c0_i32, %c0_i32_0, %c0_i32_1 : i32, i32, i32, i32
  }
}

module attributes {stable_mosaic.version = 11 : i64} {
  func.func @_conv_relu_pool_kernel(%arg0: i32, %arg1: memref<1x160x64xbf16, #tpu.memory_space<vmem>>, %arg2: memref<9x64x128xbf16, #tpu.memory_space<vmem>>, %arg3: memref<1x128xf32, #tpu.memory_space<vmem>>, %arg4: memref<1x3x3x128xbf16, #tpu.memory_space<vmem>>, %arg5: memref<3x16x128xf32, #tpu.memory_space<vmem>>) attributes {dimension_semantics = [#tpu.dimension_semantics<parallel>], iteration_bounds = array<i64: 2>, scalar_prefetch = 0 : i64, scratch_operands = 1 : i64, tpu.core_type = #tpu.core_type<tc>, window_params = [{transform_indices = @transform_0, window_bounds = array<i64: 1, 160, 64>}, {pipeline_mode = #tpu.pipeline_mode<synchronous>, transform_indices = @transform_1, window_bounds = array<i64: 9, 64, 128>}, {pipeline_mode = #tpu.pipeline_mode<synchronous>, transform_indices = @transform_2, window_bounds = array<i64: 1, 128>}, {transform_indices = @transform_3, window_bounds = array<i64: 1, 3, 3, 128>}]} {
    %c0 = arith.constant 0 : index
    %c0_0 = arith.constant 0 : index
    %c0_1 = arith.constant 0 : index
    %0 = vector.load %arg1[%c0, %c0_0, %c0_1] : memref<1x160x64xbf16, #tpu.memory_space<vmem>>, vector<1x160x64xbf16>
    %1 = vector.shape_cast %0 : vector<1x160x64xbf16> to vector<160x64xbf16>
    %cst = arith.constant 0.000000e+00 : f32
    %2 = vector.broadcast %cst : f32 to vector<112x128xf32>
    %3 = vector.extract_strided_slice %1 {offsets = [0, 0], sizes = [112, 64], strides = [1, 1]} : vector<160x64xbf16> to vector<112x64xbf16>
    %c0_2 = arith.constant 0 : index
    %c0_3 = arith.constant 0 : index
    %c0_4 = arith.constant 0 : index
    %4 = vector.load %arg2[%c0_2, %c0_3, %c0_4] : memref<9x64x128xbf16, #tpu.memory_space<vmem>>, vector<1x64x128xbf16>
    %5 = vector.shape_cast %4 : vector<1x64x128xbf16> to vector<64x128xbf16>
    %cst_5 = arith.constant dense<0.000000e+00> : vector<112x128xf32>
    %6 = tpu.matmul %3, %5, %cst_5 {dimension_numbers = #tpu.dot_dimension_numbers<[1], [0], [0], [1], [0, 0, 1, 1], [], []>} : vector<112x64xbf16>, vector<64x128xbf16>, vector<112x128xf32> -> vector<112x128xf32>
    %7 = arith.addf %2, %6 : vector<112x128xf32>
    %8 = vector.extract_strided_slice %1 {offsets = [1, 0], sizes = [112, 64], strides = [1, 1]} : vector<160x64xbf16> to vector<112x64xbf16>
    %c1 = arith.constant 1 : index
    %c0_6 = arith.constant 0 : index
    %c0_7 = arith.constant 0 : index
    %9 = vector.load %arg2[%c1, %c0_6, %c0_7] : memref<9x64x128xbf16, #tpu.memory_space<vmem>>, vector<1x64x128xbf16>
    %10 = vector.shape_cast %9 : vector<1x64x128xbf16> to vector<64x128xbf16>
    %cst_8 = arith.constant dense<0.000000e+00> : vector<112x128xf32>
    %11 = tpu.matmul %8, %10, %cst_8 {dimension_numbers = #tpu.dot_dimension_numbers<[1], [0], [0], [1], [0, 0, 1, 1], [], []>} : vector<112x64xbf16>, vector<64x128xbf16>, vector<112x128xf32> -> vector<112x128xf32>
    %12 = arith.addf %7, %11 : vector<112x128xf32>
    %13 = vector.extract_strided_slice %1 {offsets = [2, 0], sizes = [112, 64], strides = [1, 1]} : vector<160x64xbf16> to vector<112x64xbf16>
    %c2 = arith.constant 2 : index
    %c0_9 = arith.constant 0 : index
    %c0_10 = arith.constant 0 : index
    %14 = vector.load %arg2[%c2, %c0_9, %c0_10] : memref<9x64x128xbf16, #tpu.memory_space<vmem>>, vector<1x64x128xbf16>
    %15 = vector.shape_cast %14 : vector<1x64x128xbf16> to vector<64x128xbf16>
    %cst_11 = arith.constant dense<0.000000e+00> : vector<112x128xf32>
    %16 = tpu.matmul %13, %15, %cst_11 {dimension_numbers = #tpu.dot_dimension_numbers<[1], [0], [0], [1], [0, 0, 1, 1], [], []>} : vector<112x64xbf16>, vector<64x128xbf16>, vector<112x128xf32> -> vector<112x128xf32>
    %17 = arith.addf %12, %16 : vector<112x128xf32>
    %18 = vector.extract_strided_slice %1 {offsets = [16, 0], sizes = [112, 64], strides = [1, 1]} : vector<160x64xbf16> to vector<112x64xbf16>
    %c3 = arith.constant 3 : index
    %c0_12 = arith.constant 0 : index
    %c0_13 = arith.constant 0 : index
    %19 = vector.load %arg2[%c3, %c0_12, %c0_13] : memref<9x64x128xbf16, #tpu.memory_space<vmem>>, vector<1x64x128xbf16>
    %20 = vector.shape_cast %19 : vector<1x64x128xbf16> to vector<64x128xbf16>
    %cst_14 = arith.constant dense<0.000000e+00> : vector<112x128xf32>
    %21 = tpu.matmul %18, %20, %cst_14 {dimension_numbers = #tpu.dot_dimension_numbers<[1], [0], [0], [1], [0, 0, 1, 1], [], []>} : vector<112x64xbf16>, vector<64x128xbf16>, vector<112x128xf32> -> vector<112x128xf32>
    %22 = arith.addf %17, %21 : vector<112x128xf32>
    %23 = vector.extract_strided_slice %1 {offsets = [17, 0], sizes = [112, 64], strides = [1, 1]} : vector<160x64xbf16> to vector<112x64xbf16>
    %c4 = arith.constant 4 : index
    %c0_15 = arith.constant 0 : index
    %c0_16 = arith.constant 0 : index
    %24 = vector.load %arg2[%c4, %c0_15, %c0_16] : memref<9x64x128xbf16, #tpu.memory_space<vmem>>, vector<1x64x128xbf16>
    %25 = vector.shape_cast %24 : vector<1x64x128xbf16> to vector<64x128xbf16>
    %cst_17 = arith.constant dense<0.000000e+00> : vector<112x128xf32>
    %26 = tpu.matmul %23, %25, %cst_17 {dimension_numbers = #tpu.dot_dimension_numbers<[1], [0], [0], [1], [0, 0, 1, 1], [], []>} : vector<112x64xbf16>, vector<64x128xbf16>, vector<112x128xf32> -> vector<112x128xf32>
    %27 = arith.addf %22, %26 : vector<112x128xf32>
    %28 = vector.extract_strided_slice %1 {offsets = [18, 0], sizes = [112, 64], strides = [1, 1]} : vector<160x64xbf16> to vector<112x64xbf16>
    %c5 = arith.constant 5 : index
    %c0_18 = arith.constant 0 : index
    %c0_19 = arith.constant 0 : index
    %29 = vector.load %arg2[%c5, %c0_18, %c0_19] : memref<9x64x128xbf16, #tpu.memory_space<vmem>>, vector<1x64x128xbf16>
    %30 = vector.shape_cast %29 : vector<1x64x128xbf16> to vector<64x128xbf16>
    %cst_20 = arith.constant dense<0.000000e+00> : vector<112x128xf32>
    %31 = tpu.matmul %28, %30, %cst_20 {dimension_numbers = #tpu.dot_dimension_numbers<[1], [0], [0], [1], [0, 0, 1, 1], [], []>} : vector<112x64xbf16>, vector<64x128xbf16>, vector<112x128xf32> -> vector<112x128xf32>
    %32 = arith.addf %27, %31 : vector<112x128xf32>
    %33 = vector.extract_strided_slice %1 {offsets = [32, 0], sizes = [112, 64], strides = [1, 1]} : vector<160x64xbf16> to vector<112x64xbf16>
    %c6 = arith.constant 6 : index
    %c0_21 = arith.constant 0 : index
    %c0_22 = arith.constant 0 : index
    %34 = vector.load %arg2[%c6, %c0_21, %c0_22] : memref<9x64x128xbf16, #tpu.memory_space<vmem>>, vector<1x64x128xbf16>
    %35 = vector.shape_cast %34 : vector<1x64x128xbf16> to vector<64x128xbf16>
    %cst_23 = arith.constant dense<0.000000e+00> : vector<112x128xf32>
    %36 = tpu.matmul %33, %35, %cst_23 {dimension_numbers = #tpu.dot_dimension_numbers<[1], [0], [0], [1], [0, 0, 1, 1], [], []>} : vector<112x64xbf16>, vector<64x128xbf16>, vector<112x128xf32> -> vector<112x128xf32>
    %37 = arith.addf %32, %36 : vector<112x128xf32>
    %38 = vector.extract_strided_slice %1 {offsets = [33, 0], sizes = [112, 64], strides = [1, 1]} : vector<160x64xbf16> to vector<112x64xbf16>
    %c7 = arith.constant 7 : index
    %c0_24 = arith.constant 0 : index
    %c0_25 = arith.constant 0 : index
    %39 = vector.load %arg2[%c7, %c0_24, %c0_25] : memref<9x64x128xbf16, #tpu.memory_space<vmem>>, vector<1x64x128xbf16>
    %40 = vector.shape_cast %39 : vector<1x64x128xbf16> to vector<64x128xbf16>
    %cst_26 = arith.constant dense<0.000000e+00> : vector<112x128xf32>
    %41 = tpu.matmul %38, %40, %cst_26 {dimension_numbers = #tpu.dot_dimension_numbers<[1], [0], [0], [1], [0, 0, 1, 1], [], []>} : vector<112x64xbf16>, vector<64x128xbf16>, vector<112x128xf32> -> vector<112x128xf32>
    %42 = arith.addf %37, %41 : vector<112x128xf32>
    %43 = vector.extract_strided_slice %1 {offsets = [34, 0], sizes = [112, 64], strides = [1, 1]} : vector<160x64xbf16> to vector<112x64xbf16>
    %c8 = arith.constant 8 : index
    %c0_27 = arith.constant 0 : index
    %c0_28 = arith.constant 0 : index
    %44 = vector.load %arg2[%c8, %c0_27, %c0_28] : memref<9x64x128xbf16, #tpu.memory_space<vmem>>, vector<1x64x128xbf16>
    %45 = vector.shape_cast %44 : vector<1x64x128xbf16> to vector<64x128xbf16>
    %cst_29 = arith.constant dense<0.000000e+00> : vector<112x128xf32>
    %46 = tpu.matmul %43, %45, %cst_29 {dimension_numbers = #tpu.dot_dimension_numbers<[1], [0], [0], [1], [0, 0, 1, 1], [], []>} : vector<112x64xbf16>, vector<64x128xbf16>, vector<112x128xf32> -> vector<112x128xf32>
    %47 = arith.addf %42, %46 : vector<112x128xf32>
    %c0_30 = arith.constant 0 : index
    %c0_31 = arith.constant 0 : index
    %48 = vector.load %arg3[%c0_30, %c0_31] : memref<1x128xf32, #tpu.memory_space<vmem>>, vector<1x128xf32>
    %49 = vector.broadcast %48 : vector<1x128xf32> to vector<112x128xf32>
    %50 = arith.addf %47, %49 : vector<112x128xf32>
    %cst_32 = arith.constant 0.000000e+00 : f32
    %51 = vector.broadcast %cst_32 : f32 to vector<112x128xf32>
    %52 = arith.maximumf %50, %51 : vector<112x128xf32>
    %53 = vector.shape_cast %52 : vector<112x128xf32> to vector<7x16x128xf32>
    %54 = vector.extract_strided_slice %53 {offsets = [0, 0, 0], sizes = [6, 16, 128], strides = [1, 1, 1]} : vector<7x16x128xf32> to vector<6x16x128xf32>
    %55 = vector.shape_cast %54 : vector<6x16x128xf32> to vector<3x2x16x128xf32>
    %56 = vector.extract_strided_slice %55 {offsets = [0, 0, 0, 0], sizes = [3, 1, 16, 128], strides = [1, 1, 1, 1]} : vector<3x2x16x128xf32> to vector<3x1x16x128xf32>
    %57 = vector.shape_cast %56 : vector<3x1x16x128xf32> to vector<3x16x128xf32>
    %58 = vector.extract_strided_slice %55 {offsets = [0, 1, 0, 0], sizes = [3, 1, 16, 128], strides = [1, 1, 1, 1]} : vector<3x2x16x128xf32> to vector<3x1x16x128xf32>
    %59 = vector.shape_cast %58 : vector<3x1x16x128xf32> to vector<3x16x128xf32>
    %60 = arith.maximumf %57, %59 : vector<3x16x128xf32>
    %c0_33 = arith.constant 0 : index
    %c0_34 = arith.constant 0 : index
    %c0_35 = arith.constant 0 : index
    %61 = vector.load %arg5[%c0_33, %c0_34, %c0_35] : memref<3x16x128xf32, #tpu.memory_space<vmem>>, vector<3x16x128xf32>
    tpu.vector_store %arg5[%c0_33, %c0_34, %c0_35], %60 {strides = array<i32>} : memref<3x16x128xf32, #tpu.memory_space<vmem>>, vector<3x16x128xf32>,
    %c0_36 = arith.constant 0 : index
    %c0_37 = arith.constant 0 : index
    %c0_38 = arith.constant 0 : index
    %62 = tpu.strided_load %arg5[%c0_36, %c0_37, %c0_38] {strides = array<i32: 1, 2, 1>} : memref<3x16x128xf32, #tpu.memory_space<vmem>>, vector<3x3x128xf32>
    %c0_39 = arith.constant 0 : index
    %c1_40 = arith.constant 1 : index
    %c0_41 = arith.constant 0 : index
    %63 = tpu.strided_load %arg5[%c0_39, %c1_40, %c0_41] {strides = array<i32: 1, 2, 1>} : memref<3x16x128xf32, #tpu.memory_space<vmem>>, vector<3x3x128xf32>
    %64 = arith.maximumf %62, %63 : vector<3x3x128xf32>
    %65 = arith.truncf %64 : vector<3x3x128xf32> to vector<3x3x128xbf16>
    %c0_42 = arith.constant 0 : index
    %c0_43 = arith.constant 0 : index
    %c0_44 = arith.constant 0 : index
    %c0_45 = arith.constant 0 : index
    %66 = vector.load %arg4[%c0_42, %c0_43, %c0_44, %c0_45] : memref<1x3x3x128xbf16, #tpu.memory_space<vmem>>, vector<1x3x3x128xbf16>
    %67 = vector.shape_cast %66 : vector<1x3x3x128xbf16> to vector<3x3x128xbf16>
    %68 = vector.shape_cast %65 : vector<3x3x128xbf16> to vector<1x3x3x128xbf16>
    tpu.vector_store %arg4[%c0_42, %c0_43, %c0_44, %c0_45], %68 {strides = array<i32>} : memref<1x3x3x128xbf16, #tpu.memory_space<vmem>>, vector<1x3x3x128xbf16>,
    return
  }
  func.func @transform_0(%arg0: i32) -> (i32, i32, i32) {
    %c0_i32 = arith.constant 0 : i32
    %c0_i32_0 = arith.constant 0 : i32
    %c0_i32_1 = arith.constant 0 : i32
    return %arg0, %c0_i32, %c0_i32_0 : i32, i32, i32
  }
  func.func @transform_1(%arg0: i32) -> (i32, i32, i32) {
    %c0_i32 = arith.constant 0 : i32
    %c0_i32_0 = arith.constant 0 : i32
    %c0_i32_1 = arith.constant 0 : i32
    %c0_i32_2 = arith.constant 0 : i32
    return %c0_i32, %c0_i32_0, %c0_i32_1 : i32, i32, i32
  }
  func.func @transform_2(%arg0: i32) -> (i32, i32) {
    %c0_i32 = arith.constant 0 : i32
    %c0_i32_0 = arith.constant 0 : i32
    %c0_i32_1 = arith.constant 0 : i32
    return %c0_i32, %c0_i32_0 : i32, i32
  }
  func.func @transform_3(%arg0: i32) -> (i32, i32, i32, i32) {
    %c0_i32 = arith.constant 0 : i32
    %c0_i32_0 = arith.constant 0 : i32
    %c0_i32_1 = arith.constant 0 : i32
    %c0_i32_2 = arith.constant 0 : i32
    return %arg0, %c0_i32, %c0_i32_0, %c0_i32_1 : i32, i32, i32, i32
  }
}

module attributes {stable_mosaic.version = 11 : i64} {
  func.func @_fc_fused_kernel(%arg0: i32, %arg1: memref<2x1152xbf16, #tpu.memory_space<vmem>>, %arg2: memref<1152x256xbf16, #tpu.memory_space<vmem>>, %arg3: memref<1x256xf32, #tpu.memory_space<vmem>>, %arg4: memref<256x10xbf16, #tpu.memory_space<vmem>>, %arg5: memref<1x10xf32, #tpu.memory_space<vmem>>, %arg6: memref<2x10xf32, #tpu.memory_space<vmem>>) attributes {dimension_semantics = [#tpu.dimension_semantics<parallel>], iteration_bounds = array<i64: 1>, scalar_prefetch = 0 : i64, scratch_operands = 0 : i64, tpu.core_type = #tpu.core_type<tc>, window_params = [{transform_indices = @transform_0, window_bounds = array<i64: 2, 1152>}, {pipeline_mode = #tpu.pipeline_mode<synchronous>, transform_indices = @transform_1, window_bounds = array<i64: 1152, 256>}, {pipeline_mode = #tpu.pipeline_mode<synchronous>, transform_indices = @transform_2, window_bounds = array<i64: 1, 256>}, {pipeline_mode = #tpu.pipeline_mode<synchronous>, transform_indices = @transform_3, window_bounds = array<i64: 256, 10>}, {pipeline_mode = #tpu.pipeline_mode<synchronous>, transform_indices = @transform_4, window_bounds = array<i64: 1, 10>}, {transform_indices = @transform_5, window_bounds = array<i64: 2, 10>}]} {
    %c0 = arith.constant 0 : index
    %c0_0 = arith.constant 0 : index
    %0 = vector.load %arg1[%c0, %c0_0] : memref<2x1152xbf16, #tpu.memory_space<vmem>>, vector<2x1152xbf16>
    %c0_1 = arith.constant 0 : index
    %c0_2 = arith.constant 0 : index
    %1 = vector.load %arg2[%c0_1, %c0_2] : memref<1152x256xbf16, #tpu.memory_space<vmem>>, vector<1152x256xbf16>
    %cst = arith.constant dense<0.000000e+00> : vector<2x256xf32>
    %2 = tpu.matmul %0, %1, %cst {dimension_numbers = #tpu.dot_dimension_numbers<[1], [0], [0], [1], [0, 0, 1, 1], [], []>} : vector<2x1152xbf16>, vector<1152x256xbf16>, vector<2x256xf32> -> vector<2x256xf32>
    %c0_3 = arith.constant 0 : index
    %c0_4 = arith.constant 0 : index
    %3 = vector.load %arg3[%c0_3, %c0_4] : memref<1x256xf32, #tpu.memory_space<vmem>>, vector<1x256xf32>
    %4 = vector.broadcast %3 : vector<1x256xf32> to vector<2x256xf32>
    %5 = arith.addf %2, %4 : vector<2x256xf32>
    %cst_5 = arith.constant 0.000000e+00 : f32
    %6 = vector.broadcast %cst_5 : f32 to vector<2x256xf32>
    %7 = arith.maximumf %5, %6 : vector<2x256xf32>
    %8 = arith.truncf %7 : vector<2x256xf32> to vector<2x256xbf16>
    %c0_6 = arith.constant 0 : index
    %c0_7 = arith.constant 0 : index
    %9 = vector.load %arg4[%c0_6, %c0_7] : memref<256x10xbf16, #tpu.memory_space<vmem>>, vector<256x10xbf16>
    %cst_8 = arith.constant dense<0.000000e+00> : vector<2x10xf32>
    %10 = tpu.matmul %8, %9, %cst_8 {dimension_numbers = #tpu.dot_dimension_numbers<[1], [0], [0], [1], [0, 0, 1, 1], [], []>} : vector<2x256xbf16>, vector<256x10xbf16>, vector<2x10xf32> -> vector<2x10xf32>
    %c0_9 = arith.constant 0 : index
    %c0_10 = arith.constant 0 : index
    %11 = vector.load %arg5[%c0_9, %c0_10] : memref<1x10xf32, #tpu.memory_space<vmem>>, vector<1x10xf32>
    %12 = vector.broadcast %11 : vector<1x10xf32> to vector<2x10xf32>
    %13 = arith.addf %10, %12 : vector<2x10xf32>
    %c0_11 = arith.constant 0 : index
    %c0_12 = arith.constant 0 : index
    %14 = vector.load %arg6[%c0_11, %c0_12] : memref<2x10xf32, #tpu.memory_space<vmem>>, vector<2x10xf32>
    tpu.vector_store %arg6[%c0_11, %c0_12], %13 {strides = array<i32>} : memref<2x10xf32, #tpu.memory_space<vmem>>, vector<2x10xf32>,
    return
  }
  func.func @transform_0(%arg0: i32) -> (i32, i32) {
    %c0_i32 = arith.constant 0 : i32
    %c0_i32_0 = arith.constant 0 : i32
    return %arg0, %c0_i32 : i32, i32
  }
  func.func @transform_1(%arg0: i32) -> (i32, i32) {
    %c0_i32 = arith.constant 0 : i32
    %c0_i32_0 = arith.constant 0 : i32
    %c0_i32_1 = arith.constant 0 : i32
    return %c0_i32, %c0_i32_0 : i32, i32
  }
  func.func @transform_2(%arg0: i32) -> (i32, i32) {
    %c0_i32 = arith.constant 0 : i32
    %c0_i32_0 = arith.constant 0 : i32
    %c0_i32_1 = arith.constant 0 : i32
    return %c0_i32, %c0_i32_0 : i32, i32
  }
  func.func @transform_3(%arg0: i32) -> (i32, i32) {
    %c0_i32 = arith.constant 0 : i32
    %c0_i32_0 = arith.constant 0 : i32
    %c0_i32_1 = arith.constant 0 : i32
    return %c0_i32, %c0_i32_0 : i32, i32
  }
  func.func @transform_4(%arg0: i32) -> (i32, i32) {
    %c0_i32 = arith.constant 0 : i32
    %c0_i32_0 = arith.constant 0 : i32
    %c0_i32_1 = arith.constant 0 : i32
    return %c0_i32, %c0_i32_0 : i32, i32
  }
  func.func @transform_5(%arg0: i32) -> (i32, i32) {
    %c0_i32 = arith.constant 0 : i32
    %c0_i32_0 = arith.constant 0 : i32
    return %arg0, %c0_i32 : i32, i32
  }
}

</mosaic_0001>

<bundles_post_ra>
// kernel: deep_cnn_forward.5
= control target key start
LH: loop header
LB: loop body
LE: loop exit
PB: predicated region body
PF: predicated region fallthrough
CT: control target
= control target key end

     0   :  { %s3417_s12 = smov 0   ;;  %s4064_s0 = inlined_call_operand.vmem [shape: bf16[2,272,32], index: 0, kind: input, shape index: {}]   ;;  %s4065_s1 = inlined_call_operand.vmem [shape: bf16[9,32,64], index: 1, kind: input, shape index: {}]   ;;  %s4066_s2 = inlined_call_operand.vmem [shape: f32[1,64], index: 2, kind: input, shape index: {}]   ;;  %s4067_s3 = inlined_call_operand.vmem [shape: bf16[2,7,7,64], index: 3, kind: output, shape index: {}]  }
   0x1 LB: > { %s2477_s13 = sadd.s32 4294967295, %s3395_s12   ;;  %p2481_p0 = scmp.ge.s32.totalorder %s3395_s12, 1  ;;  %s3395_s12 = sphi %s3417_s12, %s13_s12  }
   0x2   : > { %p137_p1 = scmp.lt.s32.totalorder %s3395_s12, 3 }
   0x4   : > { %p138_p2 = pnand %p2481_p0, %p137_p1 }
   0x5   : > { %v3428_v0 = vld [vmem:[%s4065_s1 + $0x40] sm:$0xff] (!%p138_p2)   ;;  %p161_p3 = scmp.lt.s32.totalorder (!%p138_p2), %s2477_s13, 1  ;;  %v3353_v1 = vld [vmem:[%s4065_s1 + $0x10] sm:$0xff] (!%p138_p2)   ;;  %v3437_v2 = vld [vmem:[%s4065_s1 + $0x48] sm:$0xff] (!%p138_p2)   ;;  %vm287_vm0 = vsmask.f32 (!%p138_p2), 7424 }
   0x6   : > { %141 = sbr.rel (%p138_p2) target bundleno = 512 (0x200), region = 32  ;;  %2954 = vmatprep.subr.bf16.mxu0 (!%p138_p2), %v3428_v0  ;;  %2826 = vmatprep.subr.bf16.mxu1 (!%p138_p2), %v3353_v1  ;;  %v3355_v3 = vld [vmem:[%s4065_s1 + $0x18] sm:$0xff] (!%p138_p2)   ;;  %v3359_v4 = vld [vmem:[%s4065_s1 + $0x50] sm:$0xff] (!%p138_p2)   ;;  %v3361_v5 = vld [vmem:[%s4065_s1] sm:$0xff] (!%p138_p2)   ;;  %vm416_vm1 = vcmask (!%p138_p2), 261120   ;;  %vm794_vm2 = vcmask (!%p138_p2), 1046528  }
   0x7   : > { %2955 = vmatpush3.bf16.msra.mxu0 (!%p138_p2), %v3428_v0  ;;  %2827 = vmatpush3.bf16.msra.mxu1 (!%p138_p2), %v3353_v1  ;;  %v3365_v38 = vld [vmem:[%s4065_s1 + $0x58] sm:$0xff] (!%p138_p2)   ;;  %v3522_v46 = vld [vmem:[%s4065_s1 + $0x60] sm:$0xff] (!%p138_p2)   ;;  %v3371_v48 = vld [vmem:[%s4065_s1 + $0x8] sm:$0xff] (!%p138_p2)   ;;  %vm2342_vm3 = vcmask (!%p138_p2), 523264   ;;  %vm2398_vm4 = vcmask (!%p138_p2), 519168  }
   0x8   : > { %2956 = vmatprep.subr.bf16.mxu0 (!%p138_p2), %v3437_v2  ;;  %2828 = vmatprep.subr.bf16.mxu1 (!%p138_p2), %v3355_v3  ;;  %v3557_v62 = vld [vmem:[%s4065_s1 + $0x20] sm:$0xff] (!%p138_p2)   ;;  %vm2399_vm5 = vsmask.f32 (!%p138_p2), 3328 }
   0x9   : > { %vm3996_vm6 = vmand (!%p138_p2), %vm2398_vm4, %vm2399_vm5 }
   0xb   : > { %2957 = vmatpush3.bf16.msra.mxu0 (!%p138_p2), %v3437_v2  ;;  %2829 = vmatpush3.bf16.msra.mxu1 (!%p138_p2), %v3355_v3 }
   0xc   : > { %2986 = vmatprep.subr.bf16.mxu0 (!%p138_p2), %v3359_v4  ;;  %2858 = vmatprep.subr.bf16.mxu1 (!%p138_p2), %v3361_v5 }
   0xd   : > { %s4071_s13 = smov (!%p161_p3, %s2477_s13), 1 }
   0xe   : > { %s3342_s22 = smul.u32 136, %s4071_s13 }
   0xf   : > { %s3343_s4 = smul.u32 28, %s4071_s13 }
  0x10   : > { %s3453_s27 = scalar_lea.vmem %s4064_s0, %s3342_s22 }
  0x11   : > { %v3460_v6 = vld [vmem:[%s3453_s27] sm:$0xff]   ;;  %v3463_v7 = vld [vmem:[%s3453_s27 + $0x8] sm:$0xff]   ;;  %v3466_v8 = vld [vmem:[%s3453_s27 + $0x10] sm:$0xff]   ;;  %s3990_s7 = scalar_lea.vmem %s4067_s3, %s3343_s4 }
  0x12   : > { %v289_v9 = vshrl.u32 %v3460_v6, 16  ;;  %v291_v10 = vshll.u32 %v3460_v6, 16  ;;  %v296_v11 = vshll.u32 %v3463_v7, 16  ;;  %v300_v12 = vshrl.u32 %v3463_v7, 16  ;;  %v3475_v15 = vld [vmem:[%s3453_s27 + $0x18] sm:$0xff]   ;;  %v3478_v16 = vld [vmem:[%s3453_s27 + $0x20] sm:$0xff]  }
  0x13   : > { %v304_v13 = vshll.u32 %v3466_v8, 16  ;;  %v308_v14 = vshrl.u32 %v3466_v8, 16  ;;  %v312_v20 = vshll.u32 %v3475_v15, 16  ;;  %v316_v21 = vshrl.u32 %v3475_v15, 16  ;;  %v3484_v25 = vld [vmem:[%s3453_s27 + $0x28] sm:$0xff]   ;;  %v3488_v30 = vld [vmem:[%s3453_s27 + $0x30] sm:$0xff]  }
  0x14   : > { %v293_v17 = vrot.slane %v291_v10, 1  ;;  %v298_v18 = vrot.slane %v296_v11, 1  ;;  %v320_v22 = vshll.u32 %v3478_v16, 16  ;;  %v324_v29 = vshrl.u32 %v3478_v16, 16  ;;  %v3507_v40 = vld [vmem:[%s3453_s27 + $0x38] sm:$0xff]   ;;  %v3515_v43 = vld [vmem:[%s3453_s27 + $0x40] sm:$0xff]  }
  0x15   : > { %v306_v19 = vrot.slane %v304_v13, 1  ;;  %v314_v27 = vrot.slane %v312_v20, 1  ;;  %v328_v33 = vshll.u32 %v3484_v25, 16  ;;  %v332_v34 = vshrl.u32 %v3484_v25, 16  ;;  %v3547_v56 = vld [vmem:[%s3453_s27 + $0x48] sm:$0xff]   ;;  %v3563_v1 = vld [vmem:[%s3453_s27 + $0x50] sm:$0xff]  }
  0x16   : > { %v294_v23 = vor.u32 %v293_v17, %v289_v9  ;;  %v302_v24 = vor.u32 %v300_v12, %v298_v18  ;;  %v322_v28 = vrot.slane %v320_v22, 1  ;;  %v336_v37 = vshll.u32 %v3488_v30, 16  ;;  %v3578_v11 = vld [vmem:[%s3453_s27 + $0x58] sm:$0xff]   ;;  %v3597_v22 = vld [vmem:[%s3453_s27 + $0x68] sm:$0xff]  }
  0x17   : > { %v310_v26 = vor.u32 %v308_v14, %v306_v19  ;;  %v318_v36 = vor.u32 %v316_v21, %v314_v27  ;;  %v330_v39 = vrot.slane %v328_v33, 1  ;;  %v344_v47 = vshll.u32 %v3507_v40, 16  ;;  %v3583_v14 = vld [vmem:[%s3453_s27 + $0x70] sm:$0xf] }
  0x18   : > { %v299_v31 = vsel %vm287_vm0, %v294_v23, %v298_v18  ;;  %v307_v32 = vsel %vm287_vm0, %v302_v24, %v306_v19  ;;  %v326_v42 = vor.u32 %v324_v29, %v322_v28  ;;  %v338_v45 = vrot.slane %v336_v37, 1 }
  0x19   : > { %2830 = vmatprep.mubr.msk.bf16.mxu1 %vm416_vm1, %v299_v31  ;;  %2958 = vmatprep.mubr.msk.bf16.mxu0 %vm416_vm1, %v307_v32  ;;  %v3497_v35 = vsel %vm287_vm0, %v310_v26, %v314_v27  ;;  %v3512_v41 = vsel %vm287_vm0, %v318_v36, %v322_v28  ;;  %v334_v44 = vor.u32 %v332_v34, %v330_v39  ;;  %v340_v50 = vshrl.u32 %v3488_v30, 16  ;;  %v3606_v26 = vld [vmem:[%s3453_s27 + $0x60] sm:$0xff]  }
  0x1a   : > { %2831 = vmatmul.mubr.msk.bf16.vlgmr.msra.gmra.mrb[0].mxu1 %vm416_vm1, %v307_v32  ;;  %2959 = vmatmul.mubr.msk.bf16.vlgmr.msra.gmra.mrb[0].mxu0 %vm416_vm1, %v3497_v35  ;;  %v3529_v49 = vsel %vm287_vm0, %v326_v42, %v330_v39  ;;  %v348_v52 = vshrl.u32 %v3507_v40, 16  ;;  %v352_v53 = vshll.u32 %v3515_v43, 16  ;;  %v346_v54 = vrot.slane %v344_v47, 1 }
  0x1b   : > { %2987 = vmatpush3.bf16.msra.mxu0 %v3359_v4  ;;  %2834 = vmatprep.mubr.msk.bf16.mxu1 %vm416_vm1, %v3497_v35  ;;  %v3533_v51 = vsel %vm287_vm0, %v334_v44, %v338_v45  ;;  %v342_v55 = vor.u32 %v340_v50, %v338_v45  ;;  %v356_v60 = vshrl.u32 %v3515_v43, 16  ;;  %v360_v61 = vshll.u32 %v3547_v56, 16 }
  0x1c   : > { %2962 = vmatprep.mubr.msk.bf16.mxu0 %vm416_vm1, %v3512_v41  ;;  %2859 = vmatpush3.bf16.msra.mxu1 %v3361_v5  ;;  %v350_v57 = vor.u32 %v348_v52, %v346_v54  ;;  %v354_v58 = vrot.slane %v352_v53, 1  ;;  %v796_v5 = vrot.slane %v3463_v7, 1  ;;  %v798_v9 = vrot.slane %v3466_v8, 1 }
  0x1d   : > { %2988 = vmatprep.subr.bf16.mxu0 %v3365_v38  ;;  %2860 = vmatprep.subr.bf16.mxu1 %v3371_v48  ;;  %v3550_v59 = vsel %vm287_vm0, %v342_v55, %v346_v54  ;;  %v362_v4 = vrot.slane %v360_v61, 1  ;;  %v364_v10 = vshrl.u32 %v3547_v56, 16  ;;  %v368_v12 = vshll.u32 %v3563_v1, 16 }
  0x1e   : > { %v3560_v63 = vsel %vm287_vm0, %v350_v57, %v354_v58  ;;  %v358_v3 = vor.u32 %v356_v60, %v354_v58  ;;  %v795_v13 = vrot.slane %v3460_v6, 1  ;;  %v3592_v19 = vsel %vm794_vm2, %v796_v5, %v798_v9  ;;  %v3654_v60 = vld [vmem:[%s4065_s1 + $0x70] sm:$0xff]  }
  0x1f   : > { %2989 = vmatpush3.bf16.msra.mxu0 %v3365_v38  ;;  %v372_v20 = vshrl.u32 %v3563_v1, 16  ;;  %v376_v21 = vshll.u32 %v3578_v11, 16  ;;  %v2502_v23 = vcombine.low %v3583_v14, %v3583_v14  ;;  %v370_v24 = vrot.slane %v368_v12, 1 }
  0x20   : > { %3018 = vmatprep.subr.bf16.mxu0 %v3522_v46  ;;  %2861 = vmatpush3.bf16.msra.mxu1 %v3371_v48  ;;  %v3586_v17 = vsel %vm287_vm0, %v358_v3, %v362_v4  ;;  %v3589_v18 = vsel %vm794_vm2, %v795_v13, %v796_v5  ;;  %v366_v27 = vor.u32 %v364_v10, %v362_v4  ;;  %v800_v28 = vrot.slane %v3475_v15, 1  ;;  %v3377_v48 = vld [vmem:[%s4065_s1 + $0x68] sm:$0xff]  }
  0x21   : > { %2890 = vmatprep.subr.bf16.mxu1 %v3557_v62  ;;  %v3614_v29 = vrot.slane %v3597_v22, 1  ;;  %v822_v31 = vrot.slane %v2502_v23, 1  ;;  %v374_v32 = vor.u32 %v372_v20, %v370_v24  ;;  %v378_v33 = vrot.slane %v376_v21, 1 }
  0x22   : > { %2835 = vmatmul.mubr.msk.bf16.gmra.mrb[4].mxu1 %vm416_vm1, %v3512_v41  ;;  %2963 = vmatmul.mubr.msk.bf16.gmra.mrb[4].mxu0 %vm416_vm1, %v3529_v49  ;;  %v802_v34 = vrot.slane %v3478_v16, 1  ;;  %v384_v37 = vshll.u32 %v3606_v26, 16  ;;  %v3623_v38 = vsel %vm287_vm0, %v366_v27, %v370_v24  ;;  %v3626_v39 = vsel %vm794_vm2, %v798_v9, %v800_v28 }
  0x23   : > { %2838 = vmatprep.mubr.msk.bf16.mxu1 %vm416_vm1, %v3529_v49  ;;  %2966 = vmatprep.mubr.msk.bf16.mxu0 %vm416_vm1, %v3533_v51  ;;  %v3619_v36 = vsel %vm794_vm2, %v3614_v29, %v822_v31  ;;  %v380_v42 = vshrl.u32 %v3578_v11, 16  ;;  %v3630_v44 = vsel %vm287_vm0, %v374_v32, %v378_v33  ;;  %v388_v45 = vshrl.u32 %v3606_v26, 16 }
  0x24   : > { %v392_v47 = vshll.u32 %v3597_v22, 16  ;;  %v3638_v50 = vsel %vm794_vm2, %v800_v28, %v802_v34  ;;  %v386_v52 = vrot.slane %v384_v37, 1  ;;  %v804_v54 = vrot.slane %v3484_v25, 1  ;;  %v201_v37 = vld [vmem:[%s3453_s27 + $0x74] sm:$0xf] }
  0x25   : > { %v382_v53 = vor.u32 %v380_v42, %v378_v33  ;;  %v806_v58 = vrot.slane %v3488_v30, 1  ;;  %v396_v3 = vshrl.u32 %v3597_v22, 16  ;;  %v400_v4 = vshll.u32 %v2502_v23, 16  ;;  %v3381_v33 = vld [vmem:[%s4065_s1 + $0x28] sm:$0xff]   ;;  %v3383_v42 = vld [vmem:[%s4065_s1 + $0x30] sm:$0xff]  }
  0x26   : > { %v390_v55 = vor.u32 %v388_v45, %v386_v52  ;;  %v394_v57 = vrot.slane %v392_v47, 1  ;;  %v3660_v61 = vsel %vm794_vm2, %v802_v34, %v804_v54  ;;  %v808_v13 = vrot.slane %v3507_v40, 1 }
  0x27   : > { %v3667_v9 = vsel %vm794_vm2, %v804_v54, %v806_v58  ;;  %v402_v12 = vrot.slane %v400_v4, 1  ;;  %v810_v20 = vrot.slane %v3515_v43, 1  ;;  %v812_v27 = vrot.slane %v3547_v56, 1 }
  0x28   : > { %v3664_v5 = vsel %vm287_vm0, %v390_v55, %v394_v57  ;;  %v3678_v10 = vor.u32 %v396_v3, %v394_v57  ;;  %v3685_v23 = vsel %vm794_vm2, %v806_v58, %v808_v13  ;;  %v814_v28 = vrot.slane %v3563_v1, 1  ;;  %v3385_v58 = vld [vmem:[%s4065_s1 + $0x80] sm:$0xff]   ;;  %v3387_v3 = vld [vmem:[%s4065_s1 + $0x88] sm:$0xff]  }
  0x29   : > { %v3688_v24 = vsel %vm794_vm2, %v808_v13, %v810_v20  ;;  %v3700_v31 = vsel %vm794_vm2, %v810_v20, %v812_v27  ;;  %v818_v34 = vrot.slane %v3606_v26, 1  ;;  %v3727_v47 = vcombine.low %v3583_v14, %v201_v37  ;;  %v202_v14 = vld [vmem:[%s3453_s27 + $0x78] sm:$0xf] }
  0x2a   : > { %2839 = vmatmul.mubr.msk.bf16.gmra.mrb[8].mxu1 %vm416_vm1, %v3533_v51  ;;  %2967 = vmatmul.mubr.msk.bf16.gmra.mrb[8].mxu0 %vm416_vm1, %v3550_v59  ;;  %v403_v21 = vsel %vm287_vm0, %v3678_v10, %v402_v12  ;;  %v3703_v32 = vsel %vm794_vm2, %v812_v27, %v814_v28 }
  0x2b   : > { %2842 = vmatprep.mubr.msk.bf16.mxu1 %vm416_vm1, %v3550_v59  ;;  %2970 = vmatprep.mubr.msk.bf16.mxu0 %vm416_vm1, %v3560_v63 }
  0x32   : > { %2843 = vmatmul.mubr.msk.bf16.gmra.mrb[12].mxu1 %vm416_vm1, %v3560_v63  ;;  %2971 = vmatmul.mubr.msk.bf16.gmra.mrb[12].mxu0 %vm416_vm1, %v3586_v17 }
  0x33   : > { %2846 = vmatprep.mubr.msk.bf16.mxu1 %vm416_vm1, %v3586_v17  ;;  %2990 = vmatprep.mubr.msk.bf16.mxu0 %vm416_vm1, %v3592_v19 }
  0x3a   : > { %2847 = vmatmul.mubr.msk.bf16.gmra.mrb[16].mxu1 %vm416_vm1, %v3623_v38  ;;  %2991 = vmatmul.mubr.msk.bf16.vlgmr.msra.gmra.mrb[0].mxu0 %vm416_vm1, %v3626_v39 }
  0x3b   : > { %3019 = vmatpush3.bf16.msra.mxu0 %v3522_v46  ;;  %2850 = vmatprep.mubr.msk.bf16.mxu1 %vm416_vm1, %v3630_v44  ;;  %v3657_v46 = vsel %vm287_vm0, %v382_v53, %v386_v52  ;;  %v3746_v52 = vsel %vm794_vm2, %v818_v34, %v3614_v29  ;;  %v3748_v53 = vcombine.low %v202_v14, %v202_v14 }
  0x3c   : > { %2994 = vmatprep.mubr.msk.bf16.mxu0 %vm416_vm1, %v3638_v50  ;;  %3020 = vmatprep.subr.bf16.mxu0 %v3377_v48 }
  0x3d   : > { %v1465_v55 = vrot.slane %v3748_v53, 1 }
  0x3f   : > { %3021 = vmatpush3.bf16.msra.mxu0 %v3377_v48 }
  0x40   : > { %3050 = vmatprep.subr.bf16.mxu0 %v3654_v60 }
  0x42   : > { %2851 = vmatmul.mubr.msk.bf16.gmra.mrb[20].mxu1 %vm416_vm1, %v3657_v46  ;;  %2995 = vmatmul.mubr.msk.bf16.gmra.mrb[4].mxu0 %vm416_vm1, %v3660_v61 }
  0x43   : > { %2854 = vmatprep.mubr.msk.bf16.mxu1 %vm416_vm1, %v3664_v5  ;;  %2998 = vmatprep.mubr.msk.bf16.mxu0 %vm416_vm1, %v3667_v9 }
  0x4a   : > { %2855 = vmatmul.mubr.msk.bf16.gmra.mrb[24].mxu1 %vm416_vm1, %v403_v21  ;;  %2999 = vmatmul.mubr.msk.bf16.gmra.mrb[8].mxu0 %vm416_vm1, %v3685_v23 }
  0x4b   : > { %2862 = vmatprep.mubr.msk.bf16.mxu1 %vm416_vm1, %v3460_v6  ;;  %3002 = vmatprep.mubr.msk.bf16.mxu0 %vm416_vm1, %v3688_v24  ;;  %v816_v6 = vrot.slane %v3578_v11, 1 }
  0x4d   : > { %v3724_v45 = vsel %vm794_vm2, %v814_v28, %v816_v6  ;;  %v3730_v48 = vsel %vm794_vm2, %v816_v6, %v818_v34 }
  0x52   : > { %2863 = vmatmul.mubr.msk.bf16.vlgmr.msra.gmra.mrb[0].mxu1 %vm416_vm1, %v3463_v7  ;;  %3003 = vmatmul.mubr.msk.bf16.gmra.mrb[12].mxu0 %vm416_vm1, %v3700_v31 }
  0x53   : > { %2866 = vmatprep.mubr.msk.bf16.mxu1 %vm416_vm1, %v3466_v8  ;;  %3006 = vmatprep.mubr.msk.bf16.mxu0 %vm416_vm1, %v3703_v32 }
  0x54   : > { %2891 = vmatpush3.bf16.msra.mxu1 %v3557_v62  ;;  %v3741_v62 = vrot.slane %v3727_v47, 1 }
  0x55   : > { %2892 = vmatprep.subr.bf16.mxu1 %v3381_v33 }
  0x56   : > { %v3753_v54 = vsel %vm794_vm2, %v3614_v29, %v3741_v62  ;;  %v1466_v57 = vsel %vm794_vm2, %v3741_v62, %v1465_v55  ;;  %v3382_v29 = vld [vmem:[%s4065_s1 + $0x78] sm:$0xff]  }
  0x58   : > { %2893 = vmatpush3.bf16.msra.mxu1 %v3381_v33 }
  0x59   : > { %2922 = vmatprep.subr.bf16.mxu1 %v3383_v42 }
  0x5a   : > { %2867 = vmatmul.mubr.msk.bf16.gmra.mrb[4].mxu1 %vm416_vm1, %v3475_v15  ;;  %3007 = vmatmul.mubr.msk.bf16.gmra.mrb[16].mxu0 %vm416_vm1, %v3724_v45 }
  0x5b   : > { %2870 = vmatprep.mubr.msk.bf16.mxu1 %vm416_vm1, %v3478_v16  ;;  %3010 = vmatprep.mubr.msk.bf16.mxu0 %vm416_vm1, %v3730_v48 }
  0x62   : > { %2871 = vmatmul.mubr.msk.bf16.gmra.mrb[8].mxu1 %vm416_vm1, %v3484_v25  ;;  %3011 = vmatmul.mubr.msk.bf16.gmra.mrb[20].mxu0 %vm416_vm1, %v3746_v52 }
  0x63   : > { %2874 = vmatprep.mubr.msk.bf16.mxu1 %vm416_vm1, %v3488_v30  ;;  %3014 = vmatprep.mubr.msk.bf16.mxu0 %vm416_vm1, %v3753_v54 }
  0x6a   : > { %2875 = vmatmul.mubr.msk.bf16.gmra.mrb[12].mxu1 %vm416_vm1, %v3507_v40  ;;  %3015 = vmatmul.mubr.msk.bf16.gmra.mrb[24].mxu0 %vm416_vm1, %v1466_v57 }
  0x6b   : > { %2878 = vmatprep.mubr.msk.bf16.mxu1 %vm416_vm1, %v3515_v43  ;;  %3022 = vmatprep.mubr.msk.bf16.mxu0 %vm416_vm1, %v3466_v8 }
  0x72   : > { %2879 = vmatmul.mubr.msk.bf16.gmra.mrb[16].mxu1 %vm416_vm1, %v3547_v56  ;;  %3023 = vmatmul.mubr.msk.bf16.vlgmr.msra.gmra.mrb[0].mxu0 %vm416_vm1, %v3475_v15 }
  0x73   : > { %3051 = vmatpush3.bf16.msra.mxu0 %v3654_v60  ;;  %2882 = vmatprep.mubr.msk.bf16.mxu1 %vm416_vm1, %v3563_v1  ;;  %v3386_v60 = vld [vmem:[%s4065_s1 + $0x38] sm:$0xff]  }
  0x74   : > { %3026 = vmatprep.mubr.msk.bf16.mxu0 %vm416_vm1, %v3478_v16  ;;  %3052 = vmatprep.subr.bf16.mxu0 %v3382_v29 }
  0x77   : > { %3053 = vmatpush3.bf16.msra.mxu0 %v3382_v29 }
  0x78   : > { %3082 = vmatprep.subr.bf16.mxu0 %v3385_v58 }
  0x7a   : > { %2883 = vmatmul.mubr.msk.bf16.gmra.mrb[20].mxu1 %vm416_vm1, %v3578_v11  ;;  %3027 = vmatmul.mubr.msk.bf16.gmra.mrb[4].mxu0 %vm416_vm1, %v3484_v25 }
  0x7b   : > { %2886 = vmatprep.mubr.msk.bf16.mxu1 %vm416_vm1, %v3606_v26  ;;  %3030 = vmatprep.mubr.msk.bf16.mxu0 %vm416_vm1, %v3488_v30 }
  0x82   : > { %2887 = vmatmul.mubr.msk.bf16.gmra.mrb[24].mxu1 %vm416_vm1, %v3597_v22  ;;  %3031 = vmatmul.mubr.msk.bf16.gmra.mrb[8].mxu0 %vm416_vm1, %v3507_v40 }
  0x83   : > { %2894 = vmatprep.mubr.msk.bf16.mxu1 %vm416_vm1, %v3589_v18  ;;  %3034 = vmatprep.mubr.msk.bf16.mxu0 %vm416_vm1, %v3515_v43  ;;  %v203_v18 = vld [vmem:[%s3453_s27 + $0x7c] sm:$0xf] }
  0x8a   : > { %2895 = vmatmul.mubr.msk.bf16.vlgmr.msra.gmra.mrb[0].mxu1 %vm416_vm1, %v3592_v19  ;;  %3035 = vmatmul.mubr.msk.bf16.gmra.mrb[12].mxu0 %vm416_vm1, %v3547_v56  ;;  %v3833_v19 = vcombine.low %v202_v14, %v203_v18 }
  0x8b   : > { %2898 = vmatprep.mubr.msk.bf16.mxu1 %vm416_vm1, %v3626_v39  ;;  %3038 = vmatprep.mubr.msk.bf16.mxu0 %vm416_vm1, %v3563_v1 }
  0x8c   : > { %2923 = vmatpush3.bf16.msra.mxu1 %v3383_v42 }
  0x8d   : > { %2924 = vmatprep.subr.bf16.mxu1 %v3386_v60 }
  0x90   : > { %2925 = vmatpush3.bf16.msra.mxu1 %v3386_v60 }
  0x91   : > { %3114 = vmatprep.subr.bf16.mxu1 %v3428_v0 }
  0x92   : > { %2899 = vmatmul.mubr.msk.bf16.gmra.mrb[4].mxu1 %vm416_vm1, %v3638_v50  ;;  %3039 = vmatmul.mubr.msk.bf16.gmra.mrb[16].mxu0 %vm416_vm1, %v3578_v11 }
  0x93   : > { %2902 = vmatprep.mubr.msk.bf16.mxu1 %vm416_vm1, %v3660_v61  ;;  %3042 = vmatprep.mubr.msk.bf16.mxu0 %vm416_vm1, %v3606_v26 }
  0x9a   : > { %2903 = vmatmul.mubr.msk.bf16.gmra.mrb[8].mxu1 %vm416_vm1, %v3667_v9  ;;  %3043 = vmatmul.mubr.msk.bf16.gmra.mrb[20].mxu0 %vm416_vm1, %v3597_v22 }
  0x9b   : > { %2906 = vmatprep.mubr.msk.bf16.mxu1 %vm416_vm1, %v3685_v23  ;;  %3046 = vmatprep.mubr.msk.bf16.mxu0 %vm416_vm1, %v3727_v47 }
  0xa2   : > { %2907 = vmatmul.mubr.msk.bf16.gmra.mrb[12].mxu1 %vm416_vm1, %v3688_v24  ;;  %3047 = vmatmul.mubr.msk.bf16.gmra.mrb[24].mxu0 %vm416_vm1, %v3833_v19 }
  0xa3   : > { %2910 = vmatprep.mubr.msk.bf16.mxu1 %vm416_vm1, %v3700_v31  ;;  %3054 = vmatprep.mubr.msk.bf16.mxu0 %vm416_vm1, %v3497_v35  ;;  %v1259_v35 = vshrl.u32 %v3727_v47, 16 }
  0xaa   : > { %2911 = vmatmul.mubr.msk.bf16.gmra.mrb[16].mxu1 %vm416_vm1, %v3703_v32  ;;  %3055 = vmatmul.mubr.msk.bf16.vlgmr.msra.gmra.mrb[0].mxu0 %vm416_vm1, %v3512_v41  ;;  %v1862_v41 = vshll.u32 %v3833_v19, 16 }
  0xab   : > { %3083 = vmatpush3.bf16.msra.mxu0 %v3385_v58  ;;  %2914 = vmatprep.mubr.msk.bf16.mxu1 %vm416_vm1, %v3724_v45 }
  0xac   : > { %3058 = vmatprep.mubr.msk.bf16.mxu0 %vm416_vm1, %v3529_v49  ;;  %3084 = vmatprep.subr.bf16.mxu0 %v3387_v3  ;;  %v1864_v49 = vrot.slane %v1862_v41, 1 }
  0xaf   : > { %3085 = vmatpush3.bf16.msra.mxu0 %v3387_v3 }
  0xb2   : > { %2915 = vmatmul.mubr.msk.bf16.gmra.mrb[20].mxu1 %vm416_vm1, %v3730_v48  ;;  %3059 = vmatmul.mubr.msk.bf16.gmra.mrb[4].mxu0 %vm416_vm1, %v3533_v51 }
  0xb3   : > { %2918 = vmatprep.mubr.msk.bf16.mxu1 %vm416_vm1, %v3746_v52  ;;  %3062 = vmatprep.mubr.msk.bf16.mxu0 %vm416_vm1, %v3550_v59 }
  0xba   : > { %2919 = vmatmul.mubr.msk.bf16.gmra.mrb[24].mxu1 %vm416_vm1, %v3619_v36  ;;  %3063 = vmatmul.mubr.msk.bf16.gmra.mrb[8].mxu0 %vm416_vm1, %v3560_v63 }
  0xbb   : > { %2926 = vmatprep.mubr.msk.bf16.mxu1 %vm416_vm1, %v3463_v7  ;;  %3066 = vmatprep.mubr.msk.bf16.mxu0 %vm416_vm1, %v3586_v17  ;;  %v1255_v7 = vshll.u32 %v3727_v47, 16 }
  0xc2   : > { %2927 = vmatmul.mubr.msk.bf16.vlgmr.msra.gmra.mrb[0].mxu1 %vm416_vm1, %v3466_v8  ;;  %3067 = vmatmul.mubr.msk.bf16.gmra.mrb[12].mxu0 %vm416_vm1, %v3623_v38  ;;  %v1257_v8 = vrot.slane %v1255_v7, 1 }
  0xc3   : > { %2930 = vmatprep.mubr.msk.bf16.mxu1 %vm416_vm1, %v3475_v15  ;;  %3070 = vmatprep.mubr.msk.bf16.mxu0 %vm416_vm1, %v3630_v44 }
  0xc4   : > { %3116 = vmatpush3.bf16.msra.mxu1 %v3428_v0  ;;  %v3388_v0 = vld [vmem:[%s3453_s27 + $0x80] ss:$0 sps:$4 sm:$0xff]   ;;  %v1261_v15 = vor.u32 %v1259_v35, %v1257_v8  ;;  %v1258_v51 = vsel %vm287_vm0, %v3678_v10, %v1257_v8 }
  0xc5   : > { %3115 = vmatprep.subr.bf16.mxu1 %v3437_v2  ;;  %v1870_v59 = vshll.u32 %v3388_v0, 16 }
  0xc7   : > { %v1872_v63 = vrot.slane %v1870_v59, 1 }
  0xc8   : > { %3117 = vmatpush3.bf16.msra.mxu1 %v3437_v2  ;;  %v1866_v2 = vshrl.u32 %v3833_v19, 16 }
  0xca   : > { %2931 = vmatmul.mubr.msk.bf16.gmra.mrb[4].mxu1 %vm416_vm1, %v3478_v16  ;;  %3071 = vmatmul.mubr.msk.bf16.gmra.mrb[16].mxu0 %vm416_vm1, %v3657_v46  ;;  %v1865_v16 = vsel %vm287_vm0, %v1261_v15, %v1864_v49 }
  0xcb   : > { %2934 = vmatprep.mubr.msk.bf16.mxu1 %vm416_vm1, %v3484_v25  ;;  %3074 = vmatprep.mubr.msk.bf16.mxu0 %vm416_vm1, %v3664_v5  ;;  %v1868_v25 = vor.u32 %v1866_v2, %v1864_v49 }
  0xcd   : > { %v1873_v17 = vsel %vm287_vm0, %v1868_v25, %v1872_v63 }
  0xd2   : > { %2935 = vmatmul.mubr.msk.bf16.gmra.mrb[8].mxu1 %vm416_vm1, %v3488_v30  ;;  %3075 = vmatmul.mubr.msk.bf16.gmra.mrb[20].mxu0 %vm416_vm1, %v1258_v51  ;;  %v1263_v30 = vshll.u32 %v3748_v53, 16 }
  0xd3   : > { %2938 = vmatprep.mubr.msk.bf16.mxu1 %vm416_vm1, %v3507_v40  ;;  %3078 = vmatprep.mubr.msk.bf16.mxu0 %vm416_vm1, %v1865_v16 }
  0xd4   : > { %v1265_v40 = vrot.slane %v1263_v30, 1 }
  0xda   : > { %2939 = vmatmul.mubr.msk.bf16.gmra.mrb[12].mxu1 %vm416_vm1, %v3515_v43  ;;  %3079 = vmatmul.mubr.msk.bf16.gmra.mrb[24].mxu0 %vm416_vm1, %v1873_v17  ;;  %v2070_v43 = vrot.slane %v3833_v19, 1 }
  0xdb   : > { %2942 = vmatprep.mubr.msk.bf16.mxu1 %vm416_vm1, %v3547_v56  ;;  %3086 = vmatprep.mubr.msk.bf16.mxu0 %vm416_vm1, %v3626_v39  ;;  %v1266_v56 = vsel %vm287_vm0, %v1261_v15, %v1265_v40 }
  0xe2   : > { %2943 = vmatmul.mubr.msk.bf16.gmra.mrb[16].mxu1 %vm416_vm1, %v3563_v1  ;;  %3087 = vmatmul.mubr.msk.bf16.vlgmr.msra.gmra.mrb[0].mxu0 %vm416_vm1, %v3638_v50  ;;  %v2071_v1 = vsel %vm794_vm2, %v3741_v62, %v2070_v43 }
  0xe3   : > { %2946 = vmatprep.mubr.msk.bf16.mxu1 %vm416_vm1, %v3578_v11  ;;  %3090 = vmatprep.mubr.msk.bf16.mxu0 %vm416_vm1, %v3660_v61  ;;  %v2072_v11 = vrot.slane %v3388_v0, 1 }
  0xea   : > { %2947 = vmatmul.mubr.msk.bf16.gmra.mrb[20].mxu1 %vm416_vm1, %v3606_v26  ;;  %3091 = vmatmul.mubr.msk.bf16.gmra.mrb[4].mxu0 %vm416_vm1, %v3667_v9 }
  0xeb   : > { %2950 = vmatprep.mubr.msk.bf16.mxu1 %vm416_vm1, %v3597_v22  ;;  %3094 = vmatprep.mubr.msk.bf16.mxu0 %vm416_vm1, %v3685_v23  ;;  %v2073_v22 = vsel %vm794_vm2, %v2070_v43, %v2072_v11 }
  0xf2   : > { %2951 = vmatmul.mubr.msk.bf16.gmra.mrb[24].mxu1 %vm416_vm1, %v3727_v47  ;;  %3095 = vmatmul.mubr.msk.bf16.gmra.mrb[8].mxu0 %vm416_vm1, %v3688_v24  ;;  %v3974_v24 = vld [vmem:[%s4066_s2] ss:$0 sm:$0xff] }
  0xf3   : > { %2974 = vmatprep.mubr.msk.bf16.mxu1 %vm416_vm1, %v3623_v38  ;;  %3098 = vmatprep.mubr.msk.bf16.mxu0 %vm416_vm1, %v3700_v31 }
  0xfa   : > { %2975 = vmatmul.mubr.msk.bf16.vlgmr.msra.gmra.mrb[16].mxu1 %vm416_vm1, %v3630_v44  ;;  %3099 = vmatmul.mubr.msk.bf16.gmra.mrb[12].mxu0 %vm416_vm1, %v3703_v32 }
  0xfb   : > { %2978 = vmatprep.mubr.msk.bf16.mxu1 %vm416_vm1, %v3657_v46  ;;  %3102 = vmatprep.mubr.msk.bf16.mxu0 %vm416_vm1, %v3724_v45 }
 0x102   : > { %2979 = vmatmul.mubr.msk.bf16.gmra.mrb[20].mxu1 %vm416_vm1, %v3664_v5  ;;  %3103 = vmatmul.mubr.msk.bf16.gmra.mrb[16].mxu0 %vm416_vm1, %v3730_v48 }
 0x103   : > { %2982 = vmatprep.mubr.msk.bf16.mxu1 %vm416_vm1, %v1258_v51  ;;  %3106 = vmatprep.mubr.msk.bf16.mxu0 %vm416_vm1, %v3746_v52 }
 0x10a   : > { %2983 = vmatmul.mubr.msk.bf16.gmra.mrb[24].mxu1 %vm416_vm1, %v1266_v56  ;;  %3107 = vmatmul.mubr.msk.bf16.gmra.mrb[20].mxu0 %vm416_vm1, %v3753_v54 }
 0x10b   : > { %3110 = vmatprep.mubr.msk.bf16.mxu0 %vm416_vm1, %v2071_v1 }
 0x112   : > { %3111 = vmatmul.mubr.msk.bf16.gmra.mrb[24].mxu0 %vm416_vm1, %v2073_v22 }
 0x195   : > { %v2928_v26 = vpop.f32.mrb[0].mxu1 }
 0x196   : > { %v1108_v36 = vpop.f32.mrb[1].mxu1 }
 0x197   : > { %v2929_v38 = vpop.f32.mrb[2].mxu1 }
 0x198   : > { %v1111_v39 = vpop.f32.mrb[3].mxu1 }
 0x19d   : > { %v2932_v44 = vpop.f32.mrb[4].mxu1 }
 0x19e   : > { %v1124_v50 = vpop.f32.mrb[5].mxu1 }
 0x19f   : > { %v2933_v46 = vpop.f32.mrb[6].mxu1 }
 0x1a0   : > { %v1127_v61 = vpop.f32.mrb[7].mxu1 }
 0x1a5   : > { %v2936_v4 = vpop.f32.mrb[8].mxu1 }
 0x1a6   : > { %v1140_v5 = vpop.f32.mrb[9].mxu1 }
 0x1a7   : > { %v2937_v9 = vpop.f32.mrb[10].mxu1 }
 0x1a8   : > { %v3961_v10 = vpop.f32.mrb[11].mxu1 }
 0x1ad   : > { %v3963_v12 = vpop.f32.mrb[12].mxu1 }
 0x1ae   : > { %v3965_v13 = vpop.f32.mrb[13].mxu1 }
 0x1af   : > { %v3967_v20 = vpop.f32.mrb[14].mxu1 }
 0x1b0   : > { %v3969_v21 = vpop.f32.mrb[15].mxu1 }
 0x1b5   : > { %v3088_v23 = vpop.f32.mrb[0].mxu0 }
 0x1b6   : > { %v3118_v27 = vadd.f32 %v3088_v23, %v2928_v26  ;;  %v2126_v28 = vpop.f32.mrb[1].mxu0 }
 0x1b7   : > { %v3119_v31 = vadd.f32 %v2126_v28, %v1108_v36  ;;  %v3089_v32 = vpop.f32.mrb[2].mxu0 }
 0x1b8   : > { %v2274_v33 = vadd.f32 %v3118_v27, %v3974_v24  ;;  %v3120_v6 = vadd.f32 %v3089_v32, %v2929_v38  ;;  %v2129_v34 = vpop.f32.mrb[3].mxu0  ;;  %v2401_v38 = vld [vmem:[%s3990_s7] sm:$0xf] }
 0x1b9   : > { %v2272_v37 = vadd.f32 %v3119_v31, %v3974_v24  ;;  %v3121_v42 = vadd.f32 %v2129_v34, %v1111_v39 }
 0x1ba   : > { %v2302_v45 = vmax.f32 %v2274_v33, 0.0  ;;  %v2275_v47 = vadd.f32 %v3120_v6, %v3974_v24 }
 0x1bb   : > { %v2300_v48 = vmax.f32 %v2272_v37, 0.0  ;;  %v2273_v62 = vadd.f32 %v3121_v42, %v3974_v24 }
 0x1bc   : > { %v2303_v14 = vmax.f32 %v2275_v47, 0.0 }
 0x1bd   : > { %v2328_v52 = vmax.f32 %v2300_v48, %v2302_v45  ;;  %v2301_v53 = vmax.f32 %v2273_v62, 0.0  ;;  %v3092_v54 = vpop.f32.mrb[4].mxu0 }
 0x1be   : > { %v3122_v55 = vadd.f32 %v3092_v54, %v2932_v44  ;;  %v2142_v57 = vpop.f32.mrb[5].mxu0  ;;  %v2404_v54 = vld [vmem:[%s3990_s7 + $0x4] sm:$0xf] }
 0x1bf   : > { %2343 = vst.msk [vmem:[#allocation2] sm:$0xff] %vm2342_vm3, %v2328_v52  ;;  %v2329_v29 = vmax.f32 %v2301_v53, %v2303_v14  ;;  %v3123_v58 = vadd.f32 %v2142_v57, %v1124_v50  ;;  %v3093_v60 = vpop.f32.mrb[6].mxu0 }
 0x1c0   : > { %v2278_v18 = vadd.f32 %v3122_v55, %v3974_v24  ;;  %v3124_v19 = vadd.f32 %v3093_v60, %v2933_v46  ;;  %v2145_v3 = vpop.f32.mrb[7].mxu0 }
 0x1c1   : > { %2344 = vst.msk [vmem:[#allocation2 + $0x8] sm:$0xff] %vm2342_vm3, %v2329_v29  ;;  %v2276_v7 = vadd.f32 %v3123_v58, %v3974_v24  ;;  %v3125_v35 = vadd.f32 %v2145_v3, %v1127_v61 }
 0x1c2   : > { %v2306_v41 = vmax.f32 %v2278_v18, 0.0  ;;  %v2279_v8 = vadd.f32 %v3124_v19, %v3974_v24 }
 0x1c3   : > { %v2304_v0 = vmax.f32 %v2276_v7, 0.0  ;;  %v2277_v15 = vadd.f32 %v3125_v35, %v3974_v24 }
 0x1c4   : > { %v2307_v49 = vmax.f32 %v2279_v8, 0.0 }
 0x1c5   : > { %v2330_v51 = vmax.f32 %v2304_v0, %v2306_v41  ;;  %v2305_v2 = vmax.f32 %v2277_v15, 0.0  ;;  %v3096_v59 = vpop.f32.mrb[8].mxu0 }
 0x1c6   : > { %v3126_v16 = vadd.f32 %v3096_v59, %v2936_v4  ;;  %v2158_v25 = vpop.f32.mrb[9].mxu0 }
 0x1c7   : > { %2345 = vst.msk [vmem:[#allocation2 + $0x10] sm:$0xff] %vm2342_vm3, %v2330_v51  ;;  %v2331_v63 = vmax.f32 %v2305_v2, %v2307_v49  ;;  %v3127_v17 = vadd.f32 %v2158_v25, %v1140_v5  ;;  %v3097_v30 = vpop.f32.mrb[10].mxu0 }
 0x1c8   : > { %v2357_v40 = vld [vmem:[#allocation2] ss:$2 sm:$0x7f]  ;;  %v2371_v43 = vld [vmem:[#allocation2 + $0x1] ss:$2 sm:$0x7f]  ;;  %v2282_v56 = vadd.f32 %v3126_v16, %v3974_v24  ;;  %v3128_v1 = vadd.f32 %v3097_v30, %v2937_v9 }
 0x1c9   : > { %v2384_v11 = vmax.f32 %v2357_v40, %v2371_v43  ;;  %2346 = vst.msk [vmem:[#allocation2 + $0x18] sm:$0xff] %vm2342_vm3, %v2331_v63  ;;  %v2280_v22 = vadd.f32 %v3127_v17, %v3974_v24  ;;  %v2161_v26 = vpop.f32.mrb[11].mxu0 }
 0x1ca   : > { %v2310_v39 = vmax.f32 %v2282_v56, 0.0  ;;  %v2283_v44 = vadd.f32 %v3128_v1, %v3974_v24  ;;  %v3129_v50 = vadd.f32 %v2161_v26, %v3961_v10 }
 0x1cb   : > { %v2391_v46 = vpack.c.bf16 %v2384_v11, %v2384_v11  ;;  %v2308_v61 = vmax.f32 %v2280_v22, 0.0  ;;  %v2407_v11 = vld [vmem:[%s3990_s7 + $0x8] sm:$0xf] }
 0x1cc   : > { %v2311_v4 = vmax.f32 %v2283_v44, 0.0  ;;  %v2281_v5 = vadd.f32 %v3129_v50, %v3974_v24 }
 0x1cd   : > { %v2402_v9 = vsel %vm3996_vm6, %v2391_v46, %v2401_v38  ;;  %v2332_v23 = vmax.f32 %v2308_v61, %v2310_v39  ;;  %v2976_v27 = vpop.f32.mrb[16].mxu1  ;;  %v3100_v28 = vpop.f32.mrb[12].mxu0 }
 0x1ce   : > { %2403 = vst [vmem:[%s3990_s7] sm:$0xf] %v2402_v9  ;;  %v2309_v31 = vmax.f32 %v2281_v5, 0.0  ;;  %v3130_v32 = vadd.f32 %v3100_v28, %v3963_v12  ;;  %v1383_v33 = vpop.f32.mrb[17].mxu1  ;;  %v2174_v6 = vpop.f32.mrb[13].mxu0 }
 0x1cf   : > { %2347 = vst.msk [vmem:[#allocation2 + $0x20] sm:$0xff] %vm2342_vm3, %v2332_v23  ;;  %v3131_v10 = vadd.f32 %v2174_v6, %v3965_v13  ;;  %v2977_v34 = vpop.f32.mrb[18].mxu1  ;;  %v3101_v37 = vpop.f32.mrb[14].mxu0 }
 0x1d0   : > { %v2359_v42 = vld [vmem:[#allocation2 + $0x10] ss:$2 sm:$0x7f]  ;;  %v2373_v45 = vld [vmem:[#allocation2 + $0x11] ss:$2 sm:$0x7f]  ;;  %v2333_v47 = vmax.f32 %v2309_v31, %v2311_v4  ;;  %v2286_v48 = vadd.f32 %v3130_v32, %v3974_v24  ;;  %v3132_v62 = vadd.f32 %v3101_v37, %v3967_v20 }
 0x1d1   : > { %v2385_v14 = vmax.f32 %v2359_v42, %v2373_v45  ;;  %v2284_v52 = vadd.f32 %v3131_v10, %v3974_v24  ;;  %v1386_v12 = vpop.f32.mrb[19].mxu1  ;;  %v2177_v53 = vpop.f32.mrb[15].mxu0 }
 0x1d2   : > { %2348 = vst.msk [vmem:[#allocation2 + $0x28] sm:$0xff] %vm2342_vm3, %v2333_v47  ;;  %v2314_v55 = vmax.f32 %v2286_v48, 0.0  ;;  %v2287_v13 = vadd.f32 %v3132_v62, %v3974_v24  ;;  %v3133_v57 = vadd.f32 %v2177_v53, %v3969_v21 }
 0x1d3   : > { %v2392_v29 = vpack.c.bf16 %v2385_v14, %v2385_v14  ;;  %v2312_v58 = vmax.f32 %v2284_v52, 0.0  ;;  %v2410_v52 = vld [vmem:[%s3990_s7 + $0xc] sm:$0xf] }
 0x1d4   : > { %v2315_v60 = vmax.f32 %v2287_v13, 0.0  ;;  %v2285_v18 = vadd.f32 %v3133_v57, %v3974_v24 }
 0x1d5   : > { %v2405_v20 = vsel %vm3996_vm6, %v2392_v29, %v2404_v54  ;;  %v2334_v19 = vmax.f32 %v2312_v58, %v2314_v55  ;;  %v2980_v3 = vpop.f32.mrb[20].mxu1  ;;  %v3104_v7 = vpop.f32.mrb[16].mxu0 }
 0x1d6   : > { %2406 = vst [vmem:[%s3990_s7 + $0x4] sm:$0xf] %v2405_v20  ;;  %v2313_v35 = vmax.f32 %v2285_v18, 0.0  ;;  %v3134_v41 = vadd.f32 %v3104_v7, %v2976_v27  ;;  %v1399_v8 = vpop.f32.mrb[21].mxu1  ;;  %v2190_v0 = vpop.f32.mrb[17].mxu0 }
 0x1d7   : > { %2349 = vst.msk [vmem:[#allocation2 + $0x30] sm:$0xff] %vm2342_vm3, %v2334_v19  ;;  %v3135_v15 = vadd.f32 %v2190_v0, %v1383_v33  ;;  %v2981_v21 = vpop.f32.mrb[22].mxu1  ;;  %v3105_v49 = vpop.f32.mrb[18].mxu0 }
 0x1d8   : > { %v2335_v51 = vmax.f32 %v2313_v35, %v2315_v60  ;;  %v2290_v2 = vadd.f32 %v3134_v41, %v3974_v24  ;;  %v3136_v59 = vadd.f32 %v3105_v49, %v2977_v34  ;;  %v1402_v16 = vpop.f32.mrb[23].mxu1  ;;  %v2193_v25 = vpop.f32.mrb[19].mxu0  ;;  %v2413_v49 = vld [vmem:[%s3990_s7 + $0x10] sm:$0xf] }
 0x1d9   : > { %v2361_v63 = vld [vmem:[#allocation2 + $0x20] ss:$2 sm:$0x7f]  ;;  %v2375_v17 = vld [vmem:[#allocation2 + $0x21] ss:$2 sm:$0x7f]  ;;  %v2288_v30 = vadd.f32 %v3135_v15, %v3974_v24  ;;  %v3137_v40 = vadd.f32 %v2193_v25, %v1386_v12 }
 0x1da   : > { %v2386_v43 = vmax.f32 %v2361_v63, %v2375_v17  ;;  %2350 = vst.msk [vmem:[#allocation2 + $0x38] sm:$0xff] %vm2342_vm3, %v2335_v51  ;;  %v2318_v56 = vmax.f32 %v2290_v2, 0.0  ;;  %v2291_v1 = vadd.f32 %v3136_v59, %v3974_v24 }
 0x1db   : > { %v2316_v22 = vmax.f32 %v2288_v30, 0.0  ;;  %v2289_v26 = vadd.f32 %v3137_v40, %v3974_v24 }
 0x1dc   : > { %v2393_v38 = vpack.c.bf16 %v2386_v43, %v2386_v43  ;;  %v2319_v39 = vmax.f32 %v2291_v1, 0.0 }
 0x1dd   : > { %v2336_v44 = vmax.f32 %v2316_v22, %v2318_v56  ;;  %v2317_v50 = vmax.f32 %v2289_v26, 0.0  ;;  %v2984_v46 = vpop.f32.mrb[24].mxu1  ;;  %v3108_v61 = vpop.f32.mrb[20].mxu0  ;;  %v2416_v26 = vld [vmem:[%s3990_s7 + $0x14] sm:$0xf] }
 0x1de   : > { %v2408_v4 = vsel %vm3996_vm6, %v2393_v38, %v2407_v11  ;;  %v3138_v5 = vadd.f32 %v3108_v61, %v2980_v3  ;;  %v1415_v9 = vpop.f32.mrb[25].mxu1  ;;  %v2206_v23 = vpop.f32.mrb[21].mxu0 }
 0x1df   : > { %2409 = vst [vmem:[%s3990_s7 + $0x8] sm:$0xf] %v2408_v4  ;;  %2351 = vst.msk [vmem:[#allocation2 + $0x40] sm:$0xff] %vm2342_vm3, %v2336_v44  ;;  %v2337_v27 = vmax.f32 %v2317_v50, %v2319_v39  ;;  %v3139_v28 = vadd.f32 %v2206_v23, %v1399_v8  ;;  %v2985_v31 = vpop.f32.mrb[26].mxu1  ;;  %v3109_v32 = vpop.f32.mrb[22].mxu0 }
 0x1e0   : > { %v2294_v33 = vadd.f32 %v3138_v5, %v3974_v24  ;;  %v3140_v6 = vadd.f32 %v3109_v32, %v2981_v21  ;;  %v1418_v10 = vpop.f32.mrb[27].mxu1  ;;  %v2209_v34 = vpop.f32.mrb[23].mxu0 }
 0x1e1   : > { %v2363_v37 = vld [vmem:[#allocation2 + $0x30] ss:$2 sm:$0x7f]  ;;  %v2377_v42 = vld [vmem:[#allocation2 + $0x31] ss:$2 sm:$0x7f]  ;;  %v2292_v45 = vadd.f32 %v3139_v28, %v3974_v24  ;;  %v3141_v47 = vadd.f32 %v2209_v34, %v1402_v16 }
 0x1e2   : > { %2352 = vst.msk [vmem:[#allocation2 + $0x48] sm:$0xff] %vm2342_vm3, %v2337_v27  ;;  %v2387_v48 = vmax.f32 %v2363_v37, %v2377_v42  ;;  %v2322_v62 = vmax.f32 %v2294_v33, 0.0  ;;  %v2295_v14 = vadd.f32 %v3140_v6, %v3974_v24 }
 0x1e3   : > { %v2320_v12 = vmax.f32 %v2292_v45, 0.0  ;;  %v2293_v53 = vadd.f32 %v3141_v47, %v3974_v24 }
 0x1e4   : > { %v2394_v54 = vpack.c.bf16 %v2387_v48, %v2387_v48  ;;  %v2323_v55 = vmax.f32 %v2295_v14, 0.0 }
 0x1e5   : > { %v2338_v13 = vmax.f32 %v2320_v12, %v2322_v62  ;;  %v2321_v57 = vmax.f32 %v2293_v53, 0.0  ;;  %v3112_v29 = vpop.f32.mrb[24].mxu0 }
 0x1e6   : > { %v2411_v58 = vsel %vm3996_vm6, %v2394_v54, %v2410_v52  ;;  %v3142_v60 = vadd.f32 %v3112_v29, %v2984_v46  ;;  %v2222_v18 = vpop.f32.mrb[25].mxu0  ;;  %v2419_v46 = vld [vmem:[%s3990_s7 + $0x18] sm:$0xf] }
 0x1e7   : > { %2412 = vst [vmem:[%s3990_s7 + $0xc] sm:$0xf] %v2411_v58  ;;  %2353 = vst.msk [vmem:[#allocation2 + $0x50] sm:$0xff] %vm2342_vm3, %v2338_v13  ;;  %v2339_v20 = vmax.f32 %v2321_v57, %v2323_v55  ;;  %v3143_v19 = vadd.f32 %v2222_v18, %v1415_v9  ;;  %v3113_v3 = vpop.f32.mrb[26].mxu0 }
 0x1e8   : > { %v2298_v41 = vadd.f32 %v3142_v60, %v3974_v24  ;;  %v3144_v8 = vadd.f32 %v3113_v3, %v2985_v31  ;;  %v2225_v21 = vpop.f32.mrb[27].mxu0 }
 0x1e9   : > { %v2365_v7 = vld [vmem:[#allocation2 + $0x40] ss:$2 sm:$0x7f]  ;;  %v2379_v35 = vld [vmem:[#allocation2 + $0x41] ss:$2 sm:$0x7f]  ;;  %v2296_v15 = vadd.f32 %v3143_v19, %v3974_v24  ;;  %v3145_v59 = vadd.f32 %v2225_v21, %v1418_v10 }
 0x1ea   : > { %v2388_v0 = vmax.f32 %v2365_v7, %v2379_v35  ;;  %2354 = vst.msk [vmem:[#allocation2 + $0x58] sm:$0xff] %vm2342_vm3, %v2339_v20  ;;  %v2326_v51 = vmax.f32 %v2298_v41, 0.0  ;;  %v2299_v2 = vadd.f32 %v3144_v8, %v3974_v24 }
 0x1eb   : > { %v2324_v25 = vmax.f32 %v2296_v15, 0.0  ;;  %v2297_v17 = vadd.f32 %v3145_v59, %v3974_v24 }
 0x1ec   : > { %v2395_v16 = vpack.c.bf16 %v2388_v0, %v2388_v0  ;;  %v2327_v63 = vmax.f32 %v2299_v2, 0.0 }
 0x1ed   : > { %v2340_v40 = vmax.f32 %v2324_v25, %v2326_v51  ;;  %v2325_v43 = vmax.f32 %v2297_v17, 0.0 }
 0x1ee   : > { %v2414_v30 = vsel %vm3996_vm6, %v2395_v16, %v2413_v49 }
 0x1ef   : > { %2415 = vst [vmem:[%s3990_s7 + $0x10] sm:$0xf] %v2414_v30  ;;  %2355 = vst.msk [vmem:[#allocation2 + $0x60] sm:$0xff] %vm2342_vm3, %v2340_v40  ;;  %v2341_v11 = vmax.f32 %v2325_v43, %v2327_v63 }
 0x1f1   : > { %v2367_v56 = vld [vmem:[#allocation2 + $0x50] ss:$2 sm:$0x7f]  ;;  %v2381_v1 = vld [vmem:[#allocation2 + $0x51] ss:$2 sm:$0x7f] }
 0x1f2   : > { %v2389_v22 = vmax.f32 %v2367_v56, %v2381_v1  ;;  %2356 = vst.msk [vmem:[#allocation2 + $0x68] sm:$0xff] %vm2342_vm3, %v2341_v11 }
 0x1f4   : > { %v2396_v38 = vpack.c.bf16 %v2389_v22, %v2389_v22 }
 0x1f6   : > { %v2417_v24 = vsel %vm3996_vm6, %v2396_v38, %v2416_v26 }
 0x1f7   : > { %2418 = vst [vmem:[%s3990_s7 + $0x14] sm:$0xf] %v2417_v24 }
 0x1f9   : > { %v2369_v39 = vld [vmem:[#allocation2 + $0x60] ss:$2 sm:$0x7f]  ;;  %v2383_v44 = vld [vmem:[#allocation2 + $0x61] ss:$2 sm:$0x7f] }
 0x1fa   : > { %v2390_v50 = vmax.f32 %v2369_v39, %v2383_v44 }
 0x1fc   : > { %v2397_v61 = vpack.c.bf16 %v2390_v50, %v2390_v50 }
 0x1fe   : > { %v2420_v4 = vsel %vm3996_vm6, %v2397_v61, %v2419_v46 }
 0x1ff   : > { %2421 = vst [vmem:[%s3990_s7 + $0x18] sm:$0xf] %v2420_v4 }
 0x200 PF: > { %s13_s12 = sadd.s32 1, %s3395_s12  }
 0x201   : > { %p10_p4 = scmp.ge.s32.totalorder %s13_s12, 4  }
 0x203   :  { %12 = sbr.rel (!%p10_p4) target bundleno = 1 (0x1), region = 83 }

// kernel: deep_cnn_forward.6
= control target key start
LH: loop header
LB: loop body
LE: loop exit
PB: predicated region body
PF: predicated region fallthrough
CT: control target
= control target key end

     0   :  { %s2433_s12 = smov 0   ;;  %s3025_s0 = inlined_call_operand.vmem [shape: bf16[2,160,64], index: 0, kind: input, shape index: {}]   ;;  %s3026_s1 = inlined_call_operand.vmem [shape: bf16[9,64,128], index: 1, kind: input, shape index: {}]   ;;  %s3027_s2 = inlined_call_operand.vmem [shape: f32[1,128], index: 2, kind: input, shape index: {}]   ;;  %s3028_s3 = inlined_call_operand.vmem [shape: bf16[2,3,3,128], index: 3, kind: output, shape index: {}]  }
   0x1 LB: > { %s1727_s13 = sadd.s32 4294967295, %s2409_s12   ;;  %p1731_p0 = scmp.ge.s32.totalorder %s2409_s12, 1  ;;  %s2409_s12 = sphi %s2433_s12, %s13_s12  }
   0x2   : > { %p137_p1 = scmp.lt.s32.totalorder %s2409_s12, 3 }
   0x4   : > { %p138_p2 = pnand %p1731_p0, %p137_p1 }
   0x5   : > { %v2355_v0 = vld [vmem:[%s3026_s1 + $0x20] sm:$0xff] (!%p138_p2)   ;;  %v2411_v1 = vmov (!%p138_p2), 0.0   ;;  %v2356_v2 = vld [vmem:[%s3026_s1 + $0x28] sm:$0xff] (!%p138_p2)   ;;  %p161_p3 = scmp.lt.s32.totalorder (!%p138_p2), %s1727_s13, 1  ;;  %vm2412_vm0 = vmmov (!%p138_p2), 0   ;;  %v2357_v3 = vld [vmem:[%s3026_s1 + $0x30] sm:$0xff] (!%p138_p2)  }
   0x6   : > { %141 = sbr.rel (%p138_p2) target bundleno = 499 (0x1f3), region = 32  ;;  %2011 = vmatprep.subr.bf16.mxu0 (!%p138_p2), %v2411_v1  ;;  %2335 = vmatprep.subr.bf16.mxu1 (!%p138_p2), %v2411_v1  ;;  %v2358_v4 = vld [vmem:[%s3026_s1 + $0x38] sm:$0xff] (!%p138_p2)   ;;  %vm246_vm1 = vsmask.f32 (!%p138_p2), 7424  ;;  %vm331_vm2 = vcmask (!%p138_p2), 523264   ;;  %v2363_v16 = vld [vmem:[%s3026_s1 + $0x40] sm:$0xff] (!%p138_p2)  }
   0x7   : > { %2012 = vmatpush3.bf16.msra.mxu0 (!%p138_p2), %v2355_v0  ;;  %2339 = vmatpush3.bf16.msra.mxu1 (!%p138_p2), %v2355_v0  ;;  %v2364_v25 = vld [vmem:[%s3026_s1] sm:$0xff] (!%p138_p2)   ;;  %v2367_v30 = vld [vmem:[%s3026_s1 + $0x48] sm:$0xff] (!%p138_p2)   ;;  %v2372_v43 = vld [vmem:[%s3026_s1 + $0x50] sm:$0xff] (!%p138_p2)   ;;  %vm574_vm3 = vcmask (!%p138_p2), 1046528   ;;  %vm1660_vm4 = vcmask (!%p138_p2), 1041408  }
   0x8   : > { %2013 = vmatprep.subr.bf16.mxu0 (!%p138_p2), %v2411_v1  ;;  %2336 = vmatprep.subr.bf16.mxu1 (!%p138_p2), %v2411_v1  ;;  %v2368_v38 = vld [vmem:[%s3026_s1 + $0x8] sm:$0xff] (!%p138_p2)   ;;  %v2371_v44 = vld [vmem:[%s3026_s1 + $0x10] sm:$0xff] (!%p138_p2)   ;;  %v2374_v50 = vld [vmem:[%s3026_s1 + $0x58] sm:$0xff] (!%p138_p2)   ;;  %vm1661_vm5 = vsmask.f32 (!%p138_p2), 1280 }
   0x9   : > { %2019 = vmatprep.mubr.msk.bf16.mxu0 (!%p138_p2), %vm2412_vm0, %v2411_v1  ;;  %2035 = vmatprep.mubr.msk.bf16.mxu1 (!%p138_p2), %vm2412_vm0, %v2411_v1  ;;  %v2373_v53 = vld [vmem:[%s3026_s1 + $0x18] sm:$0xff] (!%p138_p2)   ;;  %v2375_v62 = vld [vmem:[%s3026_s1 + $0x60] sm:$0xff] (!%p138_p2)   ;;  %vm3000_vm6 = vmand (!%p138_p2), %vm1660_vm4, %vm1661_vm5 }
   0xb   : > { %2014 = vmatpush3.bf16.msra.mxu0 (!%p138_p2), %v2356_v2  ;;  %2340 = vmatpush3.bf16.msra.mxu1 (!%p138_p2), %v2356_v2 }
   0xc   : > { %2015 = vmatprep.subr.bf16.mxu0 (!%p138_p2), %v2411_v1  ;;  %2337 = vmatprep.subr.bf16.mxu1 (!%p138_p2), %v2411_v1 }
   0xd   : > { %s3032_s13 = smov (!%p161_p3, %s1727_s13), 1 }
   0xe   : > { %s2343_s20 = smul.u32 80, %s3032_s13 }
   0xf   : > { %2016 = vmatpush3.bf16.msra.mxu0 %v2357_v3  ;;  %2341 = vmatpush3.bf16.msra.mxu1 %v2357_v3  ;;  %s2344_s18 = smul.u32 6, %s3032_s13 }
  0x10   : > { %s2469_s25 = scalar_lea.vmem %s3025_s0, %s2343_s20  ;;  %2017 = vmatprep.subr.bf16.mxu0 %v2411_v1  ;;  %2338 = vmatprep.subr.bf16.mxu1 %v2411_v1 }
  0x11   : > { %v2472_v5 = vld [vmem:[%s2469_s25] sm:$0xff]   ;;  %v2475_v6 = vld [vmem:[%s2469_s25 + $0x8] sm:$0xff]   ;;  %v2494_v17 = vld [vmem:[%s2469_s25 + $0x10] sm:$0xff]   ;;  %s2998_s21 = scalar_lea.vmem %s3028_s3, %s2344_s18 }
  0x12   : > { %v248_v7 = vshrl.u32 %v2472_v5, 16  ;;  %v250_v8 = vshll.u32 %v2472_v5, 16  ;;  %v255_v9 = vshll.u32 %v2475_v6, 16  ;;  %v2483_v10 = vld [vmem:[%s2469_s25 + $0x20] sm:$0xff]   ;;  %v2486_v11 = vld [vmem:[%s2469_s25 + $0x28] sm:$0xff]   ;;  %v2497_v18 = vld [vmem:[%s2469_s25 + $0x30] sm:$0xff]  }
  0x13   : > { %2018 = vmatpush3.bf16.msra.mxu0 %v2358_v4  ;;  %2342 = vmatpush3.bf16.msra.mxu1 %v2358_v4  ;;  %v279_v14 = vshll.u32 %v2483_v10, 16  ;;  %v283_v15 = vshrl.u32 %v2483_v10, 16  ;;  %v287_v19 = vshll.u32 %v2486_v11, 16  ;;  %v259_v20 = vshrl.u32 %v2475_v6, 16  ;;  %v186_v31 = vld [vmem:[%s2469_s25 + $0x38] sm:$0xf] }
  0x14   : > { %v252_v12 = vrot.slane %v250_v8, 1  ;;  %v257_v13 = vrot.slane %v255_v9, 1  ;;  %2083 = vmatprep.subr.bf16.mxu0 %v2411_v1  ;;  %2047 = vmatprep.subr.bf16.mxu1 %v2411_v1  ;;  %v263_v23 = vshll.u32 %v2494_v17, 16  ;;  %v291_v28 = vshrl.u32 %v2486_v11, 16  ;;  %v2524_v35 = vld [vmem:[%s2469_s25 + $0x18] sm:$0xff]   ;;  %v2377_v4 = vld [vmem:[%s3026_s1 + $0x68] sm:$0xff]  }
  0x15   : > { %v2503_v22 = vrot.slane %v279_v14, 1  ;;  %v289_v24 = vrot.slane %v287_v19, 1  ;;  %v295_v29 = vshll.u32 %v2497_v18, 16  ;;  %v2534_v39 = vcombine.low %v186_v31, %v186_v31  ;;  %v187_v58 = vld [vmem:[%s2469_s25 + $0x3c] sm:$0xf]  ;;  %v2376_v8 = vld [vmem:[%s3026_s1 + $0x80] sm:$0xff]  }
  0x16   : > { %v253_v21 = vor.u32 %v252_v12, %v248_v7  ;;  %v261_v33 = vor.u32 %v259_v20, %v257_v13  ;;  %v265_v34 = vrot.slane %v263_v23, 1  ;;  %v267_v40 = vshrl.u32 %v2494_v17, 16  ;;  %v2378_v12 = vld [vmem:[%s3026_s1 + $0x88] sm:$0xff]   ;;  %v2382_v19 = vld [vmem:[%s3026_s1 + $0x98] sm:$0xff]  }
  0x17   : > { %v285_v27 = vor.u32 %v283_v15, %v2503_v22  ;;  %v293_v36 = vor.u32 %v291_v28, %v289_v24  ;;  %v297_v37 = vrot.slane %v295_v29, 1  ;;  %v271_v42 = vshll.u32 %v2524_v35, 16  ;;  %v2380_v15 = vld [vmem:[%s3026_s1 + $0x90] sm:$0xff]  }
  0x18   : > { %v258_v26 = vsel %vm246_vm1, %v253_v21, %v257_v13  ;;  %v2539_v41 = vsel %vm246_vm1, %v261_v33, %v265_v34  ;;  %v299_v46 = vshrl.u32 %v2497_v18, 16  ;;  %v303_v47 = vshll.u32 %v2534_v39, 16  ;;  %v2381_v13 = vld [vmem:[%s3026_s1 + $0x78] sm:$0xff]   ;;  %v2385_v33 = vld [vmem:[%s3026_s1 + $0xa8] sm:$0xff]  }
  0x19   : > { %2020 = vmatmul.mubr.msk.bf16.vlgmr.msra.gmra.mrb[0].mxu0 %vm331_vm2, %v258_v26  ;;  %v2519_v32 = vsel %vm246_vm1, %v285_v27, %v289_v24  ;;  %v2550_v45 = vsel %vm246_vm1, %v293_v36, %v297_v37  ;;  %v269_v48 = vor.u32 %v267_v40, %v265_v34  ;;  %v273_v49 = vrot.slane %v271_v42, 1  ;;  %v2384_v34 = vld [vmem:[%s3026_s1 + $0xc0] sm:$0xff]   ;;  %v2387_v36 = vld [vmem:[%s3026_s1 + $0xb0] sm:$0xff]  }
  0x1a   : > { %2084 = vmatpush3.bf16.msra.mxu0 %v2363_v16  ;;  %2023 = vmatprep.mubr.msk.bf16.mxu0 %vm2412_vm0, %v2411_v1  ;;  %v301_v51 = vor.u32 %v299_v46, %v297_v37  ;;  %v305_v52 = vrot.slane %v303_v47, 1  ;;  %v275_v55 = vshrl.u32 %v2524_v35, 16  ;;  %v2584_v59 = vcombine.low %v186_v31, %v187_v58  ;;  %v2383_v31 = vld [vmem:[%s3026_s1 + $0xa0] sm:$0xff]   ;;  %v2390_v37 = vld [vmem:[%s3026_s1 + $0xb8] sm:$0xff]  }
  0x1b   : > { %2036 = vmatmul.mubr.msk.bf16.vlgmr.msra.gmra.mrb[0].mxu1 %vm331_vm2, %v2519_v32  ;;  %2085 = vmatprep.subr.bf16.mxu0 %v2411_v1  ;;  %v2572_v54 = vsel %vm246_vm1, %v269_v48, %v273_v49  ;;  %v575_v0 = vrot.slane %v2472_v5, 1  ;;  %v576_v2 = vrot.slane %v2475_v6, 1  ;;  %v578_v9 = vrot.slane %v2494_v17, 1  ;;  %v2790_v40 = vld [vmem:[%s2469_s25 + $0x40] sm:$0xf] }
  0x1c   : > { %2039 = vmatprep.mubr.msk.bf16.mxu1 %vm2412_vm0, %v2411_v1  ;;  %2048 = vmatpush3.bf16.msra.mxu1 %v2364_v25  ;;  %v306_v56 = vsel %vm246_vm1, %v301_v51, %v305_v52  ;;  %v277_v57 = vor.u32 %v275_v55, %v273_v49  ;;  %v884_v60 = vshll.u32 %v2584_v59, 16  ;;  %v580_v16 = vrot.slane %v2524_v35, 1  ;;  %v2393_v48 = vld [vmem:[%s3026_s1 + $0xe0] sm:$0xff]   ;;  %v2395_v49 = vld [vmem:[%s3026_s1 + $0xe8] sm:$0xff]   ;;  %v2400_v55 = vld [vmem:[%s3026_s1 + $0x118] sm:$0xff]  }
  0x1d   : > { %2049 = vmatprep.subr.bf16.mxu1 %v2411_v1  ;;  %v577_v7 = vsel %vm574_vm3, %v575_v0, %v576_v2  ;;  %v2641_v14 = vsel %vm574_vm3, %v576_v2, %v578_v9  ;;  %v586_v20 = vrot.slane %v2497_v18, 1  ;;  %v2663_v21 = vrot.slane %v2584_v59, 1  ;;  %v2396_v52 = vld [vmem:[%s3026_s1 + $0x108] sm:$0xff]  }
  0x1e   : > { %2086 = vmatpush3.bf16.msra.mxu0 %v2367_v30  ;;  %v2591_v61 = vsel %vm246_vm1, %v277_v57, %v2503_v22  ;;  %v2596_v63 = vrot.slane %v884_v60, 1  ;;  %v2666_v22 = vsel %vm574_vm3, %v578_v9, %v580_v16  ;;  %v582_v24 = vrot.slane %v2483_v10, 1 }
  0x1f   : > { %2087 = vmatprep.subr.bf16.mxu0 %v2411_v1  ;;  %v2670_v23 = vsel %vm574_vm3, %v586_v20, %v2663_v21  ;;  %v584_v26 = vrot.slane %v2486_v11, 1  ;;  %v588_v29 = vrot.slane %v2534_v39, 1  ;;  %v2391_v39 = vld [vmem:[%s3026_s1 + $0xd8] sm:$0xff]   ;;  %v888_v42 = vshrl.u32 %v2584_v59, 16 }
  0x20   : > { %2050 = vmatpush3.bf16.msra.mxu1 %v2368_v38  ;;  %v2604_v3 = vsel %vm246_vm1, %v301_v51, %v2596_v63  ;;  %v2683_v25 = vsel %vm574_vm3, %v580_v16, %v582_v24  ;;  %v2388_v38 = vld [vmem:[%s3026_s1 + $0xd0] sm:$0xff]  }
  0x21   : > { %2024 = vmatmul.mubr.msk.bf16.gmra.mrb[4].mxu0 %vm331_vm2, %v2539_v41  ;;  %2051 = vmatprep.subr.bf16.mxu1 %v2411_v1  ;;  %v2695_v27 = vsel %vm574_vm3, %v582_v24, %v584_v26  ;;  %v2706_v28 = vsel %vm574_vm3, %v584_v26, %v586_v20  ;;  %v589_v30 = vsel %vm574_vm3, %v586_v20, %v588_v29  ;;  %v2397_v51 = vld [vmem:[%s3026_s1 + $0xf0] sm:$0xff]  }
  0x22   : > { %2027 = vmatprep.mubr.msk.bf16.mxu0 %vm2412_vm0, %v2411_v1  ;;  %2088 = vmatpush3.bf16.msra.mxu0 %v2372_v43 }
  0x23   : > { %2040 = vmatmul.mubr.msk.bf16.gmra.mrb[4].mxu1 %vm331_vm2, %v2550_v45  ;;  %2089 = vmatprep.subr.bf16.mxu0 %v2411_v1 }
  0x24   : > { %2043 = vmatprep.mubr.msk.bf16.mxu1 %vm2412_vm0, %v2411_v1  ;;  %2052 = vmatpush3.bf16.msra.mxu1 %v2371_v44  ;;  %v2808_v44 = vor.u32 %v888_v42, %v2596_v63 }
  0x25   : > { %2053 = vmatprep.subr.bf16.mxu1 %v2411_v1 }
  0x26   : > { %2090 = vmatpush3.bf16.msra.mxu0 %v2374_v50  ;;  %v2394_v50 = vld [vmem:[%s3026_s1 + $0x100] sm:$0xff]  }
  0x27   : > { %2155 = vmatprep.subr.bf16.mxu0 %v2411_v1 }
  0x28   : > { %2054 = vmatpush3.bf16.msra.mxu1 %v2373_v53  ;;  %v2398_v53 = vld [vmem:[%s3026_s1 + $0x110] sm:$0xff]  }
  0x29   : > { %2028 = vmatmul.mubr.msk.bf16.gmra.mrb[8].mxu0 %vm331_vm2, %v2572_v54  ;;  %2119 = vmatprep.subr.bf16.mxu1 %v2411_v1 }
  0x2a   : > { %2031 = vmatprep.mubr.msk.bf16.mxu0 %vm2412_vm0, %v2411_v1 }
  0x2b   : > { %2044 = vmatmul.mubr.msk.bf16.gmra.mrb[8].mxu1 %vm331_vm2, %v306_v56 }
  0x2c   : > { %2055 = vmatprep.mubr.msk.bf16.mxu1 %vm2412_vm0, %v2411_v1 }
  0x31   : > { %2032 = vmatmul.mubr.msk.bf16.gmra.mrb[12].mxu0 %vm331_vm2, %v2591_v61 }
  0x32   : > { %2091 = vmatprep.mubr.msk.bf16.mxu0 %vm2412_vm0, %v2411_v1 }
  0x33   : > { %2056 = vmatmul.mubr.msk.bf16.vlgmr.msra.gmra.mrb[12].mxu1 %vm331_vm2, %v2472_v5  ;;  %v2379_v5 = vld [vmem:[%s3026_s1 + $0x70] sm:$0xff]  }
  0x34   : > { %2059 = vmatprep.mubr.msk.bf16.mxu1 %vm2412_vm0, %v2411_v1  ;;  %2120 = vmatpush3.bf16.msra.mxu1 %v2375_v62 }
  0x35   : > { %2121 = vmatprep.subr.bf16.mxu1 %v2411_v1 }
  0x38   : > { %2122 = vmatpush3.bf16.msra.mxu1 %v2377_v4 }
  0x39   : > { %2092 = vmatmul.mubr.msk.bf16.vlgmr.msra.gmra.mrb[16].mxu0 %vm331_vm2, %v577_v7  ;;  %2123 = vmatprep.subr.bf16.mxu1 %v2411_v1 }
  0x3a   : > { %2156 = vmatpush3.bf16.msra.mxu0 %v2376_v8  ;;  %2095 = vmatprep.mubr.msk.bf16.mxu0 %vm2412_vm0, %v2411_v1 }
  0x3b   : > { %2060 = vmatmul.mubr.msk.bf16.gmra.mrb[16].mxu1 %vm331_vm2, %v2475_v6  ;;  %2157 = vmatprep.subr.bf16.mxu0 %v2411_v1 }
  0x3c   : > { %2063 = vmatprep.mubr.msk.bf16.mxu1 %vm2412_vm0, %v2411_v1  ;;  %2124 = vmatpush3.bf16.msra.mxu1 %v2379_v5 }
  0x3d   : > { %2125 = vmatprep.subr.bf16.mxu1 %v2411_v1 }
  0x3e   : > { %2158 = vmatpush3.bf16.msra.mxu0 %v2378_v12 }
  0x3f   : > { %2159 = vmatprep.subr.bf16.mxu0 %v2411_v1 }
  0x40   : > { %2126 = vmatpush3.bf16.msra.mxu1 %v2381_v13  ;;  %v2402_v13 = vld [vmem:[%s2469_s25 + $0x48] ss:$0 sps:$4 sm:$0xff]  }
  0x41   : > { %2096 = vmatmul.mubr.msk.bf16.gmra.mrb[20].mxu0 %vm331_vm2, %v2641_v14  ;;  %2191 = vmatprep.subr.bf16.mxu1 %v2411_v1  ;;  %v1325_v26 = vshll.u32 %v2402_v13, 16 }
  0x42   : > { %2099 = vmatprep.mubr.msk.bf16.mxu0 %vm2412_vm0, %v2411_v1  ;;  %2160 = vmatpush3.bf16.msra.mxu0 %v2380_v15 }
  0x43   : > { %2064 = vmatmul.mubr.msk.bf16.gmra.mrb[20].mxu1 %vm331_vm2, %v2494_v17  ;;  %2161 = vmatprep.subr.bf16.mxu0 %v2411_v1 }
  0x44   : > { %2067 = vmatprep.mubr.msk.bf16.mxu1 %vm2412_vm0, %v2411_v1 }
  0x46   : > { %2162 = vmatpush3.bf16.msra.mxu0 %v2382_v19 }
  0x47   : > { %2227 = vmatprep.subr.bf16.mxu0 %v2411_v1 }
  0x49   : > { %2100 = vmatmul.mubr.msk.bf16.gmra.mrb[24].mxu0 %vm331_vm2, %v2666_v22 }
  0x4a   : > { %2103 = vmatprep.mubr.msk.bf16.mxu0 %vm2412_vm0, %v2411_v1 }
  0x4b   : > { %2068 = vmatmul.mubr.msk.bf16.gmra.mrb[24].mxu1 %vm331_vm2, %v2524_v35 }
  0x4c   : > { %2071 = vmatprep.mubr.msk.bf16.mxu1 %vm2412_vm0, %v2411_v1 }
  0x51   : > { %2104 = vmatmul.mubr.msk.bf16.gmra.mrb[28].mxu0 %vm331_vm2, %v2683_v25 }
  0x52   : > { %2107 = vmatprep.mubr.msk.bf16.mxu0 %vm2412_vm0, %v2411_v1 }
  0x53   : > { %2072 = vmatmul.mubr.msk.bf16.gmra.mrb[28].mxu1 %vm331_vm2, %v2483_v10 }
  0x54   : > { %2075 = vmatprep.mubr.msk.bf16.mxu1 %vm2412_vm0, %v2411_v1 }
  0x59   : > { %2108 = vmatmul.mubr.msk.bf16.gmra.mrb[32].mxu0 %vm331_vm2, %v2695_v27 }
  0x5a   : > { %2111 = vmatprep.mubr.msk.bf16.mxu0 %vm2412_vm0, %v2411_v1 }
  0x5b   : > { %2076 = vmatmul.mubr.msk.bf16.gmra.mrb[32].mxu1 %vm331_vm2, %v2486_v11 }
  0x5c   : > { %2079 = vmatprep.mubr.msk.bf16.mxu1 %vm2412_vm0, %v2411_v1 }
  0x61   : > { %2112 = vmatmul.mubr.msk.bf16.gmra.mrb[36].mxu0 %vm331_vm2, %v2706_v28 }
  0x62   : > { %2115 = vmatprep.mubr.msk.bf16.mxu0 %vm2412_vm0, %v2411_v1 }
  0x63   : > { %2080 = vmatmul.mubr.msk.bf16.gmra.mrb[36].mxu1 %vm331_vm2, %v2497_v18 }
  0x64   : > { %2127 = vmatprep.mubr.msk.bf16.mxu1 %vm2412_vm0, %v2411_v1 }
  0x69   : > { %2116 = vmatmul.mubr.msk.bf16.gmra.mrb[40].mxu0 %vm331_vm2, %v589_v30  ;;  %v1327_v30 = vrot.slane %v1325_v26, 1 }
  0x6a   : > { %2163 = vmatprep.mubr.msk.bf16.mxu0 %vm2412_vm0, %v2411_v1 }
  0x6b   : > { %2128 = vmatmul.mubr.msk.bf16.vlgmr.msra.gmra.mrb[40].mxu1 %vm331_vm2, %v2475_v6  ;;  %v2386_v6 = vld [vmem:[%s3026_s1 + $0xc8] sm:$0xff]  }
  0x6c   : > { %2131 = vmatprep.mubr.msk.bf16.mxu1 %vm2412_vm0, %v2411_v1  ;;  %2192 = vmatpush3.bf16.msra.mxu1 %v2383_v31 }
  0x6d   : > { %2193 = vmatprep.subr.bf16.mxu1 %v2411_v1 }
  0x70   : > { %2194 = vmatpush3.bf16.msra.mxu1 %v2385_v33 }
  0x71   : > { %2164 = vmatmul.mubr.msk.bf16.vlgmr.msra.gmra.mrb[44].mxu0 %vm331_vm2, %v2539_v41  ;;  %2195 = vmatprep.subr.bf16.mxu1 %v2411_v1  ;;  %v1819_v41 = vcombine.low %v2790_v40, %v2790_v40 }
  0x72   : > { %2228 = vmatpush3.bf16.msra.mxu0 %v2384_v34  ;;  %2167 = vmatprep.mubr.msk.bf16.mxu0 %vm2412_vm0, %v2411_v1 }
  0x73   : > { %2132 = vmatmul.mubr.msk.bf16.gmra.mrb[44].mxu1 %vm331_vm2, %v2494_v17  ;;  %2229 = vmatprep.subr.bf16.mxu0 %v2411_v1  ;;  %v892_v43 = vshll.u32 %v1819_v41, 16 }
  0x74   : > { %2135 = vmatprep.mubr.msk.bf16.mxu1 %vm2412_vm0, %v2411_v1  ;;  %2196 = vmatpush3.bf16.msra.mxu1 %v2387_v36 }
  0x75   : > { %2197 = vmatprep.subr.bf16.mxu1 %v2411_v1  ;;  %v894_v46 = vrot.slane %v892_v43, 1 }
  0x76   : > { %2230 = vmatpush3.bf16.msra.mxu0 %v2386_v6 }
  0x77   : > { %2231 = vmatprep.subr.bf16.mxu0 %v2411_v1  ;;  %v895_v47 = vsel %vm246_vm1, %v2808_v44, %v894_v46 }
  0x78   : > { %2198 = vmatpush3.bf16.msra.mxu1 %v2390_v37 }
  0x79   : > { %2168 = vmatmul.mubr.msk.bf16.gmra.mrb[48].mxu0 %vm331_vm2, %v2572_v54  ;;  %2263 = vmatprep.subr.bf16.mxu1 %v2411_v1 }
  0x7a   : > { %2171 = vmatprep.mubr.msk.bf16.mxu0 %vm2412_vm0, %v2411_v1  ;;  %2232 = vmatpush3.bf16.msra.mxu0 %v2388_v38 }
  0x7b   : > { %2136 = vmatmul.mubr.msk.bf16.gmra.mrb[48].mxu1 %vm331_vm2, %v2524_v35  ;;  %2233 = vmatprep.subr.bf16.mxu0 %v2411_v1 }
  0x7c   : > { %2139 = vmatprep.mubr.msk.bf16.mxu1 %vm2412_vm0, %v2411_v1 }
  0x7e   : > { %2234 = vmatpush3.bf16.msra.mxu0 %v2391_v39 }
  0x7f   : > { %2299 = vmatprep.subr.bf16.mxu0 %v2411_v1 }
  0x81   : > { %2172 = vmatmul.mubr.msk.bf16.gmra.mrb[52].mxu0 %vm331_vm2, %v2591_v61 }
  0x82   : > { %2175 = vmatprep.mubr.msk.bf16.mxu0 %vm2412_vm0, %v2411_v1 }
  0x83   : > { %2140 = vmatmul.mubr.msk.bf16.gmra.mrb[52].mxu1 %vm331_vm2, %v2483_v10 }
  0x84   : > { %2143 = vmatprep.mubr.msk.bf16.mxu1 %vm2412_vm0, %v2411_v1 }
  0x89   : > { %2176 = vmatmul.mubr.msk.bf16.gmra.mrb[56].mxu0 %vm331_vm2, %v2519_v32 }
  0x8a   : > { %2179 = vmatprep.mubr.msk.bf16.mxu0 %vm2412_vm0, %v2411_v1 }
  0x8b   : > { %2144 = vmatmul.mubr.msk.bf16.gmra.mrb[56].mxu1 %vm331_vm2, %v2486_v11 }
  0x8c   : > { %2147 = vmatprep.mubr.msk.bf16.mxu1 %vm2412_vm0, %v2411_v1 }
  0x91   : > { %2180 = vmatmul.mubr.msk.bf16.gmra.mrb[60].mxu0 %vm331_vm2, %v2550_v45 }
  0x92   : > { %2183 = vmatprep.mubr.msk.bf16.mxu0 %vm2412_vm0, %v2411_v1 }
  0x93   : > { %2148 = vmatmul.mubr.msk.bf16.gmra.mrb[60].mxu1 %vm331_vm2, %v2497_v18 }
  0x94   : > { %2151 = vmatprep.mubr.msk.bf16.mxu1 %vm2412_vm0, %v2411_v1 }
  0x99   : > { %2184 = vmatmul.mubr.msk.bf16.gmra.mrb[64].mxu0 %vm331_vm2, %v2604_v3 }
  0x9a   : > { %2187 = vmatprep.mubr.msk.bf16.mxu0 %vm2412_vm0, %v2411_v1 }
  0x9b   : > { %2152 = vmatmul.mubr.msk.bf16.gmra.mrb[64].mxu1 %vm331_vm2, %v2584_v59 }
  0x9c   : > { %2199 = vmatprep.mubr.msk.bf16.mxu1 %vm2412_vm0, %v2411_v1 }
  0xa1   : > { %2188 = vmatmul.mubr.msk.bf16.gmra.mrb[68].mxu0 %vm331_vm2, %v895_v47 }
  0xa2   : > { %2235 = vmatprep.mubr.msk.bf16.mxu0 %vm2412_vm0, %v2411_v1 }
  0xa3   : > { %2200 = vmatmul.mubr.msk.bf16.vlgmr.msra.gmra.mrb[68].mxu1 %vm331_vm2, %v2641_v14 }
  0xa4   : > { %2203 = vmatprep.mubr.msk.bf16.mxu1 %vm2412_vm0, %v2411_v1  ;;  %2264 = vmatpush3.bf16.msra.mxu1 %v2393_v48 }
  0xa5   : > { %2265 = vmatprep.subr.bf16.mxu1 %v2411_v1 }
  0xa8   : > { %2266 = vmatpush3.bf16.msra.mxu1 %v2395_v49 }
  0xa9   : > { %2236 = vmatmul.mubr.msk.bf16.vlgmr.msra.gmra.mrb[72].mxu0 %vm331_vm2, %v2494_v17  ;;  %2267 = vmatprep.subr.bf16.mxu1 %v2411_v1  ;;  %v2399_v17 = vld [vmem:[%s3026_s1 + $0xf8] sm:$0xff]  }
  0xaa   : > { %2300 = vmatpush3.bf16.msra.mxu0 %v2394_v50  ;;  %2239 = vmatprep.mubr.msk.bf16.mxu0 %vm2412_vm0, %v2411_v1 }
  0xab   : > { %2204 = vmatmul.mubr.msk.bf16.gmra.mrb[72].mxu1 %vm331_vm2, %v2666_v22  ;;  %2301 = vmatprep.subr.bf16.mxu0 %v2411_v1 }
  0xac   : > { %2207 = vmatprep.mubr.msk.bf16.mxu1 %vm2412_vm0, %v2411_v1  ;;  %2268 = vmatpush3.bf16.msra.mxu1 %v2397_v51 }
  0xad   : > { %2269 = vmatprep.subr.bf16.mxu1 %v2411_v1 }
  0xae   : > { %2302 = vmatpush3.bf16.msra.mxu0 %v2396_v52 }
  0xaf   : > { %2303 = vmatprep.subr.bf16.mxu0 %v2411_v1 }
  0xb0   : > { %2270 = vmatpush3.bf16.msra.mxu1 %v2399_v17 }
  0xb1   : > { %2240 = vmatmul.mubr.msk.bf16.gmra.mrb[76].mxu0 %vm331_vm2, %v2524_v35 }
  0xb2   : > { %2243 = vmatprep.mubr.msk.bf16.mxu0 %vm2412_vm0, %v2411_v1  ;;  %2304 = vmatpush3.bf16.msra.mxu0 %v2398_v53 }
  0xb3   : > { %2208 = vmatmul.mubr.msk.bf16.gmra.mrb[76].mxu1 %vm331_vm2, %v2683_v25  ;;  %2305 = vmatprep.subr.bf16.mxu0 %v2411_v1 }
  0xb4   : > { %2211 = vmatprep.mubr.msk.bf16.mxu1 %vm2412_vm0, %v2411_v1 }
  0xb6   : > { %2306 = vmatpush3.bf16.msra.mxu0 %v2400_v55 }
  0xb9   : > { %2244 = vmatmul.mubr.msk.bf16.gmra.mrb[80].mxu0 %vm331_vm2, %v2483_v10  ;;  %v1036_v10 = vrot.slane %v1819_v41, 1  ;;  %v1469_v41 = vrot.slane %v2402_v13, 1 }
  0xba   : > { %2247 = vmatprep.mubr.msk.bf16.mxu0 %vm2412_vm0, %v2411_v1 }
  0xbb   : > { %2212 = vmatmul.mubr.msk.bf16.gmra.mrb[80].mxu1 %vm331_vm2, %v2695_v27 }
  0xbc   : > { %2215 = vmatprep.mubr.msk.bf16.mxu1 %vm2412_vm0, %v2411_v1 }
  0xc1   : > { %2248 = vmatmul.mubr.msk.bf16.gmra.mrb[84].mxu0 %vm331_vm2, %v2486_v11  ;;  %v1037_v11 = vsel %vm574_vm3, %v2663_v21, %v1036_v10 }
  0xc2   : > { %2251 = vmatprep.mubr.msk.bf16.mxu0 %vm2412_vm0, %v2411_v1 }
  0xc3   : > { %2216 = vmatmul.mubr.msk.bf16.gmra.mrb[84].mxu1 %vm331_vm2, %v2706_v28 }
  0xc4   : > { %2219 = vmatprep.mubr.msk.bf16.mxu1 %vm2412_vm0, %v2411_v1 }
  0xc9   : > { %2252 = vmatmul.mubr.msk.bf16.gmra.mrb[88].mxu0 %vm331_vm2, %v2497_v18  ;;  %v189_v18 = vld [vmem:[%s2469_s25 + $0x44] sm:$0xf] }
  0xca   : > { %2255 = vmatprep.mubr.msk.bf16.mxu0 %vm2412_vm0, %v2411_v1  ;;  %v2904_v35 = vcombine.low %v2790_v40, %v189_v18 }
  0xcb   : > { %2220 = vmatmul.mubr.msk.bf16.gmra.mrb[88].mxu1 %vm331_vm2, %v2670_v23 }
  0xcc   : > { %2223 = vmatprep.mubr.msk.bf16.mxu1 %vm2412_vm0, %v2411_v1  ;;  %v1317_v5 = vshll.u32 %v2904_v35, 16 }
  0xce   : > { %v1319_v12 = vrot.slane %v1317_v5, 1 }
  0xd1   : > { %2256 = vmatmul.mubr.msk.bf16.gmra.mrb[92].mxu0 %vm331_vm2, %v2584_v59 }
  0xd2   : > { %2259 = vmatprep.mubr.msk.bf16.mxu0 %vm2412_vm0, %v2411_v1 }
  0xd3   : > { %2224 = vmatmul.mubr.msk.bf16.gmra.mrb[92].mxu1 %vm331_vm2, %v1037_v11 }
  0xd4   : > { %2271 = vmatprep.mubr.msk.bf16.mxu1 %vm2412_vm0, %v2411_v1 }
  0xd9   : > { %2260 = vmatmul.mubr.msk.bf16.gmra.mrb[96].mxu0 %vm331_vm2, %v2904_v35 }
  0xda   : > { %2307 = vmatprep.mubr.msk.bf16.mxu0 %vm2412_vm0, %v2411_v1 }
  0xdb   : > { %2272 = vmatmul.mubr.msk.bf16.vlgmr.msra.gmra.mrb[96].mxu1 %vm331_vm2, %v2572_v54 }
  0xdc   : > { %2275 = vmatprep.mubr.msk.bf16.mxu1 %vm2412_vm0, %v2411_v1 }
  0xe1   : > { %2308 = vmatmul.mubr.msk.bf16.vlgmr.msra.gmra.mrb[100].mxu0 %vm331_vm2, %v2666_v22  ;;  %v1320_v22 = vsel %vm246_vm1, %v2808_v44, %v1319_v12 }
  0xe2   : > { %2311 = vmatprep.mubr.msk.bf16.mxu0 %vm2412_vm0, %v2411_v1 }
  0xe3   : > { %2276 = vmatmul.mubr.msk.bf16.gmra.mrb[100].mxu1 %vm331_vm2, %v2591_v61 }
  0xe4   : > { %2279 = vmatprep.mubr.msk.bf16.mxu1 %vm2412_vm0, %v2411_v1 }
  0xe9   : > { %2312 = vmatmul.mubr.msk.bf16.gmra.mrb[104].mxu0 %vm331_vm2, %v2683_v25  ;;  %v1321_v25 = vshrl.u32 %v2904_v35, 16 }
  0xea   : > { %2315 = vmatprep.mubr.msk.bf16.mxu0 %vm2412_vm0, %v2411_v1 }
  0xeb   : > { %2280 = vmatmul.mubr.msk.bf16.gmra.mrb[104].mxu1 %vm331_vm2, %v2519_v32  ;;  %v1323_v29 = vor.u32 %v1321_v25, %v1319_v12 }
  0xec   : > { %v387_v54 = vpop.f32.mrb[0].mxu0  ;;  %2283 = vmatprep.mubr.msk.bf16.mxu1 %vm2412_vm0, %v2411_v1 }
  0xed   : > { %v2021_v56 = vpop.f32.mrb[1].mxu0  ;;  %v1328_v39 = vsel %vm246_vm1, %v1323_v29, %v1327_v30 }
  0xee   : > { %v390_v57 = vpop.f32.mrb[2].mxu0  ;;  %v2930_v58 = vpop.f32.mrb[0].mxu1 }
  0xef   : > { %v2022_v59 = vpop.f32.mrb[3].mxu0  ;;  %v2037_v60 = vpop.f32.mrb[1].mxu1 }
  0xf0   : > { %v422_v61 = vpop.f32.mrb[2].mxu1 }
  0xf1   : > { %2316 = vmatmul.mubr.msk.bf16.gmra.mrb[108].mxu0 %vm331_vm2, %v2695_v27  ;;  %v2038_v62 = vpop.f32.mrb[3].mxu1  ;;  %v1467_v27 = vrot.slane %v2904_v35, 1 }
  0xf2   : > { %2319 = vmatprep.mubr.msk.bf16.mxu0 %vm2412_vm0, %v2411_v1 }
  0xf3   : > { %2284 = vmatmul.mubr.msk.bf16.gmra.mrb[108].mxu1 %vm331_vm2, %v2550_v45  ;;  %v1470_v47 = vsel %vm574_vm3, %v1467_v27, %v1469_v41 }
  0xf4   : > { %v395_v32 = vpop.f32.mrb[4].mxu0  ;;  %2287 = vmatprep.mubr.msk.bf16.mxu1 %vm2412_vm0, %v2411_v1 }
  0xf5   : > { %v2025_v63 = vpop.f32.mrb[5].mxu0 }
  0xf6   : > { %v398_v0 = vpop.f32.mrb[6].mxu0  ;;  %v2940_v2 = vpop.f32.mrb[4].mxu1 }
  0xf7   : > { %v2026_v4 = vpop.f32.mrb[7].mxu0  ;;  %v2041_v7 = vpop.f32.mrb[5].mxu1 }
  0xf8   : > { %v430_v8 = vpop.f32.mrb[6].mxu1 }
  0xf9   : > { %2320 = vmatmul.mubr.msk.bf16.gmra.mrb[112].mxu0 %vm331_vm2, %v2706_v28  ;;  %v2042_v9 = vpop.f32.mrb[7].mxu1 }
  0xfa   : > { %2323 = vmatprep.mubr.msk.bf16.mxu0 %vm2412_vm0, %v2411_v1 }
  0xfb   : > { %2288 = vmatmul.mubr.msk.bf16.gmra.mrb[112].mxu1 %vm331_vm2, %v2604_v3 }
  0xfc   : > { %v403_v45 = vpop.f32.mrb[8].mxu0  ;;  %2291 = vmatprep.mubr.msk.bf16.mxu1 %vm2412_vm0, %v2411_v1 }
  0xfd   : > { %v2029_v14 = vpop.f32.mrb[9].mxu0 }
  0xfe   : > { %v406_v15 = vpop.f32.mrb[10].mxu0  ;;  %v435_v16 = vpop.f32.mrb[8].mxu1 }
  0xff   : > { %v2030_v19 = vpop.f32.mrb[11].mxu0  ;;  %v2045_v20 = vpop.f32.mrb[9].mxu1 }
 0x100   : > { %v437_v24 = vpop.f32.mrb[10].mxu1 }
 0x101   : > { %2324 = vmatmul.mubr.msk.bf16.gmra.mrb[116].mxu0 %vm331_vm2, %v2670_v23  ;;  %v2046_v3 = vpop.f32.mrb[11].mxu1  ;;  %v1468_v23 = vsel %vm574_vm3, %v2663_v21, %v1467_v27 }
 0x102   : > { %2327 = vmatprep.mubr.msk.bf16.mxu0 %vm2412_vm0, %v2411_v1 }
 0x103   : > { %2292 = vmatmul.mubr.msk.bf16.gmra.mrb[116].mxu1 %vm331_vm2, %v1320_v22 }
 0x104   : > { %v411_v28 = vpop.f32.mrb[12].mxu0  ;;  %2295 = vmatprep.mubr.msk.bf16.mxu1 %vm2412_vm0, %v2411_v1 }
 0x105   : > { %v2033_v31 = vpop.f32.mrb[13].mxu0 }
 0x106   : > { %v512_v33 = vpop.f32.mrb[12].mxu1  ;;  %v414_v34 = vpop.f32.mrb[14].mxu0 }
 0x107   : > { %v513_v36 = vadd.f32 %v512_v33, %v387_v54  ;;  %v2057_v6 = vpop.f32.mrb[13].mxu1  ;;  %v2034_v37 = vpop.f32.mrb[15].mxu0 }
 0x108   : > { %v515_v38 = vpop.f32.mrb[14].mxu1 }
 0x109   : > { %2328 = vmatmul.mubr.msk.bf16.gmra.mrb[120].mxu0 %vm331_vm2, %v1468_v23  ;;  %v2058_v40 = vpop.f32.mrb[15].mxu1 }
 0x10a   : > { %2331 = vmatprep.mubr.msk.bf16.mxu0 %vm2412_vm0, %v2411_v1 }
 0x10b   : > { %2296 = vmatmul.mubr.msk.bf16.gmra.mrb[120].mxu1 %vm331_vm2, %v1328_v39 }
 0x10c   : > { %v669_v42 = vpop.f32.mrb[16].mxu0 }
 0x10d   : > { %v2970_v43 = vadd.f32 %v669_v42, %v513_v36  ;;  %v2093_v44 = vpop.f32.mrb[17].mxu0 }
 0x10e   : > { %v520_v21 = vpop.f32.mrb[16].mxu1  ;;  %v672_v46 = vpop.f32.mrb[18].mxu0 }
 0x10f   : > { %v521_v48 = vadd.f32 %v520_v21, %v395_v32  ;;  %v2061_v49 = vpop.f32.mrb[17].mxu1  ;;  %v2094_v50 = vpop.f32.mrb[19].mxu0 }
 0x110   : > { %v523_v51 = vpop.f32.mrb[18].mxu1 }
 0x111   : > { %v2062_v52 = vpop.f32.mrb[19].mxu1  ;;  %2332 = vmatmul.mubr.msk.bf16.gmra.mrb[124].mxu0 %vm331_vm2, %v1470_v47 }
 0x114   : > { %v677_v17 = vpop.f32.mrb[20].mxu0 }
 0x115   : > { %v724_v1 = vadd.f32 %v677_v17, %v521_v48  ;;  %v2097_v53 = vpop.f32.mrb[21].mxu0 }
 0x116   : > { %v528_v55 = vpop.f32.mrb[20].mxu1  ;;  %v680_v10 = vpop.f32.mrb[22].mxu0 }
 0x117   : > { %v529_v11 = vadd.f32 %v528_v55, %v403_v45  ;;  %v2065_v18 = vpop.f32.mrb[21].mxu1  ;;  %v2098_v35 = vpop.f32.mrb[23].mxu0 }
 0x118   : > { %v531_v54 = vpop.f32.mrb[22].mxu1 }
 0x119   : > { %v2066_v56 = vpop.f32.mrb[23].mxu1 }
 0x11c   : > { %v685_v57 = vpop.f32.mrb[24].mxu0 }
 0x11d   : > { %v726_v59 = vadd.f32 %v685_v57, %v529_v11  ;;  %v2101_v60 = vpop.f32.mrb[25].mxu0 }
 0x11e   : > { %v536_v61 = vpop.f32.mrb[24].mxu1  ;;  %v688_v62 = vpop.f32.mrb[26].mxu0 }
 0x11f   : > { %v537_v32 = vadd.f32 %v536_v61, %v411_v28  ;;  %v2069_v63 = vpop.f32.mrb[25].mxu1  ;;  %v2102_v0 = vpop.f32.mrb[27].mxu0 }
 0x120   : > { %v539_v4 = vpop.f32.mrb[26].mxu1 }
 0x121   : > { %v2070_v7 = vpop.f32.mrb[27].mxu1 }
 0x124   : > { %v693_v8 = vpop.f32.mrb[28].mxu0 }
 0x125   : > { %v728_v5 = vadd.f32 %v693_v8, %v537_v32  ;;  %v2105_v9 = vpop.f32.mrb[29].mxu0 }
 0x126   : > { %v544_v12 = vpop.f32.mrb[28].mxu1  ;;  %v696_v13 = vpop.f32.mrb[30].mxu0 }
 0x127   : > { %v545_v45 = vadd.f32 %v544_v12, %v2930_v58  ;;  %v2073_v14 = vpop.f32.mrb[29].mxu1  ;;  %v2106_v15 = vpop.f32.mrb[31].mxu0 }
 0x128   : > { %v547_v16 = vpop.f32.mrb[30].mxu1 }
 0x129   : > { %v2074_v19 = vpop.f32.mrb[31].mxu1 }
 0x12c   : > { %v701_v20 = vpop.f32.mrb[32].mxu0 }
 0x12d   : > { %v730_v22 = vadd.f32 %v701_v20, %v545_v45  ;;  %v2109_v24 = vpop.f32.mrb[33].mxu0 }
 0x12e   : > { %v552_v25 = vpop.f32.mrb[32].mxu1  ;;  %v704_v26 = vpop.f32.mrb[34].mxu0 }
 0x12f   : > { %v553_v3 = vadd.f32 %v552_v25, %v2940_v2  ;;  %v2077_v27 = vpop.f32.mrb[33].mxu1  ;;  %v2110_v28 = vpop.f32.mrb[35].mxu0 }
 0x130   : > { %v555_v29 = vpop.f32.mrb[34].mxu1 }
 0x131   : > { %v2078_v30 = vpop.f32.mrb[35].mxu1 }
 0x134   : > { %v709_v31 = vpop.f32.mrb[36].mxu0 }
 0x135   : > { %v732_v33 = vadd.f32 %v709_v31, %v553_v3  ;;  %v2113_v34 = vpop.f32.mrb[37].mxu0 }
 0x136   : > { %v712_v23 = vpop.f32.mrb[38].mxu0  ;;  %v560_v58 = vpop.f32.mrb[36].mxu1 }
 0x137   : > { %v2114_v36 = vpop.f32.mrb[39].mxu0  ;;  %v2081_v6 = vpop.f32.mrb[37].mxu1 }
 0x138   : > { %v562_v37 = vpop.f32.mrb[38].mxu1 }
 0x139   : > { %v2082_v38 = vpop.f32.mrb[39].mxu1 }
 0x13c   : > { %v717_v39 = vpop.f32.mrb[40].mxu0 }
 0x13d   : > { %v2117_v40 = vpop.f32.mrb[41].mxu0 }
 0x13e   : > { %v807_v41 = vpop.f32.mrb[40].mxu1  ;;  %v719_v42 = vpop.f32.mrb[42].mxu0 }
 0x13f   : > { %v860_v44 = vadd.f32 %v807_v41, %v2970_v43  ;;  %v2129_v2 = vpop.f32.mrb[41].mxu1  ;;  %v2118_v21 = vpop.f32.mrb[43].mxu0 }
 0x140   : > { %v810_v46 = vpop.f32.mrb[42].mxu1 }
 0x141   : > { %v2130_v47 = vpop.f32.mrb[43].mxu1 }
 0x144   : > { %v960_v48 = vpop.f32.mrb[44].mxu0 }
 0x145   : > { %v1013_v49 = vadd.f32 %v960_v48, %v860_v44  ;;  %v2165_v50 = vpop.f32.mrb[45].mxu0 }
 0x146   : > { %v815_v51 = vpop.f32.mrb[44].mxu1  ;;  %v963_v52 = vpop.f32.mrb[46].mxu0 }
 0x147   : > { %v862_v17 = vadd.f32 %v815_v51, %v724_v1  ;;  %v2133_v53 = vpop.f32.mrb[45].mxu1  ;;  %v2166_v55 = vpop.f32.mrb[47].mxu0 }
 0x148   : > { %v818_v10 = vpop.f32.mrb[46].mxu1 }
 0x149   : > { %v2134_v11 = vpop.f32.mrb[47].mxu1 }
 0x14c   : > { %v968_v18 = vpop.f32.mrb[48].mxu0 }
 0x14d   : > { %v1015_v35 = vadd.f32 %v968_v18, %v862_v17  ;;  %v2169_v54 = vpop.f32.mrb[49].mxu0 }
 0x14e   : > { %v823_v56 = vpop.f32.mrb[48].mxu1  ;;  %v971_v57 = vpop.f32.mrb[50].mxu0 }
 0x14f   : > { %v864_v43 = vadd.f32 %v823_v56, %v726_v59  ;;  %v2137_v60 = vpop.f32.mrb[49].mxu1  ;;  %v2170_v61 = vpop.f32.mrb[51].mxu0 }
 0x150   : > { %v826_v62 = vpop.f32.mrb[50].mxu1 }
 0x151   : > { %v2138_v32 = vpop.f32.mrb[51].mxu1 }
 0x154   : > { %v976_v63 = vpop.f32.mrb[52].mxu0 }
 0x155   : > { %v1017_v0 = vadd.f32 %v976_v63, %v864_v43  ;;  %v2173_v4 = vpop.f32.mrb[53].mxu0 }
 0x156   : > { %v831_v7 = vpop.f32.mrb[52].mxu1  ;;  %v979_v8 = vpop.f32.mrb[54].mxu0 }
 0x157   : > { %v866_v1 = vadd.f32 %v831_v7, %v728_v5  ;;  %v2141_v9 = vpop.f32.mrb[53].mxu1  ;;  %v2174_v12 = vpop.f32.mrb[55].mxu0 }
 0x158   : > { %v834_v13 = vpop.f32.mrb[54].mxu1 }
 0x159   : > { %v2142_v45 = vpop.f32.mrb[55].mxu1 }
 0x15c   : > { %v984_v14 = vpop.f32.mrb[56].mxu0 }
 0x15d   : > { %v1019_v15 = vadd.f32 %v984_v14, %v866_v1  ;;  %v2177_v16 = vpop.f32.mrb[57].mxu0 }
 0x15e   : > { %v839_v19 = vpop.f32.mrb[56].mxu1  ;;  %v987_v20 = vpop.f32.mrb[58].mxu0 }
 0x15f   : > { %v868_v59 = vadd.f32 %v839_v19, %v730_v22  ;;  %v2145_v24 = vpop.f32.mrb[57].mxu1  ;;  %v2178_v25 = vpop.f32.mrb[59].mxu0 }
 0x160   : > { %v842_v26 = vpop.f32.mrb[58].mxu1 }
 0x161   : > { %v2146_v3 = vpop.f32.mrb[59].mxu1 }
 0x164   : > { %v992_v27 = vpop.f32.mrb[60].mxu0 }
 0x165   : > { %v1021_v28 = vadd.f32 %v992_v27, %v868_v59  ;;  %v2181_v29 = vpop.f32.mrb[61].mxu0 }
 0x166   : > { %v847_v30 = vpop.f32.mrb[60].mxu1  ;;  %v995_v31 = vpop.f32.mrb[62].mxu0 }
 0x167   : > { %v870_v5 = vadd.f32 %v847_v30, %v732_v33  ;;  %v2149_v34 = vpop.f32.mrb[61].mxu1  ;;  %v2182_v23 = vpop.f32.mrb[63].mxu0 }
 0x168   : > { %v850_v58 = vpop.f32.mrb[62].mxu1 }
 0x169   : > { %v2150_v36 = vpop.f32.mrb[63].mxu1 }
 0x16c   : > { %v1000_v6 = vpop.f32.mrb[64].mxu0 }
 0x16d   : > { %v1023_v37 = vadd.f32 %v1000_v6, %v870_v5  ;;  %v2185_v38 = vpop.f32.mrb[65].mxu0 }
 0x16e   : > { %v1003_v39 = vpop.f32.mrb[66].mxu0  ;;  %v855_v40 = vpop.f32.mrb[64].mxu1 }
 0x16f   : > { %v2186_v22 = vpop.f32.mrb[67].mxu0  ;;  %v2153_v41 = vpop.f32.mrb[65].mxu1 }
 0x170   : > { %v857_v42 = vpop.f32.mrb[66].mxu1 }
 0x171   : > { %v2154_v44 = vpop.f32.mrb[67].mxu1 }
 0x174   : > { %v1008_v2 = vpop.f32.mrb[68].mxu0 }
 0x175   : > { %v2189_v21 = vpop.f32.mrb[69].mxu0 }
 0x176   : > { %v1102_v46 = vpop.f32.mrb[68].mxu1  ;;  %v1010_v47 = vpop.f32.mrb[70].mxu0 }
 0x177   : > { %v1155_v48 = vadd.f32 %v1102_v46, %v1013_v49  ;;  %v2201_v50 = vpop.f32.mrb[69].mxu1  ;;  %v2190_v33 = vpop.f32.mrb[71].mxu0 }
 0x178   : > { %v1105_v51 = vpop.f32.mrb[70].mxu1 }
 0x179   : > { %v2202_v52 = vpop.f32.mrb[71].mxu1 }
 0x17c   : > { %v1240_v17 = vpop.f32.mrb[72].mxu0 }
 0x17d   : > { %v1293_v53 = vadd.f32 %v1240_v17, %v1155_v48  ;;  %v2237_v55 = vpop.f32.mrb[73].mxu0 }
 0x17e   : > { %v1110_v10 = vpop.f32.mrb[72].mxu1  ;;  %v1243_v11 = vpop.f32.mrb[74].mxu0 }
 0x17f   : > { %v1157_v18 = vadd.f32 %v1110_v10, %v1015_v35  ;;  %v2205_v54 = vpop.f32.mrb[73].mxu1  ;;  %v2238_v56 = vpop.f32.mrb[75].mxu0 }
 0x180   : > { %v1113_v57 = vpop.f32.mrb[74].mxu1 }
 0x181   : > { %v2206_v43 = vpop.f32.mrb[75].mxu1 }
 0x184   : > { %v1248_v60 = vpop.f32.mrb[76].mxu0 }
 0x185   : > { %v1295_v61 = vadd.f32 %v1248_v60, %v1157_v18  ;;  %v2241_v62 = vpop.f32.mrb[77].mxu0 }
 0x186   : > { %v1118_v32 = vpop.f32.mrb[76].mxu1  ;;  %v1251_v63 = vpop.f32.mrb[78].mxu0 }
 0x187   : > { %v1159_v49 = vadd.f32 %v1118_v32, %v1017_v0  ;;  %v2209_v4 = vpop.f32.mrb[77].mxu1  ;;  %v2242_v7 = vpop.f32.mrb[79].mxu0 }
 0x188   : > { %v1121_v8 = vpop.f32.mrb[78].mxu1  ;;  %v2988_v4 = vld [vmem:[%s3027_s2] ss:$0 sm:$0xff] }
 0x189   : > { %v2210_v1 = vpop.f32.mrb[79].mxu1 }
 0x18c   : > { %v1256_v9 = vpop.f32.mrb[80].mxu0 }
 0x18d   : > { %v2977_v12 = vadd.f32 %v1256_v9, %v1159_v49  ;;  %v2245_v13 = vpop.f32.mrb[81].mxu0 }
 0x18e   : > { %v1126_v45 = vpop.f32.mrb[80].mxu1  ;;  %v1259_v35 = vpop.f32.mrb[82].mxu0 }
 0x18f   : > { %v1161_v14 = vadd.f32 %v1126_v45, %v1019_v15  ;;  %v2213_v16 = vpop.f32.mrb[81].mxu1  ;;  %v2246_v19 = vpop.f32.mrb[83].mxu0 }
 0x190   : > { %v1129_v20 = vpop.f32.mrb[82].mxu1 }
 0x191   : > { %v2214_v59 = vpop.f32.mrb[83].mxu1 }
 0x194   : > { %v1264_v24 = vpop.f32.mrb[84].mxu0 }
 0x195   : > { %v2979_v25 = vadd.f32 %v1264_v24, %v1161_v14  ;;  %v2249_v26 = vpop.f32.mrb[85].mxu0 }
 0x196   : > { %v1134_v0 = vpop.f32.mrb[84].mxu1  ;;  %v1267_v3 = vpop.f32.mrb[86].mxu0 }
 0x197   : > { %v1163_v27 = vadd.f32 %v1134_v0, %v1021_v28  ;;  %v2217_v29 = vpop.f32.mrb[85].mxu1  ;;  %v2250_v30 = vpop.f32.mrb[87].mxu0 }
 0x198   : > { %v1137_v31 = vpop.f32.mrb[86].mxu1 }
 0x199   : > { %v2218_v5 = vpop.f32.mrb[87].mxu1 }
 0x19c   : > { %v1272_v34 = vpop.f32.mrb[88].mxu0 }
 0x19d   : > { %v2981_v23 = vadd.f32 %v1272_v34, %v1163_v27  ;;  %v2253_v58 = vpop.f32.mrb[89].mxu0 }
 0x19e   : > { %v1142_v15 = vpop.f32.mrb[88].mxu1  ;;  %v1275_v36 = vpop.f32.mrb[90].mxu0 }
 0x19f   : > { %v1165_v6 = vadd.f32 %v1142_v15, %v1023_v37  ;;  %v2221_v38 = vpop.f32.mrb[89].mxu1  ;;  %v2254_v39 = vpop.f32.mrb[91].mxu0 }
 0x1a0   : > { %v1145_v40 = vpop.f32.mrb[90].mxu1 }
 0x1a1   : > { %v2222_v22 = vpop.f32.mrb[91].mxu1 }
 0x1a4   : > { %v1280_v41 = vpop.f32.mrb[92].mxu0 }
 0x1a5   : > { %v2983_v42 = vadd.f32 %v1280_v41, %v1165_v6  ;;  %v2257_v44 = vpop.f32.mrb[93].mxu0 }
 0x1a6   : > { %v1283_v28 = vpop.f32.mrb[94].mxu0  ;;  %v1150_v2 = vpop.f32.mrb[92].mxu1 }
 0x1a7   : > { %v2258_v21 = vpop.f32.mrb[95].mxu0  ;;  %v2225_v46 = vpop.f32.mrb[93].mxu1 }
 0x1a8   : > { %v1152_v47 = vpop.f32.mrb[94].mxu1 }
 0x1a9   : > { %v2226_v48 = vpop.f32.mrb[95].mxu1 }
 0x1ac   : > { %v1288_v50 = vpop.f32.mrb[96].mxu0 }
 0x1ad   : > { %v2261_v33 = vpop.f32.mrb[97].mxu0 }
 0x1ae   : > { %v1393_v51 = vpop.f32.mrb[96].mxu1  ;;  %v1290_v52 = vpop.f32.mrb[98].mxu0 }
 0x1af   : > { %v1446_v17 = vadd.f32 %v1393_v51, %v1293_v53  ;;  %v2273_v37 = vpop.f32.mrb[97].mxu1  ;;  %v2262_v55 = vpop.f32.mrb[99].mxu0 }
 0x1b0   : > { %v1396_v10 = vpop.f32.mrb[98].mxu1 }
 0x1b1   : > { %v2274_v11 = vpop.f32.mrb[99].mxu1 }
 0x1b4   : > { %v1535_v18 = vpop.f32.mrb[100].mxu0 }
 0x1b5   : > { %v1588_v54 = vadd.f32 %v1535_v18, %v1446_v17  ;;  %v2309_v56 = vpop.f32.mrb[101].mxu0 }
 0x1b6   : > { %v1401_v57 = vpop.f32.mrb[100].mxu1  ;;  %v1538_v43 = vpop.f32.mrb[102].mxu0 }
 0x1b7   : > { %v1448_v60 = vadd.f32 %v1401_v57, %v1295_v61  ;;  %v2277_v62 = vpop.f32.mrb[101].mxu1  ;;  %v2310_v32 = vpop.f32.mrb[103].mxu0  ;;  %v1607_v7 = vadd.f32 %v2988_v4, %v1588_v54 }
 0x1b8   : > { %v1404_v63 = vpop.f32.mrb[102].mxu1 }
 0x1b9   : > { %v2278_v49 = vpop.f32.mrb[103].mxu1  ;;  %v1619_v19 = vmax.f32 %v1607_v7, 0.0 }
 0x1bc   : > { %v1543_v53 = vpop.f32.mrb[104].mxu0 }
 0x1bd   : > { %v1590_v8 = vadd.f32 %v1543_v53, %v1448_v60  ;;  %v2313_v1 = vpop.f32.mrb[105].mxu0 }
 0x1be   : > { %v1409_v9 = vpop.f32.mrb[104].mxu1  ;;  %v1546_v13 = vpop.f32.mrb[106].mxu0  ;;  %v1666_v1 = vld [vmem:[%s2998_s21 + $0x2] sm:$0x3] }
 0x1bf   : > { %v1450_v45 = vadd.f32 %v1409_v9, %v2977_v12  ;;  %v1609_v61 = vadd.f32 %v2988_v4, %v1590_v8  ;;  %v2281_v35 = vpop.f32.mrb[105].mxu1  ;;  %v2314_v14 = vpop.f32.mrb[107].mxu0 }
 0x1c0   : > { %v1412_v16 = vpop.f32.mrb[106].mxu1 }
 0x1c1   : > { %v1621_v20 = vmax.f32 %v1609_v61, 0.0  ;;  %v2282_v59 = vpop.f32.mrb[107].mxu1 }
 0x1c3   : > { %v1631_v24 = vmax.f32 %v1619_v19, %v1621_v20 }
 0x1c4   : > { %v1551_v26 = vpop.f32.mrb[108].mxu0 }
 0x1c5   : > { %1637 = vst [vmem:[#allocation2] sm:$0xff] %v1631_v24  ;;  %v1592_v0 = vadd.f32 %v1551_v26, %v1450_v45  ;;  %v2317_v3 = vpop.f32.mrb[109].mxu0 }
 0x1c6   : > { %v1417_v27 = vpop.f32.mrb[108].mxu1  ;;  %v1554_v29 = vpop.f32.mrb[110].mxu0 }
 0x1c7   : > { %v1452_v30 = vadd.f32 %v1417_v27, %v2979_v25  ;;  %v2285_v31 = vpop.f32.mrb[109].mxu1  ;;  %v2318_v12 = vpop.f32.mrb[111].mxu0  ;;  %v1663_v25 = vld [vmem:[%s2998_s21] sm:$0x3]  ;;  %v1611_v39 = vadd.f32 %v2988_v4, %v1592_v0 }
 0x1c8   : > { %v1420_v5 = vpop.f32.mrb[110].mxu1 }
 0x1c9   : > { %v2286_v34 = vpop.f32.mrb[111].mxu1  ;;  %v1623_v51 = vmax.f32 %v1611_v39, 0.0 }
 0x1cc   : > { %v1643_v58 = vld [vmem:[#allocation2] ss:$2 sm:$0x7]  ;;  %v1649_v15 = vld [vmem:[#allocation2 + $0x1] ss:$2 sm:$0x7] }
 0x1cd   : > { %v1654_v36 = vmax.f32 %v1643_v58, %v1649_v15  ;;  %v1559_v6 = vpop.f32.mrb[112].mxu0 }
 0x1ce   : > { %v1425_v40 = vpop.f32.mrb[112].mxu1  ;;  %v1594_v22 = vadd.f32 %v1559_v6, %v1452_v30  ;;  %v2321_v41 = vpop.f32.mrb[113].mxu0  ;;  %v1669_v30 = vld [vmem:[%s2998_s21 + $0x4] sm:$0x3] }
 0x1cf   : > { %v1657_v44 = vpack.c.bf16 %v1654_v36, %v1654_v36  ;;  %v1454_v28 = vadd.f32 %v1425_v40, %v2981_v23  ;;  %v2289_v2 = vpop.f32.mrb[113].mxu1  ;;  %v1562_v21 = vpop.f32.mrb[114].mxu0 }
 0x1d0   : > { %v1613_v46 = vadd.f32 %v2988_v4, %v1594_v22  ;;  %v1428_v47 = vpop.f32.mrb[114].mxu1  ;;  %v2322_v48 = vpop.f32.mrb[115].mxu0 }
 0x1d1   : > { %v1664_v50 = vsel %vm3000_vm6, %v1657_v44, %v1663_v25  ;;  %v2290_v33 = vpop.f32.mrb[115].mxu1 }
 0x1d2   : > { %1665 = vst [vmem:[%s2998_s21] sm:$0x3] %v1664_v50  ;;  %v1625_v52 = vmax.f32 %v1613_v46, 0.0 }
 0x1d4   : > { %v1633_v17 = vmax.f32 %v1623_v51, %v1625_v52  ;;  %v1567_v37 = vpop.f32.mrb[116].mxu0 }
 0x1d5   : > { %v1596_v55 = vadd.f32 %v1567_v37, %v1454_v28  ;;  %v2325_v10 = vpop.f32.mrb[117].mxu0 }
 0x1d6   : > { %1639 = vst [vmem:[#allocation2 + $0x10] sm:$0xff] %v1633_v17  ;;  %v1433_v23 = vpop.f32.mrb[116].mxu1  ;;  %v1570_v11 = vpop.f32.mrb[118].mxu0 }
 0x1d7   : > { %v1456_v18 = vadd.f32 %v1433_v23, %v2983_v42  ;;  %v2293_v54 = vpop.f32.mrb[117].mxu1  ;;  %v2326_v56 = vpop.f32.mrb[119].mxu0  ;;  %v1615_v63 = vadd.f32 %v2988_v4, %v1596_v55 }
 0x1d8   : > { %v1436_v57 = vpop.f32.mrb[118].mxu1 }
 0x1d9   : > { %v2294_v43 = vpop.f32.mrb[119].mxu1  ;;  %v1627_v14 = vmax.f32 %v1615_v63, 0.0 }
 0x1dc   : > { %v1575_v60 = vpop.f32.mrb[120].mxu0 }
 0x1dd   : > { %v1645_v62 = vld [vmem:[#allocation2 + $0x10] ss:$2 sm:$0x7]  ;;  %v1651_v32 = vld [vmem:[#allocation2 + $0x11] ss:$2 sm:$0x7]  ;;  %v1598_v49 = vadd.f32 %v1575_v60, %v1456_v18 }
 0x1de   : > { %v1655_v53 = vmax.f32 %v1645_v62, %v1651_v32  ;;  %v2329_v7 = vpop.f32.mrb[121].mxu0  ;;  %v1441_v8 = vpop.f32.mrb[120].mxu1 }
 0x1df   : > { %v1617_v9 = vadd.f32 %v2988_v4, %v1598_v49  ;;  %v1578_v13 = vpop.f32.mrb[122].mxu0  ;;  %v2297_v45 = vpop.f32.mrb[121].mxu1 }
 0x1e0   : > { %v1658_v42 = vpack.c.bf16 %v1655_v53, %v1655_v53  ;;  %v2330_v61 = vpop.f32.mrb[123].mxu0  ;;  %v1443_v35 = vpop.f32.mrb[122].mxu1 }
 0x1e1   : > { %v1629_v16 = vmax.f32 %v1617_v9, 0.0  ;;  %v2298_v19 = vpop.f32.mrb[123].mxu1 }
 0x1e2   : > { %v1667_v20 = vsel %vm3000_vm6, %v1658_v42, %v1666_v1 }
 0x1e3   : > { %1668 = vst [vmem:[%s2998_s21 + $0x2] sm:$0x3] %v1667_v20  ;;  %v1635_v59 = vmax.f32 %v1627_v14, %v1629_v16 }
 0x1e4   : > { %v1583_v24 = vpop.f32.mrb[124].mxu0 }
 0x1e5   : > { %1641 = vst [vmem:[#allocation2 + $0x20] sm:$0xff] %v1635_v59  ;;  %v2333_v26 = vpop.f32.mrb[125].mxu0 }
 0x1e6   : > { %v1585_v0 = vpop.f32.mrb[126].mxu0 }
 0x1e7   : > { %v2334_v4 = vpop.f32.mrb[127].mxu0 }
 0x1ec   : > { %v1647_v3 = vld [vmem:[#allocation2 + $0x20] ss:$2 sm:$0x7]  ;;  %v1653_v27 = vld [vmem:[#allocation2 + $0x21] ss:$2 sm:$0x7] }
 0x1ed   : > { %v1656_v29 = vmax.f32 %v1647_v3, %v1653_v27 }
 0x1ef   : > { %v1659_v31 = vpack.c.bf16 %v1656_v29, %v1656_v29 }
 0x1f1   : > { %v1670_v12 = vsel %vm3000_vm6, %v1659_v31, %v1669_v30 }
 0x1f2   : > { %1671 = vst [vmem:[%s2998_s21 + $0x4] sm:$0x3] %v1670_v12 }
 0x1f3 PF: > { %s13_s12 = sadd.s32 1, %s2409_s12  }
 0x1f4   : > { %p10_p4 = scmp.ge.s32.totalorder %s13_s12, 4  }
 0x1f6   :  { %12 = sbr.rel (!%p10_p4) target bundleno = 1 (0x1), region = 75 }

// kernel: deep_cnn_forward.7
= control target key start
LH: loop header
LB: loop body
LE: loop exit
PB: predicated region body
PF: predicated region fallthrough
CT: control target
= control target key end

     0   :  { %v170_v36 = vlaneseq  ;;  %v1834_v37 = vmov 1966171168   ;;  %s2395_s0 = inlined_call_operand.vmem [shape: bf16[2,1152], index: 0, kind: input, shape index: {}]   ;;  %s2396_s1 = inlined_call_operand.vmem [shape: bf16[1152,256], index: 1, kind: input, shape index: {}]   ;;  %s2397_s2 = inlined_call_operand.vmem [shape: f32[1,256], index: 2, kind: input, shape index: {}]   ;;  %s2398_s3 = inlined_call_operand.vmem [shape: bf16[256,10], index: 3, kind: input, shape index: {}]   ;;  %s2399_s4 = inlined_call_operand.vmem [shape: f32[1,10], index: 4, kind: input, shape index: {}]   ;;  %s2400_s5 = inlined_call_operand.hbm [shape: f32[2,10], index: 5, kind: output, shape index: {}]  }
   0x1   :  { %v1577_v0 = vld [vmem:[%s2396_s1 + $0x4] ss:$8 sps:$4 sm:$0xff]   ;;  %v1581_v2 = vld [vmem:[%s2396_s1] ss:$8 sps:$4 sm:$0xff]   ;;  %v1583_v4 = vld [vmem:[%s2396_s1 + $0x14] ss:$8 sps:$4 sm:$0xff]   ;;  %v184_v38 = vunpack.c.l.s4 %v1834_v37 }
   0x2   :  { %v1579_v1 = vld [vmem:[%s2396_s1 + $0x204] ss:$8 sps:$4 sm:$0xff]   ;;  %974 = vmatprep.subr.bf16.mxu1 %v1577_v0  ;;  %v1582_v3 = vld [vmem:[%s2396_s1 + $0x200] ss:$8 sps:$4 sm:$0xff]   ;;  %v1585_v5 = vld [vmem:[%s2396_s1 + $0x214] ss:$8 sps:$4 sm:$0xff]  }
   0x3   :  { %1056 = vmatprep.subr.bf16.mxu0 %v1579_v1  ;;  %975 = vmatpush1.bf16.msra.mxu1 %v1581_v2  ;;  %v1587_v6 = vld [vmem:[%s2396_s1 + $0x10] ss:$8 sps:$4 sm:$0xff]   ;;  %v1589_v8 = vld [vmem:[%s2396_s1 + $0x24] ss:$8 sps:$4 sm:$0xff]   ;;  %v1593_v10 = vld [vmem:[%s2396_s1 + $0x20] ss:$8 sps:$4 sm:$0xff]   ;;  %v185_v43 = vunpack.c.0.s8 %v184_v38 }
   0x4   :  { %1057 = vmatpush1.bf16.msra.mxu0 %v1582_v3  ;;  %976 = vmatprep.subr.bf16.mxu1 %v1583_v4  ;;  %v1588_v7 = vld [vmem:[%s2396_s1 + $0x210] ss:$8 sps:$4 sm:$0xff]   ;;  %v1591_v9 = vld [vmem:[%s2396_s1 + $0x224] ss:$8 sps:$4 sm:$0xff]   ;;  %v1594_v11 = vld [vmem:[%s2396_s1 + $0x220] ss:$8 sps:$4 sm:$0xff]  }
   0x5   :  { %1058 = vmatprep.subr.bf16.mxu0 %v1585_v5  ;;  %v1595_v12 = vld [vmem:[%s2396_s1 + $0x34] ss:$8 sps:$4 sm:$0xff]   ;;  %v1599_v14 = vld [vmem:[%s2396_s1 + $0x30] ss:$8 sps:$4 sm:$0xff]   ;;  %v1601_v16 = vld [vmem:[%s2396_s1 + $0x44] ss:$8 sps:$4 sm:$0xff]  }
   0x6   :  { %v1597_v13 = vld [vmem:[%s2396_s1 + $0x234] ss:$8 sps:$4 sm:$0xff]   ;;  %v1600_v15 = vld [vmem:[%s2396_s1 + $0x230] ss:$8 sps:$4 sm:$0xff]   ;;  %v1603_v17 = vld [vmem:[%s2396_s1 + $0x244] ss:$8 sps:$4 sm:$0xff]  }
   0x7   :  { %977 = vmatpush1.bf16.msra.mxu1 %v1587_v6  ;;  %v1605_v18 = vld [vmem:[%s2396_s1 + $0x40] ss:$8 sps:$4 sm:$0xff]   ;;  %v1607_v20 = vld [vmem:[%s2396_s1 + $0x54] ss:$8 sps:$4 sm:$0xff]   ;;  %v1611_v22 = vld [vmem:[%s2396_s1 + $0x50] ss:$8 sps:$4 sm:$0xff]  }
   0x8   :  { %1059 = vmatpush1.bf16.msra.mxu0 %v1588_v7  ;;  %978 = vmatprep.subr.bf16.mxu1 %v1589_v8  ;;  %v1606_v19 = vld [vmem:[%s2396_s1 + $0x240] ss:$8 sps:$4 sm:$0xff]   ;;  %v1609_v21 = vld [vmem:[%s2396_s1 + $0x254] ss:$8 sps:$4 sm:$0xff]   ;;  %v1612_v23 = vld [vmem:[%s2396_s1 + $0x250] ss:$8 sps:$4 sm:$0xff]  }
   0x9   :  { %1060 = vmatprep.subr.bf16.mxu0 %v1591_v9  ;;  %v1613_v24 = vld [vmem:[%s2396_s1 + $0x64] ss:$8 sps:$4 sm:$0xff]   ;;  %v1617_v26 = vld [vmem:[%s2396_s1 + $0x60] ss:$8 sps:$4 sm:$0xff]   ;;  %v1619_v28 = vld [vmem:[%s2396_s1 + $0x74] ss:$8 sps:$4 sm:$0xff]  }
   0xa   :  { %v1615_v25 = vld [vmem:[%s2396_s1 + $0x264] ss:$8 sps:$4 sm:$0xff]   ;;  %v1618_v27 = vld [vmem:[%s2396_s1 + $0x260] ss:$8 sps:$4 sm:$0xff]   ;;  %v1621_v29 = vld [vmem:[%s2396_s1 + $0x274] ss:$8 sps:$4 sm:$0xff]  }
   0xb   :  { %979 = vmatpush1.bf16.msra.mxu1 %v1593_v10  ;;  %v1623_v30 = vld [vmem:[%s2396_s1 + $0x70] ss:$8 sps:$4 sm:$0xff]   ;;  %v1625_v32 = vld [vmem:[%s2396_s1 + $0x84] ss:$8 sps:$4 sm:$0xff]   ;;  %v1629_v34 = vld [vmem:[%s2396_s1 + $0x80] ss:$8 sps:$4 sm:$0xff]  }
   0xc   :  { %1061 = vmatpush1.bf16.msra.mxu0 %v1594_v11  ;;  %980 = vmatprep.subr.bf16.mxu1 %v1595_v12  ;;  %v1624_v31 = vld [vmem:[%s2396_s1 + $0x270] ss:$8 sps:$4 sm:$0xff]   ;;  %v1627_v33 = vld [vmem:[%s2396_s1 + $0x284] ss:$8 sps:$4 sm:$0xff]   ;;  %v1630_v35 = vld [vmem:[%s2396_s1 + $0x280] ss:$8 sps:$4 sm:$0xff]  }
   0xd   :  { %1062 = vmatprep.subr.bf16.mxu0 %v1597_v13  ;;  %v1631_v39 = vld [vmem:[%s2396_s1 + $0x94] ss:$8 sps:$4 sm:$0xff]   ;;  %v1635_v41 = vld [vmem:[%s2396_s1 + $0x90] ss:$8 sps:$4 sm:$0xff]   ;;  %v1984_v42 = vshrl.u32 %v170_v36, 7  ;;  %v22_v52 = vld [vmem:[%s2395_s0] sm:$0xff] }
   0xe   :  { %v1633_v40 = vld [vmem:[%s2396_s1 + $0x294] ss:$8 sps:$4 sm:$0xff]   ;;  %v1636_v44 = vld [vmem:[%s2396_s1 + $0x290] ss:$8 sps:$4 sm:$0xff]   ;;  %v1637_v45 = vld [vmem:[%s2396_s1 + $0xa4] ss:$8 sps:$4 sm:$0xff]   ;;  %v182_v55 = vcombine.high %v22_v52, %v22_v52 }
   0xf   :  { %981 = vmatpush1.bf16.msra.mxu1 %v1599_v14  ;;  %v1639_v46 = vld [vmem:[%s2396_s1 + $0x2a4] ss:$8 sps:$4 sm:$0xff]   ;;  %v1641_v47 = vld [vmem:[%s2396_s1 + $0xa0] ss:$8 sps:$4 sm:$0xff]   ;;  %v2002_v49 = vsub.s32 %v185_v43, %v1984_v42  ;;  %v1643_v50 = vld [vmem:[%s2396_s1 + $0xb4] ss:$8 sps:$4 sm:$0xff]  }
  0x10   :  { %1063 = vmatpush1.bf16.msra.mxu0 %v1600_v15  ;;  %982 = vmatprep.subr.bf16.mxu1 %v1601_v16  ;;  %v1642_v48 = vld [vmem:[%s2396_s1 + $0x2a0] ss:$8 sps:$4 sm:$0xff]   ;;  %v1645_v51 = vld [vmem:[%s2396_s1 + $0x2b4] ss:$8 sps:$4 sm:$0xff]   ;;  %v1647_v53 = vld [vmem:[%s2396_s1 + $0xb0] ss:$8 sps:$4 sm:$0xff]  }
  0x11   :  { %1064 = vmatprep.subr.bf16.mxu0 %v1603_v17  ;;  %v189_v54 = vrot.slane %v22_v52, %v2002_v49  ;;  %v1648_v56 = vld [vmem:[%s2396_s1 + $0x2b0] ss:$8 sps:$4 sm:$0xff]   ;;  %v1649_v57 = vld [vmem:[%s2396_s1 + $0xc4] ss:$8 sps:$4 sm:$0xff]   ;;  %v196_v60 = vrot.slane %v182_v55, %v2002_v49  ;;  %v1653_v61 = vld [vmem:[%s2396_s1 + $0xc0] ss:$8 sps:$4 sm:$0xff]  }
  0x12   :  { %v1651_v58 = vld [vmem:[%s2396_s1 + $0x2c4] ss:$8 sps:$4 sm:$0xff]   ;;  %v1654_v0 = vld [vmem:[%s2396_s1 + $0x2c0] ss:$8 sps:$4 sm:$0xff]   ;;  %v1655_v1 = vld [vmem:[%s2396_s1 + $0xd4] ss:$8 sps:$4 sm:$0xff]  }
  0x13   :  { %983 = vmatpush1.bf16.msra.mxu1 %v1605_v18  ;;  %v197_v59 = vcombine.high %v189_v54, %v189_v54  ;;  %v198_v63 = vcombine.high %v196_v60, %v196_v60  ;;  %v1657_v2 = vld [vmem:[%s2396_s1 + $0x2d4] ss:$8 sps:$4 sm:$0xff]   ;;  %v1659_v4 = vld [vmem:[%s2396_s1 + $0xd0] ss:$8 sps:$4 sm:$0xff]   ;;  %v1661_v6 = vld [vmem:[%s2396_s1 + $0xe4] ss:$8 sps:$4 sm:$0xff]   ;;  %v2081_v17 = vrot.slane %v189_v54, %v2002_v49  ;;  %v2084_v18 = vrot.slane %v196_v60, %v2002_v49 }
  0x14   :  { %1065 = vmatpush1.bf16.msra.mxu0 %v1606_v19  ;;  %984 = vmatprep.subr.bf16.mxu1 %v1607_v20  ;;  %v1660_v5 = vld [vmem:[%s2396_s1 + $0x2d0] ss:$8 sps:$4 sm:$0xff]   ;;  %v1663_v7 = vld [vmem:[%s2396_s1 + $0x2e4] ss:$8 sps:$4 sm:$0xff]   ;;  %v1665_v8 = vld [vmem:[%s2396_s1 + $0xe0] ss:$8 sps:$4 sm:$0xff]  }
  0x15   :  { %1066 = vmatprep.subr.bf16.mxu0 %v1609_v21  ;;  %v219_v62 = vrot.slane %v197_v59, %v2002_v49  ;;  %v226_v3 = vrot.slane %v198_v63, %v2002_v49  ;;  %v1666_v9 = vld [vmem:[%s2396_s1 + $0x2e0] ss:$8 sps:$4 sm:$0xff]   ;;  %v1667_v10 = vld [vmem:[%s2396_s1 + $0xf4] ss:$8 sps:$4 sm:$0xff]   ;;  %v1671_v12 = vld [vmem:[%s2396_s1 + $0xf0] ss:$8 sps:$4 sm:$0xff]  }
  0x16   :  { %v1669_v11 = vld [vmem:[%s2396_s1 + $0x2f4] ss:$8 sps:$4 sm:$0xff]   ;;  %v1672_v13 = vld [vmem:[%s2396_s1 + $0x2f0] ss:$8 sps:$4 sm:$0xff]   ;;  %v1675_v14 = vld [vmem:[%s2396_s1 + $0x104] ss:$8 sps:$4 sm:$0xff]  }
  0x17   :  { %985 = vmatpush1.bf16.msra.mxu1 %v1611_v22  ;;  %1006 = vmatprep.mubr.bf16.mxu1 %v219_v62  ;;  %v1679_v15 = vld [vmem:[%s2396_s1 + $0x304] ss:$8 sps:$4 sm:$0xff]   ;;  %v1673_v16 = vld [vmem:[%s2396_s1 + $0x100] ss:$8 sps:$4 sm:$0xff]   ;;  %v1682_v20 = vld [vmem:[%s2396_s1 + $0x114] ss:$8 sps:$4 sm:$0xff]   ;;  %v229_v22 = vcombine.high %v219_v62, %v219_v62 }
  0x18   :  { %1067 = vmatpush1.bf16.msra.mxu0 %v1612_v23  ;;  %986 = vmatprep.subr.bf16.mxu1 %v1613_v24  ;;  %v1677_v19 = vld [vmem:[%s2396_s1 + $0x300] ss:$8 sps:$4 sm:$0xff]   ;;  %v1685_v21 = vld [vmem:[%s2396_s1 + $0x314] ss:$8 sps:$4 sm:$0xff]   ;;  %v230_v23 = vcombine.high %v226_v3, %v226_v3  ;;  %v1680_v24 = vld [vmem:[%s2396_s1 + $0x110] ss:$8 sps:$4 sm:$0xff]  }
  0x19   :  { %1068 = vmatprep.subr.bf16.mxu0 %v1615_v25  ;;  %1088 = vmatprep.mubr.bf16.mxu0 %v226_v3  ;;  %v1683_v25 = vld [vmem:[%s2396_s1 + $0x310] ss:$8 sps:$4 sm:$0xff]   ;;  %v1698_v36 = vld [vmem:[%s2396_s1 + $0x140] ss:$8 sps:$4 sm:$0xff]   ;;  %v1706_v38 = vld [vmem:[%s2396_s1 + $0x154] ss:$8 sps:$4 sm:$0xff]  }
  0x1a   :  { %v1701_v37 = vld [vmem:[%s2396_s1 + $0x340] ss:$8 sps:$4 sm:$0xff]   ;;  %v1712_v43 = vld [vmem:[%s2396_s1 + $0x164] ss:$8 sps:$4 sm:$0xff]   ;;  %v1731_v59 = vld [vmem:[%s2396_s1 + $0x390] ss:$8 sps:$4 sm:$0xff]  }
  0x1b   :  { %987 = vmatpush1.bf16.msra.mxu1 %v1617_v26  ;;  %v1688_v26 = vld [vmem:[%s2396_s1 + $0x124] ss:$8 sps:$4 sm:$0xff]   ;;  %v1722_v54 = vld [vmem:[%s2396_s1 + $0x180] ss:$8 sps:$4 sm:$0xff]   ;;  %v1743_v3 = vld [vmem:[%s2396_s1 + $0x3b0] ss:$8 sps:$4 sm:$0xff]  }
  0x1c   :  { %1069 = vmatpush1.bf16.msra.mxu0 %v1618_v27  ;;  %988 = vmatprep.subr.bf16.mxu1 %v1619_v28  ;;  %v1691_v27 = vld [vmem:[%s2396_s1 + $0x324] ss:$8 sps:$4 sm:$0xff]   ;;  %v1686_v28 = vld [vmem:[%s2396_s1 + $0x120] ss:$8 sps:$4 sm:$0xff]  }
  0x1d   :  { %1070 = vmatprep.subr.bf16.mxu0 %v1621_v29  ;;  %v1689_v29 = vld [vmem:[%s2396_s1 + $0x320] ss:$8 sps:$4 sm:$0xff]   ;;  %v1724_v52 = vld [vmem:[%s2396_s1 + $0x184] ss:$8 sps:$4 sm:$0xff]  }
  0x1e   :  { %v1725_v55 = vld [vmem:[%s2396_s1 + $0x380] ss:$8 sps:$4 sm:$0xff]   ;;  %v1736_v60 = vld [vmem:[%s2396_s1 + $0x1a4] ss:$8 sps:$4 sm:$0xff]  }
  0x1f   :  { %989 = vmatpush1.bf16.msra.mxu1 %v1623_v30  ;;  %v1694_v30 = vld [vmem:[%s2396_s1 + $0x134] ss:$8 sps:$4 sm:$0xff]   ;;  %v1734_v62 = vld [vmem:[%s2396_s1 + $0x1a0] ss:$8 sps:$4 sm:$0xff]  }
  0x20   :  { %1071 = vmatpush1.bf16.msra.mxu0 %v1624_v31  ;;  %990 = vmatprep.subr.bf16.mxu1 %v1625_v32  ;;  %v1697_v31 = vld [vmem:[%s2396_s1 + $0x334] ss:$8 sps:$4 sm:$0xff]   ;;  %v1692_v32 = vld [vmem:[%s2396_s1 + $0x130] ss:$8 sps:$4 sm:$0xff]   ;;  %v1737_v63 = vld [vmem:[%s2396_s1 + $0x3a0] ss:$8 sps:$4 sm:$0xff]  }
  0x21   :  { %1072 = vmatprep.subr.bf16.mxu0 %v1627_v33  ;;  %v1695_v33 = vld [vmem:[%s2396_s1 + $0x330] ss:$8 sps:$4 sm:$0xff]  }
  0x23   :  { %991 = vmatpush1.bf16.msra.mxu1 %v1629_v34  ;;  %v1700_v34 = vld [vmem:[%s2396_s1 + $0x144] ss:$8 sps:$4 sm:$0xff]  }
  0x24   :  { %1073 = vmatpush1.bf16.msra.mxu0 %v1630_v35  ;;  %992 = vmatprep.subr.bf16.mxu1 %v1631_v39  ;;  %v1703_v35 = vld [vmem:[%s2396_s1 + $0x344] ss:$8 sps:$4 sm:$0xff]   ;;  %v1709_v39 = vld [vmem:[%s2396_s1 + $0x354] ss:$8 sps:$4 sm:$0xff]  }
  0x25   :  { %1074 = vmatprep.subr.bf16.mxu0 %v1633_v40  ;;  %v1704_v40 = vld [vmem:[%s2396_s1 + $0x150] ss:$8 sps:$4 sm:$0xff]  }
  0x27   :  { %993 = vmatpush1.bf16.msra.mxu1 %v1635_v41  ;;  %v1707_v41 = vld [vmem:[%s2396_s1 + $0x350] ss:$8 sps:$4 sm:$0xff]  }
  0x28   :  { %1075 = vmatpush1.bf16.msra.mxu0 %v1636_v44  ;;  %994 = vmatprep.subr.bf16.mxu1 %v1637_v45  ;;  %v1715_v44 = vld [vmem:[%s2396_s1 + $0x364] ss:$8 sps:$4 sm:$0xff]   ;;  %v1710_v45 = vld [vmem:[%s2396_s1 + $0x160] ss:$8 sps:$4 sm:$0xff]  }
  0x29   :  { %1076 = vmatprep.subr.bf16.mxu0 %v1639_v46  ;;  %v1713_v46 = vld [vmem:[%s2396_s1 + $0x360] ss:$8 sps:$4 sm:$0xff]  }
  0x2b   :  { %995 = vmatpush1.bf16.msra.mxu1 %v1641_v47  ;;  %v1718_v47 = vld [vmem:[%s2396_s1 + $0x174] ss:$8 sps:$4 sm:$0xff]  }
  0x2c   :  { %1077 = vmatpush1.bf16.msra.mxu0 %v1642_v48  ;;  %996 = vmatprep.subr.bf16.mxu1 %v1643_v50  ;;  %v1721_v48 = vld [vmem:[%s2396_s1 + $0x374] ss:$8 sps:$4 sm:$0xff]   ;;  %v1716_v50 = vld [vmem:[%s2396_s1 + $0x170] ss:$8 sps:$4 sm:$0xff]  }
  0x2d   :  { %1078 = vmatprep.subr.bf16.mxu0 %v1645_v51  ;;  %v1719_v51 = vld [vmem:[%s2396_s1 + $0x370] ss:$8 sps:$4 sm:$0xff]  }
  0x2f   :  { %997 = vmatpush1.bf16.msra.mxu1 %v1647_v53  ;;  %v1727_v53 = vld [vmem:[%s2396_s1 + $0x384] ss:$8 sps:$4 sm:$0xff]  }
  0x30   :  { %1079 = vmatpush1.bf16.msra.mxu0 %v1648_v56  ;;  %998 = vmatprep.subr.bf16.mxu1 %v1649_v57  ;;  %v1730_v56 = vld [vmem:[%s2396_s1 + $0x194] ss:$8 sps:$4 sm:$0xff]  }
  0x31   :  { %1080 = vmatprep.subr.bf16.mxu0 %v1651_v58  ;;  %v1733_v57 = vld [vmem:[%s2396_s1 + $0x394] ss:$8 sps:$4 sm:$0xff]   ;;  %v1728_v58 = vld [vmem:[%s2396_s1 + $0x190] ss:$8 sps:$4 sm:$0xff]  }
  0x33   :  { %999 = vmatpush1.bf16.msra.mxu1 %v1653_v61  ;;  %v1739_v61 = vld [vmem:[%s2396_s1 + $0x3a4] ss:$8 sps:$4 sm:$0xff]  }
  0x34   :  { %1081 = vmatpush1.bf16.msra.mxu0 %v1654_v0  ;;  %1000 = vmatprep.subr.bf16.mxu1 %v1655_v1  ;;  %v1742_v0 = vld [vmem:[%s2396_s1 + $0x1b4] ss:$8 sps:$4 sm:$0xff]  }
  0x35   :  { %1082 = vmatprep.subr.bf16.mxu0 %v1657_v2  ;;  %v1745_v1 = vld [vmem:[%s2396_s1 + $0x3b4] ss:$8 sps:$4 sm:$0xff]   ;;  %v1740_v2 = vld [vmem:[%s2396_s1 + $0x1b0] ss:$8 sps:$4 sm:$0xff]  }
  0x37   :  { %1001 = vmatpush1.bf16.msra.mxu1 %v1659_v4 }
  0x38   :  { %1083 = vmatpush1.bf16.msra.mxu0 %v1660_v5  ;;  %1002 = vmatprep.subr.bf16.mxu1 %v1661_v6 }
  0x39   :  { %1084 = vmatprep.subr.bf16.mxu0 %v1663_v7 }
  0x3b   :  { %1003 = vmatpush1.bf16.msra.mxu1 %v1665_v8 }
  0x3c   :  { %1085 = vmatpush1.bf16.msra.mxu0 %v1666_v9  ;;  %1004 = vmatprep.subr.bf16.mxu1 %v1667_v10 }
  0x3d   :  { %1086 = vmatprep.subr.bf16.mxu0 %v1669_v11 }
  0x3f   :  { %1005 = vmatpush1.bf16.msra.mxu1 %v1671_v12 }
  0x40   :  { %1087 = vmatpush1.bf16.msra.mxu0 %v1672_v13  ;;  %1015 = vmatprep.subr.bf16.mxu1 %v1675_v14 }
  0x41   :  { %1097 = vmatprep.subr.bf16.mxu0 %v1679_v15 }
  0x42   :  { %1007 = vmatmul.mubr.bf16.vlgmr.msra.gmra.mrb[0].mxu1 %v2081_v17 }
  0x43   :  { %1089 = vmatmul.mubr.bf16.vlgmr.msra.gmra.mrb[0].mxu0 %v2084_v18  ;;  %1016 = vmatpush1.bf16.msra.mxu1 %v1673_v16 }
  0x44   :  { %1098 = vmatpush1.bf16.msra.mxu0 %v1677_v19  ;;  %1017 = vmatprep.subr.bf16.mxu1 %v1682_v20 }
  0x45   :  { %1099 = vmatprep.subr.bf16.mxu0 %v1685_v21  ;;  %1047 = vmatprep.mubr.bf16.mxu1 %v229_v22 }
  0x46   :  { %1129 = vmatprep.mubr.bf16.mxu0 %v230_v23 }
  0x47   :  { %1018 = vmatpush1.bf16.msra.mxu1 %v1680_v24 }
  0x48   :  { %1100 = vmatpush1.bf16.msra.mxu0 %v1683_v25  ;;  %1019 = vmatprep.subr.bf16.mxu1 %v1688_v26 }
  0x49   :  { %1101 = vmatprep.subr.bf16.mxu0 %v1691_v27 }
  0x4b   :  { %1020 = vmatpush1.bf16.msra.mxu1 %v1686_v28 }
  0x4c   :  { %1102 = vmatpush1.bf16.msra.mxu0 %v1689_v29  ;;  %1021 = vmatprep.subr.bf16.mxu1 %v1694_v30 }
  0x4d   :  { %1103 = vmatprep.subr.bf16.mxu0 %v1697_v31 }
  0x4f   :  { %1022 = vmatpush1.bf16.msra.mxu1 %v1692_v32 }
  0x50   :  { %1104 = vmatpush1.bf16.msra.mxu0 %v1695_v33  ;;  %1023 = vmatprep.subr.bf16.mxu1 %v1700_v34 }
  0x51   :  { %1105 = vmatprep.subr.bf16.mxu0 %v1703_v35 }
  0x53   :  { %1024 = vmatpush1.bf16.msra.mxu1 %v1698_v36 }
  0x54   :  { %1106 = vmatpush1.bf16.msra.mxu0 %v1701_v37  ;;  %1025 = vmatprep.subr.bf16.mxu1 %v1706_v38 }
  0x55   :  { %1107 = vmatprep.subr.bf16.mxu0 %v1709_v39 }
  0x57   :  { %1026 = vmatpush1.bf16.msra.mxu1 %v1704_v40 }
  0x58   :  { %1108 = vmatpush1.bf16.msra.mxu0 %v1707_v41  ;;  %1027 = vmatprep.subr.bf16.mxu1 %v1712_v43 }
  0x59   :  { %1109 = vmatprep.subr.bf16.mxu0 %v1715_v44 }
  0x5b   :  { %1028 = vmatpush1.bf16.msra.mxu1 %v1710_v45 }
  0x5c   :  { %1110 = vmatpush1.bf16.msra.mxu0 %v1713_v46  ;;  %1029 = vmatprep.subr.bf16.mxu1 %v1718_v47 }
  0x5d   :  { %1111 = vmatprep.subr.bf16.mxu0 %v1721_v48 }
  0x5f   :  { %1030 = vmatpush1.bf16.msra.mxu1 %v1716_v50 }
  0x60   :  { %1112 = vmatpush1.bf16.msra.mxu0 %v1719_v51  ;;  %1031 = vmatprep.subr.bf16.mxu1 %v1724_v52 }
  0x61   :  { %1113 = vmatprep.subr.bf16.mxu0 %v1727_v53 }
  0x63   :  { %1032 = vmatpush1.bf16.msra.mxu1 %v1722_v54 }
  0x64   :  { %1114 = vmatpush1.bf16.msra.mxu0 %v1725_v55  ;;  %1033 = vmatprep.subr.bf16.mxu1 %v1730_v56 }
  0x65   :  { %1115 = vmatprep.subr.bf16.mxu0 %v1733_v57 }
  0x67   :  { %1034 = vmatpush1.bf16.msra.mxu1 %v1728_v58 }
  0x68   :  { %1116 = vmatpush1.bf16.msra.mxu0 %v1731_v59  ;;  %1035 = vmatprep.subr.bf16.mxu1 %v1736_v60 }
  0x69   :  { %1117 = vmatprep.subr.bf16.mxu0 %v1739_v61 }
  0x6b   :  { %1036 = vmatpush1.bf16.msra.mxu1 %v1734_v62 }
  0x6c   :  { %1118 = vmatpush1.bf16.msra.mxu0 %v1737_v63 }
  0x6d   :  { %10 = vsyncpa [#allocation3], 0  ;;  %1037 = vmatprep.subr.bf16.mxu1 %v1742_v0  ;;  %1119 = vmatprep.subr.bf16.mxu0 %v1745_v1  ;;  %v1748_v4 = vld [vmem:[%s2396_s1 + $0x1c4] ss:$8 sps:$4 sm:$0xff]   ;;  %v1746_v6 = vld [vmem:[%s2396_s1 + $0x1c0] ss:$8 sps:$4 sm:$0xff]   ;;  %v227_v23 = vcombine.high %v2081_v17, %v2081_v17  ;;  %v228_v24 = vcombine.high %v2084_v18, %v2084_v18 }
  0x6e   :  { %v1751_v5 = vld [vmem:[%s2396_s1 + $0x3c4] ss:$8 sps:$4 sm:$0xff]   ;;  %v1749_v7 = vld [vmem:[%s2396_s1 + $0x3c0] ss:$8 sps:$4 sm:$0xff]   ;;  %v1754_v8 = vld [vmem:[%s2396_s1 + $0x1d4] ss:$8 sps:$4 sm:$0xff]  }
  0x6f   :  { %1038 = vmatpush1.bf16.msra.mxu1 %v1740_v2  ;;  %v1757_v9 = vld [vmem:[%s2396_s1 + $0x3d4] ss:$8 sps:$4 sm:$0xff]   ;;  %v1752_v10 = vld [vmem:[%s2396_s1 + $0x1d0] ss:$8 sps:$4 sm:$0xff]   ;;  %v1760_v12 = vld [vmem:[%s2396_s1 + $0x1e4] ss:$8 sps:$4 sm:$0xff]  }
  0x70   :  { %1120 = vmatpush1.bf16.msra.mxu0 %v1743_v3  ;;  %1039 = vmatprep.subr.bf16.mxu1 %v1748_v4  ;;  %v1755_v11 = vld [vmem:[%s2396_s1 + $0x3d0] ss:$8 sps:$4 sm:$0xff]   ;;  %v1763_v13 = vld [vmem:[%s2396_s1 + $0x3e4] ss:$8 sps:$4 sm:$0xff]   ;;  %v1758_v14 = vld [vmem:[%s2396_s1 + $0x1e0] ss:$8 sps:$4 sm:$0xff]  }
  0x71   :  { %1121 = vmatprep.subr.bf16.mxu0 %v1751_v5  ;;  %v1761_v15 = vld [vmem:[%s2396_s1 + $0x3e0] ss:$8 sps:$4 sm:$0xff]   ;;  %v1766_v16 = vld [vmem:[%s2396_s1 + $0x1f4] ss:$8 sps:$4 sm:$0xff]   ;;  %v1764_v20 = vld [vmem:[%s2396_s1 + $0x1f0] ss:$8 sps:$4 sm:$0xff]  }
  0x72   :  { %v1769_v19 = vld [vmem:[%s2396_s1 + $0x3f4] ss:$8 sps:$4 sm:$0xff]   ;;  %v1767_v21 = vld [vmem:[%s2396_s1 + $0x3f0] ss:$8 sps:$4 sm:$0xff]   ;;  %v1772_v22 = vld [vmem:[%s2396_s1 + $0x404] ss:$8 sps:$4 sm:$0xff]  }
  0x73   :  { %1040 = vmatpush1.bf16.msra.mxu1 %v1746_v6  ;;  %v1770_v25 = vld [vmem:[%s2396_s1 + $0x400] ss:$8 sps:$4 sm:$0xff]   ;;  %v1775_v26 = vld [vmem:[%s2396_s1 + $0x414] ss:$8 sps:$4 sm:$0xff]   ;;  %v1773_v17 = vld [vmem:[%s2396_s1 + $0x410] ss:$8 sps:$4 sm:$0xff]  }
  0x74   :  { %1122 = vmatpush1.bf16.msra.mxu0 %v1749_v7  ;;  %1041 = vmatprep.subr.bf16.mxu1 %v1754_v8  ;;  %v1835_v27 = vmov 0   ;;  %v1778_v18 = vld [vmem:[%s2396_s1 + $0x424] ss:$8 sps:$4 sm:$0xff]   ;;  %v1776_v28 = vld [vmem:[%s2396_s1 + $0x420] ss:$8 sps:$4 sm:$0xff]   ;;  %v1798_v45 = vld [vmem:[%s2398_s3 + $0x50] sm:$0xff]  }
  0x75   :  { %1123 = vmatprep.subr.bf16.mxu0 %v1757_v9  ;;  %v1781_v29 = vld [vmem:[%s2396_s1 + $0x434] ss:$8 sps:$4 sm:$0xff]   ;;  %v1779_v30 = vld [vmem:[%s2396_s1 + $0x430] ss:$8 sps:$4 sm:$0xff]   ;;  %v1784_v31 = vld [vmem:[%s2396_s1 + $0x444] ss:$8 sps:$4 sm:$0xff]  }
  0x76   :  { %v1782_v32 = vld [vmem:[%s2396_s1 + $0x440] ss:$8 sps:$4 sm:$0xff]   ;;  %v1787_v33 = vld [vmem:[%s2396_s1 + $0x454] ss:$8 sps:$4 sm:$0xff]   ;;  %v1785_v34 = vld [vmem:[%s2396_s1 + $0x450] ss:$8 sps:$4 sm:$0xff]  }
  0x77   :  { %1042 = vmatpush1.bf16.msra.mxu1 %v1752_v10  ;;  %v1790_v35 = vld [vmem:[%s2396_s1 + $0x464] ss:$8 sps:$4 sm:$0xff]   ;;  %v1788_v36 = vld [vmem:[%s2396_s1 + $0x460] ss:$8 sps:$4 sm:$0xff]   ;;  %v1793_v37 = vld [vmem:[%s2396_s1 + $0x474] ss:$8 sps:$4 sm:$0xff]  }
  0x78   :  { %1124 = vmatpush1.bf16.msra.mxu0 %v1755_v11  ;;  %1043 = vmatprep.subr.bf16.mxu1 %v1760_v12  ;;  %v1791_v38 = vld [vmem:[%s2396_s1 + $0x470] ss:$8 sps:$4 sm:$0xff]   ;;  %v1374_v39 = vld.sshfl [vmem:[%s2395_s0 + $0x8] sm:$0x1 pattern:$0x75316420] }
  0x79   :  { %1125 = vmatprep.subr.bf16.mxu0 %v1763_v13  ;;  %v244_v40 = vrot.slane %v1374_v39, %v2002_v49  ;;  %v1794_v41 = vld [vmem:[%s2398_s3 + $0x40] sm:$0xff]   ;;  %v1796_v44 = vld [vmem:[%s2398_s3 + $0x48] sm:$0xff]   ;;  %v1799_v46 = vld [vmem:[%s2398_s3 + $0x10] sm:$0xff]   ;;  %v172_v62 = vsub.s32 0, %v1984_v42  ;;  %v176_v0 = vsub.s32 1, %v1984_v42  ;;  %s1836_s1 = smov [#allocation2]  }
  0x7a   :  { %v1795_v43 = vld [vmem:[%s2398_s3] sm:$0xff]   ;;  %v1797_v49 = vld [vmem:[%s2398_s3 + $0x8] sm:$0xff]   ;;  %v1800_v47 = vld [vmem:[%s2398_s3 + $0x58] sm:$0xff]   ;;  %s1366_s16 = sshll.u32 %s1836_s1, 4  ;;  %vm1358_vm0 = vcmask 74752   ;;  %s1367_s16 = int_to_ptr.vmem [resolvable:$true] %s1366_s16 }
  0x7b   :  { %1044 = vmatpush1.bf16.msra.mxu1 %v1758_v14  ;;  %v1801_v48 = vld [vmem:[%s2398_s3 + $0x18] sm:$0xff]   ;;  %v1802_v50 = vld [vmem:[%s2398_s3 + $0x60] sm:$0xff]   ;;  %v1804_v52 = vld [vmem:[%s2398_s3 + $0x68] sm:$0xff]   ;;  %s1810_s17 = scalar_lea.vmem %s1367_s16, 32  ;;  %p1815_p1 = scmp.lt.s32.totalorder %s1367_s16, %s1367_s16 }
  0x7c   :  { %1126 = vmatpush1.bf16.msra.mxu0 %v1761_v15  ;;  %1045 = vmatprep.subr.bf16.mxu1 %v1766_v16  ;;  %v1803_v51 = vld [vmem:[%s2398_s3 + $0x20] sm:$0xff]   ;;  %v1805_v53 = vld [vmem:[%s2398_s3 + $0x28] sm:$0xff]   ;;  %v1806_v54 = vld [vmem:[%s2398_s3 + $0x70] sm:$0xff]   ;;  %p1811_p0 = scmp.ne.s32.totalorder %s1367_s16, %s1810_s17  ;;  %p1816_p2 = scmp.lt.s32.totalorder %s1810_s17, %s1810_s17 }
  0x7d   :  { %1127 = vmatprep.subr.bf16.mxu0 %v1769_v19  ;;  %v1807_v55 = vld [vmem:[%s2398_s3 + $0x30] sm:$0xff]   ;;  %v1808_v56 = vld [vmem:[%s2398_s3 + $0x78] sm:$0xff]   ;;  %v168_v63 = vld [vmem:[%s2397_s2] sm:$0x3] }
  0x7e   :  { %v1809_v57 = vld [vmem:[%s2398_s3 + $0x38] sm:$0xff]   ;;  %v173_v1 = vrot.slane %v168_v63, %v172_v62  ;;  %v177_v2 = vrot.slane %v168_v63, %v176_v0  ;;  %v1519_v42 = vld [vmem:[%s2399_s4] ss:$0 sm:$0xff]  ;;  %p1817_p3 = por %p1816_p2, %p1815_p1 }
  0x7f   :  { %1046 = vmatpush1.bf16.msra.mxu1 %v1764_v20 }
  0x80   :  { %1128 = vmatpush1.bf16.msra.mxu0 %v1767_v21  ;;  %1536 = vmatprep.subr.bf16.mxu1 %v1794_v41  ;;  %p1818_p4 = pnand %p1817_p3, %p1811_p0 }
  0x81   :  { %1138 = vmatprep.subr.bf16.mxu0 %v1772_v22 }
  0x82   :  { %1048 = vmatmul.mubr.bf16.vlgmr.msra.gmra.mrb[0].mxu1 %v227_v23 }
  0x83   :  { %1130 = vmatmul.mubr.bf16.vlgmr.msra.gmra.mrb[0].mxu0 %v228_v24  ;;  %1537 = vmatpush3.bf16.msra.mxu1 %v1795_v43 }
  0x84   :  { %1139 = vmatpush1.bf16.msra.mxu0 %v1770_v25  ;;  %1170 = vmatprep.mubr.bf16.mxu0 %v1835_v27 }
  0x85   :  { %1140 = vmatprep.subr.bf16.mxu0 %v1775_v26  ;;  %1538 = vmatprep.subr.bf16.mxu1 %v1796_v44 }
  0x87   :  { %1539 = vmatpush3.bf16.msra.mxu1 %v1797_v49 }
  0x88   :  { %1141 = vmatpush1.bf16.msra.mxu0 %v1773_v17  ;;  %1540 = vmatprep.subr.bf16.mxu1 %v1798_v45 }
  0x89   :  { %1142 = vmatprep.subr.bf16.mxu0 %v1778_v18 }
  0x8b   :  { %1541 = vmatpush3.bf16.msra.mxu1 %v1799_v46 }
  0x8c   :  { %1143 = vmatpush1.bf16.msra.mxu0 %v1776_v28  ;;  %1542 = vmatprep.subr.bf16.mxu1 %v1800_v47 }
  0x8d   :  { %1144 = vmatprep.subr.bf16.mxu0 %v1781_v29 }
  0x8f   :  { %1543 = vmatpush3.bf16.msra.mxu1 %v1801_v48 }
  0x90   :  { %1145 = vmatpush1.bf16.msra.mxu0 %v1779_v30  ;;  %1544 = vmatprep.subr.bf16.mxu1 %v1802_v50 }
  0x91   :  { %1146 = vmatprep.subr.bf16.mxu0 %v1784_v31 }
  0x93   :  { %1545 = vmatpush3.bf16.msra.mxu1 %v1803_v51 }
  0x94   :  { %1147 = vmatpush1.bf16.msra.mxu0 %v1782_v32  ;;  %1546 = vmatprep.subr.bf16.mxu1 %v1804_v52 }
  0x95   :  { %1148 = vmatprep.subr.bf16.mxu0 %v1787_v33 }
  0x97   :  { %1547 = vmatpush3.bf16.msra.mxu1 %v1805_v53 }
  0x98   :  { %1149 = vmatpush1.bf16.msra.mxu0 %v1785_v34  ;;  %1548 = vmatprep.subr.bf16.mxu1 %v1806_v54 }
  0x99   :  { %1150 = vmatprep.subr.bf16.mxu0 %v1790_v35 }
  0x9b   :  { %1549 = vmatpush3.bf16.msra.mxu1 %v1807_v55 }
  0x9c   :  { %1151 = vmatpush1.bf16.msra.mxu0 %v1788_v36  ;;  %1550 = vmatprep.subr.bf16.mxu1 %v1808_v56 }
  0x9d   :  { %1152 = vmatprep.subr.bf16.mxu0 %v1793_v37 }
  0x9f   :  { %1551 = vmatpush3.bf16.msra.mxu1 %v1809_v57 }
  0xa0   :  { %1153 = vmatpush1.bf16.msra.mxu0 %v1791_v38 }
  0xa3   :  { %1171 = vmatmul.mubr.bf16.vlgmr.msra.gmra.mrb[0].mxu0 %v244_v40 }
 0x155   :  { %v1049_v58 = vpop.f32.mrb[0].mxu1 }
 0x156   :  { %v1051_v59 = vpop.f32.mrb[1].mxu1  ;;  %v1558_v3 = vadd.f32 %v1049_v58, %v173_v1 }
 0x157   :  { %v1053_v60 = vpop.f32.mrb[2].mxu1  ;;  %v1560_v4 = vadd.f32 %v1051_v59, %v177_v2 }
 0x158   :  { %v1054_v61 = vpop.f32.mrb[3].mxu1 }
 0x176   :  { %v1172_v5 = vpop.f32.mrb[0].mxu0 }
 0x177   :  { %v1559_v6 = vadd.f32 %v1558_v3, %v1172_v5  ;;  %v1174_v7 = vpop.f32.mrb[1].mxu0 }
 0x178   :  { %v1561_v8 = vadd.f32 %v1560_v4, %v1174_v7  ;;  %v1176_v9 = vpop.f32.mrb[2].mxu0 }
 0x179   :  { %v1179_v10 = vmax.f32 %v1559_v6, 0.0  ;;  %v1177_v11 = vpop.f32.mrb[3].mxu0 }
 0x17a   :  { %v1180_v12 = vmax.f32 %v1561_v8, 0.0 }
 0x17b   :  { %v1181_v14 = vpack.c.bf16 %v1179_v10, %v1179_v10 }
 0x17c   :  { %v1182_v13 = vpack.c.bf16 %v1180_v12, %v1180_v12 }
 0x17e   :  { %1350 = vmatprep.mubr.bf16.mxu1 %v1182_v13 }
 0x17f   :  { %1351 = vmatmul.mubr.bf16.vlgmr.msra.gmra.mrb[4].mxu1 %v1181_v14 }
 0x252   :  { %v1552_v15 = vpop.f32.mrb[4].mxu1 }
 0x253   :  { %v1553_v16 = vpop.f32.mrb[5].mxu1 }
 0x254   :  { %v1554_v19 = vadd.f32 %v1553_v16, %v1552_v15  ;;  %v1555_v20 = vpop.f32.mrb[6].mxu1 }
 0x255   :  { %v1556_v21 = vpop.f32.mrb[7].mxu1 }
 0x256   :  { %v1353_v22 = vadd.f32 %v1554_v19, %v1519_v42 }
 0x258   :  { %1359 = vst.msk [vmem:[#allocation2] sm:$0x3] %vm1358_vm0, %v1353_v22 }
 0x259   :  { %1821 = shalt.err (!%p1818_p4)
}
 0x25a   :  { %s1822_s4 = scalar_lea.hbm %s2400_s5, 32 }
 0x25b   :  { %p1823_p5 = scmp.ne.s32.totalorder %s2400_s5, %s1822_s4  ;;  %p1826_p6 = scmp.lt.u32.totalorder %s1822_s4, %s2400_s5 }
 0x25d   :  { %p1828_p7 = pnand %p1826_p6, %p1823_p5 }
 0x25f   :  { %1831 = shalt.err (!%p1828_p7)
}
 0x260   :  { %1369 = dma.vmem_to_hbm [thread:$0]  %s1367_s16, 32, %s2400_s5, [#allocation3]  }
 0x261   :  { %1832 = dma.done.wait [#allocation3], 32  }
 0x262   :  { %1833 = vsyncadd [#allocation3], 4294967264 }
 0x263   :  { %1373 = vsyncpa [#allocation3], 1 }

// kernel: deep_cnn_forward.4
= control target key start
LH: loop header
LB: loop body
LE: loop exit
PB: predicated region body
PF: predicated region fallthrough
CT: control target
= control target key end

     0   :  { %s10793_s12 = smov 0   ;;  %s13094_s0 = inlined_call_operand.vmem [shape: bf16[2,992,8], index: 0, kind: input, shape index: {}]   ;;  %s13095_s1 = inlined_call_operand.vmem [shape: bf16[9,8,32], index: 1, kind: input, shape index: {}]   ;;  %s13096_s2 = inlined_call_operand.vmem [shape: f32[1,32], index: 2, kind: input, shape index: {}]   ;;  %s13097_s3 = inlined_call_operand.vmem [shape: bf16[2,14,14,32], index: 3, kind: output, shape index: {}]  }
   0x1 LB: > { %s7550_s13 = sadd.s32 4294967295, %s10771_s12   ;;  %p7554_p0 = scmp.ge.s32.totalorder %s10771_s12, 1  ;;  %s10771_s12 = sphi %s10793_s12, %s13_s12  }
   0x2   : > { %p137_p1 = scmp.lt.s32.totalorder %s10771_s12, 3 }
   0x4   : > { %p138_p2 = pnand %p7554_p0, %p137_p1 }
   0x6   : > { %141 = sbr.rel (%p138_p2) target bundleno = 1267 (0x4f3), region = 32 }
   0xd   : > { %v7557_v0 = vld [vmem:[%s13095_s1 + $0x4] sm:$0xf]  ;;  %vm1201_vm0 = vcmask 1043456   ;;  %v7843_v1 = vld [vmem:[%s13095_s1 + $0x10] sm:$0xf]  ;;  %p161_p3 = scmp.lt.s32.totalorder %s7550_s13, 1 }
   0xe   : > { %10628 = vmatprep.subr.msk.bf16.mxu1 %vm1201_vm0, %v7557_v0  ;;  %10632 = vmatprep.subr.msk.bf16.mxu0 %vm1201_vm0, %v7843_v1  ;;  %v1203_v2 = vsel %vm1201_vm0, %v7557_v0, 0  ;;  %v10811_v3 = vsel %vm1201_vm0, %v7843_v1, 0  ;;  %v293_v4 = vld [vmem:[%s13095_s1] sm:$0xf]  ;;  %v7901_v5 = vld [vmem:[%s13095_s1 + $0x14] sm:$0xf] }
   0xf   : > { %13289 = vst [vmem:[#allocation3_spill] sm:$0xff] %v10811_v3  ;;  %8705 = vmatpush3.bf16.msra.mxu1 %v1203_v2  ;;  %9161 = vmatpush3.bf16.msra.mxu0 %v10811_v3  ;;  %s13573_s13 = smov (!%p161_p3, %s7550_s13), 1  ;;  %vm579_vm1 = vsmask.f32 7424  ;;  %vm1032_vm2 = vcmask 64512   ;;  %v1799_v31 = vsel %vm1201_vm0, %v293_v4, 0 }
  0x10   : > { %10629 = vmatprep.subr.msk.bf16.mxu1 %vm1201_vm0, %v293_v4  ;;  %10634 = vmatprep.subr.msk.bf16.mxu0 %vm1201_vm0, %v7901_v5  ;;  %s10638_s22 = smul.u32 496, %s13573_s13  ;;  %v4421_v38 = vsel %vm1201_vm0, %v7901_v5, 0  ;;  %v10877_v47 = vld [vmem:[%s13095_s1 + $0x18] sm:$0xf]  ;;  %vm2284_vm3 = vcmask 1046528   ;;  %vm7157_vm4 = vcmask 261120  }
  0x11   : > { %s10639_s15 = smul.u32 112, %s13573_s13  ;;  %vm7467_vm5 = vcmask 256000   ;;  %vm7465_vm6 = vcmask 257024  }
  0x12   : > { %s10828_s25 = scalar_lea.vmem %s13094_s0, %s10638_s22 }
  0x13   : > { %v10648_v6 = vld [vmem:[%s10828_s25] sm:$0xff]   ;;  %v10649_v7 = vld [vmem:[%s10828_s25 + $0x8] sm:$0xff]   ;;  %v10833_v12 = vld [vmem:[%s10828_s25 + $0x10] sm:$0xff]   ;;  %s12833_s17 = scalar_lea.vmem %s13097_s3, %s10639_s15 }
  0x14   : > { %v581_v8 = vshrl.u32 %v10648_v6, 16  ;;  %v583_v9 = vshll.u32 %v10648_v6, 16  ;;  %v588_v10 = vshll.u32 %v10649_v7, 16  ;;  %v592_v11 = vshrl.u32 %v10649_v7, 16  ;;  %v10836_v13 = vld [vmem:[%s10828_s25 + $0x18] sm:$0xff]   ;;  %v10839_v16 = vld [vmem:[%s10828_s25 + $0x20] sm:$0xff]  }
  0x15   : > { %v10842_v17 = vld [vmem:[%s10828_s25 + $0x28] sm:$0xff]   ;;  %v596_v18 = vshll.u32 %v10833_v12, 16  ;;  %v600_v19 = vshrl.u32 %v10833_v12, 16  ;;  %v604_v20 = vshll.u32 %v10836_v13, 16  ;;  %v608_v21 = vshrl.u32 %v10836_v13, 16  ;;  %v10852_v29 = vld [vmem:[%s10828_s25 + $0x30] sm:$0xff]  }
  0x16   : > { %v585_v14 = vrot.slane %v583_v9, 1  ;;  %v590_v15 = vrot.slane %v588_v10, 1  ;;  %v612_v24 = vshll.u32 %v10839_v16, 16  ;;  %v616_v25 = vshrl.u32 %v10839_v16, 16  ;;  %v10859_v37 = vld [vmem:[%s10828_s25 + $0x38] sm:$0xff]   ;;  %v10881_v49 = vld [vmem:[%s10828_s25 + $0x40] sm:$0xff]  }
  0x17   : > { %v598_v26 = vrot.slane %v596_v18, 1  ;;  %v606_v27 = vrot.slane %v604_v20, 1  ;;  %v620_v28 = vshll.u32 %v10842_v17, 16  ;;  %v624_v40 = vshrl.u32 %v10842_v17, 16  ;;  %v10886_v53 = vld [vmem:[%s10828_s25 + $0x48] sm:$0xff]   ;;  %v10906_v61 = vld [vmem:[%s10828_s25 + $0x50] sm:$0xff]  }
  0x18   : > { %v586_v22 = vor.u32 %v585_v14, %v581_v8  ;;  %v594_v23 = vor.u32 %v592_v11, %v590_v15  ;;  %v614_v32 = vrot.slane %v612_v24, 1  ;;  %v628_v41 = vshll.u32 %v10852_v29, 16  ;;  %v10911_v1 = vld [vmem:[%s10828_s25 + $0x58] sm:$0xff]   ;;  %v10930_v10 = vld [vmem:[%s10828_s25 + $0x60] sm:$0xff]   ;;  %v10935_v18 = vld [vmem:[%s10828_s25 + $0x68] sm:$0xff]  }
  0x19   : > { %v602_v33 = vor.u32 %v600_v19, %v598_v26  ;;  %v610_v34 = vor.u32 %v608_v21, %v606_v27  ;;  %v622_v36 = vrot.slane %v620_v28, 1  ;;  %v632_v44 = vshrl.u32 %v10852_v29, 16 }
  0x1a   : > { %v591_v30 = vsel %vm579_vm1, %v586_v22, %v590_v15  ;;  %v599_v35 = vsel %vm579_vm1, %v594_v23, %v598_v26  ;;  %v618_v39 = vor.u32 %v616_v25, %v614_v32  ;;  %v636_v45 = vshll.u32 %v10859_v37, 16  ;;  %v10954_v26 = vld [vmem:[%s10828_s25 + $0x70] sm:$0xff]  }
  0x1b   : > { %8706 = vmatprep.mubr.msk.bf16.mxu1 %vm1032_vm2, %v591_v30  ;;  %v607_v42 = vsel %vm579_vm1, %v602_v33, %v606_v27  ;;  %v615_v43 = vsel %vm579_vm1, %v610_v34, %v614_v32  ;;  %v630_v48 = vrot.slane %v628_v41, 1  ;;  %v626_v50 = vor.u32 %v624_v40, %v622_v36  ;;  %v10978_v40 = vld [vmem:[%s10828_s25 + $0x80] sm:$0xff]  }
  0x1c   : > { %8707 = vmatmul.mubr.msk.bf16.vlgmr.msra.gmra.mrb[0].mxu1 %vm1032_vm2, %v599_v35  ;;  %9162 = vmatprep.mubr.msk.bf16.mxu0 %vm1032_vm2, %v607_v42  ;;  %v10872_v46 = vsel %vm579_vm1, %v618_v39, %v622_v36  ;;  %v638_v52 = vrot.slane %v636_v45, 1  ;;  %v644_v54 = vshll.u32 %v10881_v49, 16  ;;  %v640_v56 = vshrl.u32 %v10859_v37, 16 }
  0x1d   : > { %8819 = vmatpush3.bf16.msra.mxu1 %v1799_v31  ;;  %8710 = vmatprep.mubr.msk.bf16.mxu1 %vm1032_vm2, %v607_v42  ;;  %13290 = vst [vmem:[#allocation4_spill] sm:$0xff] %v10872_v46  ;;  %v634_v51 = vor.u32 %v632_v44, %v630_v48  ;;  %v10893_v55 = vsel %vm579_vm1, %v626_v50, %v630_v48  ;;  %v648_v58 = vshrl.u32 %v10881_v49, 16  ;;  %v652_v59 = vshll.u32 %v10886_v53, 16  ;;  %v10959_v31 = vld [vmem:[%s10828_s25 + $0x78] sm:$0xff]   ;;  %v10983_v44 = vld [vmem:[%s10828_s25 + $0x88] sm:$0xff]  }
  0x1e   : > { %9163 = vmatmul.mubr.msk.bf16.vlgmr.msra.gmra.mrb[0].mxu0 %vm1032_vm2, %v615_v43  ;;  %13291 = vst [vmem:[#allocation5_spill] sm:$0xff] %v10893_v55  ;;  %v646_v60 = vrot.slane %v644_v54, 1  ;;  %v642_v62 = vor.u32 %v640_v56, %v638_v52  ;;  %v660_v2 = vshll.u32 %v10906_v61, 16  ;;  %v656_v5 = vshrl.u32 %v10886_v53, 16 }
  0x1f   : > { %9275 = vmatpush3.bf16.msra.mxu0 %v4421_v38  ;;  %9166 = vmatprep.mubr.msk.bf16.mxu0 %vm1032_vm2, %v10872_v46  ;;  %v10899_v57 = vsel %vm579_vm1, %v634_v51, %v638_v52  ;;  %v654_v0 = vrot.slane %v652_v59, 1  ;;  %v664_v7 = vshrl.u32 %v10906_v61, 16  ;;  %v668_v8 = vshll.u32 %v10911_v1, 16 }
  0x20   : > { %10635 = vmatprep.subr.msk.bf16.mxu0 %vm1201_vm0, %v10877_v47  ;;  %13292 = vst [vmem:[#allocation6_spill] sm:$0xff] %v10899_v57  ;;  %v650_v63 = vor.u32 %v648_v58, %v646_v60  ;;  %v10917_v4 = vsel %vm579_vm1, %v642_v62, %v646_v60  ;;  %v662_v9 = vrot.slane %v660_v2, 1  ;;  %v676_v19 = vshll.u32 %v10930_v10, 16  ;;  %v11002_v58 = vld [vmem:[%s10828_s25 + $0x90] sm:$0xff]  }
  0x21   : > { %13293 = vst [vmem:[#allocation7_spill] sm:$0xff] %v10917_v4  ;;  %v658_v11 = vor.u32 %v656_v5, %v654_v0  ;;  %v670_v15 = vrot.slane %v668_v8, 1  ;;  %v672_v21 = vshrl.u32 %v10911_v1, 16  ;;  %v680_v23 = vshrl.u32 %v10930_v10, 16 }
  0x22   : > { %v10923_v6 = vsel %vm579_vm1, %v650_v63, %v654_v0  ;;  %v666_v14 = vor.u32 %v664_v7, %v662_v9  ;;  %v684_v24 = vshll.u32 %v10935_v18, 16  ;;  %v678_v25 = vrot.slane %v676_v19, 1  ;;  %v11007_v63 = vld [vmem:[%s10828_s25 + $0x98] sm:$0xff]  }
  0x23   : > { %13294 = vst [vmem:[#allocation8_spill] sm:$0xff] %v10923_v6  ;;  %v10941_v20 = vsel %vm579_vm1, %v658_v11, %v662_v9  ;;  %v674_v27 = vor.u32 %v672_v21, %v670_v15  ;;  %v692_v32 = vshll.u32 %v10954_v26, 16  ;;  %v688_v34 = vshrl.u32 %v10935_v18, 16 }
  0x24   : > { %8711 = vmatmul.mubr.msk.bf16.gmra.mrb[4].mxu1 %vm1032_vm2, %v615_v43  ;;  %13295 = vst [vmem:[#allocation9_spill] sm:$0xff] %v10941_v20  ;;  %v10947_v22 = vsel %vm579_vm1, %v666_v14, %v670_v15  ;;  %v682_v28 = vor.u32 %v680_v23, %v678_v25  ;;  %v686_v30 = vrot.slane %v684_v24, 1  ;;  %v696_v36 = vshrl.u32 %v10954_v26, 16  ;;  %v11026_v14 = vld [vmem:[%s10828_s25 + $0xa0] sm:$0xff]   ;;  %v11031_v23 = vld [vmem:[%s10828_s25 + $0xa8] sm:$0xff]  }
  0x25   : > { %8714 = vmatprep.mubr.msk.bf16.mxu1 %vm1032_vm2, %v10872_v46  ;;  %13296 = vst [vmem:[#allocation10_spill] sm:$0xff] %v10947_v22  ;;  %v10965_v33 = vsel %vm579_vm1, %v674_v27, %v678_v25  ;;  %v700_v38 = vshll.u32 %v10959_v31, 16  ;;  %v694_v39 = vrot.slane %v692_v32, 1  ;;  %v708_v45 = vshll.u32 %v10978_v40, 16 }
  0x26   : > { %9167 = vmatmul.mubr.msk.bf16.gmra.mrb[4].mxu0 %vm1032_vm2, %v10893_v55  ;;  %13297 = vst [vmem:[#allocation11_spill] sm:$0xff] %v10965_v33  ;;  %v10971_v35 = vsel %vm579_vm1, %v682_v28, %v686_v30  ;;  %v690_v41 = vor.u32 %v688_v34, %v686_v30  ;;  %v704_v50 = vshrl.u32 %v10959_v31, 16  ;;  %v712_v52 = vshrl.u32 %v10978_v40, 16 }
  0x27   : > { %9170 = vmatprep.mubr.msk.bf16.mxu0 %vm1032_vm2, %v10899_v57  ;;  %13298 = vst [vmem:[#allocation12_spill] sm:$0xff] %v10971_v35  ;;  %v698_v42 = vor.u32 %v696_v36, %v694_v39  ;;  %v702_v43 = vrot.slane %v700_v38, 1  ;;  %v716_v54 = vshll.u32 %v10983_v44, 16  ;;  %v710_v56 = vrot.slane %v708_v45, 1  ;;  %v11050_v36 = vld [vmem:[%s10828_s25 + $0xb0] sm:$0xff]  }
  0x28   : > { %v10989_v48 = vsel %vm579_vm1, %v690_v41, %v694_v39  ;;  %v724_v0 = vshll.u32 %v11002_v58, 16  ;;  %v720_v5 = vshrl.u32 %v10983_v44, 16  ;;  %v728_v8 = vshrl.u32 %v11002_v58, 16 }
  0x29   : > { %13299 = vst [vmem:[#allocation13_spill] sm:$0xff] %v10989_v48  ;;  %v10995_v51 = vsel %vm579_vm1, %v698_v42, %v702_v43  ;;  %v706_v59 = vor.u32 %v704_v50, %v702_v43  ;;  %v714_v60 = vor.u32 %v712_v52, %v710_v56  ;;  %v718_v62 = vrot.slane %v716_v54, 1  ;;  %v11055_v42 = vld [vmem:[%s10828_s25 + $0xb8] sm:$0xff]  }
  0x2a   : > { %13300 = vst [vmem:[#allocation14_spill] sm:$0xff] %v10995_v51  ;;  %v732_v9 = vshll.u32 %v11007_v63, 16  ;;  %v726_v11 = vrot.slane %v724_v0, 1  ;;  %v740_v24 = vshll.u32 %v11026_v14, 16  ;;  %v736_v27 = vshrl.u32 %v11007_v63, 16 }
  0x2b   : > { %v11013_v2 = vsel %vm579_vm1, %v706_v59, %v710_v56  ;;  %v11019_v7 = vsel %vm579_vm1, %v714_v60, %v718_v62  ;;  %v722_v15 = vor.u32 %v720_v5, %v718_v62  ;;  %v744_v30 = vshrl.u32 %v11026_v14, 16  ;;  %v11074_v60 = vld [vmem:[%s10828_s25 + $0xc0] sm:$0xff]  }
  0x2c   : > { %8715 = vmatmul.mubr.msk.bf16.gmra.mrb[8].mxu1 %vm1032_vm2, %v10893_v55  ;;  %13301 = vst [vmem:[#allocation15_spill] sm:$0xff] %v11013_v2  ;;  %13302 = vst [vmem:[#allocation16_spill] sm:$0xff] %v11019_v7  ;;  %v730_v19 = vor.u32 %v728_v8, %v726_v11  ;;  %v734_v21 = vrot.slane %v732_v9, 1  ;;  %v748_v32 = vshll.u32 %v11031_v23, 16  ;;  %v742_v34 = vrot.slane %v740_v24, 1  ;;  %v11079_v8 = vld [vmem:[%s10828_s25 + $0xc8] sm:$0xff]  }
  0x2d   : > { %8718 = vmatprep.mubr.msk.bf16.mxu1 %vm1032_vm2, %v10899_v57  ;;  %v11037_v25 = vsel %vm579_vm1, %v722_v15, %v726_v11  ;;  %v756_v43 = vshll.u32 %v11050_v36, 16  ;;  %v752_v50 = vshrl.u32 %v11031_v23, 16  ;;  %v760_v54 = vshrl.u32 %v11050_v36, 16 }
  0x2e   : > { %9171 = vmatmul.mubr.msk.bf16.gmra.mrb[8].mxu0 %vm1032_vm2, %v10917_v4  ;;  %13303 = vst [vmem:[#allocation17_spill] sm:$0xff] %v11037_v25  ;;  %v11043_v28 = vsel %vm579_vm1, %v730_v19, %v734_v21  ;;  %v738_v38 = vor.u32 %v736_v27, %v734_v21  ;;  %v746_v39 = vor.u32 %v744_v30, %v742_v34  ;;  %v750_v41 = vrot.slane %v748_v32, 1  ;;  %v11098_v30 = vld [vmem:[%s10828_s25 + $0xd0] sm:$0xff]  }
  0x2f   : > { %9174 = vmatprep.mubr.msk.bf16.mxu0 %vm1032_vm2, %v10923_v6  ;;  %13304 = vst [vmem:[#allocation18_spill] sm:$0xff] %v11043_v28  ;;  %v764_v56 = vshll.u32 %v11055_v42, 16  ;;  %v758_v59 = vrot.slane %v756_v43, 1  ;;  %v772_v9 = vshll.u32 %v11074_v60, 16  ;;  %v768_v15 = vshrl.u32 %v11055_v42, 16 }
  0x30   : > { %v11061_v45 = vsel %vm579_vm1, %v738_v38, %v742_v34  ;;  %v11067_v52 = vsel %vm579_vm1, %v746_v39, %v750_v41  ;;  %v754_v62 = vor.u32 %v752_v50, %v750_v41  ;;  %v776_v21 = vshrl.u32 %v11074_v60, 16  ;;  %v11103_v39 = vld [vmem:[%s10828_s25 + $0xd8] sm:$0xff]  }
  0x31   : > { %13305 = vst [vmem:[#allocation19_spill] sm:$0xff] %v11061_v45  ;;  %13306 = vst [vmem:[#allocation20_spill] sm:$0xff] %v11067_v52  ;;  %v762_v0 = vor.u32 %v760_v54, %v758_v59  ;;  %v766_v5 = vrot.slane %v764_v56, 1  ;;  %v780_v24 = vshll.u32 %v11079_v8, 16  ;;  %v774_v27 = vrot.slane %v772_v9, 1 }
  0x32   : > { %v11085_v11 = vsel %vm579_vm1, %v754_v62, %v758_v59  ;;  %v788_v41 = vshll.u32 %v11098_v30, 16  ;;  %v784_v50 = vshrl.u32 %v11079_v8, 16  ;;  %v792_v56 = vshrl.u32 %v11098_v30, 16 }
  0x33   : > { %13307 = vst [vmem:[#allocation21_spill] sm:$0xff] %v11085_v11  ;;  %v11091_v19 = vsel %vm579_vm1, %v762_v0, %v766_v5  ;;  %v770_v32 = vor.u32 %v768_v15, %v766_v5  ;;  %v778_v34 = vor.u32 %v776_v21, %v774_v27  ;;  %v782_v38 = vrot.slane %v780_v24, 1  ;;  %v11122_v0 = vld [vmem:[%s10828_s25 + $0xe0] sm:$0xff]   ;;  %v11127_v21 = vld [vmem:[%s10828_s25 + $0xe8] sm:$0xff]  }
  0x34   : > { %8719 = vmatmul.mubr.msk.bf16.gmra.mrb[12].mxu1 %vm1032_vm2, %v10917_v4  ;;  %13308 = vst [vmem:[#allocation22_spill] sm:$0xff] %v11091_v19  ;;  %v796_v59 = vshll.u32 %v11103_v39, 16  ;;  %v790_v62 = vrot.slane %v788_v41, 1  ;;  %v804_v24 = vshll.u32 %v11122_v0, 16  ;;  %v812_v41 = vshll.u32 %v11127_v21, 16  ;;  %v11419_v4 = vld [vmem:[%s10828_s25 + $0x178] sm:$0xff]  }
  0x35   : > { %8722 = vmatprep.mubr.msk.bf16.mxu1 %vm1032_vm2, %v10923_v6  ;;  %v11109_v43 = vsel %vm579_vm1, %v770_v32, %v774_v27  ;;  %v11115_v54 = vsel %vm579_vm1, %v778_v34, %v782_v38  ;;  %v786_v5 = vor.u32 %v784_v50, %v782_v38  ;;  %v800_v32 = vshrl.u32 %v11103_v39, 16 }
  0x36   : > { %9175 = vmatmul.mubr.msk.bf16.gmra.mrb[12].mxu0 %vm1032_vm2, %v10941_v20  ;;  %13309 = vst [vmem:[#allocation23_spill] sm:$0xff] %v11109_v43  ;;  %13310 = vst [vmem:[#allocation24_spill] sm:$0xff] %v11115_v54  ;;  %v794_v9 = vor.u32 %v792_v56, %v790_v62  ;;  %v798_v15 = vrot.slane %v796_v59, 1  ;;  %v808_v38 = vshrl.u32 %v11122_v0, 16  ;;  %v806_v50 = vrot.slane %v804_v24, 1 }
  0x37   : > { %9178 = vmatprep.mubr.msk.bf16.mxu0 %vm1032_vm2, %v10947_v22  ;;  %v11133_v27 = vsel %vm579_vm1, %v786_v5, %v790_v62  ;;  %v11148_v56 = vld [vmem:[%s13095_s1 + $0x8] sm:$0xf]  ;;  %v11153_v62 = vld [vmem:[%s10828_s25 + $0xf0] sm:$0xff]   ;;  %v816_v3 = vshrl.u32 %v11127_v21, 16 }
  0x38   : > { %13311 = vst [vmem:[#allocation25_spill] sm:$0xff] %v11133_v27  ;;  %v11139_v34 = vsel %vm579_vm1, %v794_v9, %v798_v15  ;;  %v802_v59 = vor.u32 %v800_v32, %v798_v15  ;;  %10630 = vmatprep.subr.msk.bf16.mxu1 %vm1201_vm0, %v11148_v56  ;;  %v810_v5 = vor.u32 %v808_v38, %v806_v50  ;;  %v814_v9 = vrot.slane %v812_v41, 1  ;;  %v11170_v32 = vld [vmem:[%s10828_s25 + $0xf8] sm:$0xff]  }
  0x39   : > { %13312 = vst [vmem:[#allocation26_spill] sm:$0xff] %v11139_v34 }
  0x3a   : > { %v11160_v24 = vsel %vm579_vm1, %v802_v59, %v806_v50  ;;  %v11167_v15 = vsel %vm579_vm1, %v810_v5, %v814_v9  ;;  %v818_v38 = vor.u32 %v816_v3, %v814_v9  ;;  %v13105_v50 = vrot.slane %v10833_v12, 1  ;;  %v11196_v9 = vld [vmem:[%s10828_s25 + $0x108] sm:$0xff]  }
  0x3b   : > { %13313 = vst [vmem:[#allocation27_spill] sm:$0xff] %v11160_v24  ;;  %13314 = vst [vmem:[#allocation28_spill] sm:$0xff] %v11167_v15  ;;  %v2290_v59 = vrot.slane %v10836_v13, 1  ;;  %v828_v5 = vshll.u32 %v11170_v32, 16 }
  0x3c   : > { %8723 = vmatmul.mubr.msk.bf16.gmra.mrb[16].mxu1 %vm1032_vm2, %v10941_v20  ;;  %v11387_v20 = vld [vmem:[%s10828_s25 + $0x168] sm:$0xff]  }
  0x3d   : > { %8726 = vmatprep.mubr.msk.bf16.mxu1 %vm1032_vm2, %v10947_v22  ;;  %v11193_v3 = vsel %vm2284_vm3, %v13105_v50, %v2290_v59  ;;  %v832_v50 = vshrl.u32 %v11170_v32, 16 }
  0x3e   : > { %9179 = vmatmul.mubr.msk.bf16.gmra.mrb[16].mxu0 %vm1032_vm2, %v10965_v33  ;;  %13316 = vst [vmem:[#allocation30_spill] sm:$0xff] %v11193_v3 }
  0x3f   : > { %9182 = vmatprep.mubr.msk.bf16.mxu0 %vm1032_vm2, %v10971_v35 }
  0x44   : > { %8727 = vmatmul.mubr.msk.bf16.gmra.mrb[20].mxu1 %vm1032_vm2, %v10965_v33  ;;  %v11355_v33 = vld [vmem:[%s10828_s25 + $0x158] sm:$0xff]  }
  0x45   : > { %8730 = vmatprep.mubr.msk.bf16.mxu1 %vm1032_vm2, %v10971_v35 }
  0x46   : > { %9183 = vmatmul.mubr.msk.bf16.gmra.mrb[20].mxu0 %vm1032_vm2, %v10989_v48 }
  0x47   : > { %9186 = vmatprep.mubr.msk.bf16.mxu0 %vm1032_vm2, %v10995_v51 }
  0x4c   : > { %8731 = vmatmul.mubr.msk.bf16.gmra.mrb[24].mxu1 %vm1032_vm2, %v10989_v48  ;;  %v11323_v48 = vld [vmem:[%s10828_s25 + $0x148] sm:$0xff]  }
  0x4d   : > { %8734 = vmatprep.mubr.msk.bf16.mxu1 %vm1032_vm2, %v10995_v51 }
  0x4e   : > { %9187 = vmatmul.mubr.msk.bf16.gmra.mrb[24].mxu0 %vm1032_vm2, %v11013_v2 }
  0x4f   : > { %9190 = vmatprep.mubr.msk.bf16.mxu0 %vm1032_vm2, %v11019_v7 }
  0x54   : > { %8735 = vmatmul.mubr.msk.bf16.gmra.mrb[28].mxu1 %vm1032_vm2, %v11013_v2  ;;  %v11291_v2 = vld [vmem:[%s10828_s25 + $0x138] sm:$0xff]  }
  0x55   : > { %8738 = vmatprep.mubr.msk.bf16.mxu1 %vm1032_vm2, %v11019_v7 }
  0x56   : > { %9191 = vmatmul.mubr.msk.bf16.gmra.mrb[28].mxu0 %vm1032_vm2, %v11037_v25 }
  0x57   : > { %9194 = vmatprep.mubr.msk.bf16.mxu0 %vm1032_vm2, %v11043_v28 }
  0x5c   : > { %8739 = vmatmul.mubr.msk.bf16.gmra.mrb[32].mxu1 %vm1032_vm2, %v11037_v25  ;;  %v11259_v25 = vld [vmem:[%s10828_s25 + $0x128] sm:$0xff]  }
  0x5d   : > { %8742 = vmatprep.mubr.msk.bf16.mxu1 %vm1032_vm2, %v11043_v28 }
  0x5e   : > { %9195 = vmatmul.mubr.msk.bf16.gmra.mrb[32].mxu0 %vm1032_vm2, %v11061_v45 }
  0x5f   : > { %9198 = vmatprep.mubr.msk.bf16.mxu0 %vm1032_vm2, %v11067_v52 }
  0x64   : > { %8743 = vmatmul.mubr.msk.bf16.gmra.mrb[36].mxu1 %vm1032_vm2, %v11061_v45 }
  0x65   : > { %8746 = vmatprep.mubr.msk.bf16.mxu1 %vm1032_vm2, %v11067_v52 }
  0x66   : > { %9199 = vmatmul.mubr.msk.bf16.gmra.mrb[36].mxu0 %vm1032_vm2, %v11085_v11 }
  0x67   : > { %9202 = vmatprep.mubr.msk.bf16.mxu0 %vm1032_vm2, %v11091_v19 }
  0x6c   : > { %8747 = vmatmul.mubr.msk.bf16.gmra.mrb[40].mxu1 %vm1032_vm2, %v11085_v11  ;;  %v11217_v11 = vld [vmem:[%s10828_s25 + $0x110] sm:$0xff]  }
  0x6d   : > { %8750 = vmatprep.mubr.msk.bf16.mxu1 %vm1032_vm2, %v11091_v19 }
  0x6e   : > { %9203 = vmatmul.mubr.msk.bf16.gmra.mrb[40].mxu0 %vm1032_vm2, %v11109_v43 }
  0x6f   : > { %9206 = vmatprep.mubr.msk.bf16.mxu0 %vm1032_vm2, %v11115_v54 }
  0x74   : > { %8751 = vmatmul.mubr.msk.bf16.gmra.mrb[44].mxu1 %vm1032_vm2, %v11109_v43  ;;  %v11186_v43 = vld [vmem:[%s10828_s25 + $0x100] sm:$0xff]  }
  0x75   : > { %8754 = vmatprep.mubr.msk.bf16.mxu1 %vm1032_vm2, %v11115_v54  ;;  %v820_v54 = vshll.u32 %v11153_v62, 16 }
  0x76   : > { %9207 = vmatmul.mubr.msk.bf16.gmra.mrb[44].mxu0 %vm1032_vm2, %v11133_v27 }
  0x77   : > { %9210 = vmatprep.mubr.msk.bf16.mxu0 %vm1032_vm2, %v11139_v34  ;;  %v822_v41 = vrot.slane %v820_v54, 1  ;;  %v830_v54 = vrot.slane %v828_v5, 1  ;;  %v844_v5 = vshll.u32 %v11196_v9, 16 }
  0x79   : > { %v834_v52 = vor.u32 %v832_v50, %v830_v54  ;;  %v846_v28 = vrot.slane %v844_v5, 1  ;;  %v2298_v50 = vrot.slane %v10859_v37, 1 }
  0x7c   : > { %8755 = vmatmul.mubr.msk.bf16.gmra.mrb[48].mxu1 %vm1032_vm2, %v11133_v27  ;;  %v11183_v27 = vsel %vm579_vm1, %v818_v38, %v822_v41  ;;  %v2292_v38 = vrot.slane %v10839_v16, 1 }
  0x7d   : > { %8758 = vmatprep.mubr.msk.bf16.mxu1 %vm1032_vm2, %v11139_v34  ;;  %v824_v34 = vshrl.u32 %v11153_v62, 16  ;;  %13315 = vst [vmem:[#allocation29_spill] sm:$0xff] %v11183_v27 }
  0x7e   : > { %9211 = vmatmul.mubr.msk.bf16.gmra.mrb[48].mxu0 %vm1032_vm2, %v11160_v24  ;;  %v11214_v19 = vsel %vm2284_vm3, %v2290_v59, %v2292_v38 }
  0x7f   : > { %9214 = vmatprep.mubr.msk.bf16.mxu0 %vm1032_vm2, %v11167_v15  ;;  %v826_v13 = vor.u32 %v824_v34, %v822_v41  ;;  %v840_v41 = vshrl.u32 %v11186_v43, 16  ;;  %13318 = vst [vmem:[#allocation32_spill] sm:$0xff] %v11214_v19 }
  0x81   : > { %v11207_v34 = vsel %vm579_vm1, %v826_v13, %v830_v54  ;;  %v848_v54 = vshrl.u32 %v11196_v9, 16 }
  0x82   : > { %13317 = vst [vmem:[#allocation31_spill] sm:$0xff] %v11207_v34 }
  0x84   : > { %8759 = vmatmul.mubr.msk.bf16.gmra.mrb[52].mxu1 %vm1032_vm2, %v11160_v24  ;;  %v2294_v24 = vrot.slane %v10842_v17, 1  ;;  %v5033_v17 = vsel %vm1201_vm0, %v10877_v47, 0  ;;  %v2296_v47 = vrot.slane %v10852_v29, 1 }
  0x85   : > { %8762 = vmatprep.mubr.msk.bf16.mxu1 %vm1032_vm2, %v11167_v15  ;;  %v836_v15 = vshll.u32 %v11186_v43, 16 }
  0x86   : > { %9215 = vmatmul.mubr.msk.bf16.gmra.mrb[52].mxu0 %vm1032_vm2, %v11183_v27  ;;  %v11224_v13 = vsel %vm2284_vm3, %v2292_v38, %v2294_v24  ;;  %v11248_v29 = vsel %vm2284_vm3, %v2294_v24, %v2296_v47  ;;  %v11256_v37 = vsel %vm2284_vm3, %v2296_v47, %v2298_v50  ;;  %v2300_v24 = vrot.slane %v10881_v49, 1 }
  0x87   : > { %9276 = vmatprep.mubr.msk.bf16.mxu0 %vm1032_vm2, %v11193_v3  ;;  %v838_v16 = vrot.slane %v836_v15, 1  ;;  %13319 = vst [vmem:[#allocation33_spill] sm:$0xff] %v11224_v13  ;;  %v852_v15 = vshll.u32 %v11217_v11, 16  ;;  %13322 = vst [vmem:[#allocation36_spill] sm:$0xff] %v11248_v29 }
  0x88   : > { %13323 = vst [vmem:[#allocation37_spill] sm:$0xff] %v11256_v37  ;;  %v11280_v49 = vsel %vm2284_vm3, %v2298_v50, %v2300_v24  ;;  %v2304_v50 = vrot.slane %v10906_v61, 1 }
  0x89   : > { %v842_v45 = vor.u32 %v840_v41, %v838_v16  ;;  %v11236_v59 = vsel %vm579_vm1, %v834_v52, %v838_v16  ;;  %v856_v41 = vshrl.u32 %v11217_v11, 16  ;;  %v11251_v52 = vld [vmem:[%s10828_s25 + $0x120] sm:$0xff]   ;;  %13326 = vst [vmem:[#allocation40_spill] sm:$0xff] %v11280_v49 }
  0x8a   : > { %13320 = vst [vmem:[#allocation34_spill] sm:$0xff] %v11236_v59 }
  0x8b   : > { %v11241_v38 = vsel %vm579_vm1, %v842_v45, %v846_v28  ;;  %v850_v45 = vor.u32 %v848_v54, %v846_v28  ;;  %v2302_v28 = vrot.slane %v10886_v53, 1 }
  0x8c   : > { %8763 = vmatmul.mubr.msk.bf16.gmra.mrb[56].mxu1 %vm1032_vm2, %v11183_v27  ;;  %v11227_v27 = vld [vmem:[%s10828_s25 + $0x118] sm:$0xff]   ;;  %13321 = vst [vmem:[#allocation35_spill] sm:$0xff] %v11241_v38 }
  0x8d   : > { %8766 = vmatprep.mubr.msk.bf16.mxu1 %vm1032_vm2, %v11207_v34  ;;  %v860_v5 = vshll.u32 %v11227_v27, 16  ;;  %v864_v54 = vshrl.u32 %v11227_v27, 16  ;;  %v11288_v53 = vsel %vm2284_vm3, %v2300_v24, %v2302_v28  ;;  %v11312_v61 = vsel %vm2284_vm3, %v2302_v28, %v2304_v50 }
  0x8e   : > { %9277 = vmatmul.mubr.msk.bf16.vlgmr.msra.gmra.mrb[0].mxu0 %vm1032_vm2, %v11214_v19  ;;  %13327 = vst [vmem:[#allocation41_spill] sm:$0xff] %v11288_v53  ;;  %13330 = vst [vmem:[#allocation44_spill] sm:$0xff] %v11312_v61  ;;  %v2308_v28 = vrot.slane %v10930_v10, 1 }
  0x8f   : > { %9389 = vmatpush3.bf16.msra.mxu0 %v5033_v17  ;;  %9280 = vmatprep.mubr.msk.bf16.mxu0 %vm1032_vm2, %v11224_v13  ;;  %v854_v17 = vrot.slane %v852_v15, 1  ;;  %v862_v34 = vrot.slane %v860_v5, 1  ;;  %v868_v15 = vshll.u32 %v11251_v52, 16  ;;  %v872_v5 = vshrl.u32 %v11251_v52, 16 }
  0x91   : > { %v858_v16 = vor.u32 %v856_v41, %v854_v17  ;;  %v11268_v47 = vsel %vm579_vm1, %v850_v45, %v854_v17  ;;  %v11283_v17 = vld [vmem:[%s10828_s25 + $0x130] sm:$0xff]   ;;  %v866_v45 = vor.u32 %v864_v54, %v862_v34 }
  0x92   : > { %13324 = vst [vmem:[#allocation38_spill] sm:$0xff] %v11268_v47 }
  0x93   : > { %v11273_v41 = vsel %vm579_vm1, %v858_v16, %v862_v34  ;;  %v2306_v34 = vrot.slane %v10911_v1, 1 }
  0x94   : > { %8767 = vmatmul.mubr.msk.bf16.gmra.mrb[60].mxu1 %vm1032_vm2, %v11236_v59  ;;  %13325 = vst [vmem:[#allocation39_spill] sm:$0xff] %v11273_v41  ;;  %v870_v59 = vrot.slane %v868_v15, 1  ;;  %v884_v15 = vshll.u32 %v11283_v17, 16 }
  0x95   : > { %8770 = vmatprep.mubr.msk.bf16.mxu1 %vm1032_vm2, %v11241_v38  ;;  %v876_v38 = vshll.u32 %v11259_v25, 16  ;;  %v11320_v1 = vsel %vm2284_vm3, %v2304_v50, %v2306_v34  ;;  %v11344_v10 = vsel %vm2284_vm3, %v2306_v34, %v2308_v28  ;;  %v2312_v34 = vrot.slane %v10954_v26, 1 }
  0x96   : > { %9281 = vmatmul.mubr.msk.bf16.gmra.mrb[4].mxu0 %vm1032_vm2, %v11248_v29  ;;  %v874_v16 = vor.u32 %v872_v5, %v870_v59  ;;  %v11300_v24 = vsel %vm579_vm1, %v866_v45, %v870_v59  ;;  %v888_v5 = vshrl.u32 %v11283_v17, 16  ;;  %v11315_v59 = vld [vmem:[%s10828_s25 + $0x140] sm:$0xff]   ;;  %13331 = vst [vmem:[#allocation45_spill] sm:$0xff] %v11320_v1  ;;  %13334 = vst [vmem:[#allocation48_spill] sm:$0xff] %v11344_v10  ;;  %v11798_v29 = vld [vmem:[%s10828_s25 + $0x78] sm:$0xff]  }
  0x97   : > { %9284 = vmatprep.mubr.msk.bf16.mxu0 %vm1032_vm2, %v11256_v37  ;;  %v878_v7 = vrot.slane %v876_v38, 1  ;;  %13328 = vst [vmem:[#allocation42_spill] sm:$0xff] %v11300_v24  ;;  %v880_v38 = vshrl.u32 %v11259_v25, 16 }
  0x99   : > { %v11305_v54 = vsel %vm579_vm1, %v874_v16, %v878_v7  ;;  %v882_v45 = vor.u32 %v880_v38, %v878_v7  ;;  %v2310_v7 = vrot.slane %v10935_v18, 1 }
  0x9a   : > { %13329 = vst [vmem:[#allocation43_spill] sm:$0xff] %v11305_v54 }
  0x9b   : > { %v11352_v18 = vsel %vm2284_vm3, %v2308_v28, %v2310_v7  ;;  %v11376_v26 = vsel %vm2284_vm3, %v2310_v7, %v2312_v34  ;;  %v2316_v7 = vrot.slane %v10978_v40, 1 }
  0x9c   : > { %8771 = vmatmul.mubr.msk.bf16.gmra.mrb[64].mxu1 %vm1032_vm2, %v11268_v47  ;;  %v886_v47 = vrot.slane %v884_v15, 1  ;;  %v900_v15 = vshll.u32 %v11315_v59, 16  ;;  %13335 = vst [vmem:[#allocation49_spill] sm:$0xff] %v11352_v18  ;;  %13338 = vst [vmem:[#allocation52_spill] sm:$0xff] %v11376_v26 }
  0x9d   : > { %8774 = vmatprep.mubr.msk.bf16.mxu1 %vm1032_vm2, %v11273_v41  ;;  %v892_v41 = vshll.u32 %v11291_v2, 16 }
  0x9e   : > { %9285 = vmatmul.mubr.msk.bf16.gmra.mrb[8].mxu0 %vm1032_vm2, %v11280_v49  ;;  %v890_v16 = vor.u32 %v888_v5, %v886_v47  ;;  %v11332_v50 = vsel %vm579_vm1, %v882_v45, %v886_v47  ;;  %v904_v5 = vshrl.u32 %v11315_v59, 16  ;;  %v11347_v47 = vld [vmem:[%s10828_s25 + $0x150] sm:$0xff]   ;;  %v11776_v49 = vld [vmem:[%s10828_s25 + $0x68] sm:$0xff]  }
  0x9f   : > { %9288 = vmatprep.mubr.msk.bf16.mxu0 %vm1032_vm2, %v11288_v53  ;;  %v894_v51 = vrot.slane %v892_v41, 1  ;;  %13332 = vst [vmem:[#allocation46_spill] sm:$0xff] %v11332_v50  ;;  %v896_v41 = vshrl.u32 %v11291_v2, 16 }
  0xa1   : > { %v11337_v38 = vsel %vm579_vm1, %v890_v16, %v894_v51  ;;  %v898_v45 = vor.u32 %v896_v41, %v894_v51  ;;  %v2314_v51 = vrot.slane %v10959_v31, 1 }
  0xa2   : > { %13333 = vst [vmem:[#allocation47_spill] sm:$0xff] %v11337_v38 }
  0xa3   : > { %v11384_v31 = vsel %vm2284_vm3, %v2312_v34, %v2314_v51  ;;  %v11408_v40 = vsel %vm2284_vm3, %v2314_v51, %v2316_v7  ;;  %v2320_v51 = vrot.slane %v11002_v58, 1 }
  0xa4   : > { %8775 = vmatmul.mubr.msk.bf16.gmra.mrb[68].mxu1 %vm1032_vm2, %v11300_v24  ;;  %v902_v24 = vrot.slane %v900_v15, 1  ;;  %v916_v15 = vshll.u32 %v11347_v47, 16  ;;  %13339 = vst [vmem:[#allocation53_spill] sm:$0xff] %v11384_v31  ;;  %13342 = vst [vmem:[#allocation56_spill] sm:$0xff] %v11408_v40 }
  0xa5   : > { %8778 = vmatprep.mubr.msk.bf16.mxu1 %vm1032_vm2, %v11305_v54  ;;  %v908_v54 = vshll.u32 %v11323_v48, 16 }
  0xa6   : > { %9289 = vmatmul.mubr.msk.bf16.gmra.mrb[12].mxu0 %vm1032_vm2, %v11312_v61  ;;  %v906_v16 = vor.u32 %v904_v5, %v902_v24  ;;  %v11364_v28 = vsel %vm579_vm1, %v898_v45, %v902_v24  ;;  %v920_v5 = vshrl.u32 %v11347_v47, 16  ;;  %v11379_v24 = vld [vmem:[%s10828_s25 + $0x160] sm:$0xff]  }
  0xa7   : > { %9292 = vmatprep.mubr.msk.bf16.mxu0 %vm1032_vm2, %v11320_v1  ;;  %v910_v35 = vrot.slane %v908_v54, 1  ;;  %13336 = vst [vmem:[#allocation50_spill] sm:$0xff] %v11364_v28  ;;  %v912_v54 = vshrl.u32 %v11323_v48, 16  ;;  %v11547_v1 = vld [vmem:[%s10828_s25 + $0x1b8] sm:$0xff]  }
  0xa9   : > { %v11369_v41 = vsel %vm579_vm1, %v906_v16, %v910_v35  ;;  %v914_v45 = vor.u32 %v912_v54, %v910_v35  ;;  %v2318_v35 = vrot.slane %v10983_v44, 1 }
  0xaa   : > { %13337 = vst [vmem:[#allocation51_spill] sm:$0xff] %v11369_v41 }
  0xab   : > { %v11416_v44 = vsel %vm2284_vm3, %v2316_v7, %v2318_v35 }
  0xac   : > { %8779 = vmatmul.mubr.msk.bf16.gmra.mrb[72].mxu1 %vm1032_vm2, %v11332_v50  ;;  %v918_v50 = vrot.slane %v916_v15, 1  ;;  %v932_v15 = vshll.u32 %v11379_v24, 16  ;;  %13343 = vst [vmem:[#allocation57_spill] sm:$0xff] %v11416_v44 }
  0xad   : > { %8782 = vmatprep.mubr.msk.bf16.mxu1 %vm1032_vm2, %v11337_v38  ;;  %v924_v38 = vshll.u32 %v11355_v33, 16 }
  0xae   : > { %9293 = vmatmul.mubr.msk.bf16.gmra.mrb[16].mxu0 %vm1032_vm2, %v11344_v10  ;;  %v922_v16 = vor.u32 %v920_v5, %v918_v50  ;;  %v11396_v34 = vsel %vm579_vm1, %v914_v45, %v918_v50  ;;  %v936_v5 = vshrl.u32 %v11379_v24, 16  ;;  %v11411_v50 = vld [vmem:[%s10828_s25 + $0x170] sm:$0xff]  }
  0xaf   : > { %9296 = vmatprep.mubr.msk.bf16.mxu0 %vm1032_vm2, %v11352_v18  ;;  %v926_v22 = vrot.slane %v924_v38, 1  ;;  %13340 = vst [vmem:[#allocation54_spill] sm:$0xff] %v11396_v34  ;;  %v928_v38 = vshrl.u32 %v11355_v33, 16  ;;  %v11515_v18 = vld [vmem:[%s10828_s25 + $0x1a8] sm:$0xff]  }
  0xb1   : > { %v11401_v54 = vsel %vm579_vm1, %v922_v16, %v926_v22  ;;  %v930_v45 = vor.u32 %v928_v38, %v926_v22  ;;  %v2322_v22 = vrot.slane %v11007_v63, 1 }
  0xb2   : > { %13341 = vst [vmem:[#allocation55_spill] sm:$0xff] %v11401_v54 }
  0xb4   : > { %8783 = vmatmul.mubr.msk.bf16.gmra.mrb[76].mxu1 %vm1032_vm2, %v11364_v28  ;;  %v934_v28 = vrot.slane %v932_v15, 1  ;;  %v948_v15 = vshll.u32 %v11411_v50, 16 }
  0xb5   : > { %8786 = vmatprep.mubr.msk.bf16.mxu1 %vm1032_vm2, %v11369_v41  ;;  %v940_v41 = vshll.u32 %v11387_v20, 16 }
  0xb6   : > { %9297 = vmatmul.mubr.msk.bf16.gmra.mrb[20].mxu0 %vm1032_vm2, %v11376_v26  ;;  %v938_v16 = vor.u32 %v936_v5, %v934_v28  ;;  %v11428_v7 = vsel %vm579_vm1, %v930_v45, %v934_v28  ;;  %v952_v5 = vshrl.u32 %v11411_v50, 16  ;;  %v950_v57 = vrot.slane %v948_v15, 1  ;;  %v11443_v28 = vld [vmem:[%s10828_s25 + $0x180] sm:$0xff]  }
  0xb7   : > { %9300 = vmatprep.mubr.msk.bf16.mxu0 %vm1032_vm2, %v11384_v31  ;;  %v942_v6 = vrot.slane %v940_v41, 1  ;;  %13344 = vst [vmem:[#allocation58_spill] sm:$0xff] %v11428_v7  ;;  %v944_v41 = vshrl.u32 %v11387_v20, 16  ;;  %v11448_v45 = vsel %vm2284_vm3, %v2320_v51, %v2322_v22  ;;  %v964_v15 = vshll.u32 %v11443_v28, 16  ;;  %v11483_v31 = vld [vmem:[%s10828_s25 + $0x198] sm:$0xff]  }
  0xb8   : > { %13347 = vst [vmem:[#allocation61_spill] sm:$0xff] %v11448_v45  ;;  %v954_v55 = vor.u32 %v952_v5, %v950_v57  ;;  %v968_v5 = vshrl.u32 %v11443_v28, 16 }
  0xb9   : > { %v11433_v38 = vsel %vm579_vm1, %v938_v16, %v942_v6  ;;  %v946_v16 = vor.u32 %v944_v41, %v942_v6  ;;  %v2326_v6 = vrot.slane %v11031_v23, 1 }
  0xba   : > { %13345 = vst [vmem:[#allocation59_spill] sm:$0xff] %v11433_v38 }
  0xbc   : > { %8787 = vmatmul.mubr.msk.bf16.gmra.mrb[80].mxu1 %vm1032_vm2, %v11396_v34  ;;  %v11440_v34 = vsel %vm2284_vm3, %v2318_v35, %v2320_v51  ;;  %v2324_v35 = vrot.slane %v11026_v14, 1  ;;  %v11460_v51 = vsel %vm579_vm1, %v946_v16, %v950_v57  ;;  %v11475_v57 = vld [vmem:[%s10828_s25 + $0x190] sm:$0xff]  }
  0xbd   : > { %8790 = vmatprep.mubr.msk.bf16.mxu1 %vm1032_vm2, %v11401_v54  ;;  %v956_v54 = vshll.u32 %v11419_v4, 16  ;;  %13346 = vst [vmem:[#allocation60_spill] sm:$0xff] %v11440_v34  ;;  %13348 = vst [vmem:[#allocation62_spill] sm:$0xff] %v11460_v51 }
  0xbe   : > { %9301 = vmatmul.mubr.msk.bf16.gmra.mrb[24].mxu0 %vm1032_vm2, %v11408_v40  ;;  %v11480_v16 = vsel %vm2284_vm3, %v2324_v35, %v2326_v6 }
  0xbf   : > { %9304 = vmatprep.mubr.msk.bf16.mxu0 %vm1032_vm2, %v11416_v44  ;;  %v958_v46 = vrot.slane %v956_v54, 1  ;;  %v11451_v44 = vld [vmem:[%s10828_s25 + $0x188] sm:$0xff]   ;;  %v960_v54 = vshrl.u32 %v11419_v4, 16  ;;  %13351 = vst [vmem:[#allocation65_spill] sm:$0xff] %v11480_v16 }
  0xc0   : > { %v2382_v19 = vrot.slane %v11451_v44, 1 }
  0xc1   : > { %v11465_v41 = vsel %vm579_vm1, %v954_v55, %v958_v46  ;;  %v962_v55 = vor.u32 %v960_v54, %v958_v46  ;;  %v2330_v46 = vrot.slane %v11055_v42, 1 }
  0xc2   : > { %13349 = vst [vmem:[#allocation63_spill] sm:$0xff] %v11465_v41 }
  0xc4   : > { %8791 = vmatmul.mubr.msk.bf16.gmra.mrb[84].mxu1 %vm1032_vm2, %v11428_v7  ;;  %v11472_v7 = vsel %vm2284_vm3, %v2322_v22, %v2324_v35  ;;  %v2328_v22 = vrot.slane %v11050_v36, 1 }
  0xc5   : > { %8794 = vmatprep.mubr.msk.bf16.mxu1 %vm1032_vm2, %v11433_v38  ;;  %v972_v38 = vshll.u32 %v11451_v44, 16  ;;  %13350 = vst [vmem:[#allocation64_spill] sm:$0xff] %v11472_v7 }
  0xc6   : > { %9305 = vmatmul.mubr.msk.bf16.gmra.mrb[28].mxu0 %vm1032_vm2, %v11440_v34 }
  0xc7   : > { %9308 = vmatprep.mubr.msk.bf16.mxu0 %vm1032_vm2, %v11448_v45  ;;  %v966_v45 = vrot.slane %v964_v15, 1  ;;  %v974_v40 = vrot.slane %v972_v38, 1  ;;  %v980_v15 = vshll.u32 %v11475_v57, 16  ;;  %v976_v38 = vshrl.u32 %v11451_v44, 16 }
  0xc9   : > { %v970_v34 = vor.u32 %v968_v5, %v966_v45  ;;  %v11492_v35 = vsel %vm579_vm1, %v962_v55, %v966_v45  ;;  %v984_v5 = vshrl.u32 %v11475_v57, 16  ;;  %v11507_v45 = vld [vmem:[%s10828_s25 + $0x1a0] sm:$0xff]   ;;  %v11512_v55 = vsel %vm2284_vm3, %v2328_v22, %v2330_v46 }
  0xca   : > { %13352 = vst [vmem:[#allocation66_spill] sm:$0xff] %v11492_v35  ;;  %13355 = vst [vmem:[#allocation69_spill] sm:$0xff] %v11512_v55 }
  0xcb   : > { %v11497_v54 = vsel %vm579_vm1, %v970_v34, %v974_v40  ;;  %v978_v34 = vor.u32 %v976_v38, %v974_v40  ;;  %v2334_v40 = vrot.slane %v11079_v8, 1 }
  0xcc   : > { %8795 = vmatmul.mubr.msk.bf16.gmra.mrb[88].mxu1 %vm1032_vm2, %v11460_v51  ;;  %13353 = vst [vmem:[#allocation67_spill] sm:$0xff] %v11497_v54  ;;  %v11504_v51 = vsel %vm2284_vm3, %v2326_v6, %v2328_v22  ;;  %v2332_v6 = vrot.slane %v11074_v60, 1 }
  0xcd   : > { %8798 = vmatprep.mubr.msk.bf16.mxu1 %vm1032_vm2, %v11465_v41  ;;  %v988_v41 = vshll.u32 %v11483_v31, 16  ;;  %13354 = vst [vmem:[#allocation68_spill] sm:$0xff] %v11504_v51 }
  0xce   : > { %9309 = vmatmul.mubr.msk.bf16.gmra.mrb[32].mxu0 %vm1032_vm2, %v11472_v7 }
  0xcf   : > { %9312 = vmatprep.mubr.msk.bf16.mxu0 %vm1032_vm2, %v11480_v16  ;;  %v982_v16 = vrot.slane %v980_v15, 1  ;;  %v990_v26 = vrot.slane %v988_v41, 1  ;;  %v996_v15 = vshll.u32 %v11507_v45, 16  ;;  %v992_v41 = vshrl.u32 %v11483_v31, 16 }
  0xd1   : > { %v986_v7 = vor.u32 %v984_v5, %v982_v16  ;;  %v11524_v22 = vsel %vm579_vm1, %v978_v34, %v982_v16  ;;  %v1000_v5 = vshrl.u32 %v11507_v45, 16  ;;  %v11539_v16 = vld [vmem:[%s10828_s25 + $0x1b0] sm:$0xff]   ;;  %v994_v34 = vor.u32 %v992_v41, %v990_v26 }
  0xd2   : > { %13356 = vst [vmem:[#allocation70_spill] sm:$0xff] %v11524_v22  ;;  %v1016_v41 = vshrl.u32 %v11539_v16, 16 }
  0xd3   : > { %v11529_v38 = vsel %vm579_vm1, %v986_v7, %v990_v26  ;;  %v11544_v7 = vsel %vm2284_vm3, %v2332_v6, %v2334_v40  ;;  %v1008_v26 = vshrl.u32 %v11515_v18, 16 }
  0xd4   : > { %8799 = vmatmul.mubr.msk.bf16.gmra.mrb[92].mxu1 %vm1032_vm2, %v11492_v35  ;;  %13357 = vst [vmem:[#allocation71_spill] sm:$0xff] %v11529_v38  ;;  %v11536_v35 = vsel %vm2284_vm3, %v2330_v46, %v2332_v6  ;;  %13359 = vst [vmem:[#allocation73_spill] sm:$0xff] %v11544_v7  ;;  %v2336_v46 = vrot.slane %v11098_v30, 1  ;;  %v2338_v6 = vrot.slane %v11103_v39, 1 }
  0xd5   : > { %8802 = vmatprep.mubr.msk.bf16.mxu1 %vm1032_vm2, %v11497_v54  ;;  %v1004_v54 = vshll.u32 %v11515_v18, 16  ;;  %13358 = vst [vmem:[#allocation72_spill] sm:$0xff] %v11536_v35 }
  0xd6   : > { %9313 = vmatmul.mubr.msk.bf16.gmra.mrb[36].mxu0 %vm1032_vm2, %v11504_v51 }
  0xd7   : > { %9316 = vmatprep.mubr.msk.bf16.mxu0 %vm1032_vm2, %v11512_v55  ;;  %v998_v55 = vrot.slane %v996_v15, 1  ;;  %v1006_v10 = vrot.slane %v1004_v54, 1  ;;  %v1012_v15 = vshll.u32 %v11539_v16, 16 }
  0xd9   : > { %v1002_v51 = vor.u32 %v1000_v5, %v998_v55  ;;  %v1020_v5 = vshll.u32 %v11547_v1, 16 }
  0xdb   : > { %v11561_v54 = vsel %vm579_vm1, %v1002_v51, %v1006_v10  ;;  %v1010_v51 = vor.u32 %v1008_v26, %v1006_v10  ;;  %v1022_v53 = vrot.slane %v1020_v5, 1  ;;  %v1024_v26 = vshrl.u32 %v11547_v1, 16 }
  0xdc   : > { %8803 = vmatmul.mubr.msk.bf16.gmra.mrb[96].mxu1 %vm1032_vm2, %v11524_v22  ;;  %13361 = vst [vmem:[#allocation75_spill] sm:$0xff] %v11561_v54  ;;  %v11566_v22 = vld [vmem:[%s10828_s25 + $0x1c0] sm:$0xf] }
  0xdd   : > { %8806 = vmatprep.mubr.msk.bf16.mxu1 %vm1032_vm2, %v11529_v38  ;;  %v11556_v38 = vsel %vm579_vm1, %v994_v34, %v998_v55  ;;  %v1014_v55 = vrot.slane %v1012_v15, 1  ;;  %v11576_v34 = vsel %vm2284_vm3, %v2336_v46, %v2338_v6  ;;  %v2342_v15 = vrot.slane %v11127_v21, 1 }
  0xde   : > { %9317 = vmatmul.mubr.msk.bf16.gmra.mrb[40].mxu0 %vm1032_vm2, %v11536_v35  ;;  %13360 = vst [vmem:[#allocation74_spill] sm:$0xff] %v11556_v38  ;;  %13363 = vst [vmem:[#allocation77_spill] sm:$0xff] %v11576_v34  ;;  %v11580_v35 = vcombine.low %v11566_v22, %v11566_v22 }
  0xdf   : > { %9320 = vmatprep.mubr.msk.bf16.mxu0 %vm1032_vm2, %v11544_v7  ;;  %v11571_v7 = vsel %vm2284_vm3, %v2334_v40, %v2336_v46  ;;  %v1018_v61 = vor.u32 %v1016_v41, %v1014_v55  ;;  %v2340_v40 = vrot.slane %v11122_v0, 1  ;;  %v11590_v46 = vld [vmem:[%s13095_s1 + $0x1c] sm:$0xf]  ;;  %v11593_v10 = vsel %vm579_vm1, %v1010_v51, %v1014_v55 }
  0xe0   : > { %13362 = vst [vmem:[#allocation76_spill] sm:$0xff] %v11571_v7  ;;  %13364 = vst [vmem:[#allocation78_spill] sm:$0xff] %v11580_v35  ;;  %v1028_v41 = vshll.u32 %v11580_v35, 16  ;;  %10636 = vmatprep.subr.msk.bf16.mxu0 %vm1201_vm0, %v11590_v46  ;;  %v11613_v51 = vor.u32 %v1024_v26, %v1022_v53 }
  0xe1   : > { %13365 = vst [vmem:[#allocation79_spill] sm:$0xff] %v11593_v10  ;;  %v11601_v5 = vsel %vm579_vm1, %v1018_v61, %v1022_v53  ;;  %v11611_v55 = vsel %vm2284_vm3, %v2340_v40, %v2342_v15  ;;  %v2344_v61 = vrot.slane %v11153_v62, 1 }
  0xe2   : > { %13366 = vst [vmem:[#allocation80_spill] sm:$0xff] %v11601_v5  ;;  %13368 = vst [vmem:[#allocation82_spill] sm:$0xff] %v11611_v55 }
  0xe3   : > { %13369 = vst [vmem:[#allocation83_spill] sm:$0xff] %v11613_v51  ;;  %v11625_v53 = vsel %vm2284_vm3, %v2342_v15, %v2344_v61  ;;  %v2350_v15 = vrot.slane %v11196_v9, 1 }
  0xe4   : > { %8807 = vmatmul.mubr.msk.bf16.gmra.mrb[100].mxu1 %vm1032_vm2, %v11556_v38  ;;  %v1030_v38 = vrot.slane %v1028_v41, 1  ;;  %13370 = vst [vmem:[#allocation84_spill] sm:$0xff] %v11625_v53  ;;  %v2567_v41 = vsel %vm1201_vm0, %v11148_v56, 0  ;;  %v2352_v56 = vrot.slane %v11217_v11, 1 }
  0xe5   : > { %8810 = vmatprep.mubr.msk.bf16.mxu1 %vm1032_vm2, %v11561_v54  ;;  %v11606_v54 = vsel %vm2284_vm3, %v2338_v6, %v2340_v40  ;;  %v11628_v40 = vld [vmem:[%s10828_s25] sm:$0xff]  }
  0xe6   : > { %9321 = vmatmul.mubr.msk.bf16.gmra.mrb[44].mxu0 %vm1032_vm2, %v11571_v7  ;;  %13367 = vst [vmem:[#allocation81_spill] sm:$0xff] %v11606_v54  ;;  %v1031_v6 = vsel %vm579_vm1, %v11613_v51, %v1030_v38  ;;  %v2348_v38 = vrot.slane %v11186_v43, 1  ;;  %v11652_v51 = vld [vmem:[%s10828_s25 + $0x10] sm:$0xff]  }
  0xe7   : > { %9324 = vmatprep.mubr.msk.bf16.mxu0 %vm1032_vm2, %v11576_v34  ;;  %13373 = vst [vmem:[#allocation87_spill] sm:$0xff] %v11652_v51  ;;  %v11754_v34 = vld [vmem:[%s10828_s25 + $0x58] sm:$0xff]  }
  0xec   : > { %8811 = vmatmul.mubr.msk.bf16.gmra.mrb[104].mxu1 %vm1032_vm2, %v11593_v10  ;;  %v11657_v10 = vsel %vm2284_vm3, %v2348_v38, %v2350_v15 }
  0xed   : > { %8814 = vmatprep.mubr.msk.bf16.mxu1 %vm1032_vm2, %v11601_v5  ;;  %v2346_v5 = vrot.slane %v11170_v32, 1  ;;  %13374 = vst [vmem:[#allocation88_spill] sm:$0xff] %v11657_v10 }
  0xee   : > { %9325 = vmatmul.mubr.msk.bf16.gmra.mrb[48].mxu0 %vm1032_vm2, %v11606_v54 }
  0xef   : > { %9328 = vmatprep.mubr.msk.bf16.mxu0 %vm1032_vm2, %v11611_v55  ;;  %v11633_v26 = vsel %vm2284_vm3, %v2344_v61, %v2346_v5  ;;  %v11649_v61 = vsel %vm2284_vm3, %v2346_v5, %v2348_v38  ;;  %v2354_v5 = vrot.slane %v11227_v27, 1  ;;  %v11674_v38 = vld [vmem:[%s10828_s25 + $0x20] sm:$0xff]   ;;  %v11732_v55 = vld [vmem:[%s10828_s25 + $0x48] sm:$0xff]  }
  0xf0   : > { %13371 = vst [vmem:[#allocation85_spill] sm:$0xff] %v11633_v26  ;;  %13372 = vst [vmem:[#allocation86_spill] sm:$0xff] %v11649_v61 }
  0xf1   : > { %v11679_v35 = vsel %vm2284_vm3, %v2352_v56, %v2354_v5 }
  0xf2   : > { %13377 = vst [vmem:[#allocation91_spill] sm:$0xff] %v11679_v35 }
  0xf4   : > { %8815 = vmatmul.mubr.msk.bf16.gmra.mrb[108].mxu1 %vm1032_vm2, %v1031_v6  ;;  %v11644_v6 = vld [vmem:[%s10828_s25 + $0x8] sm:$0xff]  }
  0xf5   : > { %8820 = vmatprep.mubr.msk.bf16.mxu1 %vm1032_vm2, %v11628_v40 }
  0xf6   : > { %9329 = vmatmul.mubr.msk.bf16.gmra.mrb[52].mxu0 %vm1032_vm2, %v11625_v53 }
  0xf7   : > { %9332 = vmatprep.mubr.msk.bf16.mxu0 %vm1032_vm2, %v11633_v26  ;;  %v11710_v26 = vld [vmem:[%s10828_s25 + $0x38] sm:$0xff]  }
  0xfc   : > { %8821 = vmatmul.mubr.msk.bf16.vlgmr.msra.gmra.mrb[0].mxu1 %vm1032_vm2, %v11644_v6 }
  0xfd   : > { %8933 = vmatpush3.bf16.msra.mxu1 %v2567_v41  ;;  %8824 = vmatprep.mubr.msk.bf16.mxu1 %vm1032_vm2, %v11652_v51  ;;  %v11666_v41 = vld [vmem:[%s10828_s25 + $0x18] sm:$0xff]   ;;  %v11671_v51 = vsel %vm2284_vm3, %v2350_v15, %v2352_v56  ;;  %v2358_v15 = vrot.slane %v11259_v25, 1  ;;  %v11696_v56 = vld [vmem:[%s10828_s25 + $0x30] sm:$0xff]  }
  0xfe   : > { %9333 = vmatmul.mubr.msk.bf16.gmra.mrb[56].mxu0 %vm1032_vm2, %v11649_v61  ;;  %13375 = vst [vmem:[#allocation89_spill] sm:$0xff] %v11666_v41  ;;  %13376 = vst [vmem:[#allocation90_spill] sm:$0xff] %v11671_v51 }
  0xff   : > { %9336 = vmatprep.mubr.msk.bf16.mxu0 %vm1032_vm2, %v11657_v10  ;;  %v11688_v10 = vld [vmem:[%s10828_s25 + $0x28] sm:$0xff]  }
 0x104   : > { %8825 = vmatmul.mubr.msk.bf16.gmra.mrb[4].mxu1 %vm1032_vm2, %v11666_v41  ;;  %v2356_v41 = vrot.slane %v11251_v52, 1 }
 0x105   : > { %8828 = vmatprep.mubr.msk.bf16.mxu1 %vm1032_vm2, %v11674_v38 }
 0x106   : > { %9337 = vmatmul.mubr.msk.bf16.gmra.mrb[60].mxu0 %vm1032_vm2, %v11671_v51  ;;  %v11693_v61 = vsel %vm2284_vm3, %v2354_v5, %v2356_v41  ;;  %v2360_v51 = vrot.slane %v11283_v17, 1  ;;  %v2362_v5 = vrot.slane %v11291_v2, 1 }
 0x107   : > { %9340 = vmatprep.mubr.msk.bf16.mxu0 %vm1032_vm2, %v11679_v35  ;;  %13378 = vst [vmem:[#allocation92_spill] sm:$0xff] %v11693_v61  ;;  %v11701_v35 = vsel %vm2284_vm3, %v2356_v41, %v2358_v15  ;;  %v11718_v41 = vld [vmem:[%s10828_s25 + $0x40] sm:$0xff]  }
 0x108   : > { %13379 = vst [vmem:[#allocation93_spill] sm:$0xff] %v11701_v35  ;;  %v11715_v53 = vsel %vm2284_vm3, %v2358_v15, %v2360_v51  ;;  %v2366_v15 = vrot.slane %v11323_v48, 1 }
 0x109   : > { %13380 = vst [vmem:[#allocation94_spill] sm:$0xff] %v11715_v53 }
 0x10c   : > { %8829 = vmatmul.mubr.msk.bf16.gmra.mrb[8].mxu1 %vm1032_vm2, %v11688_v10 }
 0x10d   : > { %8832 = vmatprep.mubr.msk.bf16.mxu1 %vm1032_vm2, %v11696_v56 }
 0x10e   : > { %9341 = vmatmul.mubr.msk.bf16.gmra.mrb[64].mxu0 %vm1032_vm2, %v11693_v61  ;;  %v2364_v61 = vrot.slane %v11315_v59, 1 }
 0x10f   : > { %9344 = vmatprep.mubr.msk.bf16.mxu0 %vm1032_vm2, %v11701_v35  ;;  %v11723_v35 = vsel %vm2284_vm3, %v2360_v51, %v2362_v5  ;;  %v11740_v51 = vld [vmem:[%s10828_s25 + $0x50] sm:$0xff]  }
 0x110   : > { %13381 = vst [vmem:[#allocation95_spill] sm:$0xff] %v11723_v35  ;;  %v11737_v54 = vsel %vm2284_vm3, %v2362_v5, %v2364_v61  ;;  %v2370_v5 = vrot.slane %v11355_v33, 1 }
 0x111   : > { %13382 = vst [vmem:[#allocation96_spill] sm:$0xff] %v11737_v54 }
 0x114   : > { %8833 = vmatmul.mubr.msk.bf16.gmra.mrb[12].mxu1 %vm1032_vm2, %v11710_v26 }
 0x115   : > { %8836 = vmatprep.mubr.msk.bf16.mxu1 %vm1032_vm2, %v11718_v41 }
 0x116   : > { %9345 = vmatmul.mubr.msk.bf16.gmra.mrb[68].mxu0 %vm1032_vm2, %v11715_v53  ;;  %v2368_v53 = vrot.slane %v11347_v47, 1 }
 0x117   : > { %9348 = vmatprep.mubr.msk.bf16.mxu0 %vm1032_vm2, %v11723_v35  ;;  %v11745_v35 = vsel %vm2284_vm3, %v2364_v61, %v2366_v15  ;;  %v11762_v61 = vld [vmem:[%s10828_s25 + $0x60] sm:$0xff]  }
 0x118   : > { %13383 = vst [vmem:[#allocation97_spill] sm:$0xff] %v11745_v35  ;;  %v11759_v7 = vsel %vm2284_vm3, %v2366_v15, %v2368_v53  ;;  %v2374_v15 = vrot.slane %v11387_v20, 1 }
 0x119   : > { %13384 = vst [vmem:[#allocation98_spill] sm:$0xff] %v11759_v7 }
 0x11c   : > { %8837 = vmatmul.mubr.msk.bf16.gmra.mrb[16].mxu1 %vm1032_vm2, %v11732_v55 }
 0x11d   : > { %8840 = vmatprep.mubr.msk.bf16.mxu1 %vm1032_vm2, %v11740_v51 }
 0x11e   : > { %9349 = vmatmul.mubr.msk.bf16.gmra.mrb[72].mxu0 %vm1032_vm2, %v11737_v54  ;;  %v2372_v54 = vrot.slane %v11379_v24, 1 }
 0x11f   : > { %9352 = vmatprep.mubr.msk.bf16.mxu0 %vm1032_vm2, %v11745_v35  ;;  %v11767_v35 = vsel %vm2284_vm3, %v2368_v53, %v2370_v5  ;;  %v11784_v53 = vld [vmem:[%s10828_s25 + $0x70] sm:$0xff]  }
 0x120   : > { %13385 = vst [vmem:[#allocation99_spill] sm:$0xff] %v11767_v35  ;;  %v11781_v37 = vsel %vm2284_vm3, %v2370_v5, %v2372_v54  ;;  %v2378_v5 = vrot.slane %v11419_v4, 1 }
 0x121   : > { %13386 = vst [vmem:[#allocation100_spill] sm:$0xff] %v11781_v37 }
 0x124   : > { %8841 = vmatmul.mubr.msk.bf16.gmra.mrb[20].mxu1 %vm1032_vm2, %v11754_v34 }
 0x125   : > { %8844 = vmatprep.mubr.msk.bf16.mxu1 %vm1032_vm2, %v11762_v61 }
 0x126   : > { %9353 = vmatmul.mubr.msk.bf16.gmra.mrb[76].mxu0 %vm1032_vm2, %v11759_v7  ;;  %v2376_v7 = vrot.slane %v11411_v50, 1 }
 0x127   : > { %9356 = vmatprep.mubr.msk.bf16.mxu0 %vm1032_vm2, %v11767_v35  ;;  %v11789_v35 = vsel %vm2284_vm3, %v2372_v54, %v2374_v15  ;;  %v11806_v54 = vld [vmem:[%s10828_s25 + $0x80] sm:$0xff]  }
 0x128   : > { %13387 = vst [vmem:[#allocation101_spill] sm:$0xff] %v11789_v35  ;;  %v11803_v13 = vsel %vm2284_vm3, %v2374_v15, %v2376_v7  ;;  %v11820_v15 = vld [vmem:[%s10828_s25 + $0x88] sm:$0xff]  }
 0x129   : > { %13388 = vst [vmem:[#allocation102_spill] sm:$0xff] %v11803_v13 }
 0x12c   : > { %8845 = vmatmul.mubr.msk.bf16.gmra.mrb[24].mxu1 %vm1032_vm2, %v11776_v49 }
 0x12d   : > { %8848 = vmatprep.mubr.msk.bf16.mxu1 %vm1032_vm2, %v11784_v53 }
 0x12e   : > { %9357 = vmatmul.mubr.msk.bf16.gmra.mrb[80].mxu0 %vm1032_vm2, %v11781_v37  ;;  %v11811_v37 = vsel %vm2284_vm3, %v2376_v7, %v2378_v5 }
 0x12f   : > { %9360 = vmatprep.mubr.msk.bf16.mxu0 %vm1032_vm2, %v11789_v35  ;;  %13389 = vst [vmem:[#allocation103_spill] sm:$0xff] %v11811_v37  ;;  %v2380_v35 = vrot.slane %v11443_v28, 1 }
 0x131   : > { %v11825_v3 = vsel %vm2284_vm3, %v2378_v5, %v2380_v35  ;;  %v11830_v7 = vsel %vm2284_vm3, %v2380_v35, %v2382_v19  ;;  %v2388_v35 = vrot.slane %v11507_v45, 1 }
 0x132   : > { %13390 = vst [vmem:[#allocation104_spill] sm:$0xff] %v11825_v3  ;;  %13391 = vst [vmem:[#allocation105_spill] sm:$0xff] %v11830_v7 }
 0x134   : > { %8849 = vmatmul.mubr.msk.bf16.gmra.mrb[28].mxu1 %vm1032_vm2, %v11798_v29 }
 0x135   : > { %8852 = vmatprep.mubr.msk.bf16.mxu1 %vm1032_vm2, %v11806_v54 }
 0x136   : > { %9361 = vmatmul.mubr.msk.bf16.gmra.mrb[84].mxu0 %vm1032_vm2, %v11803_v13  ;;  %v2386_v13 = vrot.slane %v11483_v31, 1 }
 0x137   : > { %9364 = vmatprep.mubr.msk.bf16.mxu0 %vm1032_vm2, %v11811_v37  ;;  %v2384_v37 = vrot.slane %v11475_v57, 1 }
 0x139   : > { %v11841_v5 = vsel %vm2284_vm3, %v2382_v19, %v2384_v37  ;;  %v11857_v19 = vsel %vm2284_vm3, %v2386_v13, %v2388_v35 }
 0x13a   : > { %13392 = vst [vmem:[#allocation106_spill] sm:$0xff] %v11841_v5  ;;  %13394 = vst [vmem:[#allocation108_spill] sm:$0xff] %v11857_v19 }
 0x13c   : > { %8853 = vmatmul.mubr.msk.bf16.gmra.mrb[32].mxu1 %vm1032_vm2, %v11820_v15 }
 0x13d   : > { %8856 = vmatprep.mubr.msk.bf16.mxu1 %vm1032_vm2, %v11002_v58  ;;  %v11846_v58 = vsel %vm2284_vm3, %v2384_v37, %v2386_v13  ;;  %v2392_v37 = vrot.slane %v11539_v16, 1 }
 0x13e   : > { %9365 = vmatmul.mubr.msk.bf16.gmra.mrb[88].mxu0 %vm1032_vm2, %v11825_v3  ;;  %13393 = vst [vmem:[#allocation107_spill] sm:$0xff] %v11846_v58 }
 0x13f   : > { %9368 = vmatprep.mubr.msk.bf16.mxu0 %vm1032_vm2, %v11830_v7 }
 0x144   : > { %8857 = vmatmul.mubr.msk.bf16.gmra.mrb[36].mxu1 %vm1032_vm2, %v11007_v63  ;;  %v2390_v63 = vrot.slane %v11515_v18, 1 }
 0x145   : > { %8860 = vmatprep.mubr.msk.bf16.mxu1 %vm1032_vm2, %v11026_v14 }
 0x146   : > { %9369 = vmatmul.mubr.msk.bf16.gmra.mrb[92].mxu0 %vm1032_vm2, %v11841_v5  ;;  %v11862_v14 = vsel %vm2284_vm3, %v2388_v35, %v2390_v63 }
 0x147   : > { %9372 = vmatprep.mubr.msk.bf16.mxu0 %vm1032_vm2, %v11846_v58  ;;  %13395 = vst [vmem:[#allocation109_spill] sm:$0xff] %v11862_v14  ;;  %v285_v58 = vld [vmem:[%s10828_s25 + $0x1c4] sm:$0xf] }
 0x148   : > { %v11874_v13 = vcombine.low %v11566_v22, %v285_v58  ;;  %v11895_v22 = vld [vmem:[%s13095_s1 + $0xc] sm:$0xf] }
 0x149   : > { %10631 = vmatprep.subr.msk.bf16.mxu1 %vm1201_vm0, %v11895_v22 }
 0x14c   : > { %8861 = vmatmul.mubr.msk.bf16.gmra.mrb[40].mxu1 %vm1032_vm2, %v11031_v23  ;;  %v11871_v23 = vrot.slane %v11547_v1, 1 }
 0x14d   : > { %8864 = vmatprep.mubr.msk.bf16.mxu1 %vm1032_vm2, %v11050_v36  ;;  %v11879_v36 = vsel %vm2284_vm3, %v2390_v63, %v2392_v37  ;;  %v11906_v63 = vld [vmem:[%s10828_s25 + $0x1d0] sm:$0xf] }
 0x14e   : > { %9373 = vmatmul.mubr.msk.bf16.gmra.mrb[96].mxu0 %vm1032_vm2, %v11857_v19  ;;  %13396 = vst [vmem:[#allocation110_spill] sm:$0xff] %v11871_v23  ;;  %13397 = vst [vmem:[#allocation111_spill] sm:$0xff] %v11879_v36  ;;  %v11885_v35 = vsel %vm2284_vm3, %v2392_v37, %v11871_v23 }
 0x14f   : > { %9376 = vmatprep.mubr.msk.bf16.mxu0 %vm1032_vm2, %v11862_v14  ;;  %13398 = vst [vmem:[#allocation112_spill] sm:$0xff] %v11885_v35  ;;  %v11888_v14 = vld [vmem:[%s10828_s25 + $0x1c8] sm:$0xff]  }
 0x150   : > { %v11903_v58 = vrot.slane %v11888_v14, 1 }
 0x152   : > { %13399 = vst [vmem:[#allocation113_spill] sm:$0xff] %v11903_v58 }
 0x154   : > { %8865 = vmatmul.mubr.msk.bf16.gmra.mrb[44].mxu1 %vm1032_vm2, %v11055_v42  ;;  %v4405_v42 = vrot.slane %v11874_v13, 1 }
 0x155   : > { %8868 = vmatprep.mubr.msk.bf16.mxu1 %vm1032_vm2, %v11074_v60 }
 0x156   : > { %9377 = vmatmul.mubr.msk.bf16.gmra.mrb[100].mxu0 %vm1032_vm2, %v11879_v36  ;;  %v11912_v37 = vsel %vm2284_vm3, %v11871_v23, %v4405_v42  ;;  %v11922_v36 = vsel %vm2284_vm3, %v4405_v42, %v11903_v58  ;;  %v5662_v42 = vsel %vm1201_vm0, %v11590_v46, 0  ;;  %v11995_v46 = vld [vmem:[%s10828_s25 + $0x90] sm:$0xff]  }
 0x157   : > { %9380 = vmatprep.mubr.msk.bf16.mxu0 %vm1032_vm2, %v11885_v35  ;;  %13400 = vst [vmem:[#allocation114_spill] sm:$0xff] %v11912_v37  ;;  %v11916_v35 = vcombine.low %v11906_v63, %v11906_v63  ;;  %13402 = vst [vmem:[#allocation116_spill] sm:$0xff] %v11922_v36 }
 0x159   : > { %13401 = vst [vmem:[#allocation115_spill] sm:$0xff] %v11916_v35  ;;  %v4409_v23 = vrot.slane %v11916_v35, 1  ;;  %v12032_v35 = vld [vmem:[%s10828_s25 + $0xb8] sm:$0xff]  }
 0x15b   : > { %v4410_v19 = vsel %vm2284_vm3, %v11903_v58, %v4409_v23  ;;  %v12009_v23 = vld [vmem:[%s10828_s25 + $0xa0] sm:$0xff]   ;;  %v12023_v58 = vld [vmem:[%s10828_s25 + $0xb0] sm:$0xff]  }
 0x15c   : > { %8869 = vmatmul.mubr.msk.bf16.gmra.mrb[48].mxu1 %vm1032_vm2, %v11079_v8 }
 0x15d   : > { %8872 = vmatprep.mubr.msk.bf16.mxu1 %vm1032_vm2, %v11098_v30 }
 0x15e   : > { %9381 = vmatmul.mubr.msk.bf16.gmra.mrb[104].mxu0 %vm1032_vm2, %v11912_v37  ;;  %v13437_v37 = vld [vmem:[#allocation86_spill] sm:$0xff] }
 0x15f   : > { %9384 = vmatprep.mubr.msk.bf16.mxu0 %vm1032_vm2, %v11922_v36  ;;  %v13436_v36 = vld [vmem:[#allocation6_spill] sm:$0xff] }
 0x164   : > { %8873 = vmatmul.mubr.msk.bf16.gmra.mrb[52].mxu1 %vm1032_vm2, %v11103_v39 }
 0x165   : > { %8876 = vmatprep.mubr.msk.bf16.mxu1 %vm1032_vm2, %v11122_v0 }
 0x166   : > { %9385 = vmatmul.mubr.msk.bf16.gmra.mrb[108].mxu0 %vm1032_vm2, %v4410_v19  ;;  %v12004_v19 = vld [vmem:[%s10828_s25 + $0x98] sm:$0xff]  }
 0x167   : > { %9390 = vmatprep.mubr.msk.bf16.mxu0 %vm1032_vm2, %v11674_v38 }
 0x16c   : > { %8877 = vmatmul.mubr.msk.bf16.gmra.mrb[56].mxu1 %vm1032_vm2, %v11127_v21 }
 0x16d   : > { %8880 = vmatprep.mubr.msk.bf16.mxu1 %vm1032_vm2, %v11153_v62 }
 0x16e   : > { %9391 = vmatmul.mubr.msk.bf16.vlgmr.msra.gmra.mrb[0].mxu0 %vm1032_vm2, %v11688_v10 }
 0x16f   : > { %9503 = vmatpush3.bf16.msra.mxu0 %v5662_v42  ;;  %9394 = vmatprep.mubr.msk.bf16.mxu0 %vm1032_vm2, %v11696_v56  ;;  %v12018_v42 = vld [vmem:[%s10828_s25 + $0xa8] sm:$0xff]  }
 0x174   : > { %8881 = vmatmul.mubr.msk.bf16.gmra.mrb[60].mxu1 %vm1032_vm2, %v11170_v32 }
 0x175   : > { %8884 = vmatprep.mubr.msk.bf16.mxu1 %vm1032_vm2, %v11186_v43 }
 0x176   : > { %9395 = vmatmul.mubr.msk.bf16.gmra.mrb[4].mxu0 %vm1032_vm2, %v11710_v26 }
 0x177   : > { %9398 = vmatprep.mubr.msk.bf16.mxu0 %vm1032_vm2, %v11718_v41 }
 0x17c   : > { %8885 = vmatmul.mubr.msk.bf16.gmra.mrb[64].mxu1 %vm1032_vm2, %v11196_v9 }
 0x17d   : > { %8888 = vmatprep.mubr.msk.bf16.mxu1 %vm1032_vm2, %v11217_v11 }
 0x17e   : > { %9399 = vmatmul.mubr.msk.bf16.gmra.mrb[8].mxu0 %vm1032_vm2, %v11732_v55 }
 0x17f   : > { %9402 = vmatprep.mubr.msk.bf16.mxu0 %vm1032_vm2, %v11740_v51 }
 0x184   : > { %8889 = vmatmul.mubr.msk.bf16.gmra.mrb[68].mxu1 %vm1032_vm2, %v11227_v27 }
 0x185   : > { %8892 = vmatprep.mubr.msk.bf16.mxu1 %vm1032_vm2, %v11251_v52 }
 0x186   : > { %9403 = vmatmul.mubr.msk.bf16.gmra.mrb[12].mxu0 %vm1032_vm2, %v11754_v34 }
 0x187   : > { %9406 = vmatprep.mubr.msk.bf16.mxu0 %vm1032_vm2, %v11762_v61 }
 0x18c   : > { %8893 = vmatmul.mubr.msk.bf16.gmra.mrb[72].mxu1 %vm1032_vm2, %v11259_v25 }
 0x18d   : > { %8896 = vmatprep.mubr.msk.bf16.mxu1 %vm1032_vm2, %v11283_v17 }
 0x18e   : > { %9407 = vmatmul.mubr.msk.bf16.gmra.mrb[16].mxu0 %vm1032_vm2, %v11776_v49 }
 0x18f   : > { %9410 = vmatprep.mubr.msk.bf16.mxu0 %vm1032_vm2, %v11784_v53 }
 0x194   : > { %8897 = vmatmul.mubr.msk.bf16.gmra.mrb[76].mxu1 %vm1032_vm2, %v11291_v2 }
 0x195   : > { %8900 = vmatprep.mubr.msk.bf16.mxu1 %vm1032_vm2, %v11315_v59 }
 0x196   : > { %9411 = vmatmul.mubr.msk.bf16.gmra.mrb[20].mxu0 %vm1032_vm2, %v11798_v29 }
 0x197   : > { %9414 = vmatprep.mubr.msk.bf16.mxu0 %vm1032_vm2, %v11806_v54 }
 0x19c   : > { %8901 = vmatmul.mubr.msk.bf16.gmra.mrb[80].mxu1 %vm1032_vm2, %v11323_v48 }
 0x19d   : > { %8904 = vmatprep.mubr.msk.bf16.mxu1 %vm1032_vm2, %v11347_v47 }
 0x19e   : > { %9415 = vmatmul.mubr.msk.bf16.gmra.mrb[24].mxu0 %vm1032_vm2, %v11820_v15 }
 0x19f   : > { %9418 = vmatprep.mubr.msk.bf16.mxu0 %vm1032_vm2, %v11995_v46 }
 0x1a4   : > { %8905 = vmatmul.mubr.msk.bf16.gmra.mrb[84].mxu1 %vm1032_vm2, %v11355_v33 }
 0x1a5   : > { %8908 = vmatprep.mubr.msk.bf16.mxu1 %vm1032_vm2, %v11379_v24 }
 0x1a6   : > { %9419 = vmatmul.mubr.msk.bf16.gmra.mrb[28].mxu0 %vm1032_vm2, %v12004_v19 }
 0x1a7   : > { %9422 = vmatprep.mubr.msk.bf16.mxu0 %vm1032_vm2, %v12009_v23 }
 0x1ac   : > { %8909 = vmatmul.mubr.msk.bf16.gmra.mrb[88].mxu1 %vm1032_vm2, %v11387_v20 }
 0x1ad   : > { %8912 = vmatprep.mubr.msk.bf16.mxu1 %vm1032_vm2, %v11411_v50 }
 0x1ae   : > { %9423 = vmatmul.mubr.msk.bf16.gmra.mrb[32].mxu0 %vm1032_vm2, %v12018_v42 }
 0x1af   : > { %9426 = vmatprep.mubr.msk.bf16.mxu0 %vm1032_vm2, %v12023_v58 }
 0x1b4   : > { %8913 = vmatmul.mubr.msk.bf16.gmra.mrb[92].mxu1 %vm1032_vm2, %v11419_v4 }
 0x1b5   : > { %8916 = vmatprep.mubr.msk.bf16.mxu1 %vm1032_vm2, %v11443_v28 }
 0x1b6   : > { %9427 = vmatmul.mubr.msk.bf16.gmra.mrb[36].mxu0 %vm1032_vm2, %v12032_v35 }
 0x1b7   : > { %9430 = vmatprep.mubr.msk.bf16.mxu0 %vm1032_vm2, %v11074_v60  ;;  %v12057_v60 = vld [vmem:[%s13095_s1 + $0x20] sm:$0xf] }
 0x1b8   : > { %10637 = vmatprep.subr.msk.bf16.mxu0 %vm1201_vm0, %v12057_v60 }
 0x1bc   : > { %8917 = vmatmul.mubr.msk.bf16.gmra.mrb[96].mxu1 %vm1032_vm2, %v11451_v44 }
 0x1bd   : > { %8920 = vmatprep.mubr.msk.bf16.mxu1 %vm1032_vm2, %v11475_v57 }
 0x1be   : > { %9431 = vmatmul.mubr.msk.bf16.gmra.mrb[40].mxu0 %vm1032_vm2, %v11079_v8  ;;  %v2285_v8 = vrot.slane %v11628_v40, 1  ;;  %v13404_v40 = vld [vmem:[#allocation30_spill] sm:$0xff] }
 0x1bf   : > { %9434 = vmatprep.mubr.msk.bf16.mxu0 %vm1032_vm2, %v11098_v30  ;;  %v2286_v30 = vrot.slane %v11644_v6, 1  ;;  %v13407_v6 = vld [vmem:[#allocation36_spill] sm:$0xff] }
 0x1c4   : > { %8921 = vmatmul.mubr.msk.bf16.gmra.mrb[100].mxu1 %vm1032_vm2, %v11483_v31 }
 0x1c5   : > { %8924 = vmatprep.mubr.msk.bf16.mxu1 %vm1032_vm2, %v11507_v45 }
 0x1c6   : > { %9435 = vmatmul.mubr.msk.bf16.gmra.mrb[44].mxu0 %vm1032_vm2, %v11103_v39  ;;  %v2287_v39 = vsel %vm2284_vm3, %v2285_v8, %v2286_v30  ;;  %v13427_v8 = vld [vmem:[#allocation76_spill] sm:$0xff] }
 0x1c7   : > { %9438 = vmatprep.mubr.msk.bf16.mxu0 %vm1032_vm2, %v11122_v0  ;;  %v13403_v0 = vrot.slane %v10833_v12, 1  ;;  %v13405_v12 = vld [vmem:[#allocation32_spill] sm:$0xff] }
 0x1cc   : > { %8925 = vmatmul.mubr.msk.bf16.gmra.mrb[104].mxu1 %vm1032_vm2, %v11515_v18 }
 0x1cd   : > { %8928 = vmatprep.mubr.msk.bf16.mxu1 %vm1032_vm2, %v11539_v16 }
 0x1ce   : > { %9439 = vmatmul.mubr.msk.bf16.gmra.mrb[48].mxu0 %vm1032_vm2, %v11127_v21  ;;  %v2289_v21 = vsel %vm2284_vm3, %v2286_v30, %v13403_v0  ;;  %v12196_v0 = vld [vmem:[%s10828_s25 + $0x1d8] sm:$0xff]  }
 0x1cf   : > { %9442 = vmatprep.mubr.msk.bf16.mxu0 %vm1032_vm2, %v11153_v62  ;;  %v3179_v62 = vsel %vm1201_vm0, %v11895_v22, 0  ;;  %v13408_v22 = vld [vmem:[#allocation37_spill] sm:$0xff] }
 0x1d4   : > { %8929 = vmatmul.mubr.msk.bf16.gmra.mrb[108].mxu1 %vm1032_vm2, %v11547_v1 }
 0x1d5   : > { %8934 = vmatprep.mubr.msk.bf16.mxu1 %vm1032_vm2, %v2287_v39  ;;  %v13429_v39 = vld [vmem:[#allocation77_spill] sm:$0xff] }
 0x1d6   : > { %9443 = vmatmul.mubr.msk.bf16.gmra.mrb[52].mxu0 %vm1032_vm2, %v11170_v32  ;;  %v10735_v32 = vld [vmem:[%s13095_s1 + $0x10] sm:$0xf] }
 0x1d7   : > { %9446 = vmatprep.mubr.msk.bf16.mxu0 %vm1032_vm2, %v11186_v43  ;;  %v13406_v43 = vld [vmem:[#allocation33_spill] sm:$0xff] }
 0x1dc   : > { %8935 = vmatmul.mubr.msk.bf16.vlgmr.msra.gmra.mrb[0].mxu1 %vm1032_vm2, %v2289_v21  ;;  %v13430_v21 = vld [vmem:[#allocation81_spill] sm:$0xff] }
 0x1dd   : > { %9047 = vmatpush3.bf16.msra.mxu1 %v3179_v62  ;;  %8938 = vmatprep.mubr.msk.bf16.mxu1 %vm1032_vm2, %v13404_v40  ;;  %v13431_v62 = vld [vmem:[#allocation82_spill] sm:$0xff]  ;;  %v13433_v40 = vld [vmem:[#allocation84_spill] sm:$0xff] }
 0x1de   : > { %10633 = vmatprep.subr.msk.bf16.mxu1 %vm1201_vm0, %v10735_v32  ;;  %9447 = vmatmul.mubr.msk.bf16.gmra.mrb[56].mxu0 %vm1032_vm2, %v11196_v9  ;;  %v13410_v9 = vld [vmem:[#allocation41_spill] sm:$0xff]  ;;  %v6275_v32 = vsel %vm1201_vm0, %v12057_v60, 0  ;;  %v13440_v60 = vld [vmem:[#allocation8_spill] sm:$0xff] }
 0x1df   : > { %9450 = vmatprep.mubr.msk.bf16.mxu0 %vm1032_vm2, %v11217_v11  ;;  %v13409_v11 = vld [vmem:[#allocation40_spill] sm:$0xff] }
 0x1e4   : > { %8939 = vmatmul.mubr.msk.bf16.gmra.mrb[4].mxu1 %vm1032_vm2, %v13405_v12  ;;  %v13434_v12 = vld [vmem:[#allocation85_spill] sm:$0xff] }
 0x1e5   : > { %8942 = vmatprep.mubr.msk.bf16.mxu1 %vm1032_vm2, %v13406_v43 }
 0x1e6   : > { %9451 = vmatmul.mubr.msk.bf16.gmra.mrb[60].mxu0 %vm1032_vm2, %v11227_v27  ;;  %v13411_v27 = vld [vmem:[#allocation44_spill] sm:$0xff] }
 0x1e7   : > { %9454 = vmatprep.mubr.msk.bf16.mxu0 %vm1032_vm2, %v11251_v52  ;;  %v13412_v52 = vld [vmem:[#allocation45_spill] sm:$0xff] }
 0x1ec   : > { %8943 = vmatmul.mubr.msk.bf16.gmra.mrb[8].mxu1 %vm1032_vm2, %v13407_v6 }
 0x1ed   : > { %8946 = vmatprep.mubr.msk.bf16.mxu1 %vm1032_vm2, %v13408_v22 }
 0x1ee   : > { %9455 = vmatmul.mubr.msk.bf16.gmra.mrb[64].mxu0 %vm1032_vm2, %v11259_v25  ;;  %v13413_v25 = vld [vmem:[#allocation48_spill] sm:$0xff] }
 0x1ef   : > { %9458 = vmatprep.mubr.msk.bf16.mxu0 %vm1032_vm2, %v11283_v17  ;;  %v13414_v17 = vld [vmem:[#allocation49_spill] sm:$0xff] }
 0x1f4   : > { %8947 = vmatmul.mubr.msk.bf16.gmra.mrb[12].mxu1 %vm1032_vm2, %v13409_v11 }
 0x1f5   : > { %8950 = vmatprep.mubr.msk.bf16.mxu1 %vm1032_vm2, %v13410_v9 }
 0x1f6   : > { %9459 = vmatmul.mubr.msk.bf16.gmra.mrb[68].mxu0 %vm1032_vm2, %v11291_v2  ;;  %v13415_v2 = vld [vmem:[#allocation52_spill] sm:$0xff] }
 0x1f7   : > { %9462 = vmatprep.mubr.msk.bf16.mxu0 %vm1032_vm2, %v11315_v59  ;;  %v13416_v59 = vld [vmem:[#allocation53_spill] sm:$0xff] }
 0x1fc   : > { %8951 = vmatmul.mubr.msk.bf16.gmra.mrb[16].mxu1 %vm1032_vm2, %v13411_v27 }
 0x1fd   : > { %8954 = vmatprep.mubr.msk.bf16.mxu1 %vm1032_vm2, %v13412_v52 }
 0x1fe   : > { %9463 = vmatmul.mubr.msk.bf16.gmra.mrb[72].mxu0 %vm1032_vm2, %v11323_v48  ;;  %v13417_v48 = vld [vmem:[#allocation56_spill] sm:$0xff] }
 0x1ff   : > { %9466 = vmatprep.mubr.msk.bf16.mxu0 %vm1032_vm2, %v11347_v47  ;;  %v13418_v47 = vld [vmem:[#allocation57_spill] sm:$0xff] }
 0x204   : > { %8955 = vmatmul.mubr.msk.bf16.gmra.mrb[20].mxu1 %vm1032_vm2, %v13413_v25 }
 0x205   : > { %8958 = vmatprep.mubr.msk.bf16.mxu1 %vm1032_vm2, %v13414_v17 }
 0x206   : > { %9467 = vmatmul.mubr.msk.bf16.gmra.mrb[76].mxu0 %vm1032_vm2, %v11355_v33  ;;  %v13419_v33 = vld [vmem:[#allocation60_spill] sm:$0xff] }
 0x207   : > { %9470 = vmatprep.mubr.msk.bf16.mxu0 %vm1032_vm2, %v11379_v24  ;;  %v13420_v24 = vld [vmem:[#allocation61_spill] sm:$0xff] }
 0x20c   : > { %8959 = vmatmul.mubr.msk.bf16.gmra.mrb[24].mxu1 %vm1032_vm2, %v13415_v2 }
 0x20d   : > { %8962 = vmatprep.mubr.msk.bf16.mxu1 %vm1032_vm2, %v13416_v59 }
 0x20e   : > { %9471 = vmatmul.mubr.msk.bf16.gmra.mrb[80].mxu0 %vm1032_vm2, %v11387_v20  ;;  %v13421_v20 = vld [vmem:[#allocation64_spill] sm:$0xff] }
 0x20f   : > { %9474 = vmatprep.mubr.msk.bf16.mxu0 %vm1032_vm2, %v11411_v50  ;;  %v13423_v50 = vld [vmem:[#allocation68_spill] sm:$0xff] }
 0x214   : > { %8963 = vmatmul.mubr.msk.bf16.gmra.mrb[28].mxu1 %vm1032_vm2, %v13417_v48 }
 0x215   : > { %8966 = vmatprep.mubr.msk.bf16.mxu1 %vm1032_vm2, %v13418_v47 }
 0x216   : > { %9475 = vmatmul.mubr.msk.bf16.gmra.mrb[84].mxu0 %vm1032_vm2, %v11419_v4  ;;  %v13422_v4 = vld [vmem:[#allocation65_spill] sm:$0xff] }
 0x217   : > { %9478 = vmatprep.mubr.msk.bf16.mxu0 %vm1032_vm2, %v11443_v28  ;;  %v13425_v28 = vld [vmem:[#allocation72_spill] sm:$0xff] }
 0x21c   : > { %8967 = vmatmul.mubr.msk.bf16.gmra.mrb[32].mxu1 %vm1032_vm2, %v13419_v33 }
 0x21d   : > { %8970 = vmatprep.mubr.msk.bf16.mxu1 %vm1032_vm2, %v13420_v24 }
 0x21e   : > { %9479 = vmatmul.mubr.msk.bf16.gmra.mrb[88].mxu0 %vm1032_vm2, %v11451_v44  ;;  %v13424_v44 = vld [vmem:[#allocation69_spill] sm:$0xff] }
 0x21f   : > { %9482 = vmatprep.mubr.msk.bf16.mxu0 %vm1032_vm2, %v11475_v57  ;;  %v289_v57 = vld [vmem:[%s10828_s25 + $0x1d4] sm:$0xf] }
 0x220   : > { %v12187_v30 = vcombine.low %v11906_v63, %v289_v57  ;;  %v13432_v63 = vld [vmem:[#allocation4_spill] sm:$0xff]  ;;  %v13435_v57 = vld [vmem:[#allocation5_spill] sm:$0xff] }
 0x222   : > { %13428 = vst [vmem:[#allocation30_spill] sm:$0xff] %v12187_v30 }
 0x224   : > { %8971 = vmatmul.mubr.msk.bf16.gmra.mrb[36].mxu1 %vm1032_vm2, %v13421_v20 }
 0x225   : > { %8974 = vmatprep.mubr.msk.bf16.mxu1 %vm1032_vm2, %v13422_v4 }
 0x226   : > { %9483 = vmatmul.mubr.msk.bf16.gmra.mrb[92].mxu0 %vm1032_vm2, %v11483_v31  ;;  %v13426_v31 = vld [vmem:[#allocation73_spill] sm:$0xff] }
 0x227   : > { %9486 = vmatprep.mubr.msk.bf16.mxu0 %vm1032_vm2, %v11507_v45 }
 0x22c   : > { %8975 = vmatmul.mubr.msk.bf16.gmra.mrb[40].mxu1 %vm1032_vm2, %v13423_v50 }
 0x22d   : > { %8978 = vmatprep.mubr.msk.bf16.mxu1 %vm1032_vm2, %v13424_v44 }
 0x22e   : > { %9487 = vmatmul.mubr.msk.bf16.gmra.mrb[96].mxu0 %vm1032_vm2, %v11515_v18 }
 0x22f   : > { %9490 = vmatprep.mubr.msk.bf16.mxu0 %vm1032_vm2, %v11539_v16 }
 0x234   : > { %8979 = vmatmul.mubr.msk.bf16.gmra.mrb[44].mxu1 %vm1032_vm2, %v13425_v28 }
 0x235   : > { %8982 = vmatprep.mubr.msk.bf16.mxu1 %vm1032_vm2, %v13426_v31 }
 0x236   : > { %9491 = vmatmul.mubr.msk.bf16.gmra.mrb[100].mxu0 %vm1032_vm2, %v11547_v1 }
 0x237   : > { %9494 = vmatprep.mubr.msk.bf16.mxu0 %vm1032_vm2, %v11874_v13 }
 0x23c   : > { %8983 = vmatmul.mubr.msk.bf16.gmra.mrb[48].mxu1 %vm1032_vm2, %v13427_v8 }
 0x23d   : > { %8986 = vmatprep.mubr.msk.bf16.mxu1 %vm1032_vm2, %v13429_v39 }
 0x23e   : > { %9495 = vmatmul.mubr.msk.bf16.gmra.mrb[104].mxu0 %vm1032_vm2, %v11888_v14 }
 0x23f   : > { %9498 = vmatprep.mubr.msk.bf16.mxu0 %vm1032_vm2, %v12187_v30 }
 0x244   : > { %8987 = vmatmul.mubr.msk.bf16.gmra.mrb[52].mxu1 %vm1032_vm2, %v13430_v21 }
 0x245   : > { %8990 = vmatprep.mubr.msk.bf16.mxu1 %vm1032_vm2, %v13431_v62 }
 0x246   : > { %9499 = vmatmul.mubr.msk.bf16.gmra.mrb[108].mxu0 %vm1032_vm2, %v12196_v0 }
 0x247   : > { %9504 = vmatprep.mubr.msk.bf16.mxu0 %vm1032_vm2, %v13432_v63  ;;  %v13438_v63 = vld [vmem:[#allocation88_spill] sm:$0xff] }
 0x24c   : > { %8991 = vmatmul.mubr.msk.bf16.gmra.mrb[56].mxu1 %vm1032_vm2, %v13433_v40  ;;  %v13439_v40 = vld [vmem:[#allocation7_spill] sm:$0xff] }
 0x24d   : > { %8994 = vmatprep.mubr.msk.bf16.mxu1 %vm1032_vm2, %v13434_v12  ;;  %v13441_v12 = vld [vmem:[#allocation90_spill] sm:$0xff] }
 0x24e   : > { %9505 = vmatmul.mubr.msk.bf16.vlgmr.msra.gmra.mrb[0].mxu0 %vm1032_vm2, %v13435_v57  ;;  %v13442_v57 = vld [vmem:[#allocation91_spill] sm:$0xff] }
 0x24f   : > { %9617 = vmatpush3.bf16.msra.mxu0 %v6275_v32  ;;  %9508 = vmatprep.mubr.msk.bf16.mxu0 %vm1032_vm2, %v13436_v36  ;;  %v13443_v32 = vld [vmem:[#allocation9_spill] sm:$0xff]  ;;  %v13444_v36 = vld [vmem:[#allocation10_spill] sm:$0xff] }
 0x254   : > { %8995 = vmatmul.mubr.msk.bf16.gmra.mrb[60].mxu1 %vm1032_vm2, %v13437_v37  ;;  %v13445_v37 = vld [vmem:[#allocation92_spill] sm:$0xff] }
 0x255   : > { %8998 = vmatprep.mubr.msk.bf16.mxu1 %vm1032_vm2, %v13438_v63  ;;  %v13446_v63 = vld [vmem:[#allocation93_spill] sm:$0xff] }
 0x256   : > { %9509 = vmatmul.mubr.msk.bf16.gmra.mrb[4].mxu0 %vm1032_vm2, %v13439_v40  ;;  %v13447_v40 = vld [vmem:[#allocation11_spill] sm:$0xff] }
 0x257   : > { %9512 = vmatprep.mubr.msk.bf16.mxu0 %vm1032_vm2, %v13440_v60  ;;  %v13448_v60 = vld [vmem:[#allocation12_spill] sm:$0xff] }
 0x25c   : > { %8999 = vmatmul.mubr.msk.bf16.gmra.mrb[64].mxu1 %vm1032_vm2, %v13441_v12  ;;  %v13449_v12 = vld [vmem:[#allocation94_spill] sm:$0xff] }
 0x25d   : > { %9002 = vmatprep.mubr.msk.bf16.mxu1 %vm1032_vm2, %v13442_v57  ;;  %v13450_v57 = vld [vmem:[#allocation95_spill] sm:$0xff] }
 0x25e   : > { %9513 = vmatmul.mubr.msk.bf16.gmra.mrb[8].mxu0 %vm1032_vm2, %v13443_v32  ;;  %v13451_v32 = vld [vmem:[#allocation13_spill] sm:$0xff] }
 0x25f   : > { %9516 = vmatprep.mubr.msk.bf16.mxu0 %vm1032_vm2, %v13444_v36  ;;  %v13452_v36 = vld [vmem:[#allocation14_spill] sm:$0xff] }
 0x264   : > { %9003 = vmatmul.mubr.msk.bf16.gmra.mrb[68].mxu1 %vm1032_vm2, %v13445_v37  ;;  %v13453_v37 = vld [vmem:[#allocation96_spill] sm:$0xff] }
 0x265   : > { %9006 = vmatprep.mubr.msk.bf16.mxu1 %vm1032_vm2, %v13446_v63  ;;  %v13454_v63 = vld [vmem:[#allocation97_spill] sm:$0xff] }
 0x266   : > { %9517 = vmatmul.mubr.msk.bf16.gmra.mrb[12].mxu0 %vm1032_vm2, %v13447_v40  ;;  %v13455_v40 = vld [vmem:[#allocation15_spill] sm:$0xff] }
 0x267   : > { %9520 = vmatprep.mubr.msk.bf16.mxu0 %vm1032_vm2, %v13448_v60  ;;  %v13456_v60 = vld [vmem:[#allocation16_spill] sm:$0xff] }
 0x26c   : > { %9007 = vmatmul.mubr.msk.bf16.gmra.mrb[72].mxu1 %vm1032_vm2, %v13449_v12  ;;  %v13457_v12 = vld [vmem:[#allocation98_spill] sm:$0xff] }
 0x26d   : > { %9010 = vmatprep.mubr.msk.bf16.mxu1 %vm1032_vm2, %v13450_v57  ;;  %v13458_v57 = vld [vmem:[#allocation99_spill] sm:$0xff] }
 0x26e   : > { %9521 = vmatmul.mubr.msk.bf16.gmra.mrb[16].mxu0 %vm1032_vm2, %v13451_v32  ;;  %v13459_v32 = vld [vmem:[#allocation17_spill] sm:$0xff] }
 0x26f   : > { %9524 = vmatprep.mubr.msk.bf16.mxu0 %vm1032_vm2, %v13452_v36  ;;  %v13460_v36 = vld [vmem:[#allocation18_spill] sm:$0xff] }
 0x274   : > { %9011 = vmatmul.mubr.msk.bf16.gmra.mrb[76].mxu1 %vm1032_vm2, %v13453_v37  ;;  %v13461_v37 = vld [vmem:[#allocation100_spill] sm:$0xff] }
 0x275   : > { %9014 = vmatprep.mubr.msk.bf16.mxu1 %vm1032_vm2, %v13454_v63  ;;  %v13462_v63 = vld [vmem:[#allocation101_spill] sm:$0xff] }
 0x276   : > { %9525 = vmatmul.mubr.msk.bf16.gmra.mrb[20].mxu0 %vm1032_vm2, %v13455_v40  ;;  %v13463_v40 = vld [vmem:[#allocation19_spill] sm:$0xff] }
 0x277   : > { %9528 = vmatprep.mubr.msk.bf16.mxu0 %vm1032_vm2, %v13456_v60  ;;  %v13464_v60 = vld [vmem:[#allocation20_spill] sm:$0xff] }
 0x27c   : > { %9015 = vmatmul.mubr.msk.bf16.gmra.mrb[80].mxu1 %vm1032_vm2, %v13457_v12  ;;  %v13465_v12 = vld [vmem:[#allocation102_spill] sm:$0xff] }
 0x27d   : > { %9018 = vmatprep.mubr.msk.bf16.mxu1 %vm1032_vm2, %v13458_v57  ;;  %v13466_v57 = vld [vmem:[#allocation103_spill] sm:$0xff] }
 0x27e   : > { %9529 = vmatmul.mubr.msk.bf16.gmra.mrb[24].mxu0 %vm1032_vm2, %v13459_v32  ;;  %v13467_v32 = vld [vmem:[#allocation21_spill] sm:$0xff] }
 0x27f   : > { %9532 = vmatprep.mubr.msk.bf16.mxu0 %vm1032_vm2, %v13460_v36  ;;  %v13468_v36 = vld [vmem:[#allocation22_spill] sm:$0xff] }
 0x284   : > { %9019 = vmatmul.mubr.msk.bf16.gmra.mrb[84].mxu1 %vm1032_vm2, %v13461_v37 }
 0x285   : > { %9022 = vmatprep.mubr.msk.bf16.mxu1 %vm1032_vm2, %v13462_v63 }
 0x286   : > { %9533 = vmatmul.mubr.msk.bf16.gmra.mrb[28].mxu0 %vm1032_vm2, %v13463_v40  ;;  %v13469_v40 = vld [vmem:[#allocation23_spill] sm:$0xff] }
 0x287   : > { %9536 = vmatprep.mubr.msk.bf16.mxu0 %vm1032_vm2, %v13464_v60  ;;  %v13470_v60 = vld [vmem:[#allocation24_spill] sm:$0xff] }
 0x28c   : > { %9023 = vmatmul.mubr.msk.bf16.gmra.mrb[88].mxu1 %vm1032_vm2, %v13465_v12  ;;  %v13481_v12 = vld [vmem:[#allocation29_spill] sm:$0xff] }
 0x28d   : > { %9026 = vmatprep.mubr.msk.bf16.mxu1 %vm1032_vm2, %v13466_v57  ;;  %v13471_v57 = vld [vmem:[#allocation107_spill] sm:$0xff] }
 0x28e   : > { %9537 = vmatmul.mubr.msk.bf16.gmra.mrb[32].mxu0 %vm1032_vm2, %v13467_v32  ;;  %v13472_v32 = vld [vmem:[#allocation25_spill] sm:$0xff] }
 0x28f   : > { %9540 = vmatprep.mubr.msk.bf16.mxu0 %vm1032_vm2, %v13468_v36  ;;  %v13473_v36 = vld [vmem:[#allocation26_spill] sm:$0xff] }
 0x294   : > { %9027 = vmatmul.mubr.msk.bf16.gmra.mrb[92].mxu1 %vm1032_vm2, %v11825_v3  ;;  %v13474_v3 = vld [vmem:[#allocation108_spill] sm:$0xff] }
 0x295   : > { %9030 = vmatprep.mubr.msk.bf16.mxu1 %vm1032_vm2, %v11830_v7  ;;  %v13475_v7 = vld [vmem:[#allocation109_spill] sm:$0xff] }
 0x296   : > { %9541 = vmatmul.mubr.msk.bf16.gmra.mrb[36].mxu0 %vm1032_vm2, %v13469_v40  ;;  %v13476_v40 = vld [vmem:[#allocation27_spill] sm:$0xff] }
 0x297   : > { %9544 = vmatprep.mubr.msk.bf16.mxu0 %vm1032_vm2, %v13470_v60  ;;  %v13477_v60 = vld [vmem:[#allocation28_spill] sm:$0xff] }
 0x29c   : > { %9031 = vmatmul.mubr.msk.bf16.gmra.mrb[96].mxu1 %vm1032_vm2, %v11841_v5  ;;  %v13478_v5 = vld [vmem:[#allocation111_spill] sm:$0xff] }
 0x29d   : > { %9034 = vmatprep.mubr.msk.bf16.mxu1 %vm1032_vm2, %v13471_v57  ;;  %v13479_v57 = vld [vmem:[#allocation112_spill] sm:$0xff] }
 0x29e   : > { %9545 = vmatmul.mubr.msk.bf16.gmra.mrb[40].mxu0 %vm1032_vm2, %v13472_v32  ;;  %v13480_v32 = vld [vmem:[#allocation78_spill] sm:$0xff] }
 0x29f   : > { %9548 = vmatprep.mubr.msk.bf16.mxu0 %vm1032_vm2, %v13473_v36  ;;  %v2396_v36 = vrot.slane %v13480_v32, 1  ;;  %v13487_v32 = vld [vmem:[#allocation89_spill] sm:$0xff] }
 0x2a4   : > { %9035 = vmatmul.mubr.msk.bf16.gmra.mrb[100].mxu1 %vm1032_vm2, %v13474_v3  ;;  %v13482_v3 = vld [vmem:[#allocation31_spill] sm:$0xff] }
 0x2a5   : > { %9038 = vmatprep.mubr.msk.bf16.mxu1 %vm1032_vm2, %v13475_v7  ;;  %v13483_v7 = vld [vmem:[#allocation110_spill] sm:$0xff] }
 0x2a6   : > { %9549 = vmatmul.mubr.msk.bf16.gmra.mrb[44].mxu0 %vm1032_vm2, %v13476_v40  ;;  %v2397_v40 = vsel %vm2284_vm3, %v13483_v7, %v2396_v36  ;;  %v13489_v7 = vld [vmem:[#allocation38_spill] sm:$0xff]  ;;  %v13490_v36 = vld [vmem:[#allocation39_spill] sm:$0xff] }
 0x2a7   : > { %9552 = vmatprep.mubr.msk.bf16.mxu0 %vm1032_vm2, %v13477_v60  ;;  %v13484_v60 = vld [vmem:[#allocation87_spill] sm:$0xff] }
 0x2ac   : > { %9039 = vmatmul.mubr.msk.bf16.gmra.mrb[104].mxu1 %vm1032_vm2, %v13478_v5  ;;  %v13485_v5 = vld [vmem:[#allocation34_spill] sm:$0xff] }
 0x2ad   : > { %9042 = vmatprep.mubr.msk.bf16.mxu1 %vm1032_vm2, %v13479_v57  ;;  %v13486_v57 = vld [vmem:[#allocation35_spill] sm:$0xff] }
 0x2ae   : > { %9553 = vmatmul.mubr.msk.bf16.gmra.mrb[48].mxu0 %vm1032_vm2, %v13481_v12  ;;  %v13488_v12 = vld [vmem:[#allocation3_spill] sm:$0xff] }
 0x2af   : > { %9556 = vmatprep.mubr.msk.bf16.mxu0 %vm1032_vm2, %v13482_v3 }
 0x2b4   : > { %9043 = vmatmul.mubr.msk.bf16.gmra.mrb[108].mxu1 %vm1032_vm2, %v2397_v40  ;;  %v13491_v40 = vld [vmem:[#allocation42_spill] sm:$0xff] }
 0x2b5   : > { %9048 = vmatprep.mubr.msk.bf16.mxu1 %vm1032_vm2, %v13484_v60  ;;  %v13492_v60 = vld [vmem:[#allocation43_spill] sm:$0xff] }
 0x2b6   : > { %9557 = vmatmul.mubr.msk.bf16.gmra.mrb[52].mxu0 %vm1032_vm2, %v13485_v5 }
 0x2b7   : > { %9560 = vmatprep.mubr.msk.bf16.mxu0 %vm1032_vm2, %v13486_v57 }
 0x2bc   : > { %9049 = vmatmul.mubr.msk.bf16.vlgmr.msra.gmra.mrb[0].mxu1 %vm1032_vm2, %v13487_v32  ;;  %v13494_v32 = vld [vmem:[#allocation47_spill] sm:$0xff] }
 0x2bd   : > { %9731 = vmatpush3.bf16.msra.mxu1 %v13488_v12  ;;  %9052 = vmatprep.mubr.msk.bf16.mxu1 %vm1032_vm2, %v11674_v38  ;;  %v13493_v38 = vld [vmem:[#allocation46_spill] sm:$0xff]  ;;  %v3786_v12 = vshll.u32 %v11888_v14, 16 }
 0x2be   : > { %9561 = vmatmul.mubr.msk.bf16.gmra.mrb[56].mxu0 %vm1032_vm2, %v13489_v7 }
 0x2bf   : > { %9564 = vmatprep.mubr.msk.bf16.mxu0 %vm1032_vm2, %v13490_v36 }
 0x2c4   : > { %9053 = vmatmul.mubr.msk.bf16.gmra.mrb[4].mxu1 %vm1032_vm2, %v11688_v10  ;;  %v13495_v10 = vld [vmem:[#allocation50_spill] sm:$0xff] }
 0x2c5   : > { %9056 = vmatprep.mubr.msk.bf16.mxu1 %vm1032_vm2, %v11696_v56  ;;  %v13496_v56 = vld [vmem:[#allocation51_spill] sm:$0xff] }
 0x2c6   : > { %9565 = vmatmul.mubr.msk.bf16.gmra.mrb[60].mxu0 %vm1032_vm2, %v13491_v40 }
 0x2c7   : > { %9568 = vmatprep.mubr.msk.bf16.mxu0 %vm1032_vm2, %v13492_v60 }
 0x2cc   : > { %9057 = vmatmul.mubr.msk.bf16.gmra.mrb[8].mxu1 %vm1032_vm2, %v11710_v26  ;;  %v13497_v26 = vld [vmem:[#allocation54_spill] sm:$0xff] }
 0x2cd   : > { %9060 = vmatprep.mubr.msk.bf16.mxu1 %vm1032_vm2, %v11718_v41  ;;  %v13498_v41 = vld [vmem:[#allocation55_spill] sm:$0xff] }
 0x2ce   : > { %9569 = vmatmul.mubr.msk.bf16.gmra.mrb[64].mxu0 %vm1032_vm2, %v13493_v38 }
 0x2cf   : > { %9572 = vmatprep.mubr.msk.bf16.mxu0 %vm1032_vm2, %v13494_v32 }
 0x2d4   : > { %9061 = vmatmul.mubr.msk.bf16.gmra.mrb[12].mxu1 %vm1032_vm2, %v11732_v55  ;;  %v13499_v55 = vld [vmem:[#allocation58_spill] sm:$0xff] }
 0x2d5   : > { %9064 = vmatprep.mubr.msk.bf16.mxu1 %vm1032_vm2, %v11740_v51  ;;  %v13500_v51 = vld [vmem:[#allocation59_spill] sm:$0xff] }
 0x2d6   : > { %9573 = vmatmul.mubr.msk.bf16.gmra.mrb[68].mxu0 %vm1032_vm2, %v13495_v10 }
 0x2d7   : > { %9576 = vmatprep.mubr.msk.bf16.mxu0 %vm1032_vm2, %v13496_v56 }
 0x2dc   : > { %9065 = vmatmul.mubr.msk.bf16.gmra.mrb[16].mxu1 %vm1032_vm2, %v11754_v34  ;;  %v13501_v34 = vld [vmem:[#allocation62_spill] sm:$0xff] }
 0x2dd   : > { %9068 = vmatprep.mubr.msk.bf16.mxu1 %vm1032_vm2, %v11762_v61  ;;  %v13502_v61 = vld [vmem:[#allocation63_spill] sm:$0xff] }
 0x2de   : > { %9577 = vmatmul.mubr.msk.bf16.gmra.mrb[72].mxu0 %vm1032_vm2, %v13497_v26 }
 0x2df   : > { %9580 = vmatprep.mubr.msk.bf16.mxu0 %vm1032_vm2, %v13498_v41 }
 0x2e4   : > { %9069 = vmatmul.mubr.msk.bf16.gmra.mrb[20].mxu1 %vm1032_vm2, %v11776_v49  ;;  %v13503_v49 = vld [vmem:[#allocation66_spill] sm:$0xff] }
 0x2e5   : > { %9072 = vmatprep.mubr.msk.bf16.mxu1 %vm1032_vm2, %v11784_v53  ;;  %v13505_v53 = vld [vmem:[#allocation70_spill] sm:$0xff] }
 0x2e6   : > { %9581 = vmatmul.mubr.msk.bf16.gmra.mrb[76].mxu0 %vm1032_vm2, %v13499_v55 }
 0x2e7   : > { %9584 = vmatprep.mubr.msk.bf16.mxu0 %vm1032_vm2, %v13500_v51 }
 0x2ec   : > { %9073 = vmatmul.mubr.msk.bf16.gmra.mrb[24].mxu1 %vm1032_vm2, %v11798_v29  ;;  %v13504_v29 = vld [vmem:[#allocation67_spill] sm:$0xff] }
 0x2ed   : > { %9076 = vmatprep.mubr.msk.bf16.mxu1 %vm1032_vm2, %v11806_v54  ;;  %v13506_v54 = vld [vmem:[#allocation71_spill] sm:$0xff] }
 0x2ee   : > { %9585 = vmatmul.mubr.msk.bf16.gmra.mrb[80].mxu0 %vm1032_vm2, %v13501_v34 }
 0x2ef   : > { %9588 = vmatprep.mubr.msk.bf16.mxu0 %vm1032_vm2, %v13502_v61  ;;  %v3790_v61 = vshrl.u32 %v11888_v14, 16 }
 0x2f4   : > { %9077 = vmatmul.mubr.msk.bf16.gmra.mrb[28].mxu1 %vm1032_vm2, %v11820_v15  ;;  %v13507_v15 = vld [vmem:[#allocation74_spill] sm:$0xff] }
 0x2f5   : > { %9080 = vmatprep.mubr.msk.bf16.mxu1 %vm1032_vm2, %v11995_v46  ;;  %v13508_v46 = vld [vmem:[#allocation75_spill] sm:$0xff] }
 0x2f6   : > { %9589 = vmatmul.mubr.msk.bf16.gmra.mrb[84].mxu0 %vm1032_vm2, %v13503_v49 }
 0x2f7   : > { %9592 = vmatprep.mubr.msk.bf16.mxu0 %vm1032_vm2, %v13504_v29  ;;  %v5633_v29 = vshll.u32 %v12187_v30, 16 }
 0x2fc   : > { %9081 = vmatmul.mubr.msk.bf16.gmra.mrb[32].mxu1 %vm1032_vm2, %v12004_v19  ;;  %v3779_v19 = vshll.u32 %v11874_v13, 16 }
 0x2fd   : > { %9084 = vmatprep.mubr.msk.bf16.mxu1 %vm1032_vm2, %v12009_v23  ;;  %v10736_v23 = vld [vmem:[%s10828_s25 + $0xc0] sm:$0xff]  }
 0x2fe   : > { %9593 = vmatmul.mubr.msk.bf16.gmra.mrb[88].mxu0 %vm1032_vm2, %v13505_v53  ;;  %v3788_v53 = vrot.slane %v3786_v12, 1  ;;  %v5640_v12 = vshll.u32 %v12196_v0, 16 }
 0x2ff   : > { %9596 = vmatprep.mubr.msk.bf16.mxu0 %vm1032_vm2, %v13506_v54  ;;  %v13510_v54 = vld [vmem:[#allocation80_spill] sm:$0xff] }
 0x304   : > { %9085 = vmatmul.mubr.msk.bf16.gmra.mrb[36].mxu1 %vm1032_vm2, %v12018_v42  ;;  %v3783_v42 = vshrl.u32 %v11874_v13, 16 }
 0x305   : > { %9088 = vmatprep.mubr.msk.bf16.mxu1 %vm1032_vm2, %v12023_v58  ;;  %v13509_v58 = vld [vmem:[#allocation79_spill] sm:$0xff] }
 0x306   : > { %9597 = vmatmul.mubr.msk.bf16.gmra.mrb[92].mxu0 %vm1032_vm2, %v13507_v15  ;;  %v3781_v15 = vrot.slane %v3779_v19, 1 }
 0x307   : > { %9600 = vmatprep.mubr.msk.bf16.mxu0 %vm1032_vm2, %v13508_v46 }
 0x308   : > { %v3785_v46 = vor.u32 %v3783_v42, %v3781_v15  ;;  %v5637_v42 = vshrl.u32 %v12187_v30, 16 }
 0x30a   : > { %v12425_v19 = vsel %vm579_vm1, %v3785_v46, %v3788_v53  ;;  %v10739_v46 = vld [vmem:[%s10828_s25 + $0xd8] sm:$0xff]  }
 0x30b   : > { %13513 = vst [vmem:[#allocation33_spill] sm:$0xff] %v12425_v19 }
 0x30c   : > { %9089 = vmatmul.mubr.msk.bf16.gmra.mrb[40].mxu1 %vm1032_vm2, %v12032_v35  ;;  %v10737_v35 = vld [vmem:[%s10828_s25 + $0xc8] sm:$0xff]  }
 0x30d   : > { %9092 = vmatprep.mubr.msk.bf16.mxu1 %vm1032_vm2, %v10736_v23  ;;  %v13511_v23 = vld [vmem:[#allocation83_spill] sm:$0xff] }
 0x30e   : > { %9601 = vmatmul.mubr.msk.bf16.gmra.mrb[96].mxu0 %vm1032_vm2, %v13509_v58  ;;  %v12419_v49 = vsel %vm579_vm1, %v13511_v23, %v3781_v15  ;;  %v10738_v58 = vld [vmem:[%s10828_s25 + $0xd0] sm:$0xff]   ;;  %v12433_v15 = vor.u32 %v3790_v61, %v3788_v53  ;;  %v12436_v23 = vld [vmem:[%s10828_s25 + $0x1e0] ss:$0 sps:$4 sm:$0xff]  }
 0x30f   : > { %9604 = vmatprep.mubr.msk.bf16.mxu0 %vm1032_vm2, %v13510_v54  ;;  %13512 = vst [vmem:[#allocation32_spill] sm:$0xff] %v12419_v49  ;;  %v5642_v54 = vrot.slane %v5640_v12, 1  ;;  %v10741_v12 = vld [vmem:[%s10828_s25 + $0xe8] sm:$0xff]  }
 0x314   : > { %9093 = vmatmul.mubr.msk.bf16.gmra.mrb[44].mxu1 %vm1032_vm2, %v10737_v35  ;;  %v5635_v35 = vrot.slane %v5633_v29, 1  ;;  %v5648_v29 = vshll.u32 %v12436_v23, 16 }
 0x315   : > { %9096 = vmatprep.mubr.msk.bf16.mxu1 %vm1032_vm2, %v10738_v58 }
 0x316   : > { %9605 = vmatmul.mubr.msk.bf16.gmra.mrb[100].mxu0 %vm1032_vm2, %v12419_v49  ;;  %v5639_v58 = vor.u32 %v5637_v42, %v5635_v35  ;;  %v5636_v30 = vsel %vm579_vm1, %v12433_v15, %v5635_v35  ;;  %v5644_v49 = vshrl.u32 %v12196_v0, 16  ;;  %v5650_v42 = vrot.slane %v5648_v29, 1 }
 0x317   : > { %9608 = vmatprep.mubr.msk.bf16.mxu0 %vm1032_vm2, %v12425_v19  ;;  %v10740_v19 = vld [vmem:[%s10828_s25 + $0xe0] sm:$0xff]  }
 0x318   : > { %v5643_v61 = vsel %vm579_vm1, %v5639_v58, %v5642_v54  ;;  %v5646_v53 = vor.u32 %v5644_v49, %v5642_v54  ;;  %v10744_v49 = vld [vmem:[%s10828_s25 + $0x100] sm:$0xff]   ;;  %v10745_v54 = vld [vmem:[%s10828_s25 + $0x108] sm:$0xff]   ;;  %v10762_v58 = vld [vmem:[%s10828_s25 + $0x190] sm:$0xff]  }
 0x31a   : > { %v5651_v35 = vsel %vm579_vm1, %v5646_v53, %v5650_v42  ;;  %v13521_v42 = vld [vmem:[#allocation93_spill] sm:$0xff] }
 0x31c   : > { %9097 = vmatmul.mubr.msk.bf16.gmra.mrb[48].mxu1 %vm1032_vm2, %v10739_v46  ;;  %v10742_v46 = vld [vmem:[%s10828_s25 + $0xf0] sm:$0xff]  }
 0x31d   : > { %9100 = vmatprep.mubr.msk.bf16.mxu1 %vm1032_vm2, %v10740_v19  ;;  %v10746_v19 = vld [vmem:[%s10828_s25 + $0x110] sm:$0xff]  }
 0x31e   : > { %9609 = vmatmul.mubr.msk.bf16.gmra.mrb[104].mxu0 %vm1032_vm2, %v5636_v30  ;;  %v10743_v30 = vld [vmem:[%s10828_s25 + $0xf8] sm:$0xff]  }
 0x31f   : > { %9612 = vmatprep.mubr.msk.bf16.mxu0 %vm1032_vm2, %v5643_v61 }
 0x324   : > { %9101 = vmatmul.mubr.msk.bf16.gmra.mrb[52].mxu1 %vm1032_vm2, %v10741_v12 }
 0x325   : > { %9104 = vmatprep.mubr.msk.bf16.mxu1 %vm1032_vm2, %v10742_v46 }
 0x326   : > { %9613 = vmatmul.mubr.msk.bf16.gmra.mrb[108].mxu0 %vm1032_vm2, %v5651_v35 }
 0x327   : > { %9618 = vmatprep.mubr.msk.bf16.mxu0 %vm1032_vm2, %v13406_v43  ;;  %v10747_v43 = vld [vmem:[%s10828_s25 + $0x118] sm:$0xff]  }
 0x32c   : > { %9105 = vmatmul.mubr.msk.bf16.gmra.mrb[56].mxu1 %vm1032_vm2, %v10743_v30  ;;  %v13523_v30 = vld [vmem:[#allocation95_spill] sm:$0xff] }
 0x32d   : > { %9108 = vmatprep.mubr.msk.bf16.mxu1 %vm1032_vm2, %v10744_v49 }
 0x32e   : > { %9619 = vmatmul.mubr.msk.bf16.vlgmr.msra.gmra.mrb[0].mxu0 %vm1032_vm2, %v13407_v6  ;;  %v10748_v6 = vld [vmem:[%s10828_s25 + $0x120] sm:$0xff]  }
 0x32f   : > { %9622 = vmatprep.mubr.msk.bf16.mxu0 %vm1032_vm2, %v13408_v22  ;;  %v10749_v22 = vld [vmem:[%s10828_s25 + $0x128] sm:$0xff]  }
 0x334   : > { %9109 = vmatmul.mubr.msk.bf16.gmra.mrb[60].mxu1 %vm1032_vm2, %v10745_v54 }
 0x335   : > { %9112 = vmatprep.mubr.msk.bf16.mxu1 %vm1032_vm2, %v10746_v19 }
 0x336   : > { %9623 = vmatmul.mubr.msk.bf16.gmra.mrb[4].mxu0 %vm1032_vm2, %v13409_v11  ;;  %v10750_v11 = vld [vmem:[%s10828_s25 + $0x130] sm:$0xff]  }
 0x337   : > { %9626 = vmatprep.mubr.msk.bf16.mxu0 %vm1032_vm2, %v13410_v9  ;;  %v10751_v9 = vld [vmem:[%s10828_s25 + $0x138] sm:$0xff]  }
 0x33c   : > { %9113 = vmatmul.mubr.msk.bf16.gmra.mrb[64].mxu1 %vm1032_vm2, %v10747_v43  ;;  %v13525_v43 = vld [vmem:[#allocation97_spill] sm:$0xff] }
 0x33d   : > { %9116 = vmatprep.mubr.msk.bf16.mxu1 %vm1032_vm2, %v10748_v6 }
 0x33e   : > { %9627 = vmatmul.mubr.msk.bf16.gmra.mrb[8].mxu0 %vm1032_vm2, %v13411_v27  ;;  %v10752_v27 = vld [vmem:[%s10828_s25 + $0x140] sm:$0xff]  }
 0x33f   : > { %9630 = vmatprep.mubr.msk.bf16.mxu0 %vm1032_vm2, %v13412_v52  ;;  %v10753_v52 = vld [vmem:[%s10828_s25 + $0x148] sm:$0xff]  }
 0x344   : > { %9117 = vmatmul.mubr.msk.bf16.gmra.mrb[68].mxu1 %vm1032_vm2, %v10749_v22 }
 0x345   : > { %9120 = vmatprep.mubr.msk.bf16.mxu1 %vm1032_vm2, %v10750_v11 }
 0x346   : > { %9631 = vmatmul.mubr.msk.bf16.gmra.mrb[12].mxu0 %vm1032_vm2, %v13413_v25  ;;  %v10754_v25 = vld [vmem:[%s10828_s25 + $0x150] sm:$0xff]  }
 0x347   : > { %9634 = vmatprep.mubr.msk.bf16.mxu0 %vm1032_vm2, %v13414_v17  ;;  %v10755_v17 = vld [vmem:[%s10828_s25 + $0x158] sm:$0xff]  }
 0x34c   : > { %9121 = vmatmul.mubr.msk.bf16.gmra.mrb[72].mxu1 %vm1032_vm2, %v10751_v9  ;;  %v13527_v9 = vld [vmem:[#allocation99_spill] sm:$0xff] }
 0x34d   : > { %9124 = vmatprep.mubr.msk.bf16.mxu1 %vm1032_vm2, %v10752_v27 }
 0x34e   : > { %9635 = vmatmul.mubr.msk.bf16.gmra.mrb[16].mxu0 %vm1032_vm2, %v13415_v2  ;;  %v10756_v2 = vld [vmem:[%s10828_s25 + $0x160] sm:$0xff]  }
 0x34f   : > { %9638 = vmatprep.mubr.msk.bf16.mxu0 %vm1032_vm2, %v13416_v59  ;;  %v10757_v59 = vld [vmem:[%s10828_s25 + $0x168] sm:$0xff]  }
 0x354   : > { %9125 = vmatmul.mubr.msk.bf16.gmra.mrb[76].mxu1 %vm1032_vm2, %v10753_v52 }
 0x355   : > { %9128 = vmatprep.mubr.msk.bf16.mxu1 %vm1032_vm2, %v10754_v25 }
 0x356   : > { %9639 = vmatmul.mubr.msk.bf16.gmra.mrb[20].mxu0 %vm1032_vm2, %v13417_v48  ;;  %v10758_v48 = vld [vmem:[%s10828_s25 + $0x170] sm:$0xff]  }
 0x357   : > { %9642 = vmatprep.mubr.msk.bf16.mxu0 %vm1032_vm2, %v13418_v47  ;;  %v10759_v47 = vld [vmem:[%s10828_s25 + $0x178] sm:$0xff]  }
 0x35c   : > { %9129 = vmatmul.mubr.msk.bf16.gmra.mrb[80].mxu1 %vm1032_vm2, %v10755_v17 }
 0x35d   : > { %9132 = vmatprep.mubr.msk.bf16.mxu1 %vm1032_vm2, %v10756_v2  ;;  %v13529_v2 = vld [vmem:[#allocation103_spill] sm:$0xff] }
 0x35e   : > { %9643 = vmatmul.mubr.msk.bf16.gmra.mrb[24].mxu0 %vm1032_vm2, %v13419_v33  ;;  %v10760_v33 = vld [vmem:[%s10828_s25 + $0x180] sm:$0xff]  }
 0x35f   : > { %9646 = vmatprep.mubr.msk.bf16.mxu0 %vm1032_vm2, %v13420_v24  ;;  %v10761_v24 = vld [vmem:[%s10828_s25 + $0x188] sm:$0xff]  }
 0x364   : > { %9133 = vmatmul.mubr.msk.bf16.gmra.mrb[84].mxu1 %vm1032_vm2, %v10757_v59 }
 0x365   : > { %9136 = vmatprep.mubr.msk.bf16.mxu1 %vm1032_vm2, %v10758_v48 }
 0x366   : > { %9647 = vmatmul.mubr.msk.bf16.gmra.mrb[28].mxu0 %vm1032_vm2, %v13421_v20  ;;  %v10763_v20 = vld [vmem:[%s10828_s25 + $0x198] sm:$0xff]  }
 0x367   : > { %9650 = vmatprep.mubr.msk.bf16.mxu0 %vm1032_vm2, %v13422_v4 }
 0x36c   : > { %9137 = vmatmul.mubr.msk.bf16.gmra.mrb[88].mxu1 %vm1032_vm2, %v10759_v47 }
 0x36d   : > { %9140 = vmatprep.mubr.msk.bf16.mxu1 %vm1032_vm2, %v10760_v33  ;;  %v13532_v33 = vld [vmem:[#allocation105_spill] sm:$0xff] }
 0x36e   : > { %9651 = vmatmul.mubr.msk.bf16.gmra.mrb[32].mxu0 %vm1032_vm2, %v13423_v50 }
 0x36f   : > { %9654 = vmatprep.mubr.msk.bf16.mxu0 %vm1032_vm2, %v13424_v44 }
 0x374   : > { %9141 = vmatmul.mubr.msk.bf16.gmra.mrb[92].mxu1 %vm1032_vm2, %v10761_v24 }
 0x375   : > { %9144 = vmatprep.mubr.msk.bf16.mxu1 %vm1032_vm2, %v10762_v58 }
 0x376   : > { %9655 = vmatmul.mubr.msk.bf16.gmra.mrb[36].mxu0 %vm1032_vm2, %v13425_v28 }
 0x377   : > { %9658 = vmatprep.mubr.msk.bf16.mxu0 %vm1032_vm2, %v13426_v31  ;;  %v13517_v31 = vld [vmem:[#allocation88_spill] sm:$0xff] }
 0x37c   : > { %9145 = vmatmul.mubr.msk.bf16.gmra.mrb[96].mxu1 %vm1032_vm2, %v10763_v20  ;;  %v13533_v20 = vld [vmem:[#allocation66_spill] sm:$0xff] }
 0x37d   : > { %9148 = vmatprep.mubr.msk.bf16.mxu1 %vm1032_vm2, %v11507_v45  ;;  %v13514_v45 = vld [vmem:[#allocation84_spill] sm:$0xff] }
 0x37e   : > { %9659 = vmatmul.mubr.msk.bf16.gmra.mrb[40].mxu0 %vm1032_vm2, %v13427_v8 }
 0x37f   : > { %9662 = vmatprep.mubr.msk.bf16.mxu0 %vm1032_vm2, %v13429_v39 }
 0x384   : > { %9149 = vmatmul.mubr.msk.bf16.gmra.mrb[100].mxu1 %vm1032_vm2, %v11515_v18 }
 0x385   : > { %9152 = vmatprep.mubr.msk.bf16.mxu1 %vm1032_vm2, %v11539_v16  ;;  %v13515_v16 = vld [vmem:[#allocation85_spill] sm:$0xff] }
 0x386   : > { %9663 = vmatmul.mubr.msk.bf16.gmra.mrb[44].mxu0 %vm1032_vm2, %v13430_v21 }
 0x387   : > { %9666 = vmatprep.mubr.msk.bf16.mxu0 %vm1032_vm2, %v13431_v62  ;;  %v13519_v62 = vld [vmem:[#allocation91_spill] sm:$0xff] }
 0x38c   : > { %9153 = vmatmul.mubr.msk.bf16.gmra.mrb[104].mxu1 %vm1032_vm2, %v11547_v1  ;;  %v13516_v1 = vld [vmem:[#allocation86_spill] sm:$0xff] }
 0x38d   : > { %9156 = vmatprep.mubr.msk.bf16.mxu1 %vm1032_vm2, %v11874_v13 }
 0x38e   : > { %9667 = vmatmul.mubr.msk.bf16.gmra.mrb[48].mxu0 %vm1032_vm2, %v13514_v45  ;;  %v13535_v45 = vld [vmem:[#allocation106_spill] sm:$0xff] }
 0x38f   : > { %v12559_v4 = vpop.f32.mrb[0].mxu1  ;;  %9670 = vmatprep.mubr.msk.bf16.mxu0 %vm1032_vm2, %v13515_v16 }
 0x390   : > { %v12561_v18 = vpop.f32.mrb[1].mxu1 }
 0x391   : > { %v12565_v50 = vpop.f32.mrb[2].mxu1 }
 0x392   : > { %v12567_v44 = vpop.f32.mrb[3].mxu1 }
 0x394   : > { %9157 = vmatmul.mubr.msk.bf16.gmra.mrb[108].mxu1 %vm1032_vm2, %v11888_v14 }
 0x395   : > { %9218 = vmatprep.mubr.msk.bf16.mxu1 %vm1032_vm2, %v13482_v3  ;;  %v13518_v3 = vld [vmem:[#allocation90_spill] sm:$0xff] }
 0x396   : > { %9671 = vmatmul.mubr.msk.bf16.gmra.mrb[52].mxu0 %vm1032_vm2, %v13516_v1 }
 0x397   : > { %v12575_v13 = vpop.f32.mrb[4].mxu1  ;;  %9674 = vmatprep.mubr.msk.bf16.mxu0 %vm1032_vm2, %v13517_v31  ;;  %v13536_v31 = vld [vmem:[#allocation107_spill] sm:$0xff] }
 0x398   : > { %v12577_v28 = vpop.f32.mrb[5].mxu1 }
 0x399   : > { %v12581_v8 = vpop.f32.mrb[6].mxu1 }
 0x39a   : > { %v12583_v39 = vpop.f32.mrb[7].mxu1 }
 0x39c   : > { %9219 = vmatmul.mubr.msk.bf16.vlgmr.msra.gmra.mrb[56].mxu1 %vm1032_vm2, %v13485_v5  ;;  %v13520_v5 = vld [vmem:[#allocation92_spill] sm:$0xff] }
 0x39d   : > { %9222 = vmatprep.mubr.msk.bf16.mxu1 %vm1032_vm2, %v13486_v57 }
 0x39e   : > { %9675 = vmatmul.mubr.msk.bf16.gmra.mrb[56].mxu0 %vm1032_vm2, %v13518_v3 }
 0x39f   : > { %v12591_v14 = vpop.f32.mrb[8].mxu1  ;;  %9678 = vmatprep.mubr.msk.bf16.mxu0 %vm1032_vm2, %v13519_v62 }
 0x3a0   : > { %v12593_v21 = vpop.f32.mrb[9].mxu1 }
 0x3a1   : > { %v12597_v29 = vpop.f32.mrb[10].mxu1 }
 0x3a2   : > { %v12599_v61 = vpop.f32.mrb[11].mxu1 }
 0x3a4   : > { %9223 = vmatmul.mubr.msk.bf16.gmra.mrb[60].mxu1 %vm1032_vm2, %v13489_v7  ;;  %v13522_v7 = vld [vmem:[#allocation94_spill] sm:$0xff] }
 0x3a5   : > { %9226 = vmatprep.mubr.msk.bf16.mxu1 %vm1032_vm2, %v13490_v36 }
 0x3a6   : > { %9679 = vmatmul.mubr.msk.bf16.gmra.mrb[60].mxu0 %vm1032_vm2, %v13520_v5  ;;  %v13537_v5 = vld [vmem:[#allocation70_spill] sm:$0xff] }
 0x3a7   : > { %v12607_v57 = vpop.f32.mrb[12].mxu1  ;;  %9682 = vmatprep.mubr.msk.bf16.mxu0 %vm1032_vm2, %v13521_v42  ;;  %v13538_v42 = vld [vmem:[#allocation71_spill] sm:$0xff] }
 0x3a8   : > { %v12609_v53 = vpop.f32.mrb[13].mxu1 }
 0x3a9   : > { %v12613_v12 = vpop.f32.mrb[14].mxu1 }
 0x3aa   : > { %v12615_v35 = vpop.f32.mrb[15].mxu1 }
 0x3ac   : > { %9227 = vmatmul.mubr.msk.bf16.gmra.mrb[64].mxu1 %vm1032_vm2, %v13491_v40  ;;  %v13524_v40 = vld [vmem:[#allocation96_spill] sm:$0xff] }
 0x3ad   : > { %9230 = vmatprep.mubr.msk.bf16.mxu1 %vm1032_vm2, %v13492_v60 }
 0x3ae   : > { %9683 = vmatmul.mubr.msk.bf16.gmra.mrb[64].mxu0 %vm1032_vm2, %v13522_v7  ;;  %v13539_v7 = vld [vmem:[#allocation108_spill] sm:$0xff] }
 0x3af   : > { %v12623_v36 = vpop.f32.mrb[16].mxu1  ;;  %9686 = vmatprep.mubr.msk.bf16.mxu0 %vm1032_vm2, %v13523_v30 }
 0x3b0   : > { %v12625_v46 = vpop.f32.mrb[17].mxu1 }
 0x3b1   : > { %v12629_v49 = vpop.f32.mrb[18].mxu1 }
 0x3b2   : > { %v12631_v54 = vpop.f32.mrb[19].mxu1 }
 0x3b4   : > { %9231 = vmatmul.mubr.msk.bf16.gmra.mrb[68].mxu1 %vm1032_vm2, %v13493_v38  ;;  %v13526_v38 = vld [vmem:[#allocation98_spill] sm:$0xff] }
 0x3b5   : > { %9234 = vmatprep.mubr.msk.bf16.mxu1 %vm1032_vm2, %v13494_v32 }
 0x3b6   : > { %9687 = vmatmul.mubr.msk.bf16.gmra.mrb[68].mxu0 %vm1032_vm2, %v13524_v40 }
 0x3b7   : > { %v12639_v60 = vpop.f32.mrb[20].mxu1  ;;  %9690 = vmatprep.mubr.msk.bf16.mxu0 %vm1032_vm2, %v13525_v43  ;;  %v13540_v43 = vld [vmem:[#allocation109_spill] sm:$0xff] }
 0x3b8   : > { %v12641_v19 = vpop.f32.mrb[21].mxu1 }
 0x3b9   : > { %v12645_v6 = vpop.f32.mrb[22].mxu1 }
 0x3ba   : > { %v12647_v22 = vpop.f32.mrb[23].mxu1 }
 0x3bc   : > { %9235 = vmatmul.mubr.msk.bf16.gmra.mrb[72].mxu1 %vm1032_vm2, %v13495_v10 }
 0x3bd   : > { %9238 = vmatprep.mubr.msk.bf16.mxu1 %vm1032_vm2, %v13496_v56 }
 0x3be   : > { %9691 = vmatmul.mubr.msk.bf16.gmra.mrb[72].mxu0 %vm1032_vm2, %v13526_v38 }
 0x3bf   : > { %v12655_v32 = vpop.f32.mrb[24].mxu1  ;;  %9694 = vmatprep.mubr.msk.bf16.mxu0 %vm1032_vm2, %v13527_v9 }
 0x3c0   : > { %v12657_v11 = vpop.f32.mrb[25].mxu1 }
 0x3c1   : > { %v12661_v27 = vpop.f32.mrb[26].mxu1 }
 0x3c2   : > { %v12663_v52 = vpop.f32.mrb[27].mxu1 }
 0x3c4   : > { %9239 = vmatmul.mubr.msk.bf16.gmra.mrb[76].mxu1 %vm1032_vm2, %v13497_v26  ;;  %v13528_v26 = vld [vmem:[#allocation102_spill] sm:$0xff] }
 0x3c5   : > { %9242 = vmatprep.mubr.msk.bf16.mxu1 %vm1032_vm2, %v13498_v41 }
 0x3c6   : > { %9695 = vmatmul.mubr.msk.bf16.gmra.mrb[76].mxu0 %vm1032_vm2, %v13461_v37 }
 0x3c7   : > { %v12671_v10 = vpop.f32.mrb[28].mxu1  ;;  %9698 = vmatprep.mubr.msk.bf16.mxu0 %vm1032_vm2, %v13462_v63 }
 0x3c8   : > { %v12673_v56 = vpop.f32.mrb[29].mxu1 }
 0x3c9   : > { %v12677_v25 = vpop.f32.mrb[30].mxu1 }
 0x3ca   : > { %v12679_v17 = vpop.f32.mrb[31].mxu1 }
 0x3cc   : > { %9243 = vmatmul.mubr.msk.bf16.gmra.mrb[80].mxu1 %vm1032_vm2, %v13499_v55  ;;  %v13530_v55 = vld [vmem:[#allocation63_spill] sm:$0xff] }
 0x3cd   : > { %9246 = vmatprep.mubr.msk.bf16.mxu1 %vm1032_vm2, %v13500_v51  ;;  %v13531_v51 = vld [vmem:[#allocation104_spill] sm:$0xff] }
 0x3ce   : > { %9699 = vmatmul.mubr.msk.bf16.gmra.mrb[80].mxu0 %vm1032_vm2, %v13528_v26  ;;  %v13542_v26 = vld [vmem:[#allocation74_spill] sm:$0xff] }
 0x3cf   : > { %v12687_v37 = vpop.f32.mrb[32].mxu1  ;;  %9702 = vmatprep.mubr.msk.bf16.mxu0 %vm1032_vm2, %v13529_v2  ;;  %v13543_v2 = vld [vmem:[#allocation75_spill] sm:$0xff] }
 0x3d0   : > { %v12689_v41 = vpop.f32.mrb[33].mxu1 }
 0x3d1   : > { %v12693_v63 = vpop.f32.mrb[34].mxu1 }
 0x3d2   : > { %v12695_v59 = vpop.f32.mrb[35].mxu1 }
 0x3d4   : > { %9247 = vmatmul.mubr.msk.bf16.gmra.mrb[84].mxu1 %vm1032_vm2, %v13501_v34  ;;  %v13534_v34 = vld [vmem:[#allocation67_spill] sm:$0xff] }
 0x3d5   : > { %9250 = vmatprep.mubr.msk.bf16.mxu1 %vm1032_vm2, %v13530_v55  ;;  %v13544_v55 = vld [vmem:[#allocation111_spill] sm:$0xff] }
 0x3d6   : > { %9703 = vmatmul.mubr.msk.bf16.gmra.mrb[84].mxu0 %vm1032_vm2, %v13531_v51 }
 0x3d7   : > { %v12703_v48 = vpop.f32.mrb[36].mxu1  ;;  %9706 = vmatprep.mubr.msk.bf16.mxu0 %vm1032_vm2, %v13532_v33 }
 0x3d8   : > { %v12705_v47 = vpop.f32.mrb[37].mxu1 }
 0x3d9   : > { %v12709_v24 = vpop.f32.mrb[38].mxu1 }
 0x3da   : > { %v12711_v58 = vpop.f32.mrb[39].mxu1 }
 0x3dc   : > { %9251 = vmatmul.mubr.msk.bf16.gmra.mrb[88].mxu1 %vm1032_vm2, %v13533_v20  ;;  %v13547_v20 = vld [vmem:[#allocation112_spill] sm:$0xff] }
 0x3dd   : > { %9254 = vmatprep.mubr.msk.bf16.mxu1 %vm1032_vm2, %v13534_v34 }
 0x3de   : > { %9707 = vmatmul.mubr.msk.bf16.gmra.mrb[88].mxu0 %vm1032_vm2, %v13535_v45 }
 0x3df   : > { %v12719_v16 = vpop.f32.mrb[40].mxu1  ;;  %9710 = vmatprep.mubr.msk.bf16.mxu0 %vm1032_vm2, %v13536_v31  ;;  %v13550_v31 = vld [vmem:[#allocation79_spill] sm:$0xff] }
 0x3e0   : > { %v12721_v1 = vpop.f32.mrb[41].mxu1 }
 0x3e1   : > { %v12725_v3 = vpop.f32.mrb[42].mxu1 }
 0x3e2   : > { %v12727_v62 = vpop.f32.mrb[43].mxu1 }
 0x3e4   : > { %9255 = vmatmul.mubr.msk.bf16.gmra.mrb[92].mxu1 %vm1032_vm2, %v13537_v5  ;;  %v13551_v5 = vld [vmem:[#allocation80_spill] sm:$0xff] }
 0x3e5   : > { %9258 = vmatprep.mubr.msk.bf16.mxu1 %vm1032_vm2, %v13538_v42  ;;  %v13552_v42 = vld [vmem:[#allocation114_spill] sm:$0xff] }
 0x3e6   : > { %9711 = vmatmul.mubr.msk.bf16.gmra.mrb[92].mxu0 %vm1032_vm2, %v13539_v7 }
 0x3e7   : > { %v12735_v30 = vpop.f32.mrb[44].mxu1  ;;  %9714 = vmatprep.mubr.msk.bf16.mxu0 %vm1032_vm2, %v13540_v43 }
 0x3e8   : > { %v12737_v40 = vpop.f32.mrb[45].mxu1 }
 0x3e9   : > { %v12741_v38 = vpop.f32.mrb[46].mxu1 }
 0x3ea   : > { %v12743_v9 = vpop.f32.mrb[47].mxu1 }
 0x3eb   : > { %13541 = vst [vmem:[#allocation36_spill] sm:$0xff] %v12743_v9 }
 0x3ec   : > { %9259 = vmatmul.mubr.msk.bf16.gmra.mrb[96].mxu1 %vm1032_vm2, %v13542_v26  ;;  %v13555_v26 = vld [vmem:[#allocation116_spill] sm:$0xff] }
 0x3ed   : > { %9262 = vmatprep.mubr.msk.bf16.mxu1 %vm1032_vm2, %v13543_v2  ;;  %v13556_v2 = vld [vmem:[#allocation30_spill] sm:$0xff] }
 0x3ee   : > { %9715 = vmatmul.mubr.msk.bf16.gmra.mrb[96].mxu0 %vm1032_vm2, %v13544_v55  ;;  %v6259_v55 = vrot.slane %v13556_v2, 1 }
 0x3ef   : > { %v12751_v51 = vpop.f32.mrb[48].mxu1  ;;  %9718 = vmatprep.mubr.msk.bf16.mxu0 %vm1032_vm2, %v13547_v20 }
 0x3f0   : > { %13545 = vst [vmem:[#allocation37_spill] sm:$0xff] %v12751_v51  ;;  %v12753_v33 = vpop.f32.mrb[49].mxu1 }
 0x3f1   : > { %13546 = vst [vmem:[#allocation40_spill] sm:$0xff] %v12753_v33  ;;  %v12757_v34 = vpop.f32.mrb[50].mxu1 }
 0x3f2   : > { %13548 = vst [vmem:[#allocation41_spill] sm:$0xff] %v12757_v34  ;;  %v12759_v45 = vpop.f32.mrb[51].mxu1 }
 0x3f3   : > { %13549 = vst [vmem:[#allocation44_spill] sm:$0xff] %v12759_v45  ;;  %v6261_v45 = vrot.slane %v12196_v0, 1  ;;  %v6263_v0 = vrot.slane %v12436_v23, 1 }
 0x3f4   : > { %9263 = vmatmul.mubr.msk.bf16.gmra.mrb[100].mxu1 %vm1032_vm2, %v13550_v31  ;;  %v13558_v31 = vld [vmem:[#allocation115_spill] sm:$0xff] }
 0x3f5   : > { %9266 = vmatprep.mubr.msk.bf16.mxu1 %vm1032_vm2, %v13551_v5  ;;  %v3794_v34 = vshll.u32 %v13558_v31, 16  ;;  %v13560_v5 = vld [vmem:[#allocation32_spill] sm:$0xff] }
 0x3f6   : > { %9719 = vmatmul.mubr.msk.bf16.gmra.mrb[100].mxu0 %vm1032_vm2, %v13552_v42  ;;  %v13561_v42 = vld [vmem:[#allocation113_spill] sm:$0xff] }
 0x3f7   : > { %v12767_v7 = vpop.f32.mrb[52].mxu1  ;;  %9722 = vmatprep.mubr.msk.bf16.mxu0 %vm1032_vm2, %v13555_v26  ;;  %v6262_v26 = vsel %vm2284_vm3, %v6259_v55, %v6261_v45  ;;  %v3796_v2 = vrot.slane %v3794_v34, 1  ;;  %v6264_v34 = vsel %vm2284_vm3, %v6261_v45, %v6263_v0 }
 0x3f8   : > { %13553 = vst [vmem:[#allocation45_spill] sm:$0xff] %v12767_v7  ;;  %v12769_v43 = vpop.f32.mrb[53].mxu1  ;;  %v6260_v7 = vsel %vm2284_vm3, %v13561_v42, %v6259_v55 }
 0x3f9   : > { %13554 = vst [vmem:[#allocation48_spill] sm:$0xff] %v12769_v43  ;;  %v12774_v20 = vpop.f32.mrb[54].mxu1  ;;  %v13562_v43 = vld [vmem:[#allocation33_spill] sm:$0xff]  ;;  %v3797_v31 = vsel %vm579_vm1, %v12433_v15, %v3796_v2  ;;  %v12802_v15 = vld [vmem:[%s13096_s2] ss:$0 sm:$0xff] }
 0x3fa   : > { %13557 = vst [vmem:[#allocation49_spill] sm:$0xff] %v12774_v20  ;;  %v12778_v33 = vpop.f32.mrb[55].mxu1 }
 0x3fb   : > { %13559 = vst [vmem:[#allocation52_spill] sm:$0xff] %v12778_v33 }
 0x3fc   : > { %9267 = vmatmul.mubr.msk.bf16.gmra.mrb[104].mxu1 %vm1032_vm2, %v13560_v5 }
 0x3fd   : > { %9270 = vmatprep.mubr.msk.bf16.mxu1 %vm1032_vm2, %v13562_v43 }
 0x3fe   : > { %9723 = vmatmul.mubr.msk.bf16.gmra.mrb[104].mxu0 %vm1032_vm2, %v6260_v7 }
 0x3ff   : > { %9726 = vmatprep.mubr.msk.bf16.mxu0 %vm1032_vm2, %v6262_v26 }
 0x401   : > { %v9620_v33 = vpop.f32.mrb[0].mxu0 }
 0x402   : > { %v9732_v5 = vadd.f32 %v9620_v33, %v12559_v4  ;;  %v6311_v20 = vpop.f32.mrb[1].mxu0 }
 0x403   : > { %v9733_v42 = vadd.f32 %v6311_v20, %v12561_v18  ;;  %v9621_v51 = vpop.f32.mrb[2].mxu0 }
 0x404   : > { %9271 = vmatmul.mubr.msk.bf16.gmra.mrb[108].mxu1 %vm1032_vm2, %v3797_v31  ;;  %v9734_v7 = vadd.f32 %v9621_v51, %v12565_v50  ;;  %v6314_v43 = vpop.f32.mrb[3].mxu0  ;;  %v6879_v4 = vadd.f32 %v9732_v5, %v12802_v15 }
 0x405   : > { %v9735_v55 = vadd.f32 %v6314_v43, %v12567_v44  ;;  %v6877_v45 = vadd.f32 %v9733_v42, %v12802_v15 }
 0x406   : > { %9727 = vmatmul.mubr.msk.bf16.gmra.mrb[108].mxu0 %vm1032_vm2, %v6264_v34  ;;  %v6880_v44 = vadd.f32 %v9734_v7, %v12802_v15 }
 0x407   : > { %v6878_v0 = vadd.f32 %v9735_v55, %v12802_v15  ;;  %v6989_v43 = vmax.f32 %v6877_v45, 0.0 }
 0x409   : > { %v9624_v23 = vpop.f32.mrb[4].mxu0 }
 0x40a   : > { %v9736_v18 = vadd.f32 %v9624_v23, %v12575_v13  ;;  %v6327_v33 = vpop.f32.mrb[5].mxu0  ;;  %v6991_v13 = vmax.f32 %v6879_v4, 0.0  ;;  %v6992_v23 = vmax.f32 %v6880_v44, 0.0 }
 0x40b   : > { %v9737_v50 = vadd.f32 %v6327_v33, %v12577_v28  ;;  %v9625_v51 = vpop.f32.mrb[6].mxu0 }
 0x40c   : > { %v6883_v20 = vadd.f32 %v9736_v18, %v12802_v15  ;;  %v9738_v26 = vadd.f32 %v9625_v51, %v12581_v8  ;;  %v6330_v2 = vpop.f32.mrb[7].mxu0  ;;  %v6990_v8 = vmax.f32 %v6878_v0, 0.0 }
 0x40d   : > { %v6881_v31 = vadd.f32 %v9737_v50, %v12802_v15  ;;  %v9739_v5 = vadd.f32 %v6330_v2, %v12583_v39 }
 0x40e   : > { %v6995_v34 = vmax.f32 %v6883_v20, 0.0  ;;  %v6884_v42 = vadd.f32 %v9738_v26, %v12802_v15 }
 0x40f   : > { %v6993_v28 = vmax.f32 %v6881_v31, 0.0  ;;  %v6882_v7 = vadd.f32 %v9739_v5, %v12802_v15 }
 0x410   : > { %v7103_v18 = vmax.f32 %v6991_v13, %v6995_v34  ;;  %v6996_v33 = vmax.f32 %v6884_v42, 0.0 }
 0x411   : > { %v7101_v51 = vmax.f32 %v6989_v43, %v6993_v28  ;;  %v6994_v9 = vmax.f32 %v6882_v7, 0.0  ;;  %v9628_v55 = vpop.f32.mrb[8].mxu0 }
 0x412   : > { %7160 = vst.msk [vmem:[#allocation2 + $0x10] sm:$0xff] %vm7157_vm4, %v7103_v18  ;;  %v7104_v39 = vmax.f32 %v6992_v23, %v6996_v33  ;;  %v9740_v4 = vadd.f32 %v9628_v55, %v12591_v14  ;;  %v6343_v50 = vpop.f32.mrb[9].mxu0 }
 0x413   : > { %7158 = vst.msk [vmem:[#allocation2] sm:$0xff] %vm7157_vm4, %v7101_v51  ;;  %v7102_v45 = vmax.f32 %v6990_v8, %v6994_v9  ;;  %v9741_v20 = vadd.f32 %v6343_v50, %v12593_v21  ;;  %v9629_v26 = vpop.f32.mrb[10].mxu0 }
 0x414   : > { %7161 = vst.msk [vmem:[#allocation2 + $0x18] sm:$0xff] %vm7157_vm4, %v7104_v39  ;;  %v9742_v44 = vadd.f32 %v9629_v26, %v12597_v29  ;;  %v6346_v2 = vpop.f32.mrb[11].mxu0  ;;  %v6887_v31 = vadd.f32 %v9740_v4, %v12802_v15 }
 0x415   : > { %7159 = vst.msk [vmem:[#allocation2 + $0x8] sm:$0xff] %vm7157_vm4, %v7102_v45  ;;  %v9743_v0 = vadd.f32 %v6346_v2, %v12599_v61  ;;  %v6885_v34 = vadd.f32 %v9741_v20, %v12802_v15 }
 0x416   : > { %v6999_v7 = vmax.f32 %v6887_v31, 0.0  ;;  %v6888_v18 = vadd.f32 %v9742_v44, %v12802_v15 }
 0x417   : > { %v6886_v55 = vadd.f32 %v9743_v0, %v12802_v15  ;;  %v6997_v45 = vmax.f32 %v6885_v34, 0.0 }
 0x419   : > { %v9632_v14 = vpop.f32.mrb[12].mxu0  ;;  %v6998_v0 = vmax.f32 %v6886_v55, 0.0 }
 0x41a   : > { %v9744_v9 = vadd.f32 %v9632_v14, %v12607_v57  ;;  %v6359_v5 = vpop.f32.mrb[13].mxu0 }
 0x41b   : > { %v7216_v21 = vld [vmem:[#allocation2 + $0x10] ss:$2 sm:$0x3f]  ;;  %v7272_v13 = vld [vmem:[#allocation2 + $0x11] ss:$2 sm:$0x3f]  ;;  %v9745_v29 = vadd.f32 %v6359_v5, %v12609_v53 }
 0x41c   : > { %v7326_v42 = vmax.f32 %v7216_v21, %v7272_v13  ;;  %v7214_v43 = vld [vmem:[#allocation2] ss:$2 sm:$0xff]  ;;  %v7270_v28 = vld [vmem:[#allocation2 + $0x1] ss:$2 sm:$0xff]  ;;  %v6891_v61 = vadd.f32 %v9744_v9, %v12802_v15  ;;  %v9633_v23 = vpop.f32.mrb[14].mxu0 }
 0x41d   : > { %v7325_v57 = vmax.f32 %v7214_v43, %v7270_v28  ;;  %v6889_v33 = vadd.f32 %v9745_v29, %v12802_v15  ;;  %v9746_v53 = vadd.f32 %v9633_v23, %v12613_v12  ;;  %v6362_v8 = vpop.f32.mrb[15].mxu0  ;;  %v7000_v12 = vmax.f32 %v6888_v18, 0.0 }
 0x41e   : > { %v8164_v51 = vpack.c.bf16 %v7326_v42, %v7326_v42  ;;  %v7003_v39 = vmax.f32 %v6891_v61, 0.0  ;;  %v9747_v4 = vadd.f32 %v6362_v8, %v12615_v35 }
 0x41f   : > { %v8163_v50 = vpack.c.bf16 %v7325_v57, %v7325_v57  ;;  %v7001_v20 = vmax.f32 %v6889_v33, 0.0  ;;  %v6892_v26 = vadd.f32 %v9746_v53, %v12802_v15 }
 0x420   : > { %7468 = vst.msk [vmem:[%s12833_s17 + $0x4] sm:$0x7] %vm7467_vm5, %v8164_v51  ;;  %v7107_v2 = vmax.f32 %v6999_v7, %v7003_v39  ;;  %v6890_v44 = vadd.f32 %v9747_v4, %v12802_v15 }
 0x421   : > { %7466 = vst.msk [vmem:[%s12833_s17] sm:$0xf] %vm7465_vm6, %v8163_v50  ;;  %v7105_v31 = vmax.f32 %v6997_v45, %v7001_v20  ;;  %v7004_v14 = vmax.f32 %v6892_v26, 0.0  ;;  %v9636_v9 = vpop.f32.mrb[16].mxu0 }
 0x422   : > { %7164 = vst.msk [vmem:[#allocation2 + $0x30] sm:$0xff] %vm7157_vm4, %v7107_v2  ;;  %v7002_v35 = vmax.f32 %v6890_v44, 0.0  ;;  %v9748_v5 = vadd.f32 %v9636_v9, %v12623_v36  ;;  %v6375_v21 = vpop.f32.mrb[17].mxu0 }
 0x423   : > { %7162 = vst.msk [vmem:[#allocation2 + $0x20] sm:$0xff] %vm7157_vm4, %v7105_v31  ;;  %v7108_v13 = vmax.f32 %v7000_v12, %v7004_v14  ;;  %v9749_v34 = vadd.f32 %v6375_v21, %v12625_v46  ;;  %v9637_v29 = vpop.f32.mrb[18].mxu0 }
 0x424   : > { %v7106_v42 = vmax.f32 %v6998_v0, %v7002_v35  ;;  %v9750_v43 = vadd.f32 %v9637_v29, %v12629_v49  ;;  %v6378_v28 = vpop.f32.mrb[19].mxu0  ;;  %v6895_v61 = vadd.f32 %v9748_v5, %v12802_v15 }
 0x425   : > { %7165 = vst.msk [vmem:[#allocation2 + $0x38] sm:$0xff] %vm7157_vm4, %v7108_v13  ;;  %v9751_v7 = vadd.f32 %v6378_v28, %v12631_v54  ;;  %v6893_v18 = vadd.f32 %v9749_v34, %v12802_v15 }
 0x426   : > { %7163 = vst.msk [vmem:[#allocation2 + $0x28] sm:$0xff] %vm7157_vm4, %v7106_v42  ;;  %v6896_v46 = vadd.f32 %v9750_v43, %v12802_v15  ;;  %v7007_v50 = vmax.f32 %v6895_v61, 0.0 }
 0x427   : > { %v7005_v31 = vmax.f32 %v6893_v18, 0.0 }
 0x429   : > { %v9640_v36 = vpop.f32.mrb[20].mxu0 }
 0x42a   : > { %v9752_v23 = vadd.f32 %v9640_v36, %v12639_v60  ;;  %v6391_v57 = vpop.f32.mrb[21].mxu0  ;;  %v6894_v60 = vadd.f32 %v9751_v7, %v12802_v15 }
 0x42b   : > { %v9753_v33 = vadd.f32 %v6391_v57, %v12641_v19  ;;  %v9641_v49 = vpop.f32.mrb[22].mxu0 }
 0x42c   : > { %v7220_v53 = vld [vmem:[#allocation2 + $0x30] ss:$2 sm:$0x3f]  ;;  %v7276_v8 = vld [vmem:[#allocation2 + $0x31] ss:$2 sm:$0x3f]  ;;  %v6899_v51 = vadd.f32 %v9752_v23, %v12802_v15  ;;  %v9754_v54 = vadd.f32 %v9641_v49, %v12645_v6 }
 0x42d   : > { %v7328_v55 = vmax.f32 %v7220_v53, %v7276_v8  ;;  %v7218_v39 = vld [vmem:[#allocation2 + $0x20] ss:$2 sm:$0xff]  ;;  %v7274_v4 = vld [vmem:[#allocation2 + $0x21] ss:$2 sm:$0xff]  ;;  %v6897_v45 = vadd.f32 %v9753_v33, %v12802_v15  ;;  %v6394_v20 = vpop.f32.mrb[23].mxu0  ;;  %v7008_v6 = vmax.f32 %v6896_v46, 0.0 }
 0x42e   : > { %v7327_v26 = vmax.f32 %v7218_v39, %v7274_v4  ;;  %v7011_v19 = vmax.f32 %v6899_v51, 0.0  ;;  %v6900_v2 = vadd.f32 %v9754_v54, %v12802_v15  ;;  %v9755_v44 = vadd.f32 %v6394_v20, %v12647_v22 }
 0x42f   : > { %v8166_v12 = vpack.c.bf16 %v7328_v55, %v7328_v55  ;;  %v7009_v14 = vmax.f32 %v6897_v45, 0.0  ;;  %v7006_v34 = vmax.f32 %v6894_v60, 0.0 }
 0x430   : > { %v8165_v9 = vpack.c.bf16 %v7327_v26, %v7327_v26  ;;  %v7111_v0 = vmax.f32 %v7007_v50, %v7011_v19  ;;  %v7012_v35 = vmax.f32 %v6900_v2, 0.0  ;;  %v6898_v5 = vadd.f32 %v9755_v44, %v12802_v15 }
 0x431   : > { %7470 = vst.msk [vmem:[%s12833_s17 + $0xc] sm:$0x7] %vm7467_vm5, %v8166_v12  ;;  %v7109_v21 = vmax.f32 %v7005_v31, %v7009_v14  ;;  %v9644_v13 = vpop.f32.mrb[24].mxu0 }
 0x432   : > { %7469 = vst.msk [vmem:[%s12833_s17 + $0x8] sm:$0xf] %vm7465_vm6, %v8165_v9  ;;  %v7112_v29 = vmax.f32 %v7008_v6, %v7012_v35  ;;  %v7010_v22 = vmax.f32 %v6898_v5, 0.0  ;;  %v9756_v42 = vadd.f32 %v9644_v13, %v12655_v32  ;;  %v6407_v43 = vpop.f32.mrb[25].mxu0 }
 0x433   : > { %7168 = vst.msk [vmem:[#allocation2 + $0x50] sm:$0xff] %vm7157_vm4, %v7111_v0  ;;  %7166 = vst.msk [vmem:[#allocation2 + $0x40] sm:$0xff] %vm7157_vm4, %v7109_v21  ;;  %v9757_v28 = vadd.f32 %v6407_v43, %v12657_v11  ;;  %v9645_v7 = vpop.f32.mrb[26].mxu0 }
 0x434   : > { %7169 = vst.msk [vmem:[#allocation2 + $0x58] sm:$0xff] %vm7157_vm4, %v7112_v29  ;;  %v7110_v61 = vmax.f32 %v7006_v34, %v7010_v22  ;;  %v9758_v36 = vadd.f32 %v9645_v7, %v12661_v27  ;;  %v6410_v23 = vpop.f32.mrb[27].mxu0  ;;  %v6903_v18 = vadd.f32 %v9756_v42, %v12802_v15 }
 0x435   : > { %v9759_v57 = vadd.f32 %v6410_v23, %v12663_v52  ;;  %v6901_v11 = vadd.f32 %v9757_v28, %v12802_v15 }
 0x436   : > { %7167 = vst.msk [vmem:[#allocation2 + $0x48] sm:$0xff] %vm7157_vm4, %v7110_v61  ;;  %v7015_v54 = vmax.f32 %v6903_v18, 0.0  ;;  %v6904_v4 = vadd.f32 %v9758_v36, %v12802_v15 }
 0x437   : > { %v6902_v50 = vadd.f32 %v9759_v57, %v12802_v15  ;;  %v7013_v2 = vmax.f32 %v6901_v11, 0.0 }
 0x438   : > { %v7016_v9 = vmax.f32 %v6904_v4, 0.0 }
 0x439   : > { %v9648_v46 = vpop.f32.mrb[28].mxu0  ;;  %v7014_v5 = vmax.f32 %v6902_v50, 0.0 }
 0x43a   : > { %v9760_v32 = vadd.f32 %v9648_v46, %v12671_v10  ;;  %v6423_v33 = vpop.f32.mrb[29].mxu0 }
 0x43b   : > { %v7224_v49 = vld [vmem:[#allocation2 + $0x50] ss:$2 sm:$0x3f]  ;;  %v7280_v53 = vld [vmem:[#allocation2 + $0x51] ss:$2 sm:$0x3f]  ;;  %v9761_v8 = vadd.f32 %v6423_v33, %v12673_v56 }
 0x43c   : > { %v7330_v51 = vmax.f32 %v7224_v49, %v7280_v53  ;;  %v6907_v27 = vadd.f32 %v9760_v32, %v12802_v15  ;;  %v9649_v52 = vpop.f32.mrb[30].mxu0 }
 0x43d   : > { %v7222_v55 = vld [vmem:[#allocation2 + $0x40] ss:$2 sm:$0xff]  ;;  %v7278_v39 = vld [vmem:[#allocation2 + $0x41] ss:$2 sm:$0xff]  ;;  %v6905_v10 = vadd.f32 %v9761_v8, %v12802_v15  ;;  %v9762_v60 = vadd.f32 %v9649_v52, %v12677_v25  ;;  %v6426_v45 = vpop.f32.mrb[31].mxu0 }
 0x43e   : > { %v8168_v20 = vpack.c.bf16 %v7330_v51, %v7330_v51  ;;  %v7329_v56 = vmax.f32 %v7222_v55, %v7278_v39  ;;  %v7019_v26 = vmax.f32 %v6907_v27, 0.0  ;;  %v9763_v19 = vadd.f32 %v6426_v45, %v12679_v17 }
 0x43f   : > { %v7017_v44 = vmax.f32 %v6905_v10, 0.0  ;;  %v6908_v12 = vadd.f32 %v9762_v60, %v12802_v15 }
 0x440   : > { %7472 = vst.msk [vmem:[%s12833_s17 + $0x14] sm:$0x7] %vm7467_vm5, %v8168_v20  ;;  %v8167_v31 = vpack.c.bf16 %v7329_v56, %v7329_v56  ;;  %v7115_v6 = vmax.f32 %v7015_v54, %v7019_v26  ;;  %v6906_v14 = vadd.f32 %v9763_v19, %v12802_v15 }
 0x441   : > { %v7113_v0 = vmax.f32 %v7013_v2, %v7017_v44  ;;  %v7020_v25 = vmax.f32 %v6908_v12, 0.0  ;;  %v9652_v35 = vpop.f32.mrb[32].mxu0 }
 0x442   : > { %7471 = vst.msk [vmem:[%s12833_s17 + $0x10] sm:$0xf] %vm7465_vm6, %v8167_v31  ;;  %v7018_v17 = vmax.f32 %v6906_v14, 0.0  ;;  %v9764_v21 = vadd.f32 %v9652_v35, %v12687_v37  ;;  %v6439_v13 = vpop.f32.mrb[33].mxu0 }
 0x443   : > { %7172 = vst.msk [vmem:[#allocation2 + $0x70] sm:$0xff] %vm7157_vm4, %v7115_v6  ;;  %7170 = vst.msk [vmem:[#allocation2 + $0x60] sm:$0xff] %vm7157_vm4, %v7113_v0  ;;  %v7116_v34 = vmax.f32 %v7016_v9, %v7020_v25  ;;  %v9765_v29 = vadd.f32 %v6439_v13, %v12689_v41  ;;  %v9653_v22 = vpop.f32.mrb[34].mxu0 }
 0x444   : > { %v7114_v42 = vmax.f32 %v7014_v5, %v7018_v17  ;;  %v9766_v43 = vadd.f32 %v9653_v22, %v12693_v63  ;;  %v6442_v28 = vpop.f32.mrb[35].mxu0  ;;  %v6911_v61 = vadd.f32 %v9764_v21, %v12802_v15 }
 0x445   : > { %7173 = vst.msk [vmem:[#allocation2 + $0x78] sm:$0xff] %vm7157_vm4, %v7116_v34  ;;  %v9767_v7 = vadd.f32 %v6442_v28, %v12695_v59  ;;  %v6909_v57 = vadd.f32 %v9765_v29, %v12802_v15 }
 0x446   : > { %7171 = vst.msk [vmem:[#allocation2 + $0x68] sm:$0xff] %vm7157_vm4, %v7114_v42  ;;  %v6912_v41 = vadd.f32 %v9766_v43, %v12802_v15  ;;  %v7023_v8 = vmax.f32 %v6911_v61, 0.0 }
 0x447   : > { %v7021_v4 = vmax.f32 %v6909_v57, 0.0  ;;  %v13563_v57 = vld [vmem:[#allocation36_spill] sm:$0xff] }
 0x449   : > { %v9656_v37 = vpop.f32.mrb[36].mxu0 }
 0x44a   : > { %v9768_v36 = vadd.f32 %v9656_v37, %v12703_v48  ;;  %v6455_v23 = vpop.f32.mrb[37].mxu0  ;;  %v6910_v48 = vadd.f32 %v9767_v7, %v12802_v15 }
 0x44b   : > { %v9769_v18 = vadd.f32 %v6455_v23, %v12705_v47  ;;  %v9657_v63 = vpop.f32.mrb[38].mxu0 }
 0x44c   : > { %v7228_v46 = vld [vmem:[#allocation2 + $0x70] ss:$2 sm:$0x3f]  ;;  %v7284_v32 = vld [vmem:[#allocation2 + $0x71] ss:$2 sm:$0x3f]  ;;  %v6915_v33 = vadd.f32 %v9768_v36, %v12802_v15  ;;  %v9770_v59 = vadd.f32 %v9657_v63, %v12709_v24 }
 0x44d   : > { %v7332_v49 = vmax.f32 %v7228_v46, %v7284_v32  ;;  %v7226_v53 = vld [vmem:[#allocation2 + $0x60] ss:$2 sm:$0xff]  ;;  %v7282_v11 = vld [vmem:[#allocation2 + $0x61] ss:$2 sm:$0xff]  ;;  %v6913_v51 = vadd.f32 %v9769_v18, %v12802_v15  ;;  %v6458_v54 = vpop.f32.mrb[39].mxu0  ;;  %v7024_v24 = vmax.f32 %v6912_v41, 0.0 }
 0x44e   : > { %v7331_v27 = vmax.f32 %v7226_v53, %v7282_v11  ;;  %v7027_v47 = vmax.f32 %v6915_v33, 0.0  ;;  %v6916_v52 = vadd.f32 %v9770_v59, %v12802_v15  ;;  %v9771_v55 = vadd.f32 %v6458_v54, %v12711_v58 }
 0x44f   : > { %v8170_v39 = vpack.c.bf16 %v7332_v49, %v7332_v49  ;;  %v7025_v50 = vmax.f32 %v6913_v51, 0.0  ;;  %v7022_v19 = vmax.f32 %v6910_v48, 0.0  ;;  %v13564_v51 = vld [vmem:[#allocation37_spill] sm:$0xff] }
 0x450   : > { %v8169_v10 = vpack.c.bf16 %v7331_v27, %v7331_v27  ;;  %v7119_v60 = vmax.f32 %v7023_v8, %v7027_v47  ;;  %v7028_v45 = vmax.f32 %v6916_v52, 0.0  ;;  %v6914_v20 = vadd.f32 %v9771_v55, %v12802_v15  ;;  %v13565_v52 = vld [vmem:[#allocation40_spill] sm:$0xff] }
 0x451   : > { %7474 = vst.msk [vmem:[%s12833_s17 + $0x1c] sm:$0x7] %vm7467_vm5, %v8170_v39  ;;  %v7117_v56 = vmax.f32 %v7021_v4, %v7025_v50  ;;  %v9660_v26 = vpop.f32.mrb[40].mxu0 }
 0x452   : > { %7473 = vst.msk [vmem:[%s12833_s17 + $0x18] sm:$0xf] %vm7465_vm6, %v8169_v10  ;;  %v7120_v2 = vmax.f32 %v7024_v24, %v7028_v45  ;;  %v7026_v58 = vmax.f32 %v6914_v20, 0.0  ;;  %v9772_v44 = vadd.f32 %v9660_v26, %v12719_v16  ;;  %v6471_v12 = vpop.f32.mrb[41].mxu0  ;;  %v13566_v24 = vld [vmem:[#allocation41_spill] sm:$0xff] }
 0x453   : > { %7176 = vst.msk [vmem:[#allocation2 + $0x90] sm:$0xff] %vm7157_vm4, %v7119_v60  ;;  %7174 = vst.msk [vmem:[#allocation2 + $0x80] sm:$0xff] %vm7157_vm4, %v7117_v56  ;;  %v9773_v31 = vadd.f32 %v6471_v12, %v12721_v1  ;;  %v9661_v6 = vpop.f32.mrb[42].mxu0  ;;  %v13567_v60 = vld [vmem:[#allocation44_spill] sm:$0xff]  ;;  %v13568_v26 = vld [vmem:[#allocation45_spill] sm:$0xff] }
 0x454   : > { %7177 = vst.msk [vmem:[#allocation2 + $0x98] sm:$0xff] %vm7157_vm4, %v7120_v2  ;;  %v7118_v14 = vmax.f32 %v7022_v19, %v7026_v58  ;;  %v9774_v9 = vadd.f32 %v9661_v6, %v12725_v3  ;;  %v6474_v0 = vpop.f32.mrb[43].mxu0  ;;  %v6919_v35 = vadd.f32 %v9772_v44, %v12802_v15  ;;  %v13569_v12 = vld [vmem:[#allocation48_spill] sm:$0xff] }
 0x455   : > { %v9775_v25 = vadd.f32 %v6474_v0, %v12727_v62  ;;  %v6917_v1 = vadd.f32 %v9773_v31, %v12802_v15 }
 0x456   : > { %7175 = vst.msk [vmem:[#allocation2 + $0x88] sm:$0xff] %vm7157_vm4, %v7118_v14  ;;  %v7031_v22 = vmax.f32 %v6919_v35, 0.0  ;;  %v6920_v28 = vadd.f32 %v9774_v9, %v12802_v15 }
 0x457   : > { %v6918_v7 = vadd.f32 %v9775_v25, %v12802_v15  ;;  %v7029_v18 = vmax.f32 %v6917_v1, 0.0  ;;  %v13570_v25 = vld [vmem:[#allocation49_spill] sm:$0xff] }
 0x458   : > { %v7032_v49 = vmax.f32 %v6920_v28, 0.0 }
 0x459   : > { %v9664_v5 = vpop.f32.mrb[44].mxu0  ;;  %v7030_v8 = vmax.f32 %v6918_v7, 0.0 }
 0x45a   : > { %v9776_v16 = vadd.f32 %v9664_v5, %v12735_v30  ;;  %v6487_v17 = vpop.f32.mrb[45].mxu0 }
 0x45b   : > { %v7232_v21 = vld [vmem:[#allocation2 + $0x90] ss:$2 sm:$0x3f]  ;;  %v7288_v13 = vld [vmem:[#allocation2 + $0x91] ss:$2 sm:$0x3f]  ;;  %v9777_v34 = vadd.f32 %v6487_v17, %v12737_v40 }
 0x45c   : > { %v7334_v29 = vmax.f32 %v7232_v21, %v7288_v13  ;;  %v6923_v3 = vadd.f32 %v9776_v16, %v12802_v15  ;;  %v9665_v62 = vpop.f32.mrb[46].mxu0 }
 0x45d   : > { %v7230_v42 = vld [vmem:[#allocation2 + $0x80] ss:$2 sm:$0xff]  ;;  %v7286_v43 = vld [vmem:[#allocation2 + $0x81] ss:$2 sm:$0xff]  ;;  %v6921_v30 = vadd.f32 %v9777_v34, %v12802_v15  ;;  %v9778_v61 = vadd.f32 %v9665_v62, %v12741_v38  ;;  %v6490_v37 = vpop.f32.mrb[47].mxu0 }
 0x45e   : > { %v8172_v36 = vpack.c.bf16 %v7334_v29, %v7334_v29  ;;  %v7333_v40 = vmax.f32 %v7230_v42, %v7286_v43  ;;  %v7035_v23 = vmax.f32 %v6923_v3, 0.0  ;;  %v9779_v41 = vadd.f32 %v6490_v37, %v13563_v57  ;;  %v13571_v62 = vld [vmem:[#allocation52_spill] sm:$0xff] }
 0x45f   : > { %v7033_v63 = vmax.f32 %v6921_v30, 0.0  ;;  %v6924_v46 = vadd.f32 %v9778_v61, %v12802_v15 }
 0x460   : > { %7476 = vst.msk [vmem:[%s12833_s17 + $0x24] sm:$0x7] %vm7467_vm5, %v8172_v36  ;;  %v8171_v32 = vpack.c.bf16 %v7333_v40, %v7333_v40  ;;  %v7123_v33 = vmax.f32 %v7031_v22, %v7035_v23  ;;  %v6922_v59 = vadd.f32 %v9779_v41, %v12802_v15 }
 0x461   : > { %v7121_v53 = vmax.f32 %v7029_v18, %v7033_v63  ;;  %v7036_v38 = vmax.f32 %v6924_v46, 0.0  ;;  %v9668_v11 = vpop.f32.mrb[48].mxu0 }
 0x462   : > { %7475 = vst.msk [vmem:[%s12833_s17 + $0x20] sm:$0xf] %vm7465_vm6, %v8171_v32  ;;  %v7034_v48 = vmax.f32 %v6922_v59, 0.0  ;;  %v9780_v54 = vadd.f32 %v9668_v11, %v13564_v51  ;;  %v6503_v27 = vpop.f32.mrb[49].mxu0 }
 0x463   : > { %7180 = vst.msk [vmem:[#allocation2 + $0xb0] sm:$0xff] %vm7157_vm4, %v7123_v33  ;;  %7178 = vst.msk [vmem:[#allocation2 + $0xa0] sm:$0xff] %vm7157_vm4, %v7121_v53  ;;  %v7124_v47 = vmax.f32 %v7032_v49, %v7036_v38  ;;  %v9781_v55 = vadd.f32 %v6503_v27, %v13565_v52  ;;  %v9669_v39 = vpop.f32.mrb[50].mxu0 }
 0x464   : > { %v7122_v4 = vmax.f32 %v7030_v8, %v7034_v48  ;;  %v9782_v50 = vadd.f32 %v9669_v39, %v13566_v24  ;;  %v6506_v10 = vpop.f32.mrb[51].mxu0  ;;  %v6927_v20 = vadd.f32 %v9780_v54, %v12802_v15 }
 0x465   : > { %7181 = vst.msk [vmem:[#allocation2 + $0xb8] sm:$0xff] %vm7157_vm4, %v7124_v47  ;;  %v9783_v45 = vadd.f32 %v6506_v10, %v13567_v60  ;;  %v6925_v58 = vadd.f32 %v9781_v55, %v12802_v15 }
 0x466   : > { %7179 = vst.msk [vmem:[#allocation2 + $0xa8] sm:$0xff] %vm7157_vm4, %v7122_v4  ;;  %v6928_v44 = vadd.f32 %v9782_v50, %v12802_v15  ;;  %v7039_v21 = vmax.f32 %v6927_v20, 0.0 }
 0x467   : > { %v6926_v13 = vadd.f32 %v9783_v45, %v12802_v15  ;;  %v7037_v7 = vmax.f32 %v6925_v58, 0.0 }
 0x468   : > { %v7040_v30 = vmax.f32 %v6928_v44, 0.0 }
 0x469   : > { %v9672_v56 = vpop.f32.mrb[52].mxu0  ;;  %v7038_v32 = vmax.f32 %v6926_v13, 0.0 }
 0x46a   : > { %v9784_v19 = vadd.f32 %v9672_v56, %v13568_v26  ;;  %v6519_v2 = vpop.f32.mrb[53].mxu0 }
 0x46b   : > { %v9785_v31 = vadd.f32 %v6519_v2, %v13569_v12  ;;  %v9673_v6 = vpop.f32.mrb[54].mxu0 }
 0x46c   : > { %v7236_v14 = vld [vmem:[#allocation2 + $0xb0] ss:$2 sm:$0x3f]  ;;  %v7292_v9 = vld [vmem:[#allocation2 + $0xb1] ss:$2 sm:$0x3f]  ;;  %v6931_v0 = vadd.f32 %v9784_v19, %v12802_v15  ;;  %v9786_v35 = vadd.f32 %v9673_v6, %v13570_v25 }
 0x46d   : > { %v7336_v5 = vmax.f32 %v7236_v14, %v7292_v9  ;;  %v7234_v16 = vld [vmem:[#allocation2 + $0xa0] ss:$2 sm:$0xff]  ;;  %v7290_v17 = vld [vmem:[#allocation2 + $0xa1] ss:$2 sm:$0xff]  ;;  %v6929_v1 = vadd.f32 %v9785_v31, %v12802_v15  ;;  %v6522_v34 = vpop.f32.mrb[55].mxu0 }
 0x46e   : > { %v7335_v29 = vmax.f32 %v7234_v16, %v7290_v17  ;;  %v7043_v22 = vmax.f32 %v6931_v0, 0.0  ;;  %v6932_v3 = vadd.f32 %v9786_v35, %v12802_v15  ;;  %v9787_v42 = vadd.f32 %v6522_v34, %v13571_v62 }
 0x46f   : > { %v9220_v43 = vpop.f32.mrb[56].mxu1  ;;  %v8174_v28 = vpack.c.bf16 %v7336_v5, %v7336_v5  ;;  %v7041_v61 = vmax.f32 %v6929_v1, 0.0 }
 0x470   : > { %v4068_v37 = vpop.f32.mrb[57].mxu1  ;;  %v8173_v36 = vpack.c.bf16 %v7335_v29, %v7335_v29  ;;  %v7127_v40 = vmax.f32 %v7039_v21, %v7043_v22  ;;  %v7044_v23 = vmax.f32 %v6932_v3, 0.0  ;;  %v6930_v57 = vadd.f32 %v9787_v42, %v12802_v15 }
 0x471   : > { %v9221_v41 = vpop.f32.mrb[58].mxu1  ;;  %7478 = vst.msk [vmem:[%s12833_s17 + $0x2c] sm:$0x7] %vm7467_vm5, %v8174_v28  ;;  %v7125_v18 = vmax.f32 %v7037_v7, %v7041_v61  ;;  %v9676_v63 = vpop.f32.mrb[56].mxu0 }
 0x472   : > { %v4071_v46 = vpop.f32.mrb[59].mxu1  ;;  %7477 = vst.msk [vmem:[%s12833_s17 + $0x28] sm:$0xf] %vm7465_vm6, %v8173_v36  ;;  %v7128_v33 = vmax.f32 %v7040_v30, %v7044_v23  ;;  %v7042_v59 = vmax.f32 %v6930_v57, 0.0  ;;  %v9788_v49 = vadd.f32 %v9676_v63, %v9220_v43  ;;  %v6535_v53 = vpop.f32.mrb[57].mxu0 }
 0x473   : > { %7184 = vst.msk [vmem:[#allocation2 + $0xd0] sm:$0xff] %vm7157_vm4, %v7127_v40  ;;  %7182 = vst.msk [vmem:[#allocation2 + $0xc0] sm:$0xff] %vm7157_vm4, %v7125_v18  ;;  %v9789_v38 = vadd.f32 %v6535_v53, %v4068_v37  ;;  %v9677_v11 = vpop.f32.mrb[58].mxu0 }
 0x474   : > { %7185 = vst.msk [vmem:[#allocation2 + $0xd8] sm:$0xff] %vm7157_vm4, %v7128_v33  ;;  %v7126_v8 = vmax.f32 %v7038_v32, %v7042_v59  ;;  %v9790_v48 = vadd.f32 %v9677_v11, %v9221_v41  ;;  %v6538_v51 = vpop.f32.mrb[59].mxu0  ;;  %v6935_v52 = vadd.f32 %v9788_v49, %v12802_v15 }
 0x475   : > { %v9791_v54 = vadd.f32 %v6538_v51, %v4071_v46  ;;  %v6933_v45 = vadd.f32 %v9789_v38, %v12802_v15 }
 0x476   : > { %7183 = vst.msk [vmem:[#allocation2 + $0xc8] sm:$0xff] %vm7157_vm4, %v7126_v8  ;;  %v7047_v26 = vmax.f32 %v6935_v52, 0.0  ;;  %v6936_v12 = vadd.f32 %v9790_v48, %v12802_v15 }
 0x477   : > { %v9224_v27 = vpop.f32.mrb[60].mxu1  ;;  %v6934_v31 = vadd.f32 %v9791_v54, %v12802_v15  ;;  %v7045_v17 = vmax.f32 %v6933_v45, 0.0 }
 0x478   : > { %v4084_v47 = vpop.f32.mrb[61].mxu1  ;;  %v7048_v62 = vmax.f32 %v6936_v12, 0.0 }
 0x479   : > { %v9225_v55 = vpop.f32.mrb[62].mxu1  ;;  %v9680_v39 = vpop.f32.mrb[60].mxu0  ;;  %v7046_v30 = vmax.f32 %v6934_v31, 0.0 }
 0x47a   : > { %v4087_v4 = vpop.f32.mrb[63].mxu1  ;;  %v9792_v24 = vadd.f32 %v9680_v39, %v9224_v27  ;;  %v6551_v50 = vpop.f32.mrb[61].mxu0 }
 0x47b   : > { %v7240_v10 = vld [vmem:[#allocation2 + $0xd0] ss:$2 sm:$0x3f]  ;;  %v7296_v60 = vld [vmem:[#allocation2 + $0xd1] ss:$2 sm:$0x3f]  ;;  %v9793_v20 = vadd.f32 %v6551_v50, %v4084_v47 }
 0x47c   : > { %v7338_v56 = vmax.f32 %v7240_v10, %v7296_v60  ;;  %v6939_v19 = vadd.f32 %v9792_v24, %v12802_v15  ;;  %v9681_v2 = vpop.f32.mrb[62].mxu0 }
 0x47d   : > { %v7238_v58 = vld [vmem:[#allocation2 + $0xc0] ss:$2 sm:$0xff]  ;;  %v7294_v44 = vld [vmem:[#allocation2 + $0xc1] ss:$2 sm:$0xff]  ;;  %v6937_v6 = vadd.f32 %v9793_v20, %v12802_v15  ;;  %v9794_v14 = vadd.f32 %v9681_v2, %v9225_v55  ;;  %v6554_v9 = vpop.f32.mrb[63].mxu0 }
 0x47e   : > { %v8176_v0 = vpack.c.bf16 %v7338_v56, %v7338_v56  ;;  %v7337_v25 = vmax.f32 %v7238_v58, %v7294_v44  ;;  %v7051_v35 = vmax.f32 %v6939_v19, 0.0  ;;  %v9795_v5 = vadd.f32 %v6554_v9, %v4087_v4 }
 0x47f   : > { %v9228_v16 = vpop.f32.mrb[64].mxu1  ;;  %v7049_v21 = vmax.f32 %v6937_v6, 0.0  ;;  %v6940_v13 = vadd.f32 %v9794_v14, %v12802_v15 }
 0x480   : > { %v4100_v1 = vpop.f32.mrb[65].mxu1  ;;  %7480 = vst.msk [vmem:[%s12833_s17 + $0x34] sm:$0x7] %vm7467_vm5, %v8176_v0  ;;  %v8175_v34 = vpack.c.bf16 %v7337_v25, %v7337_v25  ;;  %v7131_v29 = vmax.f32 %v7047_v26, %v7051_v35  ;;  %v6938_v22 = vadd.f32 %v9795_v5, %v12802_v15 }
 0x481   : > { %v9229_v3 = vpop.f32.mrb[66].mxu1  ;;  %v7129_v42 = vmax.f32 %v7045_v17, %v7049_v21  ;;  %v7052_v43 = vmax.f32 %v6940_v13, 0.0  ;;  %v9684_v28 = vpop.f32.mrb[64].mxu0 }
 0x482   : > { %v4103_v7 = vpop.f32.mrb[67].mxu1  ;;  %7479 = vst.msk [vmem:[%s12833_s17 + $0x30] sm:$0xf] %vm7465_vm6, %v8175_v34  ;;  %v7050_v61 = vmax.f32 %v6938_v22, 0.0  ;;  %v9796_v37 = vadd.f32 %v9684_v28, %v9228_v16  ;;  %v6567_v36 = vpop.f32.mrb[65].mxu0 }
 0x483   : > { %7188 = vst.msk [vmem:[#allocation2 + $0xf0] sm:$0xff] %vm7157_vm4, %v7131_v29  ;;  %7186 = vst.msk [vmem:[#allocation2 + $0xe0] sm:$0xff] %vm7157_vm4, %v7129_v42  ;;  %v7132_v40 = vmax.f32 %v7048_v62, %v7052_v43  ;;  %v9797_v23 = vadd.f32 %v6567_v36, %v4100_v1  ;;  %v9685_v57 = vpop.f32.mrb[66].mxu0 }
 0x484   : > { %v7130_v41 = vmax.f32 %v7046_v30, %v7050_v61  ;;  %v9798_v18 = vadd.f32 %v9685_v57, %v9229_v3  ;;  %v6570_v63 = vpop.f32.mrb[67].mxu0  ;;  %v6943_v49 = vadd.f32 %v9796_v37, %v12802_v15 }
 0x485   : > { %7189 = vst.msk [vmem:[#allocation2 + $0xf8] sm:$0xff] %vm7157_vm4, %v7132_v40  ;;  %v9799_v46 = vadd.f32 %v6570_v63, %v4103_v7  ;;  %v6941_v48 = vadd.f32 %v9797_v23, %v12802_v15 }
 0x486   : > { %7187 = vst.msk [vmem:[#allocation2 + $0xe8] sm:$0xff] %vm7157_vm4, %v7130_v41  ;;  %v6944_v51 = vadd.f32 %v9798_v18, %v12802_v15  ;;  %v7055_v10 = vmax.f32 %v6943_v49, 0.0 }
 0x487   : > { %v9232_v32 = vpop.f32.mrb[68].mxu1  ;;  %v6942_v60 = vadd.f32 %v9799_v46, %v12802_v15  ;;  %v7053_v12 = vmax.f32 %v6941_v48, 0.0 }
 0x488   : > { %v4116_v33 = vpop.f32.mrb[69].mxu1  ;;  %v7056_v31 = vmax.f32 %v6944_v51, 0.0 }
 0x489   : > { %v9233_v59 = vpop.f32.mrb[70].mxu1  ;;  %v9688_v53 = vpop.f32.mrb[68].mxu0  ;;  %v7054_v13 = vmax.f32 %v6942_v60, 0.0 }
 0x48a   : > { %v4119_v38 = vpop.f32.mrb[71].mxu1  ;;  %v9800_v11 = vadd.f32 %v9688_v53, %v9232_v32  ;;  %v6583_v8 = vpop.f32.mrb[69].mxu0 }
 0x48b   : > { %v9801_v54 = vadd.f32 %v6583_v8, %v4116_v33  ;;  %v9689_v27 = vpop.f32.mrb[70].mxu0 }
 0x48c   : > { %v7244_v47 = vld [vmem:[#allocation2 + $0xf0] ss:$2 sm:$0x3f]  ;;  %v7300_v52 = vld [vmem:[#allocation2 + $0xf1] ss:$2 sm:$0x3f]  ;;  %v6947_v55 = vadd.f32 %v9800_v11, %v12802_v15  ;;  %v9802_v39 = vadd.f32 %v9689_v27, %v9233_v59 }
 0x48d   : > { %v7340_v4 = vmax.f32 %v7244_v47, %v7300_v52  ;;  %v7242_v24 = vld [vmem:[#allocation2 + $0xe0] ss:$2 sm:$0xff]  ;;  %v7298_v50 = vld [vmem:[#allocation2 + $0xe1] ss:$2 sm:$0xff]  ;;  %v6945_v45 = vadd.f32 %v9801_v54, %v12802_v15  ;;  %v6586_v20 = vpop.f32.mrb[71].mxu0 }
 0x48e   : > { %v7339_v56 = vmax.f32 %v7242_v24, %v7298_v50  ;;  %v7059_v26 = vmax.f32 %v6947_v55, 0.0  ;;  %v6948_v19 = vadd.f32 %v9802_v39, %v12802_v15  ;;  %v9803_v2 = vadd.f32 %v6586_v20, %v4119_v38 }
 0x48f   : > { %v9236_v58 = vpop.f32.mrb[72].mxu1  ;;  %v8178_v44 = vpack.c.bf16 %v7340_v4, %v7340_v4  ;;  %v7057_v6 = vmax.f32 %v6945_v45, 0.0 }
 0x490   : > { %v4132_v14 = vpop.f32.mrb[73].mxu1  ;;  %v8177_v9 = vpack.c.bf16 %v7339_v56, %v7339_v56  ;;  %v7135_v0 = vmax.f32 %v7055_v10, %v7059_v26  ;;  %v7060_v25 = vmax.f32 %v6948_v19, 0.0  ;;  %v6946_v35 = vadd.f32 %v9803_v2, %v12802_v15 }
 0x491   : > { %v9237_v5 = vpop.f32.mrb[74].mxu1  ;;  %7482 = vst.msk [vmem:[%s12833_s17 + $0x3c] sm:$0x7] %vm7467_vm5, %v8178_v44  ;;  %v7133_v16 = vmax.f32 %v7053_v12, %v7057_v6  ;;  %v9692_v17 = vpop.f32.mrb[72].mxu0 }
 0x492   : > { %v4135_v21 = vpop.f32.mrb[75].mxu1  ;;  %7481 = vst.msk [vmem:[%s12833_s17 + $0x38] sm:$0xf] %vm7465_vm6, %v8177_v9  ;;  %v7136_v1 = vmax.f32 %v7056_v31, %v7060_v25  ;;  %v7058_v34 = vmax.f32 %v6946_v35, 0.0  ;;  %v9804_v29 = vadd.f32 %v9692_v17, %v9236_v58  ;;  %v6599_v22 = vpop.f32.mrb[73].mxu0 }
 0x493   : > { %7192 = vst.msk [vmem:[#allocation2 + $0x110] sm:$0xff] %vm7157_vm4, %v7135_v0  ;;  %7190 = vst.msk [vmem:[#allocation2 + $0x100] sm:$0xff] %vm7157_vm4, %v7133_v16  ;;  %v9805_v3 = vadd.f32 %v6599_v22, %v4132_v14  ;;  %v9693_v62 = vpop.f32.mrb[74].mxu0 }
 0x494   : > { %7193 = vst.msk [vmem:[#allocation2 + $0x118] sm:$0xff] %vm7157_vm4, %v7136_v1  ;;  %v7134_v42 = vmax.f32 %v7054_v13, %v7058_v34  ;;  %v9806_v43 = vadd.f32 %v9693_v62, %v9237_v5  ;;  %v6602_v28 = vpop.f32.mrb[75].mxu0  ;;  %v6951_v37 = vadd.f32 %v9804_v29, %v12802_v15  ;;  %v13021_v34 = vld [vmem:[%s13096_s2] ss:$0 sm:$0xff] }
 0x495   : > { %v9807_v7 = vadd.f32 %v6602_v28, %v4135_v21  ;;  %v6949_v46 = vadd.f32 %v9805_v3, %v12802_v15 }
 0x496   : > { %7191 = vst.msk [vmem:[#allocation2 + $0x108] sm:$0xff] %vm7157_vm4, %v7134_v42  ;;  %v7063_v59 = vmax.f32 %v6951_v37, 0.0  ;;  %v6952_v8 = vadd.f32 %v9806_v43, %v12802_v15 }
 0x497   : > { %v9240_v30 = vpop.f32.mrb[76].mxu1  ;;  %v6950_v48 = vadd.f32 %v9807_v7, %v12802_v15  ;;  %v7061_v24 = vmax.f32 %v6949_v46, 0.0 }
 0x498   : > { %v4148_v61 = vpop.f32.mrb[77].mxu1  ;;  %v7064_v19 = vmax.f32 %v6952_v8, 0.0 }
 0x499   : > { %v9241_v36 = vpop.f32.mrb[78].mxu1  ;;  %v9696_v40 = vpop.f32.mrb[76].mxu0  ;;  %v7062_v31 = vmax.f32 %v6950_v48, 0.0 }
 0x49a   : > { %v4151_v23 = vpop.f32.mrb[79].mxu1  ;;  %v9808_v57 = vadd.f32 %v9696_v40, %v9240_v30  ;;  %v6615_v41 = vpop.f32.mrb[77].mxu0 }
 0x49b   : > { %v7248_v18 = vld [vmem:[#allocation2 + $0x110] ss:$2 sm:$0x3f]  ;;  %v7304_v63 = vld [vmem:[#allocation2 + $0x111] ss:$2 sm:$0x3f]  ;;  %v9809_v32 = vadd.f32 %v6615_v41, %v4148_v61 }
 0x49c   : > { %v7342_v33 = vmax.f32 %v7248_v18, %v7304_v63  ;;  %v6955_v49 = vadd.f32 %v9808_v57, %v12802_v15  ;;  %v9697_v53 = vpop.f32.mrb[78].mxu0 }
 0x49d   : > { %v7246_v38 = vld [vmem:[#allocation2 + $0x100] ss:$2 sm:$0xff]  ;;  %v7302_v11 = vld [vmem:[#allocation2 + $0x101] ss:$2 sm:$0xff]  ;;  %v6953_v51 = vadd.f32 %v9809_v32, %v12802_v15  ;;  %v9810_v54 = vadd.f32 %v9697_v53, %v9241_v36  ;;  %v6618_v27 = vpop.f32.mrb[79].mxu0 }
 0x49e   : > { %v8180_v47 = vpack.c.bf16 %v7342_v33, %v7342_v33  ;;  %v7341_v52 = vmax.f32 %v7246_v38, %v7302_v11  ;;  %v7067_v55 = vmax.f32 %v6955_v49, 0.0  ;;  %v9811_v39 = vadd.f32 %v6618_v27, %v4151_v23 }
 0x49f   : > { %v9244_v4 = vpop.f32.mrb[80].mxu1  ;;  %v7065_v50 = vmax.f32 %v6953_v51, 0.0  ;;  %v6956_v10 = vadd.f32 %v9810_v54, %v12802_v15 }
 0x4a0   : > { %v4164_v60 = vpop.f32.mrb[81].mxu1  ;;  %7484 = vst.msk [vmem:[%s12833_s17 + $0x44] sm:$0x7] %vm7467_vm5, %v8180_v47  ;;  %v8179_v45 = vpack.c.bf16 %v7341_v52, %v7341_v52  ;;  %v7139_v20 = vmax.f32 %v7063_v59, %v7067_v55  ;;  %v6954_v56 = vadd.f32 %v9811_v39, %v12802_v15 }
 0x4a1   : > { %v9245_v26 = vpop.f32.mrb[82].mxu1  ;;  %v7137_v2 = vmax.f32 %v7061_v24, %v7065_v50  ;;  %v7068_v58 = vmax.f32 %v6956_v10, 0.0  ;;  %v9700_v44 = vpop.f32.mrb[80].mxu0 }
 0x4a2   : > { %v4167_v12 = vpop.f32.mrb[83].mxu1  ;;  %7483 = vst.msk [vmem:[%s12833_s17 + $0x40] sm:$0xf] %vm7465_vm6, %v8179_v45  ;;  %v7066_v6 = vmax.f32 %v6954_v56, 0.0  ;;  %v9812_v14 = vadd.f32 %v9700_v44, %v9244_v4  ;;  %v6631_v9 = vpop.f32.mrb[81].mxu0 }
 0x4a3   : > { %7196 = vst.msk [vmem:[#allocation2 + $0x130] sm:$0xff] %vm7157_vm4, %v7139_v20  ;;  %7194 = vst.msk [vmem:[#allocation2 + $0x120] sm:$0xff] %vm7157_vm4, %v7137_v2  ;;  %v7140_v0 = vmax.f32 %v7064_v19, %v7068_v58  ;;  %v9813_v25 = vadd.f32 %v6631_v9, %v4164_v60  ;;  %v9701_v35 = vpop.f32.mrb[82].mxu0 }
 0x4a4   : > { %v7138_v15 = vmax.f32 %v7062_v31, %v7066_v6  ;;  %v9814_v5 = vadd.f32 %v9701_v35, %v9245_v26  ;;  %v6634_v16 = vpop.f32.mrb[83].mxu0  ;;  %v6959_v29 = vadd.f32 %v13021_v34, %v9812_v14 }
 0x4a5   : > { %7197 = vst.msk [vmem:[#allocation2 + $0x138] sm:$0xff] %vm7157_vm4, %v7140_v0  ;;  %v9815_v17 = vadd.f32 %v6634_v16, %v4167_v12  ;;  %v6957_v43 = vadd.f32 %v13021_v34, %v9813_v25 }
 0x4a6   : > { %7195 = vst.msk [vmem:[#allocation2 + $0x128] sm:$0xff] %vm7157_vm4, %v7138_v15  ;;  %v6960_v28 = vadd.f32 %v13021_v34, %v9814_v5  ;;  %v7071_v18 = vmax.f32 %v6959_v29, 0.0 }
 0x4a7   : > { %v9248_v21 = vpop.f32.mrb[84].mxu1  ;;  %v6958_v63 = vadd.f32 %v13021_v34, %v9815_v17  ;;  %v7069_v8 = vmax.f32 %v6957_v43, 0.0 }
 0x4a8   : > { %v4180_v13 = vpop.f32.mrb[85].mxu1  ;;  %v7072_v48 = vmax.f32 %v6960_v28, 0.0 }
 0x4a9   : > { %v9249_v1 = vpop.f32.mrb[86].mxu1  ;;  %v9704_v22 = vpop.f32.mrb[84].mxu0  ;;  %v7070_v10 = vmax.f32 %v6958_v63, 0.0 }
 0x4aa   : > { %v4183_v3 = vpop.f32.mrb[87].mxu1  ;;  %v9816_v62 = vadd.f32 %v9704_v22, %v9248_v21  ;;  %v6647_v42 = vpop.f32.mrb[85].mxu0 }
 0x4ab   : > { %v9817_v7 = vadd.f32 %v6647_v42, %v4180_v13  ;;  %v9705_v30 = vpop.f32.mrb[86].mxu0 }
 0x4ac   : > { %v7252_v61 = vld [vmem:[#allocation2 + $0x130] ss:$2 sm:$0x3f]  ;;  %v7308_v37 = vld [vmem:[#allocation2 + $0x131] ss:$2 sm:$0x3f]  ;;  %v6963_v36 = vadd.f32 %v13021_v34, %v9816_v62  ;;  %v9818_v40 = vadd.f32 %v9705_v30, %v9249_v1 }
 0x4ad   : > { %v7344_v23 = vmax.f32 %v7252_v61, %v7308_v37  ;;  %v7250_v57 = vld [vmem:[#allocation2 + $0x120] ss:$2 sm:$0xff]  ;;  %v7306_v41 = vld [vmem:[#allocation2 + $0x121] ss:$2 sm:$0xff]  ;;  %v6961_v46 = vadd.f32 %v13021_v34, %v9817_v7  ;;  %v6650_v32 = vpop.f32.mrb[87].mxu0 }
 0x4ae   : > { %v7343_v33 = vmax.f32 %v7250_v57, %v7306_v41  ;;  %v7075_v59 = vmax.f32 %v6963_v36, 0.0  ;;  %v6964_v49 = vadd.f32 %v13021_v34, %v9818_v40  ;;  %v9819_v53 = vadd.f32 %v6650_v32, %v4183_v3 }
 0x4af   : > { %v9252_v38 = vpop.f32.mrb[88].mxu1  ;;  %v8182_v11 = vpack.c.bf16 %v7344_v23, %v7344_v23  ;;  %v7073_v51 = vmax.f32 %v6961_v46, 0.0 }
 0x4b0   : > { %v4196_v54 = vpop.f32.mrb[89].mxu1  ;;  %v8181_v27 = vpack.c.bf16 %v7343_v33, %v7343_v33  ;;  %v7143_v47 = vmax.f32 %v7071_v18, %v7075_v59  ;;  %v7076_v52 = vmax.f32 %v6964_v49, 0.0  ;;  %v6962_v55 = vadd.f32 %v13021_v34, %v9819_v53 }
 0x4b1   : > { %v9253_v39 = vpop.f32.mrb[90].mxu1  ;;  %7486 = vst.msk [vmem:[%s12833_s17 + $0x4c] sm:$0x7] %vm7467_vm5, %v8182_v11  ;;  %v7141_v4 = vmax.f32 %v7069_v8, %v7073_v51  ;;  %v9708_v24 = vpop.f32.mrb[88].mxu0 }
 0x4b2   : > { %v4199_v50 = vpop.f32.mrb[91].mxu1  ;;  %7485 = vst.msk [vmem:[%s12833_s17 + $0x48] sm:$0xf] %vm7465_vm6, %v8181_v27  ;;  %v7144_v60 = vmax.f32 %v7072_v48, %v7076_v52  ;;  %v7074_v45 = vmax.f32 %v6962_v55, 0.0  ;;  %v9820_v20 = vadd.f32 %v9708_v24, %v9252_v38  ;;  %v6663_v56 = vpop.f32.mrb[89].mxu0 }
 0x4b3   : > { %7200 = vst.msk [vmem:[#allocation2 + $0x150] sm:$0xff] %vm7157_vm4, %v7143_v47  ;;  %7198 = vst.msk [vmem:[#allocation2 + $0x140] sm:$0xff] %vm7157_vm4, %v7141_v4  ;;  %v9821_v26 = vadd.f32 %v6663_v56, %v4196_v54  ;;  %v9709_v19 = vpop.f32.mrb[90].mxu0 }
 0x4b4   : > { %7201 = vst.msk [vmem:[#allocation2 + $0x158] sm:$0xff] %vm7157_vm4, %v7144_v60  ;;  %v7142_v2 = vmax.f32 %v7070_v10, %v7074_v45  ;;  %v9822_v58 = vadd.f32 %v9709_v19, %v9253_v39  ;;  %v6666_v44 = vpop.f32.mrb[91].mxu0  ;;  %v6967_v14 = vadd.f32 %v13021_v34, %v9820_v20 }
 0x4b5   : > { %v9823_v12 = vadd.f32 %v6666_v44, %v4199_v50  ;;  %v6965_v17 = vadd.f32 %v13021_v34, %v9821_v26 }
 0x4b6   : > { %7199 = vst.msk [vmem:[#allocation2 + $0x148] sm:$0xff] %vm7157_vm4, %v7142_v2  ;;  %v7079_v1 = vmax.f32 %v6967_v14, 0.0  ;;  %v6968_v42 = vadd.f32 %v13021_v34, %v9822_v58 }
 0x4b7   : > { %v9256_v31 = vpop.f32.mrb[92].mxu1  ;;  %v6966_v43 = vadd.f32 %v13021_v34, %v9823_v12  ;;  %v7077_v57 = vmax.f32 %v6965_v17, 0.0 }
 0x4b8   : > { %v4212_v6 = vpop.f32.mrb[93].mxu1  ;;  %v7080_v49 = vmax.f32 %v6968_v42, 0.0 }
 0x4b9   : > { %v9257_v9 = vpop.f32.mrb[94].mxu1  ;;  %v9712_v0 = vpop.f32.mrb[92].mxu0  ;;  %v7078_v48 = vmax.f32 %v6966_v43, 0.0 }
 0x4ba   : > { %v4215_v25 = vpop.f32.mrb[95].mxu1  ;;  %v9824_v35 = vadd.f32 %v9712_v0, %v9256_v31  ;;  %v6679_v15 = vpop.f32.mrb[93].mxu0 }
 0x4bb   : > { %v7256_v5 = vld [vmem:[#allocation2 + $0x150] ss:$2 sm:$0x3f]  ;;  %v7312_v16 = vld [vmem:[#allocation2 + $0x151] ss:$2 sm:$0x3f]  ;;  %v9825_v21 = vadd.f32 %v6679_v15, %v4212_v6 }
 0x4bc   : > { %v7346_v13 = vmax.f32 %v7256_v5, %v7312_v16  ;;  %v6971_v29 = vadd.f32 %v13021_v34, %v9824_v35  ;;  %v9713_v22 = vpop.f32.mrb[94].mxu0 }
 0x4bd   : > { %v7254_v3 = vld [vmem:[#allocation2 + $0x140] ss:$2 sm:$0xff]  ;;  %v7310_v62 = vld [vmem:[#allocation2 + $0x141] ss:$2 sm:$0xff]  ;;  %v6969_v28 = vadd.f32 %v13021_v34, %v9825_v21  ;;  %v9826_v7 = vadd.f32 %v9713_v22, %v9257_v9  ;;  %v6682_v30 = vpop.f32.mrb[95].mxu0 }
 0x4be   : > { %v8184_v61 = vpack.c.bf16 %v7346_v13, %v7346_v13  ;;  %v7345_v37 = vmax.f32 %v7254_v3, %v7310_v62  ;;  %v7083_v36 = vmax.f32 %v6971_v29, 0.0  ;;  %v9827_v40 = vadd.f32 %v6682_v30, %v4215_v25 }
 0x4bf   : > { %v9260_v23 = vpop.f32.mrb[96].mxu1  ;;  %v7081_v41 = vmax.f32 %v6969_v28, 0.0  ;;  %v6972_v18 = vadd.f32 %v13021_v34, %v9826_v7 }
 0x4c0   : > { %v4228_v63 = vpop.f32.mrb[97].mxu1  ;;  %7488 = vst.msk [vmem:[%s12833_s17 + $0x54] sm:$0x7] %vm7467_vm5, %v8184_v61  ;;  %v8183_v46 = vpack.c.bf16 %v7345_v37, %v7345_v37  ;;  %v7147_v32 = vmax.f32 %v7079_v1, %v7083_v36  ;;  %v6970_v33 = vadd.f32 %v13021_v34, %v9827_v40 }
 0x4c1   : > { %v9261_v59 = vpop.f32.mrb[98].mxu1  ;;  %v7145_v53 = vmax.f32 %v7077_v57, %v7081_v41  ;;  %v7084_v38 = vmax.f32 %v6972_v18, 0.0  ;;  %v9716_v11 = vpop.f32.mrb[96].mxu0 }
 0x4c2   : > { %v4231_v8 = vpop.f32.mrb[99].mxu1  ;;  %7487 = vst.msk [vmem:[%s12833_s17 + $0x50] sm:$0xf] %vm7465_vm6, %v8183_v46  ;;  %v7082_v51 = vmax.f32 %v6970_v33, 0.0  ;;  %v9828_v54 = vadd.f32 %v9716_v11, %v9260_v23  ;;  %v6695_v27 = vpop.f32.mrb[97].mxu0 }
 0x4c3   : > { %7204 = vst.msk [vmem:[#allocation2 + $0x170] sm:$0xff] %vm7157_vm4, %v7147_v32  ;;  %7202 = vst.msk [vmem:[#allocation2 + $0x160] sm:$0xff] %vm7157_vm4, %v7145_v53  ;;  %v7148_v47 = vmax.f32 %v7080_v49, %v7084_v38  ;;  %v9829_v52 = vadd.f32 %v6695_v27, %v4228_v63  ;;  %v9717_v55 = vpop.f32.mrb[98].mxu0 }
 0x4c4   : > { %v7146_v39 = vmax.f32 %v7078_v48, %v7082_v51  ;;  %v9830_v4 = vadd.f32 %v9717_v55, %v9261_v59  ;;  %v6698_v24 = vpop.f32.mrb[99].mxu0  ;;  %v6975_v20 = vadd.f32 %v13021_v34, %v9828_v54 }
 0x4c5   : > { %7205 = vst.msk [vmem:[#allocation2 + $0x178] sm:$0xff] %vm7157_vm4, %v7148_v47  ;;  %v9831_v50 = vadd.f32 %v6698_v24, %v4231_v8  ;;  %v6973_v58 = vadd.f32 %v13021_v34, %v9829_v52 }
 0x4c6   : > { %7203 = vst.msk [vmem:[#allocation2 + $0x168] sm:$0xff] %vm7157_vm4, %v7146_v39  ;;  %v6976_v44 = vadd.f32 %v13021_v34, %v9830_v4  ;;  %v7087_v5 = vmax.f32 %v6975_v20, 0.0 }
 0x4c7   : > { %v9264_v10 = vpop.f32.mrb[100].mxu1  ;;  %v6974_v16 = vadd.f32 %v13021_v34, %v9831_v50  ;;  %v7085_v42 = vmax.f32 %v6973_v58, 0.0 }
 0x4c8   : > { %v4244_v60 = vpop.f32.mrb[101].mxu1  ;;  %v7088_v43 = vmax.f32 %v6976_v44, 0.0 }
 0x4c9   : > { %v9265_v45 = vpop.f32.mrb[102].mxu1  ;;  %v9720_v56 = vpop.f32.mrb[100].mxu0  ;;  %v7086_v18 = vmax.f32 %v6974_v16, 0.0 }
 0x4ca   : > { %v4247_v26 = vpop.f32.mrb[103].mxu1  ;;  %v9832_v19 = vadd.f32 %v9720_v56, %v9264_v10  ;;  %v6711_v2 = vpop.f32.mrb[101].mxu0 }
 0x4cb   : > { %v9833_v12 = vadd.f32 %v6711_v2, %v4244_v60  ;;  %v9721_v31 = vpop.f32.mrb[102].mxu0 }
 0x4cc   : > { %v7260_v6 = vld [vmem:[#allocation2 + $0x170] ss:$2 sm:$0x3f]  ;;  %v7316_v14 = vld [vmem:[#allocation2 + $0x171] ss:$2 sm:$0x3f]  ;;  %v6979_v9 = vadd.f32 %v13021_v34, %v9832_v19  ;;  %v9834_v0 = vadd.f32 %v9721_v31, %v9265_v45 }
 0x4cd   : > { %v7348_v25 = vmax.f32 %v7260_v6, %v7316_v14  ;;  %v7258_v35 = vld [vmem:[#allocation2 + $0x160] ss:$2 sm:$0xff]  ;;  %v7314_v15 = vld [vmem:[#allocation2 + $0x161] ss:$2 sm:$0xff]  ;;  %v6977_v17 = vadd.f32 %v13021_v34, %v9833_v12  ;;  %v6714_v21 = vpop.f32.mrb[103].mxu0 }
 0x4ce   : > { %v7347_v13 = vmax.f32 %v7258_v35, %v7314_v15  ;;  %v7091_v1 = vmax.f32 %v6979_v9, 0.0  ;;  %v6980_v29 = vadd.f32 %v13021_v34, %v9834_v0  ;;  %v9835_v22 = vadd.f32 %v6714_v21, %v4247_v26 }
 0x4cf   : > { %v9268_v3 = vpop.f32.mrb[104].mxu1  ;;  %v8186_v62 = vpack.c.bf16 %v7348_v25, %v7348_v25  ;;  %v7089_v28 = vmax.f32 %v6977_v17, 0.0 }
 0x4d0   : > { %v4260_v7 = vpop.f32.mrb[105].mxu1  ;;  %v8185_v30 = vpack.c.bf16 %v7347_v13, %v7347_v13  ;;  %v7151_v61 = vmax.f32 %v7087_v5, %v7091_v1  ;;  %v7092_v37 = vmax.f32 %v6980_v29, 0.0  ;;  %v6978_v36 = vadd.f32 %v13021_v34, %v9835_v22 }
 0x4d1   : > { %v9269_v40 = vpop.f32.mrb[106].mxu1  ;;  %7490 = vst.msk [vmem:[%s12833_s17 + $0x5c] sm:$0x7] %vm7467_vm5, %v8186_v62  ;;  %v7149_v23 = vmax.f32 %v7085_v42, %v7089_v28  ;;  %v9724_v57 = vpop.f32.mrb[104].mxu0 }
 0x4d2   : > { %v4263_v41 = vpop.f32.mrb[107].mxu1  ;;  %7489 = vst.msk [vmem:[%s12833_s17 + $0x58] sm:$0xf] %vm7465_vm6, %v8185_v30  ;;  %v7152_v63 = vmax.f32 %v7088_v43, %v7092_v37  ;;  %v7090_v46 = vmax.f32 %v6978_v36, 0.0  ;;  %v9836_v32 = vadd.f32 %v9724_v57, %v9268_v3  ;;  %v6727_v33 = vpop.f32.mrb[105].mxu0 }
 0x4d3   : > { %7208 = vst.msk [vmem:[#allocation2 + $0x190] sm:$0xff] %vm7157_vm4, %v7151_v61  ;;  %7206 = vst.msk [vmem:[#allocation2 + $0x180] sm:$0xff] %vm7157_vm4, %v7149_v23  ;;  %v9837_v59 = vadd.f32 %v6727_v33, %v4260_v7  ;;  %v9725_v49 = vpop.f32.mrb[106].mxu0 }
 0x4d4   : > { %7209 = vst.msk [vmem:[#allocation2 + $0x198] sm:$0xff] %vm7157_vm4, %v7152_v63  ;;  %v7150_v53 = vmax.f32 %v7086_v18, %v7090_v46  ;;  %v9838_v38 = vadd.f32 %v9725_v49, %v9269_v40  ;;  %v6730_v11 = vpop.f32.mrb[107].mxu0  ;;  %v6983_v54 = vadd.f32 %v13021_v34, %v9836_v32 }
 0x4d5   : > { %v9839_v8 = vadd.f32 %v6730_v11, %v4263_v41  ;;  %v6981_v50 = vadd.f32 %v13021_v34, %v9837_v59 }
 0x4d6   : > { %7207 = vst.msk [vmem:[#allocation2 + $0x188] sm:$0xff] %vm7157_vm4, %v7150_v53  ;;  %v7095_v45 = vmax.f32 %v6983_v54, 0.0  ;;  %v6984_v2 = vadd.f32 %v13021_v34, %v9838_v38 }
 0x4d7   : > { %v9272_v48 = vpop.f32.mrb[108].mxu1  ;;  %v6982_v58 = vadd.f32 %v13021_v34, %v9839_v8  ;;  %v7093_v25 = vmax.f32 %v6981_v50, 0.0 }
 0x4d8   : > { %v4276_v51 = vpop.f32.mrb[109].mxu1  ;;  %v7096_v21 = vmax.f32 %v6984_v2, 0.0 }
 0x4d9   : > { %v9273_v27 = vpop.f32.mrb[110].mxu1  ;;  %v9728_v47 = vpop.f32.mrb[108].mxu0  ;;  %v7094_v29 = vmax.f32 %v6982_v58, 0.0 }
 0x4da   : > { %v4279_v52 = vpop.f32.mrb[111].mxu1  ;;  %v9840_v55 = vadd.f32 %v9728_v47, %v9272_v48  ;;  %v6743_v39 = vpop.f32.mrb[109].mxu0 }
 0x4db   : > { %v7264_v4 = vld [vmem:[#allocation2 + $0x190] ss:$2 sm:$0x3f]  ;;  %v7320_v24 = vld [vmem:[#allocation2 + $0x191] ss:$2 sm:$0x3f]  ;;  %v9841_v10 = vadd.f32 %v6743_v39, %v4276_v51 }
 0x4dc   : > { %v7350_v60 = vmax.f32 %v7264_v4, %v7320_v24  ;;  %v6987_v20 = vadd.f32 %v13021_v34, %v9840_v55  ;;  %v9729_v56 = vpop.f32.mrb[110].mxu0 }
 0x4dd   : > { %v7262_v26 = vld [vmem:[#allocation2 + $0x180] ss:$2 sm:$0xff]  ;;  %v7318_v19 = vld [vmem:[#allocation2 + $0x181] ss:$2 sm:$0xff]  ;;  %v6985_v44 = vadd.f32 %v13021_v34, %v9841_v10  ;;  %v9842_v12 = vadd.f32 %v9729_v56, %v9273_v27  ;;  %v6746_v31 = vpop.f32.mrb[111].mxu0 }
 0x4de   : > { %v8188_v6 = vpack.c.bf16 %v7350_v60, %v7350_v60  ;;  %v7349_v14 = vmax.f32 %v7262_v26, %v7318_v19  ;;  %v7099_v9 = vmax.f32 %v6987_v20, 0.0  ;;  %v9843_v0 = vadd.f32 %v6746_v31, %v4279_v52 }
 0x4df   : > { %v7097_v35 = vmax.f32 %v6985_v44, 0.0  ;;  %v6988_v15 = vadd.f32 %v13021_v34, %v9842_v12 }
 0x4e0   : > { %7492 = vst.msk [vmem:[%s12833_s17 + $0x64] sm:$0x7] %vm7467_vm5, %v8188_v6  ;;  %v8187_v5 = vpack.c.bf16 %v7349_v14, %v7349_v14  ;;  %v7155_v16 = vmax.f32 %v7095_v45, %v7099_v9  ;;  %v6986_v17 = vadd.f32 %v13021_v34, %v9843_v0 }
 0x4e1   : > { %v7153_v13 = vmax.f32 %v7093_v25, %v7097_v35  ;;  %v7100_v1 = vmax.f32 %v6988_v15, 0.0 }
 0x4e2   : > { %7491 = vst.msk [vmem:[%s12833_s17 + $0x60] sm:$0xf] %vm7465_vm6, %v8187_v5  ;;  %v7098_v22 = vmax.f32 %v6986_v17, 0.0 }
 0x4e3   : > { %7212 = vst.msk [vmem:[#allocation2 + $0x1b0] sm:$0xff] %vm7157_vm4, %v7155_v16  ;;  %7210 = vst.msk [vmem:[#allocation2 + $0x1a0] sm:$0xff] %vm7157_vm4, %v7153_v13  ;;  %v7156_v3 = vmax.f32 %v7096_v21, %v7100_v1 }
 0x4e4   : > { %v7154_v62 = vmax.f32 %v7094_v29, %v7098_v22 }
 0x4e5   : > { %7213 = vst.msk [vmem:[#allocation2 + $0x1b8] sm:$0xff] %vm7157_vm4, %v7156_v3 }
 0x4e6   : > { %7211 = vst.msk [vmem:[#allocation2 + $0x1a8] sm:$0xff] %vm7157_vm4, %v7154_v62 }
 0x4ec   : > { %v7268_v34 = vld [vmem:[#allocation2 + $0x1b0] ss:$2 sm:$0x3f]  ;;  %v7324_v42 = vld [vmem:[#allocation2 + $0x1b1] ss:$2 sm:$0x3f] }
 0x4ed   : > { %v7352_v43 = vmax.f32 %v7268_v34, %v7324_v42  ;;  %v7266_v28 = vld [vmem:[#allocation2 + $0x1a0] ss:$2 sm:$0xff]  ;;  %v7322_v7 = vld [vmem:[#allocation2 + $0x1a1] ss:$2 sm:$0xff] }
 0x4ee   : > { %v7351_v30 = vmax.f32 %v7266_v28, %v7322_v7 }
 0x4ef   : > { %v8190_v61 = vpack.c.bf16 %v7352_v43, %v7352_v43 }
 0x4f0   : > { %v8189_v37 = vpack.c.bf16 %v7351_v30, %v7351_v30 }
 0x4f1   : > { %7494 = vst.msk [vmem:[%s12833_s17 + $0x6c] sm:$0x7] %vm7467_vm5, %v8190_v61 }
 0x4f2   : > { %7493 = vst.msk [vmem:[%s12833_s17 + $0x68] sm:$0xf] %vm7465_vm6, %v8189_v37 }
 0x4f3 PF: > { %s13_s12 = sadd.s32 1, %s10771_s12  }
 0x4f4   : > { %p10_p4 = scmp.ge.s32.totalorder %s13_s12, 4  }
 0x4f6   :  { %12 = sbr.rel (!%p10_p4) target bundleno = 1 (0x1), region = 125 }

</bundles_post_ra>
